<compile_context>
chip_gen: v6e
topology: v6e:2x2x1
jax: 0.10.0
libtpu: 0.0.40
codegen_flags: <defaults>
</compile_context>

<pallas_src>
import functools

import jax
import jax.numpy as jnp
from jax.experimental import pallas as pl
from jax.experimental.pallas import tpu as pltpu

_VMEM_LIMIT = 32 * 1024 * 1024
_CIN_PAD_V1 = 8      # pad Cin 3 -> 8   (sublane alignment of the V1 weight tile)
_COUT_PAD_V1 = 128   # pad Cout 64 -> 128 (lane-aligned V1 conv/matmul tiles)


# ----------------------------------------------------------------------------
# Pallas kernels
# ----------------------------------------------------------------------------

def _tree_max(vals):
    """Pairwise (tree) max reduction over a list of arrays."""
    vals = list(vals)
    while len(vals) > 1:
        nxt = [jnp.maximum(vals[i], vals[i + 1]) for i in range(0, len(vals) - 1, 2)]
        if len(vals) % 2:
            nxt.append(vals[-1])
        vals = nxt
    return vals[0]


def _corblock_kernel(x_ref, w_ref, b_ref, o_ref, *, k, oh, ow, pad, cout_keep):
    """Fused CORblock_Z for one image:
         (optional in-VMEM zero pad + bf16 cast of the input)
         conv(k x k, stride 1, 'valid')                        [bf16 MXU, f32 acc]
         + bias + ReLU                                         [f32 VPU]
         + MaxPool2d(kernel=3, stride=2, padding=1)            [f32 VPU, in VMEM]
    """
    cout = w_ref.shape[-1]
    cin = x_ref.shape[-1]
    x = x_ref[0].astype(jnp.bfloat16)                  # (hin, win, cin) bf16

    # ---- in-VMEM conv padding (pad=1 for the 3x3 blocks; V1 is pre-padded) ---
    if pad:
        zr = jnp.zeros((pad, x.shape[1], cin), jnp.bfloat16)
        x = jnp.concatenate([zr, x, zr], axis=0)
        zc = jnp.zeros((x.shape[0], pad, cin), jnp.bfloat16)
        x = jnp.concatenate([zc, x, zc], axis=1)       # (oh+k-1, ow+k-1, cin)

    # ---- conv: accumulate k*k shifted matmuls (no HBM im2col) ---------------
    acc = jnp.zeros((oh * ow, cout), jnp.float32)
    for i in range(k):
        for j in range(k):
            patch = x[i:i + oh, j:j + ow, :].reshape(oh * ow, cin)     # bf16
            acc = acc + jnp.dot(patch, w_ref[i * k + j],
                                preferred_element_type=jnp.float32)

    # ---- bias + ReLU (f32 epilogue) ------------------------------------------
    y = jnp.maximum(acc + b_ref[...], 0.0).reshape(oh, ow, cout)

    # ---- MaxPool2d(3, 2, 1) ---------------------------------------------------
    # Zero padding is exact because y >= 0 post-ReLU (matches -inf padding).
    zr = jnp.zeros((1, ow, cout), jnp.float32)
    yp = jnp.concatenate([zr, y, zr], axis=0)                  # (oh+2, ow,   C)
    zc = jnp.zeros((oh + 2, 1, cout), jnp.float32)
    yp = jnp.concatenate([zc, yp, zc], axis=1)                 # (oh+2, ow+2, C)

    wins = [yp[di:di + oh, dj:dj + ow, :] for di in range(3) for dj in range(3)]
    m = _tree_max(wins)                                        # stride-1 3x3 max
    ph, pw = oh // 2, ow // 2
    pooled = m.reshape(ph, 2, ow, cout)[:, 0]                  # rows 0,2,4,...
    pooled = pooled.reshape(ph, pw, 2, cout)[:, :, 0]          # cols 0,2,4,...
    o_ref[0] = pooled[..., :cout_keep]                         # drop Cout padding


def _head_kernel(it_ref, w_ref, b_ref, h_ref, out_ref):
    """AdaptiveAvgPool2d(1) + Flatten + Linear (decoder), fused, f32."""
    hw = it_ref.shape[1]
    h = jnp.sum(it_ref[...], axis=1) * (1.0 / hw)              # (N, C)
    h_ref[...] = h
    out_ref[...] = (
        jnp.dot(h, w_ref[...], preferred_element_type=jnp.float32) + b_ref[...]
    )


# ----------------------------------------------------------------------------
# pallas_call wrappers
# ----------------------------------------------------------------------------

def pallas_corblock(x, w_taps, bias, *, k, oh, ow, pad, cout_keep=None):
    """x: (N, hin, win, Cin) activation (f32, unpadded, pad=1)   -- V2/V4/IT, or
          (N, oh+k-1, ow+k-1, Cin) bf16 pre-padded input (pad=0) -- V1.
       w_taps: (k*k, Cin, Cout) bf16 tap slabs, bias: (1, Cout) f32.
       Returns pooled activation (N, oh//2, ow//2, cout_keep) f32."""
    assert oh % 2 == 0 and ow % 2 == 0   # TODO(synk): odd conv sizes unsupported
    n, hin, win, cin = x.shape
    cout = w_taps.shape[-1]
    if cout_keep is None:
        cout_keep = cout
    ph, pw = oh // 2, ow // 2
    kern = functools.partial(_corblock_kernel, k=k, oh=oh, ow=ow,
                             pad=pad, cout_keep=cout_keep)
    return pl.pallas_call(
        kern,
        out_shape=jax.ShapeDtypeStruct((n, ph, pw, cout_keep), jnp.float32),
        grid=(n,),
        in_specs=[
            pl.BlockSpec((1, hin, win, cin), lambda b: (b, 0, 0, 0)),
            pl.BlockSpec((k * k, cin, cout), lambda b: (0, 0, 0)),
            pl.BlockSpec((1, cout), lambda b: (0, 0)),
        ],
        out_specs=pl.BlockSpec((1, ph, pw, cout_keep), lambda b: (b, 0, 0, 0)),
        compiler_params=pltpu.CompilerParams(
            dimension_semantics=("parallel",),
            vmem_limit_bytes=_VMEM_LIMIT,
        ),
    )(x, w_taps, bias)


def pallas_head(it_flat, w_pad, b_pad):
    n, _, c = it_flat.shape
    dpad = w_pad.shape[1]
    vm = pl.BlockSpec(memory_space=pltpu.MemorySpace.VMEM)
    return pl.pallas_call(
        _head_kernel,
        out_shape=(
            jax.ShapeDtypeStruct((n, c), jnp.float32),
            jax.ShapeDtypeStruct((n, dpad), jnp.float32),
        ),
        in_specs=[vm, vm, vm],
        out_specs=(vm, vm),
        compiler_params=pltpu.CompilerParams(vmem_limit_bytes=_VMEM_LIMIT),
    )(it_flat, w_pad, b_pad.reshape(1, dpad))


# ----------------------------------------------------------------------------
# Wrapper-side layout prep (tiny tensors only; no HBM im2col, no act repacking)
# ----------------------------------------------------------------------------

def _prep_w_std(w_oihw):
    """(Cout, Cin, k, k) torch layout -> (k*k, Cin, Cout) bf16 tap slabs."""
    k = w_oihw.shape[-1]
    cout = w_oihw.shape[0]
    return (jnp.transpose(w_oihw, (2, 3, 1, 0))
            .reshape(k * k, -1, cout).astype(jnp.bfloat16))


def _prep_v1_input(x_nhwc):
    """Pad Cin 3->8, spatial pad 3, parity-pack (space-to-depth) so the 7x7
       stride-2 conv becomes a 4x4 stride-1 conv on (N, H/2+3, W/2+3, 32)."""
    n, h, w, c = x_nhwc.shape
    x = jnp.pad(x_nhwc, ((0, 0), (3, 3), (3, 3), (0, _CIN_PAD_V1 - c)))
    parts = [x[:, pi::2, pj::2, :] for pi in (0, 1) for pj in (0, 1)]
    return jnp.concatenate(parts, axis=-1).astype(jnp.bfloat16)


def _prep_v1_weights(w_oihw, bias):
    """(64, 3, 7, 7) -> (16, 32, 128) bf16 taps matching the parity-packed input.
       Weff[a*4+b, (pi*2+pj)*8 + c, o] = W[o, c, 2a+pi, 2b+pj] (zero-padded)."""
    cout, cin, _, _ = w_oihw.shape
    w = jnp.pad(w_oihw, ((0, _COUT_PAD_V1 - cout), (0, _CIN_PAD_V1 - cin),
                         (0, 1), (0, 1)))                      # (128, 8, 8, 8)
    w = w.reshape(_COUT_PAD_V1, _CIN_PAD_V1, 4, 2, 4, 2)       # (o, c, a, pi, b, pj)
    w = jnp.transpose(w, (2, 4, 3, 5, 1, 0))                   # (a, b, pi, pj, c, o)
    w = w.reshape(16, 4 * _CIN_PAD_V1, _COUT_PAD_V1).astype(jnp.bfloat16)
    b = jnp.pad(bias, (0, _COUT_PAD_V1 - cout)).reshape(1, _COUT_PAD_V1)
    return w, b.astype(jnp.float32)


def _flatten_nchw(x_nhwc):
    """PyTorch x.view(N, -1) flattens in (C, H, W) order."""
    n = x_nhwc.shape[0]
    return jnp.transpose(x_nhwc, (0, 3, 1, 2)).reshape(n, -1)


# ----------------------------------------------------------------------------
# Model: deterministic parameter init + forward
# ----------------------------------------------------------------------------

def init_params(key, out_img=16, out_wrd=0):
    specs = [  # (name, cin, cout, k)
        ("V1", 3, 64, 7),
        ("V2", 64, 128, 3),
        ("V4", 128, 256, 3),
        ("IT", 256, 512, 3),
    ]
    params = {}
    keys = jax.random.split(key, len(specs) + 1)
    for kk, (name, cin, cout, k) in zip(keys[:-1], specs):
        kw_, kb_ = jax.random.split(kk)
        scale = (2.0 / (cin * k * k)) ** 0.5
        params[name] = {
            "w": scale * jax.random.normal(kw_, (cout, cin, k, k), jnp.float32),
            "b": 0.01 * jax.random.normal(kb_, (cout,), jnp.float32),
        }
    kw_, kb_ = jax.random.split(keys[-1])
    dout = out_img + out_wrd
    params["decoder"] = {
        "w": (1.0 / 512.0 ** 0.5)
        * jax.random.normal(kw_, (dout, 512), jnp.float32),   # torch Linear layout
        "b": 0.01 * jax.random.normal(kb_, (dout,), jnp.float32),
    }
    return params


def cornet_z_tweak_forward(image_nchw, params):
    """Returns (flatten(v1), flatten(v2), flatten(v4), flatten(it), h, out)."""
    x = jnp.transpose(image_nchw, (0, 2, 3, 1))                 # NCHW -> NHWC
    _, h_in, w_in, _ = x.shape

    # ---- V1: 7x7 / stride 2 via parity packing -> fused conv+ReLU+pool kernel
    w1, b1 = _prep_v1_weights(params["V1"]["w"], params["V1"]["b"])
    v1 = pallas_corblock(_prep_v1_input(x), w1, b1,
                         k=4, oh=h_in // 2, ow=w_in // 2,
                         pad=0, cout_keep=64)                   # (N, H/4, W/4, 64)

    # ---- V2 / V4 / IT: 3x3 / stride 1 fused blocks (pad + bf16 cast in VMEM)
    def block(xin, name):
        wt = _prep_w_std(params[name]["w"])
        bt = params[name]["b"].reshape(1, -1).astype(jnp.float32)
        return pallas_corblock(xin, wt, bt, k=3,
                               oh=xin.shape[1], ow=xin.shape[2], pad=1)

    v2 = block(v1, "V2")
    v4 = block(v2, "V4")
    it = block(v4, "IT")

    # ---- head: AdaptiveAvgPool2d(1) + Flatten + Linear, fused (D padded to 128)
    n, ph, pw, c = it.shape
    it_flat = it.reshape(n, ph * pw, c)
    d = params["decoder"]["w"].shape[0]
    dpad = ((d + 127) // 128) * 128
    w_dec = jnp.pad(jnp.transpose(params["decoder"]["w"]), ((0, 0), (0, dpad - d)))
    b_dec = jnp.pad(params["decoder"]["b"], (0, dpad - d))
    h_out, out_pad = pallas_head(it_flat, w_dec, b_dec)
    out = out_pad[:, :d]

    return (
        _flatten_nchw(v1),
        _flatten_nchw(v2),
        _flatten_nchw(v4),
        _flatten_nchw(it),
        h_out,
        out,
    )
    # TODO(synk): the `clip=True` branch (fixed spatial crops) is not exercised here.


# ----------------------------------------------------------------------------
# Main
# ----------------------------------------------------------------------------

if __name__ == "__main__":
    key = jax.random.PRNGKey(0)
    k_img, k_params = jax.random.split(key)

    # Small shapes consistent with the module: NCHW image, 3 input channels.
    image = jax.random.normal(k_img, (2, 3, 32, 32), jnp.float32)
    params = init_params(k_params, out_img=16, out_wrd=0)

    fwd = jax.jit(cornet_z_tweak_forward)
    outs = fwd(image, params)
    outs = jax.block_until_ready(outs)

    expected = [(2, 4096), (2, 2048), (2, 1024), (2, 512), (2, 512), (2, 16)]
    assert [tuple(o.shape) for o in outs] == expected, \
        [tuple(o.shape) for o in outs]
    assert all(bool(jnp.all(jnp.isfinite(o))) for o in outs)

    print("KERNEL_OK")
</pallas_src>

<mosaic_0001>
module attributes {stable_mosaic.version = 11 : i64} {
  func.func @_corblock_kernel(%arg0: i32, %arg1: memref<1x19x19x32xbf16, #tpu.memory_space<vmem>>, %arg2: memref<16x32x128xbf16, #tpu.memory_space<vmem>>, %arg3: memref<1x128xf32, #tpu.memory_space<vmem>>, %arg4: memref<1x8x8x64xf32, #tpu.memory_space<vmem>>) attributes {dimension_semantics = [#tpu.dimension_semantics<parallel>], iteration_bounds = array<i64: 2>, scalar_prefetch = 0 : i64, scratch_operands = 0 : i64, tpu.core_type = #tpu.core_type<tc>, window_params = [{transform_indices = @transform_0, window_bounds = array<i64: 1, 19, 19, 32>}, {pipeline_mode = #tpu.pipeline_mode<synchronous>, transform_indices = @transform_1, window_bounds = array<i64: 16, 32, 128>}, {pipeline_mode = #tpu.pipeline_mode<synchronous>, transform_indices = @transform_2, window_bounds = array<i64: 1, 128>}, {transform_indices = @transform_3, window_bounds = array<i64: 1, 8, 8, 64>}]} {
    %c0 = arith.constant 0 : index
    %c0_0 = arith.constant 0 : index
    %c0_1 = arith.constant 0 : index
    %c0_2 = arith.constant 0 : index
    %0 = vector.load %arg1[%c0, %c0_0, %c0_1, %c0_2] : memref<1x19x19x32xbf16, #tpu.memory_space<vmem>>, vector<1x19x19x32xbf16>
    %1 = vector.shape_cast %0 : vector<1x19x19x32xbf16> to vector<19x19x32xbf16>
    %cst = arith.constant 0.000000e+00 : f32
    %2 = vector.broadcast %cst : f32 to vector<256x128xf32>
    %3 = vector.extract_strided_slice %1 {offsets = [0, 0, 0], sizes = [16, 16, 32], strides = [1, 1, 1]} : vector<19x19x32xbf16> to vector<16x16x32xbf16>
    %4 = vector.shape_cast %3 : vector<16x16x32xbf16> to vector<256x32xbf16>
    %c0_3 = arith.constant 0 : index
    %c0_4 = arith.constant 0 : index
    %c0_5 = arith.constant 0 : index
    %5 = vector.load %arg2[%c0_3, %c0_4, %c0_5] : memref<16x32x128xbf16, #tpu.memory_space<vmem>>, vector<1x32x128xbf16>
    %6 = vector.shape_cast %5 : vector<1x32x128xbf16> to vector<32x128xbf16>
    %cst_6 = arith.constant dense<0.000000e+00> : vector<256x128xf32>
    %7 = tpu.matmul %4, %6, %cst_6 {dimension_numbers = #tpu.dot_dimension_numbers<[1], [0], [0], [1], [0, 0, 1, 1], [], []>} : vector<256x32xbf16>, vector<32x128xbf16>, vector<256x128xf32> -> vector<256x128xf32>
    %8 = arith.addf %2, %7 : vector<256x128xf32>
    %9 = vector.extract_strided_slice %1 {offsets = [0, 1, 0], sizes = [16, 16, 32], strides = [1, 1, 1]} : vector<19x19x32xbf16> to vector<16x16x32xbf16>
    %10 = vector.shape_cast %9 : vector<16x16x32xbf16> to vector<256x32xbf16>
    %c1 = arith.constant 1 : index
    %c0_7 = arith.constant 0 : index
    %c0_8 = arith.constant 0 : index
    %11 = vector.load %arg2[%c1, %c0_7, %c0_8] : memref<16x32x128xbf16, #tpu.memory_space<vmem>>, vector<1x32x128xbf16>
    %12 = vector.shape_cast %11 : vector<1x32x128xbf16> to vector<32x128xbf16>
    %cst_9 = arith.constant dense<0.000000e+00> : vector<256x128xf32>
    %13 = tpu.matmul %10, %12, %cst_9 {dimension_numbers = #tpu.dot_dimension_numbers<[1], [0], [0], [1], [0, 0, 1, 1], [], []>} : vector<256x32xbf16>, vector<32x128xbf16>, vector<256x128xf32> -> vector<256x128xf32>
    %14 = arith.addf %8, %13 : vector<256x128xf32>
    %15 = vector.extract_strided_slice %1 {offsets = [0, 2, 0], sizes = [16, 16, 32], strides = [1, 1, 1]} : vector<19x19x32xbf16> to vector<16x16x32xbf16>
    %16 = vector.shape_cast %15 : vector<16x16x32xbf16> to vector<256x32xbf16>
    %c2 = arith.constant 2 : index
    %c0_10 = arith.constant 0 : index
    %c0_11 = arith.constant 0 : index
    %17 = vector.load %arg2[%c2, %c0_10, %c0_11] : memref<16x32x128xbf16, #tpu.memory_space<vmem>>, vector<1x32x128xbf16>
    %18 = vector.shape_cast %17 : vector<1x32x128xbf16> to vector<32x128xbf16>
    %cst_12 = arith.constant dense<0.000000e+00> : vector<256x128xf32>
    %19 = tpu.matmul %16, %18, %cst_12 {dimension_numbers = #tpu.dot_dimension_numbers<[1], [0], [0], [1], [0, 0, 1, 1], [], []>} : vector<256x32xbf16>, vector<32x128xbf16>, vector<256x128xf32> -> vector<256x128xf32>
    %20 = arith.addf %14, %19 : vector<256x128xf32>
    %21 = vector.extract_strided_slice %1 {offsets = [0, 3, 0], sizes = [16, 16, 32], strides = [1, 1, 1]} : vector<19x19x32xbf16> to vector<16x16x32xbf16>
    %22 = vector.shape_cast %21 : vector<16x16x32xbf16> to vector<256x32xbf16>
    %c3 = arith.constant 3 : index
    %c0_13 = arith.constant 0 : index
    %c0_14 = arith.constant 0 : index
    %23 = vector.load %arg2[%c3, %c0_13, %c0_14] : memref<16x32x128xbf16, #tpu.memory_space<vmem>>, vector<1x32x128xbf16>
    %24 = vector.shape_cast %23 : vector<1x32x128xbf16> to vector<32x128xbf16>
    %cst_15 = arith.constant dense<0.000000e+00> : vector<256x128xf32>
    %25 = tpu.matmul %22, %24, %cst_15 {dimension_numbers = #tpu.dot_dimension_numbers<[1], [0], [0], [1], [0, 0, 1, 1], [], []>} : vector<256x32xbf16>, vector<32x128xbf16>, vector<256x128xf32> -> vector<256x128xf32>
    %26 = arith.addf %20, %25 : vector<256x128xf32>
    %27 = vector.extract_strided_slice %1 {offsets = [1, 0, 0], sizes = [16, 16, 32], strides = [1, 1, 1]} : vector<19x19x32xbf16> to vector<16x16x32xbf16>
    %28 = vector.shape_cast %27 : vector<16x16x32xbf16> to vector<256x32xbf16>
    %c4 = arith.constant 4 : index
    %c0_16 = arith.constant 0 : index
    %c0_17 = arith.constant 0 : index
    %29 = vector.load %arg2[%c4, %c0_16, %c0_17] : memref<16x32x128xbf16, #tpu.memory_space<vmem>>, vector<1x32x128xbf16>
    %30 = vector.shape_cast %29 : vector<1x32x128xbf16> to vector<32x128xbf16>
    %cst_18 = arith.constant dense<0.000000e+00> : vector<256x128xf32>
    %31 = tpu.matmul %28, %30, %cst_18 {dimension_numbers = #tpu.dot_dimension_numbers<[1], [0], [0], [1], [0, 0, 1, 1], [], []>} : vector<256x32xbf16>, vector<32x128xbf16>, vector<256x128xf32> -> vector<256x128xf32>
    %32 = arith.addf %26, %31 : vector<256x128xf32>
    %33 = vector.extract_strided_slice %1 {offsets = [1, 1, 0], sizes = [16, 16, 32], strides = [1, 1, 1]} : vector<19x19x32xbf16> to vector<16x16x32xbf16>
    %34 = vector.shape_cast %33 : vector<16x16x32xbf16> to vector<256x32xbf16>
    %c5 = arith.constant 5 : index
    %c0_19 = arith.constant 0 : index
    %c0_20 = arith.constant 0 : index
    %35 = vector.load %arg2[%c5, %c0_19, %c0_20] : memref<16x32x128xbf16, #tpu.memory_space<vmem>>, vector<1x32x128xbf16>
    %36 = vector.shape_cast %35 : vector<1x32x128xbf16> to vector<32x128xbf16>
    %cst_21 = arith.constant dense<0.000000e+00> : vector<256x128xf32>
    %37 = tpu.matmul %34, %36, %cst_21 {dimension_numbers = #tpu.dot_dimension_numbers<[1], [0], [0], [1], [0, 0, 1, 1], [], []>} : vector<256x32xbf16>, vector<32x128xbf16>, vector<256x128xf32> -> vector<256x128xf32>
    %38 = arith.addf %32, %37 : vector<256x128xf32>
    %39 = vector.extract_strided_slice %1 {offsets = [1, 2, 0], sizes = [16, 16, 32], strides = [1, 1, 1]} : vector<19x19x32xbf16> to vector<16x16x32xbf16>
    %40 = vector.shape_cast %39 : vector<16x16x32xbf16> to vector<256x32xbf16>
    %c6 = arith.constant 6 : index
    %c0_22 = arith.constant 0 : index
    %c0_23 = arith.constant 0 : index
    %41 = vector.load %arg2[%c6, %c0_22, %c0_23] : memref<16x32x128xbf16, #tpu.memory_space<vmem>>, vector<1x32x128xbf16>
    %42 = vector.shape_cast %41 : vector<1x32x128xbf16> to vector<32x128xbf16>
    %cst_24 = arith.constant dense<0.000000e+00> : vector<256x128xf32>
    %43 = tpu.matmul %40, %42, %cst_24 {dimension_numbers = #tpu.dot_dimension_numbers<[1], [0], [0], [1], [0, 0, 1, 1], [], []>} : vector<256x32xbf16>, vector<32x128xbf16>, vector<256x128xf32> -> vector<256x128xf32>
    %44 = arith.addf %38, %43 : vector<256x128xf32>
    %45 = vector.extract_strided_slice %1 {offsets = [1, 3, 0], sizes = [16, 16, 32], strides = [1, 1, 1]} : vector<19x19x32xbf16> to vector<16x16x32xbf16>
    %46 = vector.shape_cast %45 : vector<16x16x32xbf16> to vector<256x32xbf16>
    %c7 = arith.constant 7 : index
    %c0_25 = arith.constant 0 : index
    %c0_26 = arith.constant 0 : index
    %47 = vector.load %arg2[%c7, %c0_25, %c0_26] : memref<16x32x128xbf16, #tpu.memory_space<vmem>>, vector<1x32x128xbf16>
    %48 = vector.shape_cast %47 : vector<1x32x128xbf16> to vector<32x128xbf16>
    %cst_27 = arith.constant dense<0.000000e+00> : vector<256x128xf32>
    %49 = tpu.matmul %46, %48, %cst_27 {dimension_numbers = #tpu.dot_dimension_numbers<[1], [0], [0], [1], [0, 0, 1, 1], [], []>} : vector<256x32xbf16>, vector<32x128xbf16>, vector<256x128xf32> -> vector<256x128xf32>
    %50 = arith.addf %44, %49 : vector<256x128xf32>
    %51 = vector.extract_strided_slice %1 {offsets = [2, 0, 0], sizes = [16, 16, 32], strides = [1, 1, 1]} : vector<19x19x32xbf16> to vector<16x16x32xbf16>
    %52 = vector.shape_cast %51 : vector<16x16x32xbf16> to vector<256x32xbf16>
    %c8 = arith.constant 8 : index
    %c0_28 = arith.constant 0 : index
    %c0_29 = arith.constant 0 : index
    %53 = vector.load %arg2[%c8, %c0_28, %c0_29] : memref<16x32x128xbf16, #tpu.memory_space<vmem>>, vector<1x32x128xbf16>
    %54 = vector.shape_cast %53 : vector<1x32x128xbf16> to vector<32x128xbf16>
    %cst_30 = arith.constant dense<0.000000e+00> : vector<256x128xf32>
    %55 = tpu.matmul %52, %54, %cst_30 {dimension_numbers = #tpu.dot_dimension_numbers<[1], [0], [0], [1], [0, 0, 1, 1], [], []>} : vector<256x32xbf16>, vector<32x128xbf16>, vector<256x128xf32> -> vector<256x128xf32>
    %56 = arith.addf %50, %55 : vector<256x128xf32>
    %57 = vector.extract_strided_slice %1 {offsets = [2, 1, 0], sizes = [16, 16, 32], strides = [1, 1, 1]} : vector<19x19x32xbf16> to vector<16x16x32xbf16>
    %58 = vector.shape_cast %57 : vector<16x16x32xbf16> to vector<256x32xbf16>
    %c9 = arith.constant 9 : index
    %c0_31 = arith.constant 0 : index
    %c0_32 = arith.constant 0 : index
    %59 = vector.load %arg2[%c9, %c0_31, %c0_32] : memref<16x32x128xbf16, #tpu.memory_space<vmem>>, vector<1x32x128xbf16>
    %60 = vector.shape_cast %59 : vector<1x32x128xbf16> to vector<32x128xbf16>
    %cst_33 = arith.constant dense<0.000000e+00> : vector<256x128xf32>
    %61 = tpu.matmul %58, %60, %cst_33 {dimension_numbers = #tpu.dot_dimension_numbers<[1], [0], [0], [1], [0, 0, 1, 1], [], []>} : vector<256x32xbf16>, vector<32x128xbf16>, vector<256x128xf32> -> vector<256x128xf32>
    %62 = arith.addf %56, %61 : vector<256x128xf32>
    %63 = vector.extract_strided_slice %1 {offsets = [2, 2, 0], sizes = [16, 16, 32], strides = [1, 1, 1]} : vector<19x19x32xbf16> to vector<16x16x32xbf16>
    %64 = vector.shape_cast %63 : vector<16x16x32xbf16> to vector<256x32xbf16>
    %c10 = arith.constant 10 : index
    %c0_34 = arith.constant 0 : index
    %c0_35 = arith.constant 0 : index
    %65 = vector.load %arg2[%c10, %c0_34, %c0_35] : memref<16x32x128xbf16, #tpu.memory_space<vmem>>, vector<1x32x128xbf16>
    %66 = vector.shape_cast %65 : vector<1x32x128xbf16> to vector<32x128xbf16>
    %cst_36 = arith.constant dense<0.000000e+00> : vector<256x128xf32>
    %67 = tpu.matmul %64, %66, %cst_36 {dimension_numbers = #tpu.dot_dimension_numbers<[1], [0], [0], [1], [0, 0, 1, 1], [], []>} : vector<256x32xbf16>, vector<32x128xbf16>, vector<256x128xf32> -> vector<256x128xf32>
    %68 = arith.addf %62, %67 : vector<256x128xf32>
    %69 = vector.extract_strided_slice %1 {offsets = [2, 3, 0], sizes = [16, 16, 32], strides = [1, 1, 1]} : vector<19x19x32xbf16> to vector<16x16x32xbf16>
    %70 = vector.shape_cast %69 : vector<16x16x32xbf16> to vector<256x32xbf16>
    %c11 = arith.constant 11 : index
    %c0_37 = arith.constant 0 : index
    %c0_38 = arith.constant 0 : index
    %71 = vector.load %arg2[%c11, %c0_37, %c0_38] : memref<16x32x128xbf16, #tpu.memory_space<vmem>>, vector<1x32x128xbf16>
    %72 = vector.shape_cast %71 : vector<1x32x128xbf16> to vector<32x128xbf16>
    %cst_39 = arith.constant dense<0.000000e+00> : vector<256x128xf32>
    %73 = tpu.matmul %70, %72, %cst_39 {dimension_numbers = #tpu.dot_dimension_numbers<[1], [0], [0], [1], [0, 0, 1, 1], [], []>} : vector<256x32xbf16>, vector<32x128xbf16>, vector<256x128xf32> -> vector<256x128xf32>
    %74 = arith.addf %68, %73 : vector<256x128xf32>
    %75 = vector.extract_strided_slice %1 {offsets = [3, 0, 0], sizes = [16, 16, 32], strides = [1, 1, 1]} : vector<19x19x32xbf16> to vector<16x16x32xbf16>
    %76 = vector.shape_cast %75 : vector<16x16x32xbf16> to vector<256x32xbf16>
    %c12 = arith.constant 12 : index
    %c0_40 = arith.constant 0 : index
    %c0_41 = arith.constant 0 : index
    %77 = vector.load %arg2[%c12, %c0_40, %c0_41] : memref<16x32x128xbf16, #tpu.memory_space<vmem>>, vector<1x32x128xbf16>
    %78 = vector.shape_cast %77 : vector<1x32x128xbf16> to vector<32x128xbf16>
    %cst_42 = arith.constant dense<0.000000e+00> : vector<256x128xf32>
    %79 = tpu.matmul %76, %78, %cst_42 {dimension_numbers = #tpu.dot_dimension_numbers<[1], [0], [0], [1], [0, 0, 1, 1], [], []>} : vector<256x32xbf16>, vector<32x128xbf16>, vector<256x128xf32> -> vector<256x128xf32>
    %80 = arith.addf %74, %79 : vector<256x128xf32>
    %81 = vector.extract_strided_slice %1 {offsets = [3, 1, 0], sizes = [16, 16, 32], strides = [1, 1, 1]} : vector<19x19x32xbf16> to vector<16x16x32xbf16>
    %82 = vector.shape_cast %81 : vector<16x16x32xbf16> to vector<256x32xbf16>
    %c13 = arith.constant 13 : index
    %c0_43 = arith.constant 0 : index
    %c0_44 = arith.constant 0 : index
    %83 = vector.load %arg2[%c13, %c0_43, %c0_44] : memref<16x32x128xbf16, #tpu.memory_space<vmem>>, vector<1x32x128xbf16>
    %84 = vector.shape_cast %83 : vector<1x32x128xbf16> to vector<32x128xbf16>
    %cst_45 = arith.constant dense<0.000000e+00> : vector<256x128xf32>
    %85 = tpu.matmul %82, %84, %cst_45 {dimension_numbers = #tpu.dot_dimension_numbers<[1], [0], [0], [1], [0, 0, 1, 1], [], []>} : vector<256x32xbf16>, vector<32x128xbf16>, vector<256x128xf32> -> vector<256x128xf32>
    %86 = arith.addf %80, %85 : vector<256x128xf32>
    %87 = vector.extract_strided_slice %1 {offsets = [3, 2, 0], sizes = [16, 16, 32], strides = [1, 1, 1]} : vector<19x19x32xbf16> to vector<16x16x32xbf16>
    %88 = vector.shape_cast %87 : vector<16x16x32xbf16> to vector<256x32xbf16>
    %c14 = arith.constant 14 : index
    %c0_46 = arith.constant 0 : index
    %c0_47 = arith.constant 0 : index
    %89 = vector.load %arg2[%c14, %c0_46, %c0_47] : memref<16x32x128xbf16, #tpu.memory_space<vmem>>, vector<1x32x128xbf16>
    %90 = vector.shape_cast %89 : vector<1x32x128xbf16> to vector<32x128xbf16>
    %cst_48 = arith.constant dense<0.000000e+00> : vector<256x128xf32>
    %91 = tpu.matmul %88, %90, %cst_48 {dimension_numbers = #tpu.dot_dimension_numbers<[1], [0], [0], [1], [0, 0, 1, 1], [], []>} : vector<256x32xbf16>, vector<32x128xbf16>, vector<256x128xf32> -> vector<256x128xf32>
    %92 = arith.addf %86, %91 : vector<256x128xf32>
    %93 = vector.extract_strided_slice %1 {offsets = [3, 3, 0], sizes = [16, 16, 32], strides = [1, 1, 1]} : vector<19x19x32xbf16> to vector<16x16x32xbf16>
    %94 = vector.shape_cast %93 : vector<16x16x32xbf16> to vector<256x32xbf16>
    %c15 = arith.constant 15 : index
    %c0_49 = arith.constant 0 : index
    %c0_50 = arith.constant 0 : index
    %95 = vector.load %arg2[%c15, %c0_49, %c0_50] : memref<16x32x128xbf16, #tpu.memory_space<vmem>>, vector<1x32x128xbf16>
    %96 = vector.shape_cast %95 : vector<1x32x128xbf16> to vector<32x128xbf16>
    %cst_51 = arith.constant dense<0.000000e+00> : vector<256x128xf32>
    %97 = tpu.matmul %94, %96, %cst_51 {dimension_numbers = #tpu.dot_dimension_numbers<[1], [0], [0], [1], [0, 0, 1, 1], [], []>} : vector<256x32xbf16>, vector<32x128xbf16>, vector<256x128xf32> -> vector<256x128xf32>
    %98 = arith.addf %92, %97 : vector<256x128xf32>
    %c0_52 = arith.constant 0 : index
    %c0_53 = arith.constant 0 : index
    %99 = vector.load %arg3[%c0_52, %c0_53] : memref<1x128xf32, #tpu.memory_space<vmem>>, vector<1x128xf32>
    %100 = vector.broadcast %99 : vector<1x128xf32> to vector<256x128xf32>
    %101 = arith.addf %98, %100 : vector<256x128xf32>
    %cst_54 = arith.constant 0.000000e+00 : f32
    %102 = vector.broadcast %cst_54 : f32 to vector<256x128xf32>
    %103 = arith.maximumf %101, %102 : vector<256x128xf32>
    %104 = vector.shape_cast %103 : vector<256x128xf32> to vector<16x16x128xf32>
    %cst_55 = arith.constant 0.000000e+00 : f32
    %105 = vector.broadcast %cst_55 : f32 to vector<1x16x128xf32>
    %106 = tpu.concatenate %105, %104, %105 in 0 : vector<1x16x128xf32>, vector<16x16x128xf32>, vector<1x16x128xf32> -> vector<18x16x128xf32>
    %cst_56 = arith.constant 0.000000e+00 : f32
    %107 = vector.broadcast %cst_56 : f32 to vector<18x1x128xf32>
    %108 = tpu.concatenate %107, %106, %107 in 1 : vector<18x1x128xf32>, vector<18x16x128xf32>, vector<18x1x128xf32> -> vector<18x18x128xf32>
    %109 = vector.extract_strided_slice %108 {offsets = [0, 0, 0], sizes = [16, 16, 128], strides = [1, 1, 1]} : vector<18x18x128xf32> to vector<16x16x128xf32>
    %110 = vector.extract_strided_slice %108 {offsets = [0, 1, 0], sizes = [16, 16, 128], strides = [1, 1, 1]} : vector<18x18x128xf32> to vector<16x16x128xf32>
    %111 = vector.extract_strided_slice %108 {offsets = [0, 2, 0], sizes = [16, 16, 128], strides = [1, 1, 1]} : vector<18x18x128xf32> to vector<16x16x128xf32>
    %112 = vector.extract_strided_slice %108 {offsets = [1, 0, 0], sizes = [16, 16, 128], strides = [1, 1, 1]} : vector<18x18x128xf32> to vector<16x16x128xf32>
    %113 = vector.extract_strided_slice %108 {offsets = [1, 1, 0], sizes = [16, 16, 128], strides = [1, 1, 1]} : vector<18x18x128xf32> to vector<16x16x128xf32>
    %114 = vector.extract_strided_slice %108 {offsets = [1, 2, 0], sizes = [16, 16, 128], strides = [1, 1, 1]} : vector<18x18x128xf32> to vector<16x16x128xf32>
    %115 = vector.extract_strided_slice %108 {offsets = [2, 0, 0], sizes = [16, 16, 128], strides = [1, 1, 1]} : vector<18x18x128xf32> to vector<16x16x128xf32>
    %116 = vector.extract_strided_slice %108 {offsets = [2, 1, 0], sizes = [16, 16, 128], strides = [1, 1, 1]} : vector<18x18x128xf32> to vector<16x16x128xf32>
    %117 = vector.extract_strided_slice %108 {offsets = [2, 2, 0], sizes = [16, 16, 128], strides = [1, 1, 1]} : vector<18x18x128xf32> to vector<16x16x128xf32>
    %118 = arith.maximumf %109, %110 : vector<16x16x128xf32>
    %119 = arith.maximumf %111, %112 : vector<16x16x128xf32>
    %120 = arith.maximumf %113, %114 : vector<16x16x128xf32>
    %121 = arith.maximumf %115, %116 : vector<16x16x128xf32>
    %122 = arith.maximumf %118, %119 : vector<16x16x128xf32>
    %123 = arith.maximumf %120, %121 : vector<16x16x128xf32>
    %124 = arith.maximumf %122, %123 : vector<16x16x128xf32>
    %125 = arith.maximumf %124, %117 : vector<16x16x128xf32>
    %126 = vector.shape_cast %125 : vector<16x16x128xf32> to vector<8x2x16x128xf32>
    %127 = vector.extract_strided_slice %126 {offsets = [0, 0, 0, 0], sizes = [8, 1, 16, 128], strides = [1, 1, 1, 1]} : vector<8x2x16x128xf32> to vector<8x1x16x128xf32>
    %128 = vector.shape_cast %127 : vector<8x1x16x128xf32> to vector<8x16x128xf32>
    %129 = vector.shape_cast %128 : vector<8x16x128xf32> to vector<8x8x2x128xf32>
    %130 = vector.extract_strided_slice %129 {offsets = [0, 0, 0, 0], sizes = [8, 8, 1, 128], strides = [1, 1, 1, 1]} : vector<8x8x2x128xf32> to vector<8x8x1x128xf32>
    %131 = vector.shape_cast %130 : vector<8x8x1x128xf32> to vector<8x8x128xf32>
    %132 = vector.extract_strided_slice %131 {offsets = [0, 0, 0], sizes = [8, 8, 64], strides = [1, 1, 1]} : vector<8x8x128xf32> to vector<8x8x64xf32>
    %c0_57 = arith.constant 0 : index
    %c0_58 = arith.constant 0 : index
    %c0_59 = arith.constant 0 : index
    %c0_60 = arith.constant 0 : index
    %133 = vector.load %arg4[%c0_57, %c0_58, %c0_59, %c0_60] : memref<1x8x8x64xf32, #tpu.memory_space<vmem>>, vector<1x8x8x64xf32>
    %134 = vector.shape_cast %133 : vector<1x8x8x64xf32> to vector<8x8x64xf32>
    %135 = vector.shape_cast %132 : vector<8x8x64xf32> to vector<1x8x8x64xf32>
    tpu.vector_store %arg4[%c0_57, %c0_58, %c0_59, %c0_60], %135 {strides = array<i32>} : memref<1x8x8x64xf32, #tpu.memory_space<vmem>>, vector<1x8x8x64xf32>,
    return
  }
  func.func @transform_0(%arg0: i32) -> (i32, i32, i32, i32) {
    %c0_i32 = arith.constant 0 : i32
    %c0_i32_0 = arith.constant 0 : i32
    %c0_i32_1 = arith.constant 0 : i32
    %c0_i32_2 = arith.constant 0 : i32
    return %arg0, %c0_i32, %c0_i32_0, %c0_i32_1 : i32, i32, i32, i32
  }
  func.func @transform_1(%arg0: i32) -> (i32, i32, i32) {
    %c0_i32 = arith.constant 0 : i32
    %c0_i32_0 = arith.constant 0 : i32
    %c0_i32_1 = arith.constant 0 : i32
    %c0_i32_2 = arith.constant 0 : i32
    return %c0_i32, %c0_i32_0, %c0_i32_1 : i32, i32, i32
  }
  func.func @transform_2(%arg0: i32) -> (i32, i32) {
    %c0_i32 = arith.constant 0 : i32
    %c0_i32_0 = arith.constant 0 : i32
    %c0_i32_1 = arith.constant 0 : i32
    return %c0_i32, %c0_i32_0 : i32, i32
  }
  func.func @transform_3(%arg0: i32) -> (i32, i32, i32, i32) {
    %c0_i32 = arith.constant 0 : i32
    %c0_i32_0 = arith.constant 0 : i32
    %c0_i32_1 = arith.constant 0 : i32
    %c0_i32_2 = arith.constant 0 : i32
    return %arg0, %c0_i32, %c0_i32_0, %c0_i32_1 : i32, i32, i32, i32
  }
}

module attributes {stable_mosaic.version = 11 : i64} {
  func.func @_corblock_kernel(%arg0: i32, %arg1: memref<1x8x8x64xf32, #tpu.memory_space<vmem>>, %arg2: memref<9x64x128xbf16, #tpu.memory_space<vmem>>, %arg3: memref<1x128xf32, #tpu.memory_space<vmem>>, %arg4: memref<1x4x4x128xf32, #tpu.memory_space<vmem>>) attributes {dimension_semantics = [#tpu.dimension_semantics<parallel>], iteration_bounds = array<i64: 2>, scalar_prefetch = 0 : i64, scratch_operands = 0 : i64, tpu.core_type = #tpu.core_type<tc>, window_params = [{transform_indices = @transform_0, window_bounds = array<i64: 1, 8, 8, 64>}, {pipeline_mode = #tpu.pipeline_mode<synchronous>, transform_indices = @transform_1, window_bounds = array<i64: 9, 64, 128>}, {pipeline_mode = #tpu.pipeline_mode<synchronous>, transform_indices = @transform_2, window_bounds = array<i64: 1, 128>}, {transform_indices = @transform_3, window_bounds = array<i64: 1, 4, 4, 128>}]} {
    %c0 = arith.constant 0 : index
    %c0_0 = arith.constant 0 : index
    %c0_1 = arith.constant 0 : index
    %c0_2 = arith.constant 0 : index
    %0 = vector.load %arg1[%c0, %c0_0, %c0_1, %c0_2] : memref<1x8x8x64xf32, #tpu.memory_space<vmem>>, vector<1x8x8x64xf32>
    %1 = vector.shape_cast %0 : vector<1x8x8x64xf32> to vector<8x8x64xf32>
    %2 = arith.truncf %1 : vector<8x8x64xf32> to vector<8x8x64xbf16>
    %cst = arith.constant 0.000000e+00 : bf16
    %3 = vector.broadcast %cst : bf16 to vector<1x8x64xbf16>
    %4 = tpu.concatenate %3, %2, %3 in 0 : vector<1x8x64xbf16>, vector<8x8x64xbf16>, vector<1x8x64xbf16> -> vector<10x8x64xbf16>
    %cst_3 = arith.constant 0.000000e+00 : bf16
    %5 = vector.broadcast %cst_3 : bf16 to vector<10x1x64xbf16>
    %6 = tpu.concatenate %5, %4, %5 in 1 : vector<10x1x64xbf16>, vector<10x8x64xbf16>, vector<10x1x64xbf16> -> vector<10x10x64xbf16>
    %cst_4 = arith.constant 0.000000e+00 : f32
    %7 = vector.broadcast %cst_4 : f32 to vector<64x128xf32>
    %8 = vector.extract_strided_slice %6 {offsets = [0, 0, 0], sizes = [8, 8, 64], strides = [1, 1, 1]} : vector<10x10x64xbf16> to vector<8x8x64xbf16>
    %9 = vector.shape_cast %8 : vector<8x8x64xbf16> to vector<64x64xbf16>
    %c0_5 = arith.constant 0 : index
    %c0_6 = arith.constant 0 : index
    %c0_7 = arith.constant 0 : index
    %10 = vector.load %arg2[%c0_5, %c0_6, %c0_7] : memref<9x64x128xbf16, #tpu.memory_space<vmem>>, vector<1x64x128xbf16>
    %11 = vector.shape_cast %10 : vector<1x64x128xbf16> to vector<64x128xbf16>
    %cst_8 = arith.constant dense<0.000000e+00> : vector<64x128xf32>
    %12 = tpu.matmul %9, %11, %cst_8 {dimension_numbers = #tpu.dot_dimension_numbers<[1], [0], [0], [1], [0, 0, 1, 1], [], []>} : vector<64x64xbf16>, vector<64x128xbf16>, vector<64x128xf32> -> vector<64x128xf32>
    %13 = arith.addf %7, %12 : vector<64x128xf32>
    %14 = vector.extract_strided_slice %6 {offsets = [0, 1, 0], sizes = [8, 8, 64], strides = [1, 1, 1]} : vector<10x10x64xbf16> to vector<8x8x64xbf16>
    %15 = vector.shape_cast %14 : vector<8x8x64xbf16> to vector<64x64xbf16>
    %c1 = arith.constant 1 : index
    %c0_9 = arith.constant 0 : index
    %c0_10 = arith.constant 0 : index
    %16 = vector.load %arg2[%c1, %c0_9, %c0_10] : memref<9x64x128xbf16, #tpu.memory_space<vmem>>, vector<1x64x128xbf16>
    %17 = vector.shape_cast %16 : vector<1x64x128xbf16> to vector<64x128xbf16>
    %cst_11 = arith.constant dense<0.000000e+00> : vector<64x128xf32>
    %18 = tpu.matmul %15, %17, %cst_11 {dimension_numbers = #tpu.dot_dimension_numbers<[1], [0], [0], [1], [0, 0, 1, 1], [], []>} : vector<64x64xbf16>, vector<64x128xbf16>, vector<64x128xf32> -> vector<64x128xf32>
    %19 = arith.addf %13, %18 : vector<64x128xf32>
    %20 = vector.extract_strided_slice %6 {offsets = [0, 2, 0], sizes = [8, 8, 64], strides = [1, 1, 1]} : vector<10x10x64xbf16> to vector<8x8x64xbf16>
    %21 = vector.shape_cast %20 : vector<8x8x64xbf16> to vector<64x64xbf16>
    %c2 = arith.constant 2 : index
    %c0_12 = arith.constant 0 : index
    %c0_13 = arith.constant 0 : index
    %22 = vector.load %arg2[%c2, %c0_12, %c0_13] : memref<9x64x128xbf16, #tpu.memory_space<vmem>>, vector<1x64x128xbf16>
    %23 = vector.shape_cast %22 : vector<1x64x128xbf16> to vector<64x128xbf16>
    %cst_14 = arith.constant dense<0.000000e+00> : vector<64x128xf32>
    %24 = tpu.matmul %21, %23, %cst_14 {dimension_numbers = #tpu.dot_dimension_numbers<[1], [0], [0], [1], [0, 0, 1, 1], [], []>} : vector<64x64xbf16>, vector<64x128xbf16>, vector<64x128xf32> -> vector<64x128xf32>
    %25 = arith.addf %19, %24 : vector<64x128xf32>
    %26 = vector.extract_strided_slice %6 {offsets = [1, 0, 0], sizes = [8, 8, 64], strides = [1, 1, 1]} : vector<10x10x64xbf16> to vector<8x8x64xbf16>
    %27 = vector.shape_cast %26 : vector<8x8x64xbf16> to vector<64x64xbf16>
    %c3 = arith.constant 3 : index
    %c0_15 = arith.constant 0 : index
    %c0_16 = arith.constant 0 : index
    %28 = vector.load %arg2[%c3, %c0_15, %c0_16] : memref<9x64x128xbf16, #tpu.memory_space<vmem>>, vector<1x64x128xbf16>
    %29 = vector.shape_cast %28 : vector<1x64x128xbf16> to vector<64x128xbf16>
    %cst_17 = arith.constant dense<0.000000e+00> : vector<64x128xf32>
    %30 = tpu.matmul %27, %29, %cst_17 {dimension_numbers = #tpu.dot_dimension_numbers<[1], [0], [0], [1], [0, 0, 1, 1], [], []>} : vector<64x64xbf16>, vector<64x128xbf16>, vector<64x128xf32> -> vector<64x128xf32>
    %31 = arith.addf %25, %30 : vector<64x128xf32>
    %32 = vector.extract_strided_slice %6 {offsets = [1, 1, 0], sizes = [8, 8, 64], strides = [1, 1, 1]} : vector<10x10x64xbf16> to vector<8x8x64xbf16>
    %33 = vector.shape_cast %32 : vector<8x8x64xbf16> to vector<64x64xbf16>
    %c4 = arith.constant 4 : index
    %c0_18 = arith.constant 0 : index
    %c0_19 = arith.constant 0 : index
    %34 = vector.load %arg2[%c4, %c0_18, %c0_19] : memref<9x64x128xbf16, #tpu.memory_space<vmem>>, vector<1x64x128xbf16>
    %35 = vector.shape_cast %34 : vector<1x64x128xbf16> to vector<64x128xbf16>
    %cst_20 = arith.constant dense<0.000000e+00> : vector<64x128xf32>
    %36 = tpu.matmul %33, %35, %cst_20 {dimension_numbers = #tpu.dot_dimension_numbers<[1], [0], [0], [1], [0, 0, 1, 1], [], []>} : vector<64x64xbf16>, vector<64x128xbf16>, vector<64x128xf32> -> vector<64x128xf32>
    %37 = arith.addf %31, %36 : vector<64x128xf32>
    %38 = vector.extract_strided_slice %6 {offsets = [1, 2, 0], sizes = [8, 8, 64], strides = [1, 1, 1]} : vector<10x10x64xbf16> to vector<8x8x64xbf16>
    %39 = vector.shape_cast %38 : vector<8x8x64xbf16> to vector<64x64xbf16>
    %c5 = arith.constant 5 : index
    %c0_21 = arith.constant 0 : index
    %c0_22 = arith.constant 0 : index
    %40 = vector.load %arg2[%c5, %c0_21, %c0_22] : memref<9x64x128xbf16, #tpu.memory_space<vmem>>, vector<1x64x128xbf16>
    %41 = vector.shape_cast %40 : vector<1x64x128xbf16> to vector<64x128xbf16>
    %cst_23 = arith.constant dense<0.000000e+00> : vector<64x128xf32>
    %42 = tpu.matmul %39, %41, %cst_23 {dimension_numbers = #tpu.dot_dimension_numbers<[1], [0], [0], [1], [0, 0, 1, 1], [], []>} : vector<64x64xbf16>, vector<64x128xbf16>, vector<64x128xf32> -> vector<64x128xf32>
    %43 = arith.addf %37, %42 : vector<64x128xf32>
    %44 = vector.extract_strided_slice %6 {offsets = [2, 0, 0], sizes = [8, 8, 64], strides = [1, 1, 1]} : vector<10x10x64xbf16> to vector<8x8x64xbf16>
    %45 = vector.shape_cast %44 : vector<8x8x64xbf16> to vector<64x64xbf16>
    %c6 = arith.constant 6 : index
    %c0_24 = arith.constant 0 : index
    %c0_25 = arith.constant 0 : index
    %46 = vector.load %arg2[%c6, %c0_24, %c0_25] : memref<9x64x128xbf16, #tpu.memory_space<vmem>>, vector<1x64x128xbf16>
    %47 = vector.shape_cast %46 : vector<1x64x128xbf16> to vector<64x128xbf16>
    %cst_26 = arith.constant dense<0.000000e+00> : vector<64x128xf32>
    %48 = tpu.matmul %45, %47, %cst_26 {dimension_numbers = #tpu.dot_dimension_numbers<[1], [0], [0], [1], [0, 0, 1, 1], [], []>} : vector<64x64xbf16>, vector<64x128xbf16>, vector<64x128xf32> -> vector<64x128xf32>
    %49 = arith.addf %43, %48 : vector<64x128xf32>
    %50 = vector.extract_strided_slice %6 {offsets = [2, 1, 0], sizes = [8, 8, 64], strides = [1, 1, 1]} : vector<10x10x64xbf16> to vector<8x8x64xbf16>
    %51 = vector.shape_cast %50 : vector<8x8x64xbf16> to vector<64x64xbf16>
    %c7 = arith.constant 7 : index
    %c0_27 = arith.constant 0 : index
    %c0_28 = arith.constant 0 : index
    %52 = vector.load %arg2[%c7, %c0_27, %c0_28] : memref<9x64x128xbf16, #tpu.memory_space<vmem>>, vector<1x64x128xbf16>
    %53 = vector.shape_cast %52 : vector<1x64x128xbf16> to vector<64x128xbf16>
    %cst_29 = arith.constant dense<0.000000e+00> : vector<64x128xf32>
    %54 = tpu.matmul %51, %53, %cst_29 {dimension_numbers = #tpu.dot_dimension_numbers<[1], [0], [0], [1], [0, 0, 1, 1], [], []>} : vector<64x64xbf16>, vector<64x128xbf16>, vector<64x128xf32> -> vector<64x128xf32>
    %55 = arith.addf %49, %54 : vector<64x128xf32>
    %56 = vector.extract_strided_slice %6 {offsets = [2, 2, 0], sizes = [8, 8, 64], strides = [1, 1, 1]} : vector<10x10x64xbf16> to vector<8x8x64xbf16>
    %57 = vector.shape_cast %56 : vector<8x8x64xbf16> to vector<64x64xbf16>
    %c8 = arith.constant 8 : index
    %c0_30 = arith.constant 0 : index
    %c0_31 = arith.constant 0 : index
    %58 = vector.load %arg2[%c8, %c0_30, %c0_31] : memref<9x64x128xbf16, #tpu.memory_space<vmem>>, vector<1x64x128xbf16>
    %59 = vector.shape_cast %58 : vector<1x64x128xbf16> to vector<64x128xbf16>
    %cst_32 = arith.constant dense<0.000000e+00> : vector<64x128xf32>
    %60 = tpu.matmul %57, %59, %cst_32 {dimension_numbers = #tpu.dot_dimension_numbers<[1], [0], [0], [1], [0, 0, 1, 1], [], []>} : vector<64x64xbf16>, vector<64x128xbf16>, vector<64x128xf32> -> vector<64x128xf32>
    %61 = arith.addf %55, %60 : vector<64x128xf32>
    %c0_33 = arith.constant 0 : index
    %c0_34 = arith.constant 0 : index
    %62 = vector.load %arg3[%c0_33, %c0_34] : memref<1x128xf32, #tpu.memory_space<vmem>>, vector<1x128xf32>
    %63 = vector.broadcast %62 : vector<1x128xf32> to vector<64x128xf32>
    %64 = arith.addf %61, %63 : vector<64x128xf32>
    %cst_35 = arith.constant 0.000000e+00 : f32
    %65 = vector.broadcast %cst_35 : f32 to vector<64x128xf32>
    %66 = arith.maximumf %64, %65 : vector<64x128xf32>
    %67 = vector.shape_cast %66 : vector<64x128xf32> to vector<8x8x128xf32>
    %cst_36 = arith.constant 0.000000e+00 : f32
    %68 = vector.broadcast %cst_36 : f32 to vector<1x8x128xf32>
    %69 = tpu.concatenate %68, %67, %68 in 0 : vector<1x8x128xf32>, vector<8x8x128xf32>, vector<1x8x128xf32> -> vector<10x8x128xf32>
    %cst_37 = arith.constant 0.000000e+00 : f32
    %70 = vector.broadcast %cst_37 : f32 to vector<10x1x128xf32>
    %71 = tpu.concatenate %70, %69, %70 in 1 : vector<10x1x128xf32>, vector<10x8x128xf32>, vector<10x1x128xf32> -> vector<10x10x128xf32>
    %72 = vector.extract_strided_slice %71 {offsets = [0, 0, 0], sizes = [8, 8, 128], strides = [1, 1, 1]} : vector<10x10x128xf32> to vector<8x8x128xf32>
    %73 = vector.extract_strided_slice %71 {offsets = [0, 1, 0], sizes = [8, 8, 128], strides = [1, 1, 1]} : vector<10x10x128xf32> to vector<8x8x128xf32>
    %74 = vector.extract_strided_slice %71 {offsets = [0, 2, 0], sizes = [8, 8, 128], strides = [1, 1, 1]} : vector<10x10x128xf32> to vector<8x8x128xf32>
    %75 = vector.extract_strided_slice %71 {offsets = [1, 0, 0], sizes = [8, 8, 128], strides = [1, 1, 1]} : vector<10x10x128xf32> to vector<8x8x128xf32>
    %76 = vector.extract_strided_slice %71 {offsets = [1, 1, 0], sizes = [8, 8, 128], strides = [1, 1, 1]} : vector<10x10x128xf32> to vector<8x8x128xf32>
    %77 = vector.extract_strided_slice %71 {offsets = [1, 2, 0], sizes = [8, 8, 128], strides = [1, 1, 1]} : vector<10x10x128xf32> to vector<8x8x128xf32>
    %78 = vector.extract_strided_slice %71 {offsets = [2, 0, 0], sizes = [8, 8, 128], strides = [1, 1, 1]} : vector<10x10x128xf32> to vector<8x8x128xf32>
    %79 = vector.extract_strided_slice %71 {offsets = [2, 1, 0], sizes = [8, 8, 128], strides = [1, 1, 1]} : vector<10x10x128xf32> to vector<8x8x128xf32>
    %80 = vector.extract_strided_slice %71 {offsets = [2, 2, 0], sizes = [8, 8, 128], strides = [1, 1, 1]} : vector<10x10x128xf32> to vector<8x8x128xf32>
    %81 = arith.maximumf %72, %73 : vector<8x8x128xf32>
    %82 = arith.maximumf %74, %75 : vector<8x8x128xf32>
    %83 = arith.maximumf %76, %77 : vector<8x8x128xf32>
    %84 = arith.maximumf %78, %79 : vector<8x8x128xf32>
    %85 = arith.maximumf %81, %82 : vector<8x8x128xf32>
    %86 = arith.maximumf %83, %84 : vector<8x8x128xf32>
    %87 = arith.maximumf %85, %86 : vector<8x8x128xf32>
    %88 = arith.maximumf %87, %80 : vector<8x8x128xf32>
    %89 = vector.shape_cast %88 : vector<8x8x128xf32> to vector<4x2x8x128xf32>
    %90 = vector.extract_strided_slice %89 {offsets = [0, 0, 0, 0], sizes = [4, 1, 8, 128], strides = [1, 1, 1, 1]} : vector<4x2x8x128xf32> to vector<4x1x8x128xf32>
    %91 = vector.shape_cast %90 : vector<4x1x8x128xf32> to vector<4x8x128xf32>
    %92 = vector.shape_cast %91 : vector<4x8x128xf32> to vector<4x4x2x128xf32>
    %93 = vector.extract_strided_slice %92 {offsets = [0, 0, 0, 0], sizes = [4, 4, 1, 128], strides = [1, 1, 1, 1]} : vector<4x4x2x128xf32> to vector<4x4x1x128xf32>
    %94 = vector.shape_cast %93 : vector<4x4x1x128xf32> to vector<4x4x128xf32>
    %c0_38 = arith.constant 0 : index
    %c0_39 = arith.constant 0 : index
    %c0_40 = arith.constant 0 : index
    %c0_41 = arith.constant 0 : index
    %95 = vector.load %arg4[%c0_38, %c0_39, %c0_40, %c0_41] : memref<1x4x4x128xf32, #tpu.memory_space<vmem>>, vector<1x4x4x128xf32>
    %96 = vector.shape_cast %95 : vector<1x4x4x128xf32> to vector<4x4x128xf32>
    %97 = vector.shape_cast %94 : vector<4x4x128xf32> to vector<1x4x4x128xf32>
    tpu.vector_store %arg4[%c0_38, %c0_39, %c0_40, %c0_41], %97 {strides = array<i32>} : memref<1x4x4x128xf32, #tpu.memory_space<vmem>>, vector<1x4x4x128xf32>,
    return
  }
  func.func @transform_0(%arg0: i32) -> (i32, i32, i32, i32) {
    %c0_i32 = arith.constant 0 : i32
    %c0_i32_0 = arith.constant 0 : i32
    %c0_i32_1 = arith.constant 0 : i32
    %c0_i32_2 = arith.constant 0 : i32
    return %arg0, %c0_i32, %c0_i32_0, %c0_i32_1 : i32, i32, i32, i32
  }
  func.func @transform_1(%arg0: i32) -> (i32, i32, i32) {
    %c0_i32 = arith.constant 0 : i32
    %c0_i32_0 = arith.constant 0 : i32
    %c0_i32_1 = arith.constant 0 : i32
    %c0_i32_2 = arith.constant 0 : i32
    return %c0_i32, %c0_i32_0, %c0_i32_1 : i32, i32, i32
  }
  func.func @transform_2(%arg0: i32) -> (i32, i32) {
    %c0_i32 = arith.constant 0 : i32
    %c0_i32_0 = arith.constant 0 : i32
    %c0_i32_1 = arith.constant 0 : i32
    return %c0_i32, %c0_i32_0 : i32, i32
  }
  func.func @transform_3(%arg0: i32) -> (i32, i32, i32, i32) {
    %c0_i32 = arith.constant 0 : i32
    %c0_i32_0 = arith.constant 0 : i32
    %c0_i32_1 = arith.constant 0 : i32
    %c0_i32_2 = arith.constant 0 : i32
    return %arg0, %c0_i32, %c0_i32_0, %c0_i32_1 : i32, i32, i32, i32
  }
}

module attributes {stable_mosaic.version = 11 : i64} {
  func.func @_corblock_kernel(%arg0: i32, %arg1: memref<1x4x4x128xf32, #tpu.memory_space<vmem>>, %arg2: memref<9x128x256xbf16, #tpu.memory_space<vmem>>, %arg3: memref<1x256xf32, #tpu.memory_space<vmem>>, %arg4: memref<1x2x2x256xf32, #tpu.memory_space<vmem>>) attributes {dimension_semantics = [#tpu.dimension_semantics<parallel>], iteration_bounds = array<i64: 2>, scalar_prefetch = 0 : i64, scratch_operands = 0 : i64, tpu.core_type = #tpu.core_type<tc>, window_params = [{transform_indices = @transform_0, window_bounds = array<i64: 1, 4, 4, 128>}, {pipeline_mode = #tpu.pipeline_mode<synchronous>, transform_indices = @transform_1, window_bounds = array<i64: 9, 128, 256>}, {pipeline_mode = #tpu.pipeline_mode<synchronous>, transform_indices = @transform_2, window_bounds = array<i64: 1, 256>}, {transform_indices = @transform_3, window_bounds = array<i64: 1, 2, 2, 256>}]} {
    %c0 = arith.constant 0 : index
    %c0_0 = arith.constant 0 : index
    %c0_1 = arith.constant 0 : index
    %c0_2 = arith.constant 0 : index
    %0 = vector.load %arg1[%c0, %c0_0, %c0_1, %c0_2] : memref<1x4x4x128xf32, #tpu.memory_space<vmem>>, vector<1x4x4x128xf32>
    %1 = vector.shape_cast %0 : vector<1x4x4x128xf32> to vector<4x4x128xf32>
    %2 = arith.truncf %1 : vector<4x4x128xf32> to vector<4x4x128xbf16>
    %cst = arith.constant 0.000000e+00 : bf16
    %3 = vector.broadcast %cst : bf16 to vector<1x4x128xbf16>
    %4 = tpu.concatenate %3, %2, %3 in 0 : vector<1x4x128xbf16>, vector<4x4x128xbf16>, vector<1x4x128xbf16> -> vector<6x4x128xbf16>
    %cst_3 = arith.constant 0.000000e+00 : bf16
    %5 = vector.broadcast %cst_3 : bf16 to vector<6x1x128xbf16>
    %6 = tpu.concatenate %5, %4, %5 in 1 : vector<6x1x128xbf16>, vector<6x4x128xbf16>, vector<6x1x128xbf16> -> vector<6x6x128xbf16>
    %cst_4 = arith.constant 0.000000e+00 : f32
    %7 = vector.broadcast %cst_4 : f32 to vector<16x256xf32>
    %8 = vector.extract_strided_slice %6 {offsets = [0, 0, 0], sizes = [4, 4, 128], strides = [1, 1, 1]} : vector<6x6x128xbf16> to vector<4x4x128xbf16>
    %9 = vector.shape_cast %8 : vector<4x4x128xbf16> to vector<16x128xbf16>
    %c0_5 = arith.constant 0 : index
    %c0_6 = arith.constant 0 : index
    %c0_7 = arith.constant 0 : index
    %10 = vector.load %arg2[%c0_5, %c0_6, %c0_7] : memref<9x128x256xbf16, #tpu.memory_space<vmem>>, vector<1x128x256xbf16>
    %11 = vector.shape_cast %10 : vector<1x128x256xbf16> to vector<128x256xbf16>
    %cst_8 = arith.constant dense<0.000000e+00> : vector<16x256xf32>
    %12 = tpu.matmul %9, %11, %cst_8 {dimension_numbers = #tpu.dot_dimension_numbers<[1], [0], [0], [1], [0, 0, 1, 1], [], []>} : vector<16x128xbf16>, vector<128x256xbf16>, vector<16x256xf32> -> vector<16x256xf32>
    %13 = arith.addf %7, %12 : vector<16x256xf32>
    %14 = vector.extract_strided_slice %6 {offsets = [0, 1, 0], sizes = [4, 4, 128], strides = [1, 1, 1]} : vector<6x6x128xbf16> to vector<4x4x128xbf16>
    %15 = vector.shape_cast %14 : vector<4x4x128xbf16> to vector<16x128xbf16>
    %c1 = arith.constant 1 : index
    %c0_9 = arith.constant 0 : index
    %c0_10 = arith.constant 0 : index
    %16 = vector.load %arg2[%c1, %c0_9, %c0_10] : memref<9x128x256xbf16, #tpu.memory_space<vmem>>, vector<1x128x256xbf16>
    %17 = vector.shape_cast %16 : vector<1x128x256xbf16> to vector<128x256xbf16>
    %cst_11 = arith.constant dense<0.000000e+00> : vector<16x256xf32>
    %18 = tpu.matmul %15, %17, %cst_11 {dimension_numbers = #tpu.dot_dimension_numbers<[1], [0], [0], [1], [0, 0, 1, 1], [], []>} : vector<16x128xbf16>, vector<128x256xbf16>, vector<16x256xf32> -> vector<16x256xf32>
    %19 = arith.addf %13, %18 : vector<16x256xf32>
    %20 = vector.extract_strided_slice %6 {offsets = [0, 2, 0], sizes = [4, 4, 128], strides = [1, 1, 1]} : vector<6x6x128xbf16> to vector<4x4x128xbf16>
    %21 = vector.shape_cast %20 : vector<4x4x128xbf16> to vector<16x128xbf16>
    %c2 = arith.constant 2 : index
    %c0_12 = arith.constant 0 : index
    %c0_13 = arith.constant 0 : index
    %22 = vector.load %arg2[%c2, %c0_12, %c0_13] : memref<9x128x256xbf16, #tpu.memory_space<vmem>>, vector<1x128x256xbf16>
    %23 = vector.shape_cast %22 : vector<1x128x256xbf16> to vector<128x256xbf16>
    %cst_14 = arith.constant dense<0.000000e+00> : vector<16x256xf32>
    %24 = tpu.matmul %21, %23, %cst_14 {dimension_numbers = #tpu.dot_dimension_numbers<[1], [0], [0], [1], [0, 0, 1, 1], [], []>} : vector<16x128xbf16>, vector<128x256xbf16>, vector<16x256xf32> -> vector<16x256xf32>
    %25 = arith.addf %19, %24 : vector<16x256xf32>
    %26 = vector.extract_strided_slice %6 {offsets = [1, 0, 0], sizes = [4, 4, 128], strides = [1, 1, 1]} : vector<6x6x128xbf16> to vector<4x4x128xbf16>
    %27 = vector.shape_cast %26 : vector<4x4x128xbf16> to vector<16x128xbf16>
    %c3 = arith.constant 3 : index
    %c0_15 = arith.constant 0 : index
    %c0_16 = arith.constant 0 : index
    %28 = vector.load %arg2[%c3, %c0_15, %c0_16] : memref<9x128x256xbf16, #tpu.memory_space<vmem>>, vector<1x128x256xbf16>
    %29 = vector.shape_cast %28 : vector<1x128x256xbf16> to vector<128x256xbf16>
    %cst_17 = arith.constant dense<0.000000e+00> : vector<16x256xf32>
    %30 = tpu.matmul %27, %29, %cst_17 {dimension_numbers = #tpu.dot_dimension_numbers<[1], [0], [0], [1], [0, 0, 1, 1], [], []>} : vector<16x128xbf16>, vector<128x256xbf16>, vector<16x256xf32> -> vector<16x256xf32>
    %31 = arith.addf %25, %30 : vector<16x256xf32>
    %32 = vector.extract_strided_slice %6 {offsets = [1, 1, 0], sizes = [4, 4, 128], strides = [1, 1, 1]} : vector<6x6x128xbf16> to vector<4x4x128xbf16>
    %33 = vector.shape_cast %32 : vector<4x4x128xbf16> to vector<16x128xbf16>
    %c4 = arith.constant 4 : index
    %c0_18 = arith.constant 0 : index
    %c0_19 = arith.constant 0 : index
    %34 = vector.load %arg2[%c4, %c0_18, %c0_19] : memref<9x128x256xbf16, #tpu.memory_space<vmem>>, vector<1x128x256xbf16>
    %35 = vector.shape_cast %34 : vector<1x128x256xbf16> to vector<128x256xbf16>
    %cst_20 = arith.constant dense<0.000000e+00> : vector<16x256xf32>
    %36 = tpu.matmul %33, %35, %cst_20 {dimension_numbers = #tpu.dot_dimension_numbers<[1], [0], [0], [1], [0, 0, 1, 1], [], []>} : vector<16x128xbf16>, vector<128x256xbf16>, vector<16x256xf32> -> vector<16x256xf32>
    %37 = arith.addf %31, %36 : vector<16x256xf32>
    %38 = vector.extract_strided_slice %6 {offsets = [1, 2, 0], sizes = [4, 4, 128], strides = [1, 1, 1]} : vector<6x6x128xbf16> to vector<4x4x128xbf16>
    %39 = vector.shape_cast %38 : vector<4x4x128xbf16> to vector<16x128xbf16>
    %c5 = arith.constant 5 : index
    %c0_21 = arith.constant 0 : index
    %c0_22 = arith.constant 0 : index
    %40 = vector.load %arg2[%c5, %c0_21, %c0_22] : memref<9x128x256xbf16, #tpu.memory_space<vmem>>, vector<1x128x256xbf16>
    %41 = vector.shape_cast %40 : vector<1x128x256xbf16> to vector<128x256xbf16>
    %cst_23 = arith.constant dense<0.000000e+00> : vector<16x256xf32>
    %42 = tpu.matmul %39, %41, %cst_23 {dimension_numbers = #tpu.dot_dimension_numbers<[1], [0], [0], [1], [0, 0, 1, 1], [], []>} : vector<16x128xbf16>, vector<128x256xbf16>, vector<16x256xf32> -> vector<16x256xf32>
    %43 = arith.addf %37, %42 : vector<16x256xf32>
    %44 = vector.extract_strided_slice %6 {offsets = [2, 0, 0], sizes = [4, 4, 128], strides = [1, 1, 1]} : vector<6x6x128xbf16> to vector<4x4x128xbf16>
    %45 = vector.shape_cast %44 : vector<4x4x128xbf16> to vector<16x128xbf16>
    %c6 = arith.constant 6 : index
    %c0_24 = arith.constant 0 : index
    %c0_25 = arith.constant 0 : index
    %46 = vector.load %arg2[%c6, %c0_24, %c0_25] : memref<9x128x256xbf16, #tpu.memory_space<vmem>>, vector<1x128x256xbf16>
    %47 = vector.shape_cast %46 : vector<1x128x256xbf16> to vector<128x256xbf16>
    %cst_26 = arith.constant dense<0.000000e+00> : vector<16x256xf32>
    %48 = tpu.matmul %45, %47, %cst_26 {dimension_numbers = #tpu.dot_dimension_numbers<[1], [0], [0], [1], [0, 0, 1, 1], [], []>} : vector<16x128xbf16>, vector<128x256xbf16>, vector<16x256xf32> -> vector<16x256xf32>
    %49 = arith.addf %43, %48 : vector<16x256xf32>
    %50 = vector.extract_strided_slice %6 {offsets = [2, 1, 0], sizes = [4, 4, 128], strides = [1, 1, 1]} : vector<6x6x128xbf16> to vector<4x4x128xbf16>
    %51 = vector.shape_cast %50 : vector<4x4x128xbf16> to vector<16x128xbf16>
    %c7 = arith.constant 7 : index
    %c0_27 = arith.constant 0 : index
    %c0_28 = arith.constant 0 : index
    %52 = vector.load %arg2[%c7, %c0_27, %c0_28] : memref<9x128x256xbf16, #tpu.memory_space<vmem>>, vector<1x128x256xbf16>
    %53 = vector.shape_cast %52 : vector<1x128x256xbf16> to vector<128x256xbf16>
    %cst_29 = arith.constant dense<0.000000e+00> : vector<16x256xf32>
    %54 = tpu.matmul %51, %53, %cst_29 {dimension_numbers = #tpu.dot_dimension_numbers<[1], [0], [0], [1], [0, 0, 1, 1], [], []>} : vector<16x128xbf16>, vector<128x256xbf16>, vector<16x256xf32> -> vector<16x256xf32>
    %55 = arith.addf %49, %54 : vector<16x256xf32>
    %56 = vector.extract_strided_slice %6 {offsets = [2, 2, 0], sizes = [4, 4, 128], strides = [1, 1, 1]} : vector<6x6x128xbf16> to vector<4x4x128xbf16>
    %57 = vector.shape_cast %56 : vector<4x4x128xbf16> to vector<16x128xbf16>
    %c8 = arith.constant 8 : index
    %c0_30 = arith.constant 0 : index
    %c0_31 = arith.constant 0 : index
    %58 = vector.load %arg2[%c8, %c0_30, %c0_31] : memref<9x128x256xbf16, #tpu.memory_space<vmem>>, vector<1x128x256xbf16>
    %59 = vector.shape_cast %58 : vector<1x128x256xbf16> to vector<128x256xbf16>
    %cst_32 = arith.constant dense<0.000000e+00> : vector<16x256xf32>
    %60 = tpu.matmul %57, %59, %cst_32 {dimension_numbers = #tpu.dot_dimension_numbers<[1], [0], [0], [1], [0, 0, 1, 1], [], []>} : vector<16x128xbf16>, vector<128x256xbf16>, vector<16x256xf32> -> vector<16x256xf32>
    %61 = arith.addf %55, %60 : vector<16x256xf32>
    %c0_33 = arith.constant 0 : index
    %c0_34 = arith.constant 0 : index
    %62 = vector.load %arg3[%c0_33, %c0_34] : memref<1x256xf32, #tpu.memory_space<vmem>>, vector<1x256xf32>
    %63 = vector.broadcast %62 : vector<1x256xf32> to vector<16x256xf32>
    %64 = arith.addf %61, %63 : vector<16x256xf32>
    %cst_35 = arith.constant 0.000000e+00 : f32
    %65 = vector.broadcast %cst_35 : f32 to vector<16x256xf32>
    %66 = arith.maximumf %64, %65 : vector<16x256xf32>
    %67 = vector.shape_cast %66 : vector<16x256xf32> to vector<4x4x256xf32>
    %cst_36 = arith.constant 0.000000e+00 : f32
    %68 = vector.broadcast %cst_36 : f32 to vector<1x4x256xf32>
    %69 = tpu.concatenate %68, %67, %68 in 0 : vector<1x4x256xf32>, vector<4x4x256xf32>, vector<1x4x256xf32> -> vector<6x4x256xf32>
    %cst_37 = arith.constant 0.000000e+00 : f32
    %70 = vector.broadcast %cst_37 : f32 to vector<6x1x256xf32>
    %71 = tpu.concatenate %70, %69, %70 in 1 : vector<6x1x256xf32>, vector<6x4x256xf32>, vector<6x1x256xf32> -> vector<6x6x256xf32>
    %72 = vector.extract_strided_slice %71 {offsets = [0, 0, 0], sizes = [4, 4, 256], strides = [1, 1, 1]} : vector<6x6x256xf32> to vector<4x4x256xf32>
    %73 = vector.extract_strided_slice %71 {offsets = [0, 1, 0], sizes = [4, 4, 256], strides = [1, 1, 1]} : vector<6x6x256xf32> to vector<4x4x256xf32>
    %74 = vector.extract_strided_slice %71 {offsets = [0, 2, 0], sizes = [4, 4, 256], strides = [1, 1, 1]} : vector<6x6x256xf32> to vector<4x4x256xf32>
    %75 = vector.extract_strided_slice %71 {offsets = [1, 0, 0], sizes = [4, 4, 256], strides = [1, 1, 1]} : vector<6x6x256xf32> to vector<4x4x256xf32>
    %76 = vector.extract_strided_slice %71 {offsets = [1, 1, 0], sizes = [4, 4, 256], strides = [1, 1, 1]} : vector<6x6x256xf32> to vector<4x4x256xf32>
    %77 = vector.extract_strided_slice %71 {offsets = [1, 2, 0], sizes = [4, 4, 256], strides = [1, 1, 1]} : vector<6x6x256xf32> to vector<4x4x256xf32>
    %78 = vector.extract_strided_slice %71 {offsets = [2, 0, 0], sizes = [4, 4, 256], strides = [1, 1, 1]} : vector<6x6x256xf32> to vector<4x4x256xf32>
    %79 = vector.extract_strided_slice %71 {offsets = [2, 1, 0], sizes = [4, 4, 256], strides = [1, 1, 1]} : vector<6x6x256xf32> to vector<4x4x256xf32>
    %80 = vector.extract_strided_slice %71 {offsets = [2, 2, 0], sizes = [4, 4, 256], strides = [1, 1, 1]} : vector<6x6x256xf32> to vector<4x4x256xf32>
    %81 = arith.maximumf %72, %73 : vector<4x4x256xf32>
    %82 = arith.maximumf %74, %75 : vector<4x4x256xf32>
    %83 = arith.maximumf %76, %77 : vector<4x4x256xf32>
    %84 = arith.maximumf %78, %79 : vector<4x4x256xf32>
    %85 = arith.maximumf %81, %82 : vector<4x4x256xf32>
    %86 = arith.maximumf %83, %84 : vector<4x4x256xf32>
    %87 = arith.maximumf %85, %86 : vector<4x4x256xf32>
    %88 = arith.maximumf %87, %80 : vector<4x4x256xf32>
    %89 = vector.shape_cast %88 : vector<4x4x256xf32> to vector<2x2x4x256xf32>
    %90 = vector.extract_strided_slice %89 {offsets = [0, 0, 0, 0], sizes = [2, 1, 4, 256], strides = [1, 1, 1, 1]} : vector<2x2x4x256xf32> to vector<2x1x4x256xf32>
    %91 = vector.shape_cast %90 : vector<2x1x4x256xf32> to vector<2x4x256xf32>
    %92 = vector.shape_cast %91 : vector<2x4x256xf32> to vector<2x2x2x256xf32>
    %93 = vector.extract_strided_slice %92 {offsets = [0, 0, 0, 0], sizes = [2, 2, 1, 256], strides = [1, 1, 1, 1]} : vector<2x2x2x256xf32> to vector<2x2x1x256xf32>
    %94 = vector.shape_cast %93 : vector<2x2x1x256xf32> to vector<2x2x256xf32>
    %c0_38 = arith.constant 0 : index
    %c0_39 = arith.constant 0 : index
    %c0_40 = arith.constant 0 : index
    %c0_41 = arith.constant 0 : index
    %95 = vector.load %arg4[%c0_38, %c0_39, %c0_40, %c0_41] : memref<1x2x2x256xf32, #tpu.memory_space<vmem>>, vector<1x2x2x256xf32>
    %96 = vector.shape_cast %95 : vector<1x2x2x256xf32> to vector<2x2x256xf32>
    %97 = vector.shape_cast %94 : vector<2x2x256xf32> to vector<1x2x2x256xf32>
    tpu.vector_store %arg4[%c0_38, %c0_39, %c0_40, %c0_41], %97 {strides = array<i32>} : memref<1x2x2x256xf32, #tpu.memory_space<vmem>>, vector<1x2x2x256xf32>,
    return
  }
  func.func @transform_0(%arg0: i32) -> (i32, i32, i32, i32) {
    %c0_i32 = arith.constant 0 : i32
    %c0_i32_0 = arith.constant 0 : i32
    %c0_i32_1 = arith.constant 0 : i32
    %c0_i32_2 = arith.constant 0 : i32
    return %arg0, %c0_i32, %c0_i32_0, %c0_i32_1 : i32, i32, i32, i32
  }
  func.func @transform_1(%arg0: i32) -> (i32, i32, i32) {
    %c0_i32 = arith.constant 0 : i32
    %c0_i32_0 = arith.constant 0 : i32
    %c0_i32_1 = arith.constant 0 : i32
    %c0_i32_2 = arith.constant 0 : i32
    return %c0_i32, %c0_i32_0, %c0_i32_1 : i32, i32, i32
  }
  func.func @transform_2(%arg0: i32) -> (i32, i32) {
    %c0_i32 = arith.constant 0 : i32
    %c0_i32_0 = arith.constant 0 : i32
    %c0_i32_1 = arith.constant 0 : i32
    return %c0_i32, %c0_i32_0 : i32, i32
  }
  func.func @transform_3(%arg0: i32) -> (i32, i32, i32, i32) {
    %c0_i32 = arith.constant 0 : i32
    %c0_i32_0 = arith.constant 0 : i32
    %c0_i32_1 = arith.constant 0 : i32
    %c0_i32_2 = arith.constant 0 : i32
    return %arg0, %c0_i32, %c0_i32_0, %c0_i32_1 : i32, i32, i32, i32
  }
}

module attributes {stable_mosaic.version = 11 : i64} {
  func.func @_corblock_kernel(%arg0: i32, %arg1: memref<1x2x2x256xf32, #tpu.memory_space<vmem>>, %arg2: memref<9x256x512xbf16, #tpu.memory_space<vmem>>, %arg3: memref<1x512xf32, #tpu.memory_space<vmem>>, %arg4: memref<1x1x1x512xf32, #tpu.memory_space<vmem>>) attributes {dimension_semantics = [#tpu.dimension_semantics<parallel>], iteration_bounds = array<i64: 2>, scalar_prefetch = 0 : i64, scratch_operands = 0 : i64, tpu.core_type = #tpu.core_type<tc>, window_params = [{transform_indices = @transform_0, window_bounds = array<i64: 1, 2, 2, 256>}, {pipeline_mode = #tpu.pipeline_mode<synchronous>, transform_indices = @transform_1, window_bounds = array<i64: 9, 256, 512>}, {pipeline_mode = #tpu.pipeline_mode<synchronous>, transform_indices = @transform_2, window_bounds = array<i64: 1, 512>}, {transform_indices = @transform_3, window_bounds = array<i64: 1, 1, 1, 512>}]} {
    %c0 = arith.constant 0 : index
    %c0_0 = arith.constant 0 : index
    %c0_1 = arith.constant 0 : index
    %c0_2 = arith.constant 0 : index
    %0 = vector.load %arg1[%c0, %c0_0, %c0_1, %c0_2] : memref<1x2x2x256xf32, #tpu.memory_space<vmem>>, vector<1x2x2x256xf32>
    %1 = vector.shape_cast %0 : vector<1x2x2x256xf32> to vector<2x2x256xf32>
    %2 = arith.truncf %1 : vector<2x2x256xf32> to vector<2x2x256xbf16>
    %cst = arith.constant 0.000000e+00 : bf16
    %3 = vector.broadcast %cst : bf16 to vector<1x2x256xbf16>
    %4 = tpu.concatenate %3, %2, %3 in 0 : vector<1x2x256xbf16>, vector<2x2x256xbf16>, vector<1x2x256xbf16> -> vector<4x2x256xbf16>
    %cst_3 = arith.constant 0.000000e+00 : bf16
    %5 = vector.broadcast %cst_3 : bf16 to vector<4x1x256xbf16>
    %6 = tpu.concatenate %5, %4, %5 in 1 : vector<4x1x256xbf16>, vector<4x2x256xbf16>, vector<4x1x256xbf16> -> vector<4x4x256xbf16>
    %cst_4 = arith.constant 0.000000e+00 : f32
    %7 = vector.broadcast %cst_4 : f32 to vector<4x512xf32>
    %8 = vector.extract_strided_slice %6 {offsets = [0, 0, 0], sizes = [2, 2, 256], strides = [1, 1, 1]} : vector<4x4x256xbf16> to vector<2x2x256xbf16>
    %9 = vector.shape_cast %8 : vector<2x2x256xbf16> to vector<4x256xbf16>
    %c0_5 = arith.constant 0 : index
    %c0_6 = arith.constant 0 : index
    %c0_7 = arith.constant 0 : index
    %10 = vector.load %arg2[%c0_5, %c0_6, %c0_7] : memref<9x256x512xbf16, #tpu.memory_space<vmem>>, vector<1x256x512xbf16>
    %11 = vector.shape_cast %10 : vector<1x256x512xbf16> to vector<256x512xbf16>
    %cst_8 = arith.constant dense<0.000000e+00> : vector<4x512xf32>
    %12 = tpu.matmul %9, %11, %cst_8 {dimension_numbers = #tpu.dot_dimension_numbers<[1], [0], [0], [1], [0, 0, 1, 1], [], []>} : vector<4x256xbf16>, vector<256x512xbf16>, vector<4x512xf32> -> vector<4x512xf32>
    %13 = arith.addf %7, %12 : vector<4x512xf32>
    %14 = vector.extract_strided_slice %6 {offsets = [0, 1, 0], sizes = [2, 2, 256], strides = [1, 1, 1]} : vector<4x4x256xbf16> to vector<2x2x256xbf16>
    %15 = vector.shape_cast %14 : vector<2x2x256xbf16> to vector<4x256xbf16>
    %c1 = arith.constant 1 : index
    %c0_9 = arith.constant 0 : index
    %c0_10 = arith.constant 0 : index
    %16 = vector.load %arg2[%c1, %c0_9, %c0_10] : memref<9x256x512xbf16, #tpu.memory_space<vmem>>, vector<1x256x512xbf16>
    %17 = vector.shape_cast %16 : vector<1x256x512xbf16> to vector<256x512xbf16>
    %cst_11 = arith.constant dense<0.000000e+00> : vector<4x512xf32>
    %18 = tpu.matmul %15, %17, %cst_11 {dimension_numbers = #tpu.dot_dimension_numbers<[1], [0], [0], [1], [0, 0, 1, 1], [], []>} : vector<4x256xbf16>, vector<256x512xbf16>, vector<4x512xf32> -> vector<4x512xf32>
    %19 = arith.addf %13, %18 : vector<4x512xf32>
    %20 = vector.extract_strided_slice %6 {offsets = [0, 2, 0], sizes = [2, 2, 256], strides = [1, 1, 1]} : vector<4x4x256xbf16> to vector<2x2x256xbf16>
    %21 = vector.shape_cast %20 : vector<2x2x256xbf16> to vector<4x256xbf16>
    %c2 = arith.constant 2 : index
    %c0_12 = arith.constant 0 : index
    %c0_13 = arith.constant 0 : index
    %22 = vector.load %arg2[%c2, %c0_12, %c0_13] : memref<9x256x512xbf16, #tpu.memory_space<vmem>>, vector<1x256x512xbf16>
    %23 = vector.shape_cast %22 : vector<1x256x512xbf16> to vector<256x512xbf16>
    %cst_14 = arith.constant dense<0.000000e+00> : vector<4x512xf32>
    %24 = tpu.matmul %21, %23, %cst_14 {dimension_numbers = #tpu.dot_dimension_numbers<[1], [0], [0], [1], [0, 0, 1, 1], [], []>} : vector<4x256xbf16>, vector<256x512xbf16>, vector<4x512xf32> -> vector<4x512xf32>
    %25 = arith.addf %19, %24 : vector<4x512xf32>
    %26 = vector.extract_strided_slice %6 {offsets = [1, 0, 0], sizes = [2, 2, 256], strides = [1, 1, 1]} : vector<4x4x256xbf16> to vector<2x2x256xbf16>
    %27 = vector.shape_cast %26 : vector<2x2x256xbf16> to vector<4x256xbf16>
    %c3 = arith.constant 3 : index
    %c0_15 = arith.constant 0 : index
    %c0_16 = arith.constant 0 : index
    %28 = vector.load %arg2[%c3, %c0_15, %c0_16] : memref<9x256x512xbf16, #tpu.memory_space<vmem>>, vector<1x256x512xbf16>
    %29 = vector.shape_cast %28 : vector<1x256x512xbf16> to vector<256x512xbf16>
    %cst_17 = arith.constant dense<0.000000e+00> : vector<4x512xf32>
    %30 = tpu.matmul %27, %29, %cst_17 {dimension_numbers = #tpu.dot_dimension_numbers<[1], [0], [0], [1], [0, 0, 1, 1], [], []>} : vector<4x256xbf16>, vector<256x512xbf16>, vector<4x512xf32> -> vector<4x512xf32>
    %31 = arith.addf %25, %30 : vector<4x512xf32>
    %32 = vector.extract_strided_slice %6 {offsets = [1, 1, 0], sizes = [2, 2, 256], strides = [1, 1, 1]} : vector<4x4x256xbf16> to vector<2x2x256xbf16>
    %33 = vector.shape_cast %32 : vector<2x2x256xbf16> to vector<4x256xbf16>
    %c4 = arith.constant 4 : index
    %c0_18 = arith.constant 0 : index
    %c0_19 = arith.constant 0 : index
    %34 = vector.load %arg2[%c4, %c0_18, %c0_19] : memref<9x256x512xbf16, #tpu.memory_space<vmem>>, vector<1x256x512xbf16>
    %35 = vector.shape_cast %34 : vector<1x256x512xbf16> to vector<256x512xbf16>
    %cst_20 = arith.constant dense<0.000000e+00> : vector<4x512xf32>
    %36 = tpu.matmul %33, %35, %cst_20 {dimension_numbers = #tpu.dot_dimension_numbers<[1], [0], [0], [1], [0, 0, 1, 1], [], []>} : vector<4x256xbf16>, vector<256x512xbf16>, vector<4x512xf32> -> vector<4x512xf32>
    %37 = arith.addf %31, %36 : vector<4x512xf32>
    %38 = vector.extract_strided_slice %6 {offsets = [1, 2, 0], sizes = [2, 2, 256], strides = [1, 1, 1]} : vector<4x4x256xbf16> to vector<2x2x256xbf16>
    %39 = vector.shape_cast %38 : vector<2x2x256xbf16> to vector<4x256xbf16>
    %c5 = arith.constant 5 : index
    %c0_21 = arith.constant 0 : index
    %c0_22 = arith.constant 0 : index
    %40 = vector.load %arg2[%c5, %c0_21, %c0_22] : memref<9x256x512xbf16, #tpu.memory_space<vmem>>, vector<1x256x512xbf16>
    %41 = vector.shape_cast %40 : vector<1x256x512xbf16> to vector<256x512xbf16>
    %cst_23 = arith.constant dense<0.000000e+00> : vector<4x512xf32>
    %42 = tpu.matmul %39, %41, %cst_23 {dimension_numbers = #tpu.dot_dimension_numbers<[1], [0], [0], [1], [0, 0, 1, 1], [], []>} : vector<4x256xbf16>, vector<256x512xbf16>, vector<4x512xf32> -> vector<4x512xf32>
    %43 = arith.addf %37, %42 : vector<4x512xf32>
    %44 = vector.extract_strided_slice %6 {offsets = [2, 0, 0], sizes = [2, 2, 256], strides = [1, 1, 1]} : vector<4x4x256xbf16> to vector<2x2x256xbf16>
    %45 = vector.shape_cast %44 : vector<2x2x256xbf16> to vector<4x256xbf16>
    %c6 = arith.constant 6 : index
    %c0_24 = arith.constant 0 : index
    %c0_25 = arith.constant 0 : index
    %46 = vector.load %arg2[%c6, %c0_24, %c0_25] : memref<9x256x512xbf16, #tpu.memory_space<vmem>>, vector<1x256x512xbf16>
    %47 = vector.shape_cast %46 : vector<1x256x512xbf16> to vector<256x512xbf16>
    %cst_26 = arith.constant dense<0.000000e+00> : vector<4x512xf32>
    %48 = tpu.matmul %45, %47, %cst_26 {dimension_numbers = #tpu.dot_dimension_numbers<[1], [0], [0], [1], [0, 0, 1, 1], [], []>} : vector<4x256xbf16>, vector<256x512xbf16>, vector<4x512xf32> -> vector<4x512xf32>
    %49 = arith.addf %43, %48 : vector<4x512xf32>
    %50 = vector.extract_strided_slice %6 {offsets = [2, 1, 0], sizes = [2, 2, 256], strides = [1, 1, 1]} : vector<4x4x256xbf16> to vector<2x2x256xbf16>
    %51 = vector.shape_cast %50 : vector<2x2x256xbf16> to vector<4x256xbf16>
    %c7 = arith.constant 7 : index
    %c0_27 = arith.constant 0 : index
    %c0_28 = arith.constant 0 : index
    %52 = vector.load %arg2[%c7, %c0_27, %c0_28] : memref<9x256x512xbf16, #tpu.memory_space<vmem>>, vector<1x256x512xbf16>
    %53 = vector.shape_cast %52 : vector<1x256x512xbf16> to vector<256x512xbf16>
    %cst_29 = arith.constant dense<0.000000e+00> : vector<4x512xf32>
    %54 = tpu.matmul %51, %53, %cst_29 {dimension_numbers = #tpu.dot_dimension_numbers<[1], [0], [0], [1], [0, 0, 1, 1], [], []>} : vector<4x256xbf16>, vector<256x512xbf16>, vector<4x512xf32> -> vector<4x512xf32>
    %55 = arith.addf %49, %54 : vector<4x512xf32>
    %56 = vector.extract_strided_slice %6 {offsets = [2, 2, 0], sizes = [2, 2, 256], strides = [1, 1, 1]} : vector<4x4x256xbf16> to vector<2x2x256xbf16>
    %57 = vector.shape_cast %56 : vector<2x2x256xbf16> to vector<4x256xbf16>
    %c8 = arith.constant 8 : index
    %c0_30 = arith.constant 0 : index
    %c0_31 = arith.constant 0 : index
    %58 = vector.load %arg2[%c8, %c0_30, %c0_31] : memref<9x256x512xbf16, #tpu.memory_space<vmem>>, vector<1x256x512xbf16>
    %59 = vector.shape_cast %58 : vector<1x256x512xbf16> to vector<256x512xbf16>
    %cst_32 = arith.constant dense<0.000000e+00> : vector<4x512xf32>
    %60 = tpu.matmul %57, %59, %cst_32 {dimension_numbers = #tpu.dot_dimension_numbers<[1], [0], [0], [1], [0, 0, 1, 1], [], []>} : vector<4x256xbf16>, vector<256x512xbf16>, vector<4x512xf32> -> vector<4x512xf32>
    %61 = arith.addf %55, %60 : vector<4x512xf32>
    %c0_33 = arith.constant 0 : index
    %c0_34 = arith.constant 0 : index
    %62 = vector.load %arg3[%c0_33, %c0_34] : memref<1x512xf32, #tpu.memory_space<vmem>>, vector<1x512xf32>
    %63 = vector.broadcast %62 : vector<1x512xf32> to vector<4x512xf32>
    %64 = arith.addf %61, %63 : vector<4x512xf32>
    %cst_35 = arith.constant 0.000000e+00 : f32
    %65 = vector.broadcast %cst_35 : f32 to vector<4x512xf32>
    %66 = arith.maximumf %64, %65 : vector<4x512xf32>
    %67 = vector.shape_cast %66 : vector<4x512xf32> to vector<2x2x512xf32>
    %cst_36 = arith.constant 0.000000e+00 : f32
    %68 = vector.broadcast %cst_36 : f32 to vector<1x2x512xf32>
    %69 = tpu.concatenate %68, %67, %68 in 0 : vector<1x2x512xf32>, vector<2x2x512xf32>, vector<1x2x512xf32> -> vector<4x2x512xf32>
    %cst_37 = arith.constant 0.000000e+00 : f32
    %70 = vector.broadcast %cst_37 : f32 to vector<4x1x512xf32>
    %71 = tpu.concatenate %70, %69, %70 in 1 : vector<4x1x512xf32>, vector<4x2x512xf32>, vector<4x1x512xf32> -> vector<4x4x512xf32>
    %72 = vector.extract_strided_slice %71 {offsets = [0, 0, 0], sizes = [2, 2, 512], strides = [1, 1, 1]} : vector<4x4x512xf32> to vector<2x2x512xf32>
    %73 = vector.extract_strided_slice %71 {offsets = [0, 1, 0], sizes = [2, 2, 512], strides = [1, 1, 1]} : vector<4x4x512xf32> to vector<2x2x512xf32>
    %74 = vector.extract_strided_slice %71 {offsets = [0, 2, 0], sizes = [2, 2, 512], strides = [1, 1, 1]} : vector<4x4x512xf32> to vector<2x2x512xf32>
    %75 = vector.extract_strided_slice %71 {offsets = [1, 0, 0], sizes = [2, 2, 512], strides = [1, 1, 1]} : vector<4x4x512xf32> to vector<2x2x512xf32>
    %76 = vector.extract_strided_slice %71 {offsets = [1, 1, 0], sizes = [2, 2, 512], strides = [1, 1, 1]} : vector<4x4x512xf32> to vector<2x2x512xf32>
    %77 = vector.extract_strided_slice %71 {offsets = [1, 2, 0], sizes = [2, 2, 512], strides = [1, 1, 1]} : vector<4x4x512xf32> to vector<2x2x512xf32>
    %78 = vector.extract_strided_slice %71 {offsets = [2, 0, 0], sizes = [2, 2, 512], strides = [1, 1, 1]} : vector<4x4x512xf32> to vector<2x2x512xf32>
    %79 = vector.extract_strided_slice %71 {offsets = [2, 1, 0], sizes = [2, 2, 512], strides = [1, 1, 1]} : vector<4x4x512xf32> to vector<2x2x512xf32>
    %80 = vector.extract_strided_slice %71 {offsets = [2, 2, 0], sizes = [2, 2, 512], strides = [1, 1, 1]} : vector<4x4x512xf32> to vector<2x2x512xf32>
    %81 = arith.maximumf %72, %73 : vector<2x2x512xf32>
    %82 = arith.maximumf %74, %75 : vector<2x2x512xf32>
    %83 = arith.maximumf %76, %77 : vector<2x2x512xf32>
    %84 = arith.maximumf %78, %79 : vector<2x2x512xf32>
    %85 = arith.maximumf %81, %82 : vector<2x2x512xf32>
    %86 = arith.maximumf %83, %84 : vector<2x2x512xf32>
    %87 = arith.maximumf %85, %86 : vector<2x2x512xf32>
    %88 = arith.maximumf %87, %80 : vector<2x2x512xf32>
    %89 = vector.shape_cast %88 : vector<2x2x512xf32> to vector<1x2x2x512xf32>
    %90 = vector.extract_strided_slice %89 {offsets = [0, 0, 0, 0], sizes = [1, 1, 2, 512], strides = [1, 1, 1, 1]} : vector<1x2x2x512xf32> to vector<1x1x2x512xf32>
    %91 = vector.shape_cast %90 : vector<1x1x2x512xf32> to vector<1x2x512xf32>
    %92 = vector.shape_cast %91 : vector<1x2x512xf32> to vector<1x1x2x512xf32>
    %93 = vector.extract_strided_slice %92 {offsets = [0, 0, 0, 0], sizes = [1, 1, 1, 512], strides = [1, 1, 1, 1]} : vector<1x1x2x512xf32> to vector<1x1x1x512xf32>
    %94 = vector.shape_cast %93 : vector<1x1x1x512xf32> to vector<1x1x512xf32>
    %c0_38 = arith.constant 0 : index
    %c0_39 = arith.constant 0 : index
    %c0_40 = arith.constant 0 : index
    %c0_41 = arith.constant 0 : index
    %95 = vector.load %arg4[%c0_38, %c0_39, %c0_40, %c0_41] : memref<1x1x1x512xf32, #tpu.memory_space<vmem>>, vector<1x1x1x512xf32>
    %96 = vector.shape_cast %95 : vector<1x1x1x512xf32> to vector<1x1x512xf32>
    %97 = vector.shape_cast %94 : vector<1x1x512xf32> to vector<1x1x1x512xf32>
    tpu.vector_store %arg4[%c0_38, %c0_39, %c0_40, %c0_41], %97 {strides = array<i32>} : memref<1x1x1x512xf32, #tpu.memory_space<vmem>>, vector<1x1x1x512xf32>,
    return
  }
  func.func @transform_0(%arg0: i32) -> (i32, i32, i32, i32) {
    %c0_i32 = arith.constant 0 : i32
    %c0_i32_0 = arith.constant 0 : i32
    %c0_i32_1 = arith.constant 0 : i32
    %c0_i32_2 = arith.constant 0 : i32
    return %arg0, %c0_i32, %c0_i32_0, %c0_i32_1 : i32, i32, i32, i32
  }
  func.func @transform_1(%arg0: i32) -> (i32, i32, i32) {
    %c0_i32 = arith.constant 0 : i32
    %c0_i32_0 = arith.constant 0 : i32
    %c0_i32_1 = arith.constant 0 : i32
    %c0_i32_2 = arith.constant 0 : i32
    return %c0_i32, %c0_i32_0, %c0_i32_1 : i32, i32, i32
  }
  func.func @transform_2(%arg0: i32) -> (i32, i32) {
    %c0_i32 = arith.constant 0 : i32
    %c0_i32_0 = arith.constant 0 : i32
    %c0_i32_1 = arith.constant 0 : i32
    return %c0_i32, %c0_i32_0 : i32, i32
  }
  func.func @transform_3(%arg0: i32) -> (i32, i32, i32, i32) {
    %c0_i32 = arith.constant 0 : i32
    %c0_i32_0 = arith.constant 0 : i32
    %c0_i32_1 = arith.constant 0 : i32
    %c0_i32_2 = arith.constant 0 : i32
    return %arg0, %c0_i32, %c0_i32_0, %c0_i32_1 : i32, i32, i32, i32
  }
}

module attributes {stable_mosaic.version = 11 : i64} {
  func.func @_head_kernel(%arg0: memref<2x1x512xf32, #tpu.memory_space<vmem>>, %arg1: memref<512x128xf32, #tpu.memory_space<vmem>>, %arg2: memref<1x128xf32, #tpu.memory_space<vmem>>, %arg3: memref<2x512xf32, #tpu.memory_space<vmem>>, %arg4: memref<2x128xf32, #tpu.memory_space<vmem>>) attributes {dimension_semantics = [], scalar_prefetch = 0 : i64, scratch_operands = 0 : i64, tpu.core_type = #tpu.core_type<tc>} {
    %c0 = arith.constant 0 : index
    %c0_0 = arith.constant 0 : index
    %c0_1 = arith.constant 0 : index
    %0 = vector.load %arg0[%c0, %c0_0, %c0_1] : memref<2x1x512xf32, #tpu.memory_space<vmem>>, vector<2x1x512xf32>
    %cst = arith.constant dense<0.000000e+00> : vector<2x512xf32>
    %1 = vector.multi_reduction <add>, %0, %cst [1] : vector<2x1x512xf32> to vector<2x512xf32>
    %cst_2 = arith.constant 1.000000e+00 : f32
    %2 = vector.broadcast %cst_2 : f32 to vector<2x512xf32>
    %3 = arith.mulf %1, %2 : vector<2x512xf32>
    %c0_3 = arith.constant 0 : index
    %c0_4 = arith.constant 0 : index
    %4 = vector.load %arg3[%c0_3, %c0_4] : memref<2x512xf32, #tpu.memory_space<vmem>>, vector<2x512xf32>
    tpu.vector_store %arg3[%c0_3, %c0_4], %3 {strides = array<i32>} : memref<2x512xf32, #tpu.memory_space<vmem>>, vector<2x512xf32>,
    %c0_5 = arith.constant 0 : index
    %c0_6 = arith.constant 0 : index
    %5 = vector.load %arg1[%c0_5, %c0_6] : memref<512x128xf32, #tpu.memory_space<vmem>>, vector<512x128xf32>
    %cst_7 = arith.constant dense<0.000000e+00> : vector<2x128xf32>
    %6 = tpu.matmul %3, %5, %cst_7 {dimension_numbers = #tpu.dot_dimension_numbers<[1], [0], [0], [1], [0, 0, 1, 1], [], []>} : vector<2x512xf32>, vector<512x128xf32>, vector<2x128xf32> -> vector<2x128xf32>
    %c0_8 = arith.constant 0 : index
    %c0_9 = arith.constant 0 : index
    %7 = vector.load %arg2[%c0_8, %c0_9] : memref<1x128xf32, #tpu.memory_space<vmem>>, vector<1x128xf32>
    %8 = vector.broadcast %7 : vector<1x128xf32> to vector<2x128xf32>
    %9 = arith.addf %6, %8 : vector<2x128xf32>
    %c0_10 = arith.constant 0 : index
    %c0_11 = arith.constant 0 : index
    %10 = vector.load %arg4[%c0_10, %c0_11] : memref<2x128xf32, #tpu.memory_space<vmem>>, vector<2x128xf32>
    tpu.vector_store %arg4[%c0_10, %c0_11], %9 {strides = array<i32>} : memref<2x128xf32, #tpu.memory_space<vmem>>, vector<2x128xf32>,
    return
  }
}

</mosaic_0001>

<bundles_post_ra>
// kernel: cornet_z_tweak_forward.6
= control target key start
LH: loop header
LB: loop body
LE: loop exit
PB: predicated region body
PF: predicated region fallthrough
CT: control target
= control target key end

     0   :  { %s2535_s12 = smov 0   ;;  %s3228_s0 = inlined_call_operand.vmem [shape: f32[2,8,8,64], index: 0, kind: input, shape index: {}]   ;;  %s3229_s1 = inlined_call_operand.vmem [shape: bf16[9,64,128], index: 1, kind: input, shape index: {}]   ;;  %s3230_s2 = inlined_call_operand.vmem [shape: f32[1,128], index: 2, kind: input, shape index: {}]   ;;  %s3231_s3 = inlined_call_operand.vmem [shape: f32[2,4,4,128], index: 3, kind: output, shape index: {}]  }
   0x1 LB: > { %s2029_s13 = sadd.s32 4294967295, %s2510_s12   ;;  %p2033_p0 = scmp.ge.s32.totalorder %s2510_s12, 1  ;;  %s2510_s12 = sphi %s2535_s12, %s13_s12  }
   0x2   : > { %p137_p1 = scmp.lt.s32.totalorder %s2510_s12, 3 }
   0x4   : > { %p138_p2 = pnand %p2033_p0, %p137_p1 }
   0x5   : > { %p161_p3 = scmp.lt.s32.totalorder (!%p138_p2), %s2029_s13, 1 }
   0x6   : > { %141 = sbr.rel (%p138_p2) target bundleno = 374 (0x176), region = 32 }
   0xb   : > { %v2468_v0 = vld [vmem:[%s3229_s1 + $0x18] sm:$0xff]   ;;  %v2469_v1 = vld [vmem:[%s3229_s1 + $0x10] sm:$0xff]   ;;  %s3241_s13 = smov (!%p161_p3, %s2029_s13), 1  ;;  %v2471_v3 = vld [vmem:[%s3229_s1 + $0x8] sm:$0xff]   ;;  %v2512_v5 = vmov 0   ;;  %vm260_vm0 = vcmask 1040384  }
   0xc   : > { %2321 = vmatprep.subr.bf16.mxu1 %v2468_v0  ;;  %v2470_v2 = vld [vmem:[%s3229_s1 + $0x38] sm:$0xff]   ;;  %v2472_v4 = vld [vmem:[%s3229_s1 + $0x30] sm:$0xff]   ;;  %s2231_s24 = sshll.u32 %s3241_s13, 6  ;;  %v191_v6 = vrot.slane %v2512_v5, 7  ;;  %v2474_v7 = vld [vmem:[%s3229_s1 + $0x28] sm:$0xff]   ;;  %vm272_vm1 = vcmask 1044480  }
   0xd   : > { %2322 = vmatpush3.bf16.msra.mxu1 %v2468_v0  ;;  %2305 = vmatprep.subr.bf16.mxu0 %v2470_v2  ;;  %s2564_s27 = scalar_lea.vmem %s3228_s0, %s2231_s24  ;;  %v2473_v8 = vld [vmem:[%s3229_s1] sm:$0xff]   ;;  %vm261_vm2 = vsmask.f32 256  ;;  %vm273_vm3 = vsmask.f32 4352  ;;  %v2475_v21 = vld [vmem:[%s3229_s1 + $0x78] sm:$0xff]  }
   0xe   : > { %2323 = vmatprep.subr.bf16.mxu1 %v2469_v1  ;;  %2306 = vmatpush3.bf16.msra.mxu0 %v2470_v2  ;;  %v172_v9 = vld [vmem:[%s2564_s27] sm:$0xff]  ;;  %vm2574_vm4 = vmand %vm260_vm0, %vm261_vm2  ;;  %v173_v12 = vld [vmem:[%s2564_s27 + $0x8] sm:$0xff]  ;;  %vm492_vm6 = vcmask 523264   ;;  %vm332_vm7 = vsmask.f32 3328  ;;  %vm675_vm10 = vcmask 1042432  }
   0xf   : > { %2307 = vmatprep.subr.bf16.mxu0 %v2472_v4  ;;  %v180_v10 = vpack.c.bf16 %v172_v9, %v172_v9  ;;  %v174_v13 = vld [vmem:[%s2564_s27 + $0x10] sm:$0xff]  ;;  %v263_v14 = vsel %vm2574_vm4, 0, %v191_v6  ;;  %vm2582_vm5 = vmand %vm272_vm1, %vm273_vm3  ;;  %v181_v16 = vpack.c.bf16 %v173_v12, %v173_v12  ;;  %v2476_v25 = vld [vmem:[%s3229_s1 + $0x20] sm:$0xff]   ;;  %vm333_vm8 = vsmask.f32 7440  ;;  %s2232_s17 = sshll.u32 %s3241_s13, 4 }
  0x10   : > { %v182_v17 = vpack.c.bf16 %v174_v13, %v174_v13  ;;  %v2588_v20 = vsel %vm2582_vm5, %v263_v14, 0  ;;  %v175_v31 = vld [vmem:[%s2564_s27 + $0x18] sm:$0xff]  ;;  %v178_v32 = vld [vmem:[%s2564_s27 + $0x30] sm:$0xff]  ;;  %v2479_v0 = vld [vmem:[%s3229_s1 + $0x68] sm:$0xff]   ;;  %vm676_vm11 = vcmask 1046532   ;;  %vm1638_vm13 = vcmask 1046528   ;;  %s3167_s19 = scalar_lea.vmem %s3231_s3, %s2232_s17 }
  0x11   : > { %2324 = vmatpush3.bf16.msra.mxu1 %v2469_v1  ;;  %v196_v18 = vshrl.u32 %v180_v10, 16  ;;  %v199_v19 = vshll.u32 %v180_v10, 16  ;;  %v203_v22 = vshrl.u32 %v181_v16, 16  ;;  %v206_v23 = vshll.u32 %v181_v16, 16  ;;  %v2605_v38 = vld [vmem:[%s3229_s1 + $0x58] sm:$0xff]   ;;  %v2477_v52 = vld [vmem:[%s3229_s1 + $0x70] sm:$0xff]   ;;  %vm2682_vm9 = vmor %vm332_vm7, %vm333_vm8 }
  0x12   : > { %2325 = vmatprep.subr.bf16.mxu1 %v2471_v3  ;;  %2308 = vmatpush3.bf16.msra.mxu0 %v2472_v4  ;;  %v210_v24 = vshrl.u32 %v182_v17, 16  ;;  %v2598_v27 = vcombine.low %v2588_v20, %v2588_v20  ;;  %v213_v28 = vshll.u32 %v182_v17, 16  ;;  %v183_v34 = vpack.c.bf16 %v175_v31, %v175_v31  ;;  %vm2821_vm12 = vmor %vm675_vm10, %vm676_vm11 }
  0x13   : > { %2309 = vmatprep.subr.bf16.mxu0 %v2474_v7  ;;  %v198_v26 = vrot.slane %v196_v18, 7  ;;  %v205_v29 = vrot.slane %v203_v22, 7  ;;  %v186_v35 = vpack.c.bf16 %v178_v32, %v178_v32  ;;  %v2643_v53 = vcombine.high %v2588_v20, %v2588_v20 }
  0x14   : > { %v212_v30 = vrot.slane %v210_v24, 7  ;;  %v336_v40 = vshrl.u32 %v2598_v27, 16  ;;  %v339_v41 = vshll.u32 %v2598_v27, 16  ;;  %v217_v45 = vshrl.u32 %v183_v34, 16 }
  0x15   : > { %2326 = vmatpush3.bf16.msra.mxu1 %v2471_v3  ;;  %v201_v33 = vor.u32 %v199_v19, %v198_v26  ;;  %v208_v36 = vor.u32 %v206_v23, %v205_v29  ;;  %v238_v49 = vshrl.u32 %v186_v35, 16  ;;  %v220_v54 = vshll.u32 %v183_v34, 16  ;;  %v179_v34 = vld [vmem:[%s2564_s27 + $0x38] sm:$0xff]  ;;  %v2500_v19 = vld [vmem:[%s3229_s1 + $0xc0] sm:$0xff]  }
  0x16   : > { %2327 = vmatprep.subr.bf16.mxu1 %v2473_v8  ;;  %2310 = vmatpush3.bf16.msra.mxu0 %v2474_v7  ;;  %v215_v37 = vor.u32 %v213_v28, %v212_v30  ;;  %v338_v55 = vrot.slane %v336_v40, 4  ;;  %v219_v56 = vrot.slane %v217_v45, 7  ;;  %v241_v57 = vshll.u32 %v186_v35, 16 }
  0x17   : > { %2311 = vmatprep.subr.bf16.mxu0 %v2476_v25  ;;  %v264_v39 = vsel %vm2574_vm4, 0, %v201_v33  ;;  %v265_v43 = vsel %vm2574_vm4, 0, %v208_v36  ;;  %v240_v58 = vrot.slane %v238_v49, 7  ;;  %v341_v59 = vrot.slane %v339_v41, 5  ;;  %v2694_v33 = vld [vmem:[%s3229_s1 + $0xb8] sm:$0xff]  }
  0x18   : > { %v2613_v42 = vsel %vm2582_vm5, %v264_v39, 0  ;;  %v266_v44 = vsel %vm2574_vm4, 0, %v215_v37  ;;  %v2623_v47 = vsel %vm2582_vm5, %v265_v43, 0  ;;  %v345_v61 = vshll.u32 %v2643_v53, 16 }
  0x19   : > { %2328 = vmatpush3.bf16.msra.mxu1 %v2473_v8  ;;  %v2074_v46 = vcombine.low %v2588_v20, %v2613_v42  ;;  %v2627_v48 = vsel %vm2582_vm5, %v266_v44, 0  ;;  %v2632_v50 = vcombine.low %v2613_v42, %v2613_v42  ;;  %v2650_v60 = vcombine.high %v2613_v42, %v2613_v42  ;;  %v2481_v8 = vld [vmem:[%s3229_s1 + $0x60] sm:$0xff]  }
  0x1a   : > { %2353 = vmatprep.subr.bf16.mxu1 %v2475_v21  ;;  %2312 = vmatpush3.bf16.msra.mxu0 %v2476_v25  ;;  %v2636_v51 = vcombine.low %v2623_v47, %v2627_v48  ;;  %v2660_v1 = vcombine.low %v2623_v47, %v2623_v47  ;;  %v2664_v2 = vcombine.high %v2623_v47, %v2623_v47  ;;  %v347_v9 = vrot.slane %v345_v61, 5  ;;  %v2480_v61 = vld [vmem:[%s3229_s1 + $0x50] sm:$0xff]  }
  0x1b   : > { %2337 = vmatprep.subr.bf16.mxu0 %v2605_v38  ;;  %2329 = vmatprep.mubr.msk.bf16.mxu1 %vm492_vm6, %v2074_v46  ;;  %v350_v62 = vshrl.u32 %v2632_v50, 16  ;;  %v353_v63 = vshll.u32 %v2632_v50, 16  ;;  %v342_v3 = vor.u32 %v341_v59, %v338_v55  ;;  %v2668_v4 = vcombine.low %v2627_v48, %v2627_v48 }
  0x1c   : > { %2330 = vmatmul.mubr.msk.bf16.vlgmr.msra.gmra.mxu1 %vm492_vm6, %v2636_v51  ;;  %v222_v5 = vor.u32 %v220_v54, %v219_v56  ;;  %v243_v6 = vor.u32 %v241_v57, %v240_v58  ;;  %v2672_v7 = vcombine.high %v2627_v48, %v2627_v48  ;;  %v359_v13 = vshll.u32 %v2650_v60, 16  ;;  %v176_v58 = vld [vmem:[%s2564_s27 + $0x20] sm:$0xff] }
  0x1d   : > { %2354 = vmatpush3.bf16.msra.mxu1 %v2475_v21  ;;  %v352_v10 = vrot.slane %v350_v62, 4  ;;  %v355_v12 = vrot.slane %v353_v63, 5  ;;  %v343_v14 = vrot.slane %v342_v3, 4  ;;  %v364_v16 = vshrl.u32 %v2660_v1, 16 }
  0x1e   : > { %2355 = vmatprep.subr.bf16.mxu1 %v2477_v52  ;;  %v367_v17 = vshll.u32 %v2660_v1, 16  ;;  %v373_v18 = vshll.u32 %v2664_v2, 16  ;;  %v361_v22 = vrot.slane %v359_v13, 5  ;;  %v378_v23 = vshrl.u32 %v2668_v4, 16 }
  0x1f   : > { %v356_v21 = vor.u32 %v355_v12, %v352_v10  ;;  %v381_v24 = vshll.u32 %v2668_v4, 16  ;;  %v267_v25 = vsel %vm2574_vm4, 0, %v222_v5  ;;  %v366_v26 = vrot.slane %v364_v16, 4 }
  0x20   : > { %v369_v28 = vrot.slane %v367_v17, 5  ;;  %v387_v29 = vshll.u32 %v2672_v7, 16  ;;  %v380_v31 = vrot.slane %v378_v23, 4  ;;  %v2699_v35 = vsel %vm2682_vm9, %v343_v14, %v347_v9  ;;  %v2482_v9 = vld [vmem:[%s3229_s1 + $0x48] sm:$0xff]  }
  0x21   : > { %2356 = vmatpush3.bf16.msra.mxu1 %v2477_v52  ;;  %v357_v30 = vrot.slane %v356_v21, 4  ;;  %v383_v32 = vrot.slane %v381_v24, 5  ;;  %v375_v37 = vrot.slane %v373_v18, 5  ;;  %v270_v39 = vsel %vm2574_vm4, 0, %v243_v6 }
  0x22   : > { %2357 = vmatprep.subr.bf16.mxu1 %v2479_v0  ;;  %v370_v36 = vor.u32 %v369_v28, %v366_v26  ;;  %v389_v43 = vrot.slane %v387_v29, 5  ;;  %v2709_v44 = vsel %vm2582_vm5, %v267_v25, 0  ;;  %v187_v46 = vpack.c.bf16 %v179_v34, %v179_v34 }
  0x23   : > { %v2705_v40 = vsel %vm2682_vm9, %v357_v30, %v361_v22  ;;  %v384_v41 = vor.u32 %v383_v32, %v380_v31  ;;  %v2716_v54 = vsel %vm2582_vm5, %v270_v39, 0  ;;  %v2724_v56 = vcombine.low %v2709_v44, %v2709_v44 }
  0x24   : > { %v371_v45 = vrot.slane %v370_v36, 4  ;;  %v2062_v52 = vcombine.low %v2699_v35, %v2705_v40  ;;  %v245_v62 = vshrl.u32 %v187_v46, 16  ;;  %v2741_v63 = vcombine.low %v2716_v54, %v2716_v54 }
  0x25   : > { %2358 = vmatpush3.bf16.msra.mxu1 %v2479_v0  ;;  %v385_v49 = vrot.slane %v384_v41, 4  ;;  %v177_v0 = vld [vmem:[%s2564_s27 + $0x28] sm:$0xff]  ;;  %v184_v3 = vpack.c.bf16 %v176_v58, %v176_v58  ;;  %v2748_v5 = vcombine.high %v2709_v44, %v2709_v44  ;;  %v392_v6 = vshrl.u32 %v2724_v56, 16 }
  0x26   : > { %2359 = vmatprep.subr.bf16.mxu1 %v2481_v8  ;;  %v2720_v55 = vsel %vm2682_vm9, %v371_v45, %v375_v37  ;;  %2313 = vmatprep.mubr.msk.bf16.mxu0 %vm492_vm6, %v2062_v52  ;;  %v185_v13 = vpack.c.bf16 %v177_v0, %v177_v0  ;;  %v247_v14 = vrot.slane %v245_v62, 7  ;;  %v248_v16 = vshll.u32 %v187_v46, 16 }
  0x27   : > { %v2728_v57 = vsel %vm2682_vm9, %v385_v49, %v389_v43  ;;  %v224_v10 = vshrl.u32 %v184_v3, 16  ;;  %v227_v12 = vshll.u32 %v184_v3, 16  ;;  %v434_v17 = vshrl.u32 %v2741_v63, 16  ;;  %v2776_v43 = vld [vmem:[%s3229_s1 + $0x98] sm:$0xff]  }
  0x28   : > { %v2734_v59 = vcombine.low %v2720_v55, %v2728_v57  ;;  %v437_v18 = vshll.u32 %v2741_v63, 16  ;;  %v231_v22 = vshrl.u32 %v185_v13, 16  ;;  %v234_v23 = vshll.u32 %v185_v13, 16 }
  0x29   : > { %2360 = vmatpush3.bf16.msra.mxu1 %v2481_v8  ;;  %v395_v8 = vshll.u32 %v2724_v56, 16  ;;  %v226_v21 = vrot.slane %v224_v10, 7  ;;  %v2763_v24 = vcombine.high %v2716_v54, %v2716_v54  ;;  %v394_v25 = vrot.slane %v392_v6, 4 }
  0x2a   : > { %2385 = vmatprep.subr.bf16.mxu1 %v2694_v33  ;;  %2314 = vmatmul.mubr.msk.bf16.vlgmr.msra.gmra.mxu0 %vm492_vm6, %v2734_v59  ;;  %v401_v26 = vshll.u32 %v2748_v5, 16  ;;  %v233_v30 = vrot.slane %v231_v22, 7  ;;  %v436_v31 = vrot.slane %v434_v17, 4  ;;  %v439_v32 = vrot.slane %v437_v18, 5 }
  0x2b   : > { %2338 = vmatpush3.bf16.msra.mxu0 %v2605_v38  ;;  %v2484_v38 = vld [vmem:[%s3229_s1 + $0x40] sm:$0xff]   ;;  %v397_v28 = vrot.slane %v395_v8, 5  ;;  %v229_v29 = vor.u32 %v227_v12, %v226_v21  ;;  %v443_v39 = vshll.u32 %v2763_v24, 16  ;;  %v250_v45 = vor.u32 %v248_v16, %v247_v14 }
  0x2c   : > { %2339 = vmatprep.subr.bf16.mxu0 %v2480_v61  ;;  %v236_v36 = vor.u32 %v234_v23, %v233_v30  ;;  %v403_v37 = vrot.slane %v401_v26, 5  ;;  %v440_v58 = vor.u32 %v439_v32, %v436_v31  ;;  %v2122_v8 = vcombine.low %v2613_v42, %v2623_v47 }
  0x2d   : > { %v268_v34 = vsel %vm2574_vm4, 0, %v229_v29  ;;  %v398_v46 = vor.u32 %v397_v28, %v394_v25  ;;  %v680_v16 = vrot.slane %v2643_v53, 5  ;;  %v684_v21 = vrot.slane %v2650_v60, 5  ;;  %v2494_v60 = vld [vmem:[%s3229_s1 + $0xd8] sm:$0xff]  }
  0x2e   : > { %v2771_v41 = vsel %vm2582_vm5, %v268_v34, 0  ;;  %v2086_v53 = vrot.slane %v2598_v27, 9  ;;  %v2087_v25 = vrot.slane %v2632_v50, 9  ;;  %v441_v26 = vrot.slane %v440_v58, 4 }
  0x2f   : > { %2340 = vmatpush3.bf16.msra.mxu0 %v2480_v61  ;;  %v2780_v49 = vcombine.low %v2771_v41, %v2771_v41  ;;  %v2784_v52 = vcombine.low %v2709_v44, %v2771_v41  ;;  %v269_v61 = vsel %vm2574_vm4, 0, %v236_v36  ;;  %v2790_v62 = vcombine.high %v2771_v41, %v2771_v41 }
  0x30   : > { %2341 = vmatprep.subr.bf16.mxu0 %v2482_v9  ;;  %v281_v0 = vsel %vm2582_vm5, %v269_v61, 0  ;;  %v399_v14 = vrot.slane %v398_v46, 4  ;;  %v445_v28 = vrot.slane %v443_v39, 5  ;;  %v271_v27 = vsel %vm2574_vm4, 0, %v250_v45  ;;  %v2485_v45 = vld [vmem:[%s3229_s1 + $0xb0] sm:$0xff]  }
  0x31   : > { %2333 = vmatprep.mubr.msk.bf16.mxu1 %vm492_vm6, %v2784_v52  ;;  %v406_v3 = vshrl.u32 %v2780_v49, 16  ;;  %v409_v6 = vshll.u32 %v2780_v49, 16  ;;  %v2803_v10 = vcombine.low %v281_v0, %v2716_v54  ;;  %v415_v12 = vshll.u32 %v2790_v62, 16 }
  0x32   : > { %v2806_v13 = vcombine.high %v281_v0, %v281_v0  ;;  %v2827_v31 = vsel %vm2682_vm9, %v399_v14, %v403_v37  ;;  %v2123_v36 = vcombine.low %v2627_v48, %v2709_v44  ;;  %v2839_v46 = vsel %vm2821_vm12, %v2086_v53, %v680_v16  ;;  %v2487_v14 = vld [vmem:[%s3229_s1 + $0xa8] sm:$0xff]   ;;  %v2488_v53 = vld [vmem:[%s3229_s1 + $0x90] sm:$0xff]  }
  0x33   : > { %2342 = vmatpush3.bf16.msra.mxu0 %v2482_v9  ;;  %v2800_v9 = vcombine.low %v281_v0, %v281_v0  ;;  %v408_v17 = vrot.slane %v406_v3, 4  ;;  %v411_v18 = vrot.slane %v409_v6, 5  ;;  %2334 = vmatmul.mubr.msk.bf16.gmra.mxu1 %vm492_vm6, %v2803_v10  ;;  %v685_v37 = vsel %vm2821_vm12, %v2087_v25, %v684_v21 }
  0x34   : > { %2343 = vmatprep.subr.bf16.mxu0 %v2484_v38  ;;  %v429_v22 = vshll.u32 %v2806_v13, 16  ;;  %2361 = vmatprep.mubr.msk.bf16.mxu1 %vm492_vm6, %v2122_v8  ;;  %v2124_v58 = vcombine.low %v2771_v41, %v281_v0  ;;  %v2846_v11 = vsel %vm2682_vm9, %v441_v26, %v445_v28  ;;  %v2088_v61 = vrot.slane %v2660_v1, 9  ;;  %v2490_v28 = vld [vmem:[%s3229_s1 + $0x88] sm:$0xff]  }
  0x35   : > { %v420_v42 = vshrl.u32 %v2800_v9, 16  ;;  %v423_v47 = vshll.u32 %v2800_v9, 16  ;;  %v412_v23 = vor.u32 %v411_v18, %v408_v17  ;;  %v2089_v3 = vrot.slane %v2668_v4, 9  ;;  %v2489_v17 = vld [vmem:[%s3229_s1 + $0xa0] sm:$0xff]  }
  0x36   : > { %v431_v50 = vrot.slane %v429_v22, 5  ;;  %v2859_v41 = vsel %vm2582_vm5, %v271_v27, 0  ;;  %v688_v0 = vrot.slane %v2664_v2, 5  ;;  %v692_v6 = vrot.slane %v2672_v7, 5 }
  0x37   : > { %2344 = vmatpush3.bf16.msra.mxu0 %v2484_v38  ;;  %v417_v38 = vrot.slane %v415_v12, 5  ;;  %v422_v29 = vrot.slane %v420_v42, 4  ;;  %v425_v30 = vrot.slane %v423_v47, 5  ;;  %v413_v32 = vrot.slane %v412_v23, 4 }
  0x38   : > { %2369 = vmatprep.subr.bf16.mxu0 %v2776_v43  ;;  %v2102_v1 = vcombine.low %v2839_v46, %v685_v37  ;;  %v2090_v4 = vrot.slane %v2724_v56, 9  ;;  %v696_v2 = vrot.slane %v2748_v5, 5  ;;  %v2091_v7 = vrot.slane %v2780_v49, 9 }
  0x39   : > { %v426_v34 = vor.u32 %v425_v30, %v422_v29  ;;  %v2835_v39 = vsel %vm2682_vm9, %v413_v32, %v417_v38  ;;  %v700_v12 = vrot.slane %v2790_v62, 5  ;;  %v689_v56 = vsel %vm2821_vm12, %v2088_v61, %v688_v0  ;;  %v2497_v61 = vld [vmem:[%s3229_s1 + $0xe0] sm:$0xff]  }
  0x3a   : > { %v2850_v48 = vcombine.low %v2827_v31, %v2835_v39  ;;  %v2125_v5 = vcombine.low %v2716_v54, %v2859_v41  ;;  %v697_v49 = vsel %vm2821_vm12, %v2090_v4, %v696_v2  ;;  %v2165_v16 = vcombine.low %v685_v37, %v689_v56  ;;  %v2492_v37 = vld [vmem:[%s3229_s1 + $0x80] sm:$0xff]   ;;  %v2496_v4 = vld [vmem:[%s3229_s1 + $0xd0] sm:$0xff]   ;;  %v2502_v2 = vld [vmem:[%s3229_s1 + $0x108] sm:$0xff]  }
  0x3b   : > { %v427_v44 = vrot.slane %v426_v34, 4  ;;  %2362 = vmatmul.mubr.msk.bf16.vlgmr.msra.gmra.mxu1 %vm492_vm6, %v2123_v36  ;;  %v701_v62 = vsel %vm2821_vm12, %v2091_v7, %v700_v12  ;;  %v2134_v18 = vcombine.low %v2859_v41, %v2859_v41  ;;  %v2093_v54 = vrot.slane %v2741_v63, 9  ;;  %v2491_v63 = vld [vmem:[%s3229_s1 + $0xf8] sm:$0xff]  }
  0x3c   : > { %2317 = vmatprep.mubr.msk.bf16.mxu0 %vm492_vm6, %v2850_v48  ;;  %2386 = vmatpush3.bf16.msra.mxu1 %v2694_v33  ;;  %v693_v33 = vsel %vm2821_vm12, %v2089_v3, %v692_v6  ;;  %v2906_v42 = vcombine.low %v697_v49, %v701_v62  ;;  %v2092_v47 = vrot.slane %v2800_v9, 9  ;;  %v704_v22 = vrot.slane %v2806_v13, 5 }
  0x3d   : > { %v2867_v8 = vsel %vm2682_vm9, %v427_v44, %v431_v50  ;;  %2365 = vmatprep.mubr.msk.bf16.mxu1 %vm492_vm6, %v2124_v58  ;;  %2387 = vmatprep.subr.bf16.mxu1 %v2485_v45  ;;  %v2902_v21 = vcombine.low %v689_v56, %v693_v33  ;;  %v708_v23 = vrot.slane %v2763_v24, 5  ;;  %v2135_v38 = vcombine.high %v2859_v41, %v2859_v41 }
  0x3e   : > { %v2874_v15 = vcombine.low %v2867_v8, %v2846_v11  ;;  %v968_v9 = vshrl.u32 %v2134_v18, 16  ;;  %v971_v24 = vshll.u32 %v2134_v18, 16  ;;  %v2166_v13 = vcombine.low %v693_v33, %v697_v49 }
  0x3f   : > { %v705_v25 = vsel %vm2821_vm12, %v2092_v47, %v704_v22  ;;  %v709_v26 = vsel %vm2821_vm12, %v2093_v54, %v708_v23  ;;  %v2156_v29 = vrot.slane %v2134_v18, 9  ;;  %v1106_v30 = vrot.slane %v2135_v38, 5 }
  0x40   : > { %2318 = vmatmul.mubr.msk.bf16.gmra.mxu0 %vm492_vm6, %v2874_v15  ;;  %2388 = vmatpush3.bf16.msra.mxu1 %v2485_v45  ;;  %v2167_v32 = vcombine.low %v701_v62, %v705_v25  ;;  %v2935_v27 = vcombine.low %v705_v25, %v709_v26  ;;  %v970_v34 = vrot.slane %v968_v9, 4  ;;  %v973_v50 = vrot.slane %v971_v24, 5 }
  0x41   : > { %2345 = vmatprep.mubr.msk.bf16.mxu0 %vm492_vm6, %v2102_v1  ;;  %2389 = vmatprep.subr.bf16.mxu1 %v2487_v14  ;;  %v2144_v36 = vcombine.low %v2705_v40, %v2720_v55  ;;  %v2945_v58 = vsel %vm2821_vm12, %v2156_v29, %v1106_v30  ;;  %v2495_v40 = vld [vmem:[%s3229_s1 + $0xe8] sm:$0xff]   ;;  %v977_v44 = vshll.u32 %v2135_v38, 16  ;;  %v2145_v3 = vcombine.low %v2728_v57, %v2827_v31  ;;  %v2499_v57 = vld [vmem:[%s3229_s1 + $0x118] sm:$0xff]  }
  0x42   : > { %v974_v55 = vor.u32 %v973_v50, %v970_v34  ;;  %v2168_v45 = vcombine.low %v709_v26, %v2945_v58  ;;  %v2146_v1 = vcombine.low %v2835_v39, %v2867_v8  ;;  %v2498_v39 = vld [vmem:[%s3229_s1 + $0xc8] sm:$0xff]   ;;  %vm1726_vm14 = vcmask 1045504  }
  0x43   : > { %2366 = vmatmul.mubr.msk.bf16.gmra.mxu1 %vm492_vm6, %v2125_v5  ;;  %v979_v6 = vrot.slane %v977_v44, 5  ;;  %vm1951_vm15 = vcmask 1041409   ;;  %vm1953_vm1 = vcmask 1042434   ;;  %vm1955_vm2 = vcmask 1043459  }
  0x44   : > { %2390 = vmatpush3.bf16.msra.mxu1 %v2487_v14  ;;  %2393 = vmatprep.mubr.msk.bf16.mxu1 %vm492_vm6, %v2165_v16  ;;  %v975_v0 = vrot.slane %v974_v55, 4 }
  0x45   : > { %2391 = vmatprep.subr.bf16.mxu1 %v2489_v17 }
  0x46   : > { %v980_v31 = vsel %vm2682_vm9, %v975_v0, %v979_v6 }
  0x47   : > { %v2147_v8 = vcombine.low %v2846_v11, %v980_v31  ;;  %v2202_v11 = vcombine.low %v980_v31, %v2699_v35  ;;  %v2185_v35 = vcombine.low %v2859_v41, %v2588_v20 }
  0x48   : > { %2346 = vmatmul.mubr.msk.bf16.vlgmr.msra.gmra.mxu0 %vm492_vm6, %v2902_v21  ;;  %2392 = vmatpush3.bf16.msra.mxu1 %v2489_v17 }
  0x49   : > { %2370 = vmatpush3.bf16.msra.mxu0 %v2776_v43  ;;  %2349 = vmatprep.mubr.msk.bf16.mxu0 %vm492_vm6, %v2906_v42  ;;  %v2493_v43 = vld [vmem:[%s3229_s1 + $0xf0] sm:$0xff]  }
  0x4a   : > { %2371 = vmatprep.subr.bf16.mxu0 %v2488_v53  ;;  %2417 = vmatprep.subr.bf16.mxu1 %v2491_v63 }
  0x4b   : > { %2394 = vmatmul.mubr.msk.bf16.vlgmr.msra.gmra.mxu1 %vm492_vm6, %v2166_v13 }
  0x4c   : > { %2418 = vmatpush3.bf16.msra.mxu1 %v2491_v63  ;;  %2397 = vmatprep.mubr.msk.bf16.mxu1 %vm492_vm6, %v2167_v32 }
  0x4d   : > { %2372 = vmatpush3.bf16.msra.mxu0 %v2488_v53  ;;  %2419 = vmatprep.subr.bf16.mxu1 %v2493_v43 }
  0x4e   : > { %2373 = vmatprep.subr.bf16.mxu0 %v2490_v28 }
  0x50   : > { %2350 = vmatmul.mubr.msk.bf16.gmra.mxu0 %vm492_vm6, %v2935_v27  ;;  %2420 = vmatpush3.bf16.msra.mxu1 %v2493_v43 }
  0x51   : > { %2374 = vmatpush3.bf16.msra.mxu0 %v2490_v28  ;;  %2377 = vmatprep.mubr.msk.bf16.mxu0 %vm492_vm6, %v2144_v36 }
  0x52   : > { %2375 = vmatprep.subr.bf16.mxu0 %v2492_v37  ;;  %2421 = vmatprep.subr.bf16.mxu1 %v2495_v40 }
  0x53   : > { %2398 = vmatmul.mubr.msk.bf16.gmra.mxu1 %vm492_vm6, %v2168_v45 }
  0x54   : > { %2422 = vmatpush3.bf16.msra.mxu1 %v2495_v40  ;;  %2425 = vmatprep.mubr.msk.bf16.mxu1 %vm492_vm6, %v2734_v59  ;;  %v2501_v59 = vld [vmem:[%s3229_s1 + $0x110] sm:$0xff]  }
  0x55   : > { %2376 = vmatpush3.bf16.msra.mxu0 %v2492_v37  ;;  %2423 = vmatprep.subr.bf16.mxu1 %v2497_v61 }
  0x56   : > { %2401 = vmatprep.subr.bf16.mxu0 %v2494_v60 }
  0x58   : > { %2378 = vmatmul.mubr.msk.bf16.vlgmr.msra.gmra.mxu0 %vm492_vm6, %v2145_v3  ;;  %2424 = vmatpush3.bf16.msra.mxu1 %v2497_v61 }
  0x59   : > { %2402 = vmatpush3.bf16.msra.mxu0 %v2494_v60  ;;  %2381 = vmatprep.mubr.msk.bf16.mxu0 %vm492_vm6, %v2146_v1 }
  0x5a   : > { %2403 = vmatprep.subr.bf16.mxu0 %v2496_v4  ;;  %2449 = vmatprep.subr.bf16.mxu1 %v2499_v57 }
  0x5b   : > { %2426 = vmatmul.mubr.msk.bf16.vlgmr.msra.gmra.mxu1 %vm492_vm6, %v2850_v48  ;;  %v2503_v48 = vld [vmem:[%s3229_s1 + $0x100] sm:$0xff]  }
  0x5c   : > { %2453 = vmatpush3.bf16.msra.mxu1 %v2499_v57  ;;  %2429 = vmatprep.mubr.msk.bf16.mxu1 %vm492_vm6, %v2874_v15 }
  0x5d   : > { %2404 = vmatpush3.bf16.msra.mxu0 %v2496_v4  ;;  %2450 = vmatprep.subr.bf16.mxu1 %v2501_v59 }
  0x5e   : > { %2405 = vmatprep.subr.bf16.mxu0 %v2498_v39 }
  0x60   : > { %2382 = vmatmul.mubr.msk.bf16.gmra.mxu0 %vm492_vm6, %v2147_v8  ;;  %2454 = vmatpush3.bf16.msra.mxu1 %v2501_v59 }
  0x61   : > { %2406 = vmatpush3.bf16.msra.mxu0 %v2498_v39  ;;  %2409 = vmatprep.mubr.msk.bf16.mxu0 %vm492_vm6, %v2636_v51  ;;  %v2219_v51 = vcombine.low %v2945_v58, %v2839_v46 }
  0x62   : > { %2407 = vmatprep.subr.bf16.mxu0 %v2500_v19  ;;  %2451 = vmatprep.subr.bf16.mxu1 %v2502_v2 }
  0x63   : > { %2430 = vmatmul.mubr.msk.bf16.gmra.mxu1 %vm492_vm6, %v2202_v11 }
  0x64   : > { %2455 = vmatpush3.bf16.msra.mxu1 %v2502_v2  ;;  %2445 = vmatprep.mubr.msk.bf16.mxu1 %vm492_vm6, %v2935_v27 }
  0x65   : > { %2408 = vmatpush3.bf16.msra.mxu0 %v2500_v19  ;;  %2452 = vmatprep.subr.bf16.mxu1 %v2503_v48 }
  0x66   : > { %2433 = vmatprep.subr.bf16.mxu0 %v2499_v57 }
  0x68   : > { %2410 = vmatmul.mubr.msk.bf16.vlgmr.msra.gmra.mxu0 %vm492_vm6, %v2784_v52  ;;  %2456 = vmatpush3.bf16.msra.mxu1 %v2503_v48 }
  0x69   : > { %2434 = vmatpush3.bf16.msra.mxu0 %v2499_v57  ;;  %2413 = vmatprep.mubr.msk.bf16.mxu0 %vm492_vm6, %v2803_v10 }
  0x6a   : > { %2435 = vmatprep.subr.bf16.mxu0 %v2501_v59 }
  0x6b   : > { %2446 = vmatmul.mubr.msk.bf16.vlgmr.msra.gmra.mxu1 %vm492_vm6, %v2219_v51 }
  0x6d   : > { %2436 = vmatpush3.bf16.msra.mxu0 %v2501_v59 }
  0x6e   : > { %2437 = vmatprep.subr.bf16.mxu0 %v2502_v2 }
  0x70   : > { %2414 = vmatmul.mubr.msk.bf16.gmra.mxu0 %vm492_vm6, %v2185_v35 }
  0x71   : > { %2438 = vmatpush3.bf16.msra.mxu0 %v2502_v2  ;;  %2441 = vmatprep.mubr.msk.bf16.mxu0 %vm492_vm6, %v2902_v21 }
  0x72   : > { %2439 = vmatprep.subr.bf16.mxu0 %v2503_v48 }
  0x75   : > { %2440 = vmatpush3.bf16.msra.mxu0 %v2503_v48 }
  0x78   : > { %2442 = vmatmul.mubr.msk.bf16.vlgmr.msra.gmra.mxu0 %vm492_vm6, %v2906_v42 }
  0xdc   : > { %v2331_v52 = vpop.f32.mrf.mxu1 }
  0xde   : > { %v644_v10 = vpop.f32.mrf.mxu1 }
  0xe0   : > { %v3019_v20 = vpop.f32.mrf.mxu1 }
  0xe2   : > { %v647_v14 = vpop.f32.mrf.mxu1 }
  0xea   : > { %v2315_v46 = vpop.f32.mrf.mxu0 }
  0xeb   : > { %v653_v15 = vadd.f32 %v2331_v52, %v2315_v46 }
  0xec   : > { %v539_v41 = vpop.f32.mrf.mxu0 }
  0xed   : > { %v645_v7 = vadd.f32 %v644_v10, %v539_v41 }
  0xee   : > { %v3021_v12 = vpop.f32.mrf.mxu0 }
  0xf0   : > { %v542_v56 = vpop.f32.mrf.mxu0 }
  0xf1   : > { %v3023_v33 = vadd.f32 %v647_v14, %v542_v56 }
  0xf3   : > { %v2335_v5 = vpop.f32.mrf.mxu1 }
  0xf5   : > { %v660_v49 = vpop.f32.mrf.mxu1 }
  0xf7   : > { %v2336_v62 = vpop.f32.mrf.mxu1 }
  0xf9   : > { %v663_v16 = vpop.f32.mrf.mxu1 }
  0xfb   : > { %v2363_v17 = vpop.f32.mrf.mxu1 }
  0xfd   : > { %v925_v18 = vpop.f32.mrf.mxu1 }
  0xff   : > { %v3025_v54 = vpop.f32.mrf.mxu1 }
 0x100   : > { %v2319_v21 = vpop.f32.mrf.mxu0 }
 0x101   : > { %v3027_v47 = vpop.f32.mrf.mxu1  ;;  %v669_v59 = vadd.f32 %v2335_v5, %v2319_v21 }
 0x102   : > { %v555_v42 = vpop.f32.mrf.mxu0 }
 0x103   : > { %v2367_v23 = vpop.f32.mrf.mxu1  ;;  %v661_v2 = vadd.f32 %v660_v49, %v555_v42 }
 0x104   : > { %v2320_v22 = vpop.f32.mrf.mxu0 }
 0x105   : > { %v941_v53 = vpop.f32.mrf.mxu1  ;;  %v672_v35 = vadd.f32 %v2336_v62, %v2320_v22 }
 0x106   : > { %v558_v38 = vpop.f32.mrf.mxu0 }
 0x107   : > { %v2368_v24 = vpop.f32.mrf.mxu1 }
 0x108   : > { %v2347_v63 = vpop.f32.mrf.mxu0 }
 0x109   : > { %v834_v9 = vadd.f32 %v2347_v63, %v653_v15  ;;  %v944_v26 = vpop.f32.mrf.mxu1  ;;  %v664_v15 = vadd.f32 %v663_v16, %v558_v38  ;;  %v2513_v16 = vmov 0.0  }
 0x10a   : > { %v801_v13 = vpop.f32.mrf.mxu0  ;;  %v1593_v38 = vrot.slane %v2513_v16, 7 }
 0x10b   : > { %v832_v25 = vadd.f32 %v801_v13, %v645_v7  ;;  %v958_v28 = vadd.f32 %v2363_v17, %v834_v9  ;;  %v2395_v30 = vpop.f32.mrf.mxu1 }
 0x10c   : > { %v3029_v29 = vpop.f32.mrf.mxu0 }
 0x10d   : > { %v3031_v43 = vadd.f32 %v925_v18, %v832_v25  ;;  %v3035_v27 = vpop.f32.mrf.mxu1 }
 0x10e   : > { %v3033_v32 = vpop.f32.mrf.mxu0 }
 0x10f   : > { %v3037_v50 = vpop.f32.mrf.mxu1 }
 0x110   : > { %v2351_v34 = vpop.f32.mrf.mxu0 }
 0x111   : > { %v3039_v37 = vpop.f32.mrf.mxu1  ;;  %v838_v11 = vadd.f32 %v2351_v34, %v669_v59 }
 0x112   : > { %v817_v36 = vpop.f32.mrf.mxu0 }
 0x113   : > { %v2399_v40 = vpop.f32.mrf.mxu1  ;;  %v836_v52 = vadd.f32 %v817_v36, %v661_v2  ;;  %v962_v7 = vadd.f32 %v2367_v23, %v838_v11 }
 0x114   : > { %v2352_v58 = vpop.f32.mrf.mxu0 }
 0x115   : > { %v1208_v44 = vpop.f32.mrf.mxu1  ;;  %v839_v41 = vadd.f32 %v2352_v58, %v672_v35  ;;  %v960_v63 = vadd.f32 %v941_v53, %v836_v52  ;;  %v656_v53 = vadd.f32 %v3019_v20, %v3021_v12  ;;  %v3070_v52 = vsel %vm260_vm0, %v1593_v38, 0.0 }
 0x116   : > { %v820_v55 = vpop.f32.mrf.mxu0 }
 0x117   : > { %v2400_v60 = vpop.f32.mrf.mxu1  ;;  %v837_v17 = vadd.f32 %v820_v55, %v664_v15  ;;  %v963_v42 = vadd.f32 %v2368_v24, %v839_v41 }
 0x118   : > { %v2379_v45 = vpop.f32.mrf.mxu0 }
 0x119   : > { %v1211_v3 = vpop.f32.mrf.mxu1  ;;  %v1098_v21 = vadd.f32 %v2379_v45, %v958_v28  ;;  %v961_v22 = vadd.f32 %v944_v26, %v837_v17  ;;  %v3058_v26 = vsel %vm260_vm0, 0.0, %v1593_v38  ;;  %v2514_v17 = vmov 1983009808  }
 0x11a   : > { %v1065_v61 = vpop.f32.mrf.mxu0 }
 0x11b   : > { %v2427_v6 = vpop.f32.mrf.mxu1  ;;  %v1225_v23 = vadd.f32 %v2395_v30, %v1098_v21  ;;  %v1096_v30 = vadd.f32 %v1065_v61, %v3031_v43 }
 0x11c   : > { %v3041_v0 = vpop.f32.mrf.mxu0 }
 0x11d   : > { %v3045_v4 = vpop.f32.mrf.mxu1 }
 0x11e   : > { %v3043_v1 = vpop.f32.mrf.mxu0 }
 0x11f   : > { %v3047_v31 = vpop.f32.mrf.mxu1 }
 0x120   : > { %v2383_v57 = vpop.f32.mrf.mxu0 }
 0x121   : > { %v3049_v8 = vpop.f32.mrf.mxu1  ;;  %v1102_v18 = vadd.f32 %v2383_v57, %v962_v7 }
 0x122   : > { %v1081_v39 = vpop.f32.mrf.mxu0 }
 0x123   : > { %v2431_v48 = vpop.f32.mrf.mxu1  ;;  %v1100_v49 = vadd.f32 %v1081_v39, %v960_v63  ;;  %v1229_v25 = vadd.f32 %v2399_v40, %v1102_v18  ;;  %v835_v40 = vadd.f32 %v3029_v29, %v656_v53  ;;  %v1639_v29 = vrot.slane %v3058_v26, 1 }
 0x124   : > { %v2384_v19 = vpop.f32.mrf.mxu0 }
 0x125   : > { %v1428_v10 = vpop.f32.mrf.mxu1  ;;  %v1103_v62 = vadd.f32 %v2384_v19, %v963_v42  ;;  %v1227_v57 = vadd.f32 %v1208_v44, %v1100_v49  ;;  %v3065_v44 = vld [vmem:[%s3230_s2] ss:$0 sm:$0xff]  ;;  %v959_v7 = vadd.f32 %v3025_v54, %v835_v40 }
 0x126   : > { %v1084_v51 = vpop.f32.mrf.mxu0 }
 0x127   : > { %v2432_v14 = vpop.f32.mrf.mxu1  ;;  %v1101_v58 = vadd.f32 %v1084_v51, %v961_v22  ;;  %v1230_v59 = vadd.f32 %v2400_v60, %v1103_v62  ;;  %v833_v60 = vadd.f32 %v3033_v32, %v3023_v33  ;;  %v1821_v33 = vunpack.c.l.s4 %v2514_v17 }
 0x128   : > { %v2411_v46 = vpop.f32.mrf.mxu0  ;;  %v1823_v32 = vlaneseq  ;;  %v1099_v49 = vadd.f32 %v3041_v0, %v959_v7 }
 0x129   : > { %v1431_v5 = vpop.f32.mrf.mxu1  ;;  %v1335_v28 = vadd.f32 %v2411_v46, %v1225_v23  ;;  %v1228_v51 = vadd.f32 %v1211_v3, %v1101_v58  ;;  %v1223_v3 = vadd.f32 %v3035_v27, %v1096_v30  ;;  %v957_v42 = vadd.f32 %v3027_v47, %v833_v60 }
 0x12a   : > { %v1302_v56 = vpop.f32.mrf.mxu0  ;;  %v1822_v23 = vunpack.c.0.s8 %v1821_v33 }
 0x12b   : > { %v2447_v34 = vpop.f32.mrf.mxu1  ;;  %v1445_v35 = vadd.f32 %v2427_v6, %v1335_v28  ;;  %v1333_v62 = vadd.f32 %v1302_v56, %v1223_v3  ;;  %v1097_v16 = vadd.f32 %v3043_v1, %v957_v42  ;;  %v3085_v56 = vshrl.u32 %v1823_v32, 7 }
 0x12c   : > { %v3051_v9 = vpop.f32.mrf.mxu0 }
 0x12d   : > { %v1538_v2 = vpop.f32.mrf.mxu1  ;;  %v1443_v28 = vadd.f32 %v3045_v4, %v1333_v62 }
 0x12e   : > { %v3053_v13 = vpop.f32.mrf.mxu0 }
 0x12f   : > { %v2448_v41 = vpop.f32.mrf.mxu1 }
 0x130   : > { %v2415_v36 = vpop.f32.mrf.mxu0 }
 0x131   : > { %v1339_v55 = vadd.f32 %v2415_v36, %v1229_v25  ;;  %v1640_v36 = vrot.slane %v3070_v52, 1 }
 0x132   : > { %v1318_v45 = vpop.f32.mrf.mxu0 }
 0x133   : > { %v1337_v39 = vadd.f32 %v1318_v45, %v1227_v57  ;;  %v1449_v24 = vadd.f32 %v2431_v48, %v1339_v55  ;;  %v1226_v55 = vadd.f32 %v3037_v50, %v1099_v49  ;;  %v3095_v50 = vsub.s32 %v1822_v23, %v3085_v56 }
 0x134   : > { %v2416_v19 = vpop.f32.mrf.mxu0  ;;  %v3098_v4 = vsel %vm1638_vm13, %v1639_v29, %v1640_v36 }
 0x135   : > { %v1559_v20 = vadd.f32 %v2447_v34, %v1449_v24  ;;  %v1340_v12 = vadd.f32 %v2416_v19, %v1230_v59  ;;  %v1447_v11 = vadd.f32 %v1428_v10, %v1337_v39  ;;  %v1541_v34 = vpop.f32.mrf.mxu1  ;;  %v1336_v59 = vadd.f32 %v3051_v9, %v1226_v55 }
 0x136   : > { %v1321_v48 = vpop.f32.mrf.mxu0 }
 0x137   : > { %v1574_v43 = vadd.f32 %v3065_v44, %v1559_v20  ;;  %v1557_v61 = vadd.f32 %v1538_v2, %v1447_v11  ;;  %v1338_v46 = vadd.f32 %v1321_v48, %v1228_v51  ;;  %v1450_v15 = vadd.f32 %v2432_v14, %v1340_v12 }
 0x138   : > { %v2443_v10 = vpop.f32.mrf.mxu0  ;;  %v1224_v2 = vadd.f32 %v3039_v37, %v1097_v16 }
 0x139   : > { %v1582_v6 = vmax.f32 %v1574_v43, 0.0  ;;  %v1572_v18 = vadd.f32 %v3065_v44, %v1557_v61  ;;  %v1560_v63 = vadd.f32 %v2448_v41, %v1450_v15  ;;  %v1555_v21 = vadd.f32 %v2443_v10, %v1445_v35 }
 0x13a   : > { %v1448_v14 = vadd.f32 %v1431_v5, %v1338_v46  ;;  %v1522_v5 = vpop.f32.mrf.mxu0  ;;  %v1334_v20 = vadd.f32 %v3053_v13, %v1224_v2  ;;  %v1446_v61 = vadd.f32 %v3047_v31, %v1336_v59 }
 0x13b   : > { %v1600_v22 = vrot.slane %v1582_v6, 7  ;;  %v1580_v25 = vmax.f32 %v1572_v18, 0.0  ;;  %v1575_v54 = vadd.f32 %v3065_v44, %v1560_v63  ;;  %v1570_v27 = vadd.f32 %v3065_v44, %v1555_v21 }
 0x13c   : > { %v1558_v38 = vadd.f32 %v1541_v34, %v1448_v14  ;;  %v1553_v40 = vadd.f32 %v1522_v5, %v1443_v28  ;;  %v2444_v7 = vpop.f32.mrf.mxu0  ;;  %v3122_v28 = vsub.s32 0, %v3085_v56 }
 0x13d   : > { %v1619_v58 = vsel %vm260_vm0, 0.0, %v1600_v22  ;;  %v1628_v0 = vsel %vm260_vm0, %v1600_v22, 0.0  ;;  %v1583_v47 = vmax.f32 %v1575_v54, 0.0  ;;  %v1598_v53 = vrot.slane %v1580_v25, 7 }
 0x13e   : > { %v1692_v57 = vrot.slane %v1619_v58, 1  ;;  %v1693_v45 = vrot.slane %v1628_v0, 1  ;;  %v1578_v39 = vmax.f32 %v1570_v27, 0.0  ;;  %v1573_v24 = vadd.f32 %v3065_v44, %v1558_v38 }
 0x13f   : > { %v1601_v1 = vrot.slane %v1583_v47, 7  ;;  %v3102_v12 = vsel %vm260_vm0, 0.0, %v1598_v53  ;;  %v1626_v51 = vsel %vm260_vm0, %v1598_v53, 0.0  ;;  %v1666_v35 = vrot.slane %v1619_v58, 6 }
 0x140   : > { %v1694_v37 = vsel %vm1638_vm13, %v1692_v57, %v1693_v45  ;;  %v1596_v60 = vrot.slane %v1578_v39, 7  ;;  %v1581_v48 = vmax.f32 %v1573_v24, 0.0  ;;  %v1568_v29 = vadd.f32 %v3065_v44, %v1553_v40 }
 0x141   : > { %v1620_v30 = vsel %vm260_vm0, 0.0, %v1601_v1  ;;  %v1629_v19 = vsel %vm260_vm0, %v1601_v1, 0.0  ;;  %v1710_v13 = vmax.f32 %v1628_v0, %v1693_v45  ;;  %v1689_v46 = vrot.slane %v3102_v12, 1  ;;  %v1525_v1 = vpop.f32.mrf.mxu0 }
 0x142   : > { %v1713_v9 = vrot.slane %v1620_v30, 1  ;;  %v1714_v11 = vrot.slane %v1629_v19, 1  ;;  %v1599_v41 = vrot.slane %v1581_v48, 7  ;;  %v1709_v3 = vmax.f32 %v1619_v58, %v1694_v37 }
 0x143   : > { %v1690_v10 = vrot.slane %v1626_v51, 1  ;;  %v1804_v17 = vrot.slane %v1620_v30, 2  ;;  %v3111_v33 = vsel %vm260_vm0, 0.0, %v1596_v60  ;;  %v1624_v6 = vsel %vm260_vm0, %v1596_v60, 0.0 }
 0x144   : > { %v1715_v43 = vsel %vm1638_vm13, %v1713_v9, %v1714_v11  ;;  %v1618_v18 = vsel %vm260_vm0, 0.0, %v1599_v41  ;;  %v1627_v63 = vsel %vm260_vm0, %v1599_v41, 0.0  ;;  %v1576_v49 = vmax.f32 %v1568_v29, 0.0 }
 0x145   : > { %v1717_v15 = vmax.f32 %v1620_v30, %v1715_v43  ;;  %v1648_v31 = vrot.slane %v1618_v18, 1  ;;  %v1649_v21 = vrot.slane %v1627_v63, 1  ;;  %v1556_v42 = vadd.f32 %v2444_v7, %v1446_v61 }
 0x146   : > { %v1805_v22 = vrot.slane %v1629_v19, 2  ;;  %v1677_v25 = vmax.f32 %v1618_v18, %v1666_v35  ;;  %v1686_v54 = vrot.slane %v3111_v33, 1  ;;  %v1687_v27 = vrot.slane %v1624_v6, 1 }
 0x147   : > { %v1754_v32 = vrot.slane %v1717_v15, 7  ;;  %v1650_v34 = vsel %vm1638_vm13, %v1648_v31, %v1649_v21  ;;  %v1678_v16 = vmax.f32 %v1627_v63, %v1666_v35  ;;  %v1691_v0 = vsel %vm1638_vm13, %v1689_v46, %v1690_v10 }
 0x148   : > { %v1658_v36 = vmax.f32 %v1618_v18, %v1650_v34  ;;  %v1736_v58 = vrot.slane %v1677_v25, 2  ;;  %v1594_v5 = vrot.slane %v1576_v49, 7  ;;  %v1571_v55 = vadd.f32 %v3065_v44, %v1556_v42 }
 0x149   : > { %v1765_v62 = vmax.f32 %v1709_v3, %v1754_v32  ;;  %v1766_v14 = vmax.f32 %v1710_v13, %v1754_v32  ;;  %v1737_v47 = vrot.slane %v1678_v16, 2  ;;  %v1665_v57 = vrot.slane %v3102_v12, 6 }
 0x14a   : > { %v1708_v53 = vmax.f32 %v1626_v51, %v1690_v10  ;;  %v1444_v45 = vadd.f32 %v3049_v8, %v1334_v20  ;;  %v1753_v24 = vrot.slane %v1658_v36, 7  ;;  %v1579_v2 = vmax.f32 %v1571_v55, 0.0 }
 0x14b   : > { %v1784_v38 = vrot.slane %v1765_v62, 1  ;;  %v1785_v23 = vrot.slane %v1766_v14, 1  ;;  %v1738_v39 = vsel %vm1726_vm14, %v1736_v58, %v1737_v47  ;;  %v1707_v40 = vmax.f32 %v3102_v12, %v1691_v0 }
 0x14c   : > { %v1806_v30 = vsel %vm1726_vm14, %v1804_v17, %v1805_v22  ;;  %v1688_v19 = vsel %vm1638_vm13, %v1686_v54, %v1687_v27  ;;  %v1746_v9 = vmax.f32 %v1658_v36, %v1738_v39  ;;  %v1664_v11 = vrot.slane %v3111_v33, 6 }
 0x14d   : > { %v1786_v59 = vsel %vm1638_vm13, %v1784_v38, %v1785_v23  ;;  %v3132_v56 = vsel %vm260_vm0, 0.0, %v1594_v5  ;;  %v1597_v8 = vrot.slane %v1579_v2, 7  ;;  %v1554_v20 = vadd.f32 %v1525_v1, %v1444_v45 }
 0x14e   : > { %v1706_v37 = vmax.f32 %v1624_v6, %v1687_v27  ;;  %v1794_v51 = vmax.f32 %v1746_v9, %v1786_v59  ;;  %v1801_v60 = vrot.slane %v1618_v18, 2  ;;  %v1802_v48 = vrot.slane %v1627_v63, 2 }
 0x14f   : > { %v1705_v12 = vmax.f32 %v3111_v33, %v1688_v19  ;;  %v1763_v35 = vmax.f32 %v1707_v40, %v1753_v24  ;;  %v1764_v43 = vmax.f32 %v1708_v53, %v1753_v24  ;;  %v3136_v29 = vsel %vm260_vm0, 0.0, %v1597_v8 }
 0x150   : > { %v1814_v61 = vmax.f32 %v1794_v51, %v1806_v30  ;;  %v3139_v13 = vsel %vm260_vm0, %v1594_v5, 0.0  ;;  %v1663_v46 = vrot.slane %v3132_v56, 6  ;;  %v3143_v15 = vsel %vm260_vm0, %v1597_v8, 0.0 }
 0x151   : > { %v1645_v41 = vrot.slane %v3136_v29, 1  ;;  %v1646_v7 = vrot.slane %v3143_v15, 1  ;;  %v1675_v3 = vmax.f32 %v3136_v29, %v1665_v57  ;;  %v1569_v10 = vadd.f32 %v3065_v44, %v1554_v20 }
 0x152   : > { %v1803_v17 = vsel %vm1726_vm14, %v1801_v60, %v1802_v48  ;;  %v1870_v32 = vcombine.high %v1814_v61, %v1814_v61  ;;  %v1877_v6 = vrot.slane %v1814_v61, %v3095_v50  ;;  %v1676_v18 = vmax.f32 %v3143_v15, %v1665_v57 }
 0x153   : > { %v1781_v63 = vrot.slane %v1763_v35, 1  ;;  %v1782_v31 = vrot.slane %v1764_v43, 1  ;;  %v1647_v21 = vsel %vm1638_vm13, %v1645_v41, %v1646_v7  ;;  %v1733_v49 = vrot.slane %v1675_v3, 2 }
 0x154   : > { %v1884_v42 = vrot.slane %v1870_v32, %v3095_v50  ;;  %v1885_v62 = vcombine.high %v1877_v6, %v1877_v6  ;;  %v1683_v14 = vrot.slane %v3132_v56, 1  ;;  %v1684_v22 = vrot.slane %v3139_v13, 1 }
 0x155   : > { %v1671_v44 = vmax.f32 %v3058_v26, %v1663_v46  ;;  %v1657_v25 = vmax.f32 %v3136_v29, %v1647_v21  ;;  %v1734_v54 = vrot.slane %v1676_v18, 2  ;;  %v1577_v27 = vmax.f32 %v1569_v10, 0.0 }
 0x156   : > { %v1886_v34 = vcombine.high %v1884_v42, %v1884_v42  ;;  %v1938_v16 = vrot.slane %v1877_v6, %v3122_v28  ;;  %v1942_v38 = vrot.slane %v1885_v62, %v3122_v28  ;;  %v1946_v23 = vrot.slane %v1884_v42, %v3122_v28 }
 0x157   : > { %v1735_v36 = vsel %vm1726_vm14, %v1733_v49, %v1734_v54  ;;  %v1752_v58 = vrot.slane %v1657_v25, 7  ;;  %v1783_v0 = vsel %vm1638_vm13, %v1781_v63, %v1782_v31  ;;  %v1595_v47 = vrot.slane %v1577_v27, 7 }
 0x158   : > { %v1950_v5 = vrot.slane %v1886_v34, %v3122_v28  ;;  %v1963_v55 = vsel %vm1951_vm15, %v1942_v38, %v1938_v16  ;;  %v1672_v57 = vmax.f32 %v3070_v52, %v1663_v46  ;;  %v1745_v53 = vmax.f32 %v1657_v25, %v1735_v36 }
 0x159   : > { %v1964_v45 = vsel %vm1953_vm1, %v1946_v23, %v1963_v55  ;;  %v1761_v1 = vmax.f32 %v1705_v12, %v1752_v58  ;;  %v1762_v39 = vmax.f32 %v1706_v37, %v1752_v58  ;;  %v1614_v24 = vsel %vm260_vm0, 0.0, %v1595_v47 }
 0x15a   : > { %v1965_v59 = vsel %vm1955_vm2, %v1950_v5, %v1964_v45  ;;  %v1793_v2 = vmax.f32 %v1745_v53, %v1783_v0  ;;  %v1623_v40 = vsel %vm260_vm0, %v1595_v47, 0.0  ;;  %v1642_v30 = vrot.slane %v1614_v24, 1 }
 0x15b   : > { %1973 = vst [vmem:[%s3167_s19 + $0xc] sm:$0xf] %v1965_v59  ;;  %v1778_v19 = vrot.slane %v1761_v1, 1  ;;  %v1779_v9 = vrot.slane %v1762_v39, 1  ;;  %v1643_v8 = vrot.slane %v1623_v40, 1  ;;  %v1673_v52 = vmax.f32 %v1614_v24, %v1664_v11 }
 0x15c   : > { %v1685_v20 = vsel %vm1638_vm13, %v1683_v14, %v1684_v22  ;;  %v1727_v51 = vrot.slane %v1671_v44, 2  ;;  %v1813_v60 = vmax.f32 %v1793_v2, %v1803_v17  ;;  %v1674_v37 = vmax.f32 %v1623_v40, %v1664_v11 }
 0x15d   : > { %v1728_v48 = vrot.slane %v1672_v57, 2  ;;  %v1644_v12 = vsel %vm1638_vm13, %v1642_v30, %v1643_v8  ;;  %v1730_v35 = vrot.slane %v1673_v52, 2  ;;  %v1780_v43 = vsel %vm1638_vm13, %v1778_v19, %v1779_v9 }
 0x15e   : > { %v1853_v61 = vcombine.high %v1813_v60, %v1813_v60  ;;  %v1860_v46 = vrot.slane %v1813_v60, %v3095_v50  ;;  %v1656_v41 = vmax.f32 %v1614_v24, %v1644_v12  ;;  %v1731_v7 = vrot.slane %v1674_v37, 2 }
 0x15f   : > { %v1655_v3 = vmax.f32 %v3058_v26, %v3098_v4  ;;  %v1798_v10 = vrot.slane %v3136_v29, 2  ;;  %v1799_v17 = vrot.slane %v3143_v15, 2  ;;  %v1704_v33 = vmax.f32 %v3139_v13, %v1684_v22 }
 0x160   : > { %v1867_v11 = vrot.slane %v1853_v61, %v3095_v50  ;;  %v1868_v32 = vcombine.high %v1860_v46, %v1860_v46  ;;  %v1732_v6 = vsel %vm1726_vm14, %v1730_v35, %v1731_v7  ;;  %v1703_v18 = vmax.f32 %v3132_v56, %v1685_v20 }
 0x161   : > { %v1729_v63 = vsel %vm1726_vm14, %v1727_v51, %v1728_v48  ;;  %v1744_v31 = vmax.f32 %v1656_v41, %v1732_v6  ;;  %v1751_v21 = vrot.slane %v1656_v41, 7  ;;  %v1922_v26 = vrot.slane %v1860_v46, %v3122_v28 }
 0x162   : > { %v1869_v49 = vcombine.high %v1867_v11, %v1867_v11  ;;  %v1926_v4 = vrot.slane %v1868_v32, %v3122_v28  ;;  %v1930_v29 = vrot.slane %v1867_v11, %v3122_v28  ;;  %v1800_v13 = vsel %vm1726_vm14, %v1798_v10, %v1799_v17 }
 0x163   : > { %v1759_v15 = vmax.f32 %v1703_v18, %v1751_v21  ;;  %v1760_v42 = vmax.f32 %v1704_v33, %v1751_v21  ;;  %v1792_v62 = vmax.f32 %v1744_v31, %v1780_v43  ;;  %v1795_v22 = vrot.slane %v1614_v24, 2 }
 0x164   : > { %v1934_v14 = vrot.slane %v1869_v49, %v3122_v28  ;;  %v1960_v56 = vsel %vm1951_vm15, %v1926_v4, %v1922_v26  ;;  %v1796_v44 = vrot.slane %v1623_v40, 2  ;;  %v1743_v16 = vmax.f32 %v1655_v3, %v1729_v63 }
 0x165   : > { %v1961_v25 = vsel %vm1953_vm1, %v1930_v29, %v1960_v56  ;;  %v1775_v54 = vrot.slane %v1759_v15, 1  ;;  %v1776_v27 = vrot.slane %v1760_v42, 1  ;;  %v1812_v34 = vmax.f32 %v1792_v62, %v1800_v13 }
 0x166   : > { %v1962_v38 = vsel %vm1955_vm2, %v1934_v14, %v1961_v25  ;;  %v1797_v47 = vsel %vm1726_vm14, %v1795_v22, %v1796_v44 }
 0x167   : > { %1972 = vst [vmem:[%s3167_s19 + $0x8] sm:$0xf] %v1962_v38  ;;  %v1777_v23 = vsel %vm1638_vm13, %v1775_v54, %v1776_v27  ;;  %v1836_v36 = vcombine.high %v1812_v34, %v1812_v34  ;;  %v1843_v58 = vrot.slane %v1812_v34, %v3095_v50 }
 0x168   : > { %v1791_v0 = vmax.f32 %v1743_v16, %v1777_v23 }
 0x169   : > { %v1850_v5 = vrot.slane %v1836_v36, %v3095_v50  ;;  %v1851_v55 = vcombine.high %v1843_v58, %v1843_v58  ;;  %v1906_v45 = vrot.slane %v1843_v58, %v3122_v28 }
 0x16a   : > { %v1811_v57 = vmax.f32 %v1791_v0, %v1797_v47 }
 0x16b   : > { %v1852_v53 = vcombine.high %v1850_v5, %v1850_v5  ;;  %v1910_v1 = vrot.slane %v1851_v55, %v3122_v28  ;;  %v1914_v39 = vrot.slane %v1850_v5, %v3122_v28 }
 0x16c   : > { %v1819_v24 = vcombine.high %v1811_v57, %v1811_v57  ;;  %v1826_v59 = vrot.slane %v1811_v57, %v3095_v50 }
 0x16d   : > { %v1918_v2 = vrot.slane %v1852_v53, %v3122_v28  ;;  %v1957_v40 = vsel %vm1951_vm15, %v1910_v1, %v1906_v45 }
 0x16e   : > { %v1833_v30 = vrot.slane %v1819_v24, %v3095_v50  ;;  %v1834_v19 = vcombine.high %v1826_v59, %v1826_v59  ;;  %v1958_v9 = vsel %vm1953_vm1, %v1914_v39, %v1957_v40  ;;  %v1890_v20 = vrot.slane %v1826_v59, %v3122_v28 }
 0x16f   : > { %v1959_v8 = vsel %vm1955_vm2, %v1918_v2, %v1958_v9 }
 0x170   : > { %v1835_v52 = vcombine.high %v1833_v30, %v1833_v30  ;;  %v1894_v51 = vrot.slane %v1834_v19, %v3122_v28  ;;  %v1898_v60 = vrot.slane %v1833_v30, %v3122_v28  ;;  %1971 = vst [vmem:[%s3167_s19 + $0x4] sm:$0xf] %v1959_v8 }
 0x172   : > { %v1902_v37 = vrot.slane %v1835_v52, %v3122_v28  ;;  %v1952_v48 = vsel %vm1951_vm15, %v1894_v51, %v1890_v20 }
 0x173   : > { %v1954_v12 = vsel %vm1953_vm1, %v1898_v60, %v1952_v48 }
 0x174   : > { %v1956_v50 = vsel %vm1955_vm2, %v1902_v37, %v1954_v12 }
 0x175   : > { %1970 = vst [vmem:[%s3167_s19] sm:$0xf] %v1956_v50 }
 0x176 PF: > { %s13_s12 = sadd.s32 1, %s2510_s12  }
 0x177   : > { %p10_p4 = scmp.ge.s32.totalorder %s13_s12, 4  }
 0x179   :  { %12 = sbr.rel (!%p10_p4) target bundleno = 1 (0x1), region = 70 }

// kernel: cornet_z_tweak_forward.5
= control target key start
LH: loop header
LB: loop body
LE: loop exit
PB: predicated region body
PF: predicated region fallthrough
CT: control target
= control target key end

     0   :  { %s7881_s12 = smov 0   ;;  %s11122_s0 = inlined_call_operand.vmem [shape: bf16[2,19,19,32], index: 0, kind: input, shape index: {}]   ;;  %s11123_s1 = inlined_call_operand.vmem [shape: bf16[16,32,128], index: 1, kind: input, shape index: {}]   ;;  %s11124_s2 = inlined_call_operand.vmem [shape: f32[1,128], index: 2, kind: input, shape index: {}]   ;;  %s11125_s3 = inlined_call_operand.vmem [shape: f32[2,8,8,64], index: 3, kind: output, shape index: {}]  }
   0x1 LB: > { %s6469_s13 = sadd.s32 4294967295, %s7857_s12   ;;  %p6473_p0 = scmp.ge.s32.totalorder %s7857_s12, 1  ;;  %s7857_s12 = sphi %s7881_s12, %s13_s12  }
   0x2   : > { %p137_p1 = scmp.lt.s32.totalorder %s7857_s12, 3 }
   0x4   : > { %p138_p2 = pnand %p6473_p0, %p137_p1 }
   0x6   : > { %141 = sbr.rel (%p138_p2) target bundleno = 942 (0x3ae), region = 32 }
   0xb   : > { %v7799_v0 = vld [vmem:[%s11123_s1 + $0x8] sm:$0xff]   ;;  %p161_p3 = scmp.lt.s32.totalorder %s6469_s13, 1  ;;  %v7800_v1 = vld [vmem:[%s11123_s1 + $0x18] sm:$0xff]   ;;  %v7801_v2 = vld [vmem:[%s11123_s1] sm:$0xff]   ;;  %vm233_vm0 = vsmask.f32 3328 }
   0xc   : > { %7248 = vmatprep.subr.bf16.mxu1 %v7799_v0  ;;  %7212 = vmatprep.subr.bf16.mxu0 %v7800_v1  ;;  %v7802_v3 = vld [vmem:[%s11123_s1 + $0x10] sm:$0xff]   ;;  %vm234_vm1 = vsmask.f32 7440  ;;  %v7907_v4 = vld [vmem:[%s11123_s1 + $0x28] sm:$0xff]   ;;  %vm685_vm2 = vcmask 261120   ;;  %v7806_v5 = vld [vmem:[%s11123_s1 + $0x38] sm:$0xff]  }
   0xd   : > { %s11746_s13 = smov (!%p161_p3, %s6469_s13), 1  ;;  %7249 = vmatpush3.bf16.msra.mxu1 %v7799_v0  ;;  %7213 = vmatpush3.bf16.msra.mxu0 %v7800_v1  ;;  %v7816_v27 = vld [vmem:[%s11123_s1 + $0x30] sm:$0xff]   ;;  %v7980_v45 = vld [vmem:[%s11123_s1 + $0x58] sm:$0xff]   ;;  %vm7986_vm3 = vmor %vm233_vm0, %vm234_vm1  ;;  %v11337_v47 = vmov 0  ;;  %vm1212_vm4 = vcmask 1042432   ;;  %vm1213_vm5 = vcmask 1046532  }
   0xe   : > { %7250 = vmatprep.subr.bf16.mxu1 %v7801_v2  ;;  %s7788_s22 = smul.u32 228, %s11746_s13  ;;  %7214 = vmatprep.subr.bf16.mxu0 %v7802_v3  ;;  %v11338_v47 = vsel %vm7986_vm3, 4294967295, %v11337_v47  ;;  %vm1633_vm6 = vsmask.f32 2304  ;;  %vm1634_vm7 = vsmask.f32 6416  ;;  %vm8547_vm8 = vmor %vm1212_vm4, %vm1213_vm5 }
   0xf   : > { %11339 = vst [vmem:[#allocation3_spill] sm:$0xff] %v11338_v47  ;;  %vm8554_vm9 = vmor %vm1633_vm6, %vm1634_vm7  ;;  %vm5025_vm10 = vcmask 1040384   ;;  %vm5176_vm11 = vcmask 1046528   ;;  %vm5461_vm12 = vcmask 1045504   ;;  %vm5257_vm13 = vcmask 1041408   ;;  %s6923_s8 = sshll.u32 %s11746_s13, 6 }
  0x10   : > { %s7912_s27 = scalar_lea.vmem %s11122_s0, %s7788_s22  ;;  %vm6334_vm14 = vcmask 1041409   ;;  %vm6336_vm15 = vcmask 1042434   ;;  %vm6338_vm0 = vcmask 1043459   ;;  %vm6340_vm1 = vcmask 1044484   ;;  %s10529_s10 = scalar_lea.vmem %s11125_s3, %s6923_s8 }
  0x11   : > { %7251 = vmatpush3.bf16.msra.mxu1 %v7801_v2  ;;  %v7918_v6 = vld [vmem:[%s7912_s27] sm:$0xf]  ;;  %v7921_v7 = vld [vmem:[%s7912_s27 + $0x4] sm:$0xf]  ;;  %v7924_v8 = vld [vmem:[%s7912_s27 + $0xc] sm:$0xf]  ;;  %7215 = vmatpush3.bf16.msra.mxu0 %v7802_v3 }
  0x12   : > { %v237_v9 = vshrl.u32 %v7918_v6, 16  ;;  %v240_v10 = vshll.u32 %v7918_v6, 16  ;;  %v250_v11 = vshrl.u32 %v7921_v7, 16  ;;  %v6515_v12 = vcombine.low %v7918_v6, %v7921_v7  ;;  %v7932_v13 = vld [vmem:[%s7912_s27 + $0x10] sm:$0xf]  ;;  %7320 = vmatprep.subr.bf16.mxu1 %v7806_v5  ;;  %7284 = vmatprep.subr.bf16.mxu0 %v7907_v4 }
  0x13   : > { %v11145_v15 = vrot.slane %v7921_v7, 5  ;;  %v261_v16 = vshrl.u32 %v7924_v8, 16  ;;  %v264_v17 = vshll.u32 %v7924_v8, 16  ;;  %v274_v21 = vshrl.u32 %v7932_v13, 16  ;;  %v7958_v26 = vld [vmem:[%s7912_s27 + $0x8] sm:$0x3] }
  0x14   : > { %7252 = vmatprep.mubr.msk.bf16.mxu1 %vm685_vm2, %v6515_v12  ;;  %v7940_v18 = vrot.slane %v237_v9, 5  ;;  %v7942_v19 = vrot.slane %v240_v10, 6  ;;  %v7944_v20 = vrot.slane %v250_v11, 5  ;;  %v7953_v23 = vcombine.low %v7924_v8, %v7932_v13  ;;  %v7975_v43 = vld [vmem:[%s7912_s27 + $0x14] sm:$0x3] }
  0x15   : > { %v7949_v22 = vrot.slane %v11145_v15, 4  ;;  %v11141_v25 = vrot.slane %v7932_v13, 5  ;;  %v1651_v28 = vrot.slane %v261_v16, 5  ;;  %v1652_v29 = vrot.slane %v264_v17, 6  ;;  %v7999_v59 = vld [vmem:[%s7912_s27 + $0x18] sm:$0xf] }
  0x16   : > { %11336 = vst [vmem:[#allocation2_spill] sm:$0xff] %v7953_v23  ;;  %v1655_v30 = vrot.slane %v274_v21, 5  ;;  %v239_v31 = vrot.slane %v237_v9, 4  ;;  %7253 = vmatmul.mubr.msk.bf16.vlgmr.msra.gmra.mxu1 %vm685_vm2, %v7953_v23  ;;  %v242_v33 = vrot.slane %v240_v10, 5  ;;  %v246_v34 = vshll.u32 %v7921_v7, 16 }
  0x17   : > { %v7967_v32 = vrot.slane %v11141_v25, 4  ;;  %v252_v35 = vrot.slane %v250_v11, 4  ;;  %v1653_v36 = vor.u32 %v1652_v29, %v1651_v28  ;;  %v256_v37 = vshll.u32 %v7958_v26, 16  ;;  %7321 = vmatpush3.bf16.msra.mxu1 %v7806_v5  ;;  %v8004_v0 = vld [vmem:[%s7912_s27 + $0x1c] sm:$0xf] }
  0x18   : > { %v1645_v38 = vshrl.u32 %v7958_v26, 16  ;;  %v263_v39 = vrot.slane %v261_v16, 4  ;;  %v243_v40 = vor.u32 %v242_v33, %v239_v31  ;;  %v248_v41 = vrot.slane %v246_v34, 5  ;;  %7322 = vmatprep.subr.bf16.mxu1 %v7816_v27  ;;  %v8012_v9 = vld [vmem:[%s7912_s27 + $0x24] sm:$0xf] }
  0x19   : > { %v7972_v42 = vrot.slane %v246_v34, 6  ;;  %v266_v44 = vrot.slane %v264_v17, 5  ;;  %v7982_v46 = vrot.slane %v1653_v36, 4  ;;  %v258_v48 = vrot.slane %v256_v37, 5  ;;  %v8020_v17 = vld [vmem:[%s7912_s27 + $0x28] sm:$0xf] }
  0x1a   : > { %v7990_v49 = vrot.slane %v1645_v38, 5  ;;  %v7992_v50 = vrot.slane %v256_v37, 6  ;;  %v244_v51 = vrot.slane %v243_v40, 4  ;;  %v253_v52 = vor.u32 %v252_v35, %v248_v41  ;;  %v8034_v36 = vld [vmem:[%s7912_s27 + $0x20] sm:$0x3] }
  0x1b   : > { %v267_v53 = vor.u32 %v266_v44, %v263_v39  ;;  %v270_v54 = vshll.u32 %v7932_v13, 16  ;;  %v276_v55 = vrot.slane %v274_v21, 4  ;;  %v280_v56 = vshll.u32 %v7975_v43, 16  ;;  %7323 = vmatpush3.bf16.msra.mxu1 %v7816_v27  ;;  %v8045_v40 = vld [vmem:[%s7912_s27 + $0x2c] sm:$0x3] }
  0x1c   : > { %v1660_v58 = vshrl.u32 %v7975_v43, 16  ;;  %v249_v60 = vsel %vm7986_vm3, %v244_v51, %v248_v41  ;;  %v254_v61 = vrot.slane %v253_v52, 4  ;;  %7392 = vmatprep.subr.bf16.mxu1 %v7980_v45  ;;  %v11135_v16 = vshrl.u32 %v7999_v59, 16  ;;  %v8057_v52 = vld [vmem:[%s7912_s27 + $0x30] sm:$0xf] }
  0x1d   : > { %v268_v62 = vrot.slane %v267_v53, 4  ;;  %v272_v63 = vrot.slane %v270_v54, 5  ;;  %v282_v1 = vrot.slane %v280_v56, 5  ;;  %v1656_v2 = vrot.slane %v270_v54, 6  ;;  %v8168_v14 = vld [vmem:[%s7912_s27 + $0x54] sm:$0xf] }
  0x1e   : > { %v8007_v3 = vrot.slane %v1660_v58, 5  ;;  %v8009_v5 = vrot.slane %v280_v56, 6  ;;  %v259_v10 = vsel %vm7986_vm3, %v254_v61, %v258_v48  ;;  %v11134_v29 = vshll.u32 %v7999_v59, 16  ;;  %v7815_v58 = vld [vmem:[%s11123_s1 + $0x20] sm:$0xff]   ;;  %v8214_v28 = vld [vmem:[%s7912_s27 + $0x5c] sm:$0x3] }
  0x1f   : > { %v273_v11 = vsel %vm7986_vm3, %v268_v62, %v272_v63  ;;  %v277_v12 = vor.u32 %v276_v55, %v272_v63  ;;  %v6481_v21 = vcombine.low %v249_v60, %v259_v10  ;;  %v8022_v27 = vor.u32 %v1656_v2, %v1655_v30 }
  0x20   : > { %v11133_v33 = vshrl.u32 %v8004_v0, 16  ;;  %v8030_v34 = vcombine.low %v7999_v59, %v8004_v0  ;;  %v11128_v35 = vshrl.u32 %v8012_v9, 16  ;;  %v11126_v37 = vshll.u32 %v8012_v9, 16 }
  0x21   : > { %v278_v31 = vrot.slane %v277_v12, 4  ;;  %7216 = vmatprep.mubr.msk.bf16.mxu0 %vm685_vm2, %v6481_v21  ;;  %v11127_v38 = vshrl.u32 %v8020_v17, 16  ;;  %v8042_v39 = vcombine.low %v8012_v9, %v8020_v17  ;;  %v287_v44 = vrot.slane %v11135_v16, 4 }
  0x22   : > { %11340 = vst [vmem:[#allocation4_spill] sm:$0xff] %v8030_v34  ;;  %7256 = vmatprep.mubr.msk.bf16.mxu1 %vm685_vm2, %v8030_v34  ;;  %v290_v48 = vrot.slane %v11134_v29, 5  ;;  %v11132_v51 = vshll.u32 %v8004_v0, 16  ;;  %v300_v54 = vrot.slane %v11133_v33, 4  ;;  %v11129_v55 = vshll.u32 %v8034_v36, 16 }
  0x23   : > { %11341 = vst [vmem:[#allocation5_spill] sm:$0xff] %v8042_v39  ;;  %v283_v41 = vsel %vm7986_vm3, %v278_v31, %v282_v1  ;;  %7257 = vmatmul.mubr.msk.bf16.gmra.mxu1 %vm685_vm2, %v8042_v39  ;;  %v311_v56 = vrot.slane %v11128_v35, 4  ;;  %v314_v62 = vrot.slane %v11126_v37, 5  ;;  %v11131_v63 = vshll.u32 %v8020_v17, 16  ;;  %v8077_v1 = vld [vmem:[%s7912_s27 + $0x34] sm:$0xf] }
  0x24   : > { %v8059_v53 = vcombine.low %v273_v11, %v283_v41  ;;  %v291_v60 = vor.u32 %v290_v48, %v287_v44  ;;  %v296_v61 = vrot.slane %v11132_v51, 5  ;;  %v306_v2 = vrot.slane %v11129_v55, 5  ;;  %v8091_v48 = vld [vmem:[%s7912_s27 + $0x3c] sm:$0xf]  ;;  %v8094_v37 = vld [vmem:[%s7912_s27 + $0x40] sm:$0xf] }
  0x25   : > { %v324_v10 = vrot.slane %v11127_v38, 4  ;;  %v11130_v11 = vshll.u32 %v8045_v40, 16  ;;  %v11138_v12 = vshrl.u32 %v8057_v52, 16  ;;  %v315_v41 = vor.u32 %v314_v62, %v311_v56  ;;  %v8273_v34 = vld [vmem:[%s7912_s27 + $0x74] sm:$0x3] }
  0x26   : > { %11342 = vst [vmem:[#allocation6_spill] sm:$0xff] %v8059_v53  ;;  %7217 = vmatmul.mubr.msk.bf16.vlgmr.msra.gmra.mxu0 %vm685_vm2, %v8059_v53  ;;  %v292_v21 = vrot.slane %v291_v60, 4  ;;  %v301_v31 = vor.u32 %v300_v54, %v296_v61  ;;  %v320_v44 = vrot.slane %v11131_v63, 5  ;;  %v11137_v35 = vshll.u32 %v8057_v52, 16  ;;  %v8107_v54 = vld [vmem:[%s11123_s1 + $0x48] sm:$0xff]   ;;  %11362 = vst [vmem:[#allocation21_spill] sm:$0xff] %v8273_v34 }
  0x27   : > { %7285 = vmatpush3.bf16.msra.mxu0 %v7907_v4  ;;  %v330_v38 = vrot.slane %v11130_v11, 5  ;;  %v11136_v55 = vshrl.u32 %v8077_v1, 16  ;;  %v8102_v4 = vcombine.low %v8057_v52, %v8077_v1  ;;  %v316_v62 = vrot.slane %v315_v41, 4  ;;  %v8112_v63 = vld [vmem:[%s7912_s27 + $0x38] sm:$0x3] }
  0x28   : > { %7286 = vmatprep.subr.bf16.mxu0 %v7815_v58  ;;  %v297_v56 = vsel %vm7986_vm3, %v292_v21, %v296_v61  ;;  %v302_v60 = vrot.slane %v301_v31, 4  ;;  %v325_v11 = vor.u32 %v324_v10, %v320_v44  ;;  %v11139_v51 = vshrl.u32 %v8091_v48, 16 }
  0x29   : > { %11343 = vst [vmem:[#allocation7_spill] sm:$0xff] %v8102_v4  ;;  %7260 = vmatprep.mubr.msk.bf16.mxu1 %vm685_vm2, %v8102_v4  ;;  %v11140_v33 = vshll.u32 %v8091_v48, 16  ;;  %v11143_v29 = vshrl.u32 %v8094_v37, 16  ;;  %v8121_v16 = vcombine.low %v8091_v48, %v8094_v37  ;;  %v321_v10 = vsel %vm7986_vm3, %v316_v62, %v320_v44  ;;  %v8139_v44 = vld [vmem:[%s7912_s27 + $0x44] sm:$0x3] }
  0x2a   : > { %v307_v61 = vsel %vm7986_vm3, %v302_v60, %v306_v2  ;;  %v326_v21 = vrot.slane %v325_v11, 4  ;;  %v335_v31 = vrot.slane %v11138_v12, 4  ;;  %v338_v57 = vrot.slane %v11137_v35, 5  ;;  %v8160_v12 = vld [vmem:[%s7912_s27 + $0x4c] sm:$0xf] }
  0x2b   : > { %11344 = vst [vmem:[#allocation8_spill] sm:$0xff] %v8121_v16  ;;  %7287 = vmatpush3.bf16.msra.mxu0 %v7815_v58  ;;  %v8129_v41 = vcombine.low %v297_v56, %v307_v61  ;;  %7261 = vmatmul.mubr.msk.bf16.gmra.mxu1 %vm685_vm2, %v8121_v16  ;;  %v11144_v2 = vshll.u32 %v8077_v1, 16  ;;  %v348_v60 = vrot.slane %v11136_v55, 4  ;;  %v11142_v11 = vshll.u32 %v8112_v63, 16  ;;  %v8150_v61 = vld [vmem:[%s7912_s27 + $0x48] sm:$0xf] }
  0x2c   : > { %7356 = vmatprep.subr.bf16.mxu0 %v8107_v54  ;;  %v331_v58 = vsel %vm7986_vm3, %v326_v21, %v330_v38  ;;  %v359_v56 = vrot.slane %v11139_v51, 4  ;;  %v362_v62 = vrot.slane %v11140_v33, 5  ;;  %v339_v35 = vor.u32 %v338_v57, %v335_v31 }
  0x2d   : > { %11345 = vst [vmem:[#allocation9_spill] sm:$0xff] %v8129_v41  ;;  %7220 = vmatprep.mubr.msk.bf16.mxu0 %vm685_vm2, %v8129_v41  ;;  %v8154_v55 = vcombine.low %v321_v10, %v331_v58  ;;  %v344_v38 = vrot.slane %v11144_v2, 5  ;;  %v11146_v21 = vshll.u32 %v8094_v37, 16  ;;  %v354_v51 = vrot.slane %v11142_v11, 5  ;;  %v8176_v11 = vld [vmem:[%s7912_s27 + $0x58] sm:$0xf] }
  0x2e   : > { %v363_v33 = vor.u32 %v362_v62, %v359_v56  ;;  %v372_v24 = vrot.slane %v11143_v29, 4  ;;  %v11147_v25 = vshll.u32 %v8139_v44, 16  ;;  %v340_v57 = vrot.slane %v339_v35, 4  ;;  %v8194_v2 = vld [vmem:[%s7912_s27 + $0x50] sm:$0x3] }
  0x2f   : > { %11346 = vst [vmem:[#allocation10_spill] sm:$0xff] %v8154_v55  ;;  %7221 = vmatmul.mubr.msk.bf16.gmra.mxu0 %vm685_vm2, %v8154_v55  ;;  %v349_v10 = vor.u32 %v348_v60, %v344_v38  ;;  %v368_v31 = vrot.slane %v11146_v21, 5  ;;  %v11149_v58 = vshrl.u32 %v8150_v61, 16  ;;  %v11148_v29 = vshll.u32 %v8150_v61, 16  ;;  %v8259_v55 = vld [vmem:[%s7912_s27 + $0x68] sm:$0x3] }
  0x30   : > { %v364_v56 = vrot.slane %v363_v33, 4  ;;  %v378_v62 = vrot.slane %v11147_v25, 5  ;;  %v345_v35 = vsel %vm7986_vm3, %v340_v57, %v344_v38  ;;  %v8186_v21 = vcombine.low %v8150_v61, %v8160_v12  ;;  %11360 = vst [vmem:[#allocation19_spill] sm:$0xff] %v8259_v55 }
  0x31   : > { %v350_v60 = vrot.slane %v349_v10, 4  ;;  %v373_v15 = vor.u32 %v372_v24, %v368_v31  ;;  %v11154_v30 = vshrl.u32 %v8168_v14, 16  ;;  %v8202_v57 = vcombine.low %v8168_v14, %v8176_v11 }
  0x32   : > { %11347 = vst [vmem:[#allocation11_spill] sm:$0xff] %v8186_v21  ;;  %v369_v33 = vsel %vm7986_vm3, %v364_v56, %v368_v31  ;;  %7264 = vmatprep.mubr.msk.bf16.mxu1 %vm685_vm2, %v8186_v21  ;;  %v383_v10 = vrot.slane %v11149_v58, 4  ;;  %v386_v56 = vrot.slane %v11148_v29, 5  ;;  %v11351_v29 = vshll.u32 %v8168_v14, 16 }
  0x33   : > { %v355_v24 = vsel %vm7986_vm3, %v350_v60, %v354_v51  ;;  %v374_v38 = vrot.slane %v373_v15, 4  ;;  %11348 = vst [vmem:[#allocation12_spill] sm:$0xff] %v8202_v57  ;;  %v11350_v15 = vshrl.u32 %v8160_v12, 16  ;;  %7265 = vmatmul.mubr.msk.bf16.gmra.mxu1 %vm685_vm2, %v8202_v57  ;;  %v8226_v51 = vld [vmem:[%s7912_s27 + $0x60] sm:$0xf]  ;;  %v11169_v21 = vshll.u32 %v8176_v11, 16 }
  0x34   : > { %v8206_v31 = vcombine.low %v345_v35, %v355_v24  ;;  %v407_v24 = vrot.slane %v11154_v30, 4  ;;  %v410_v58 = vrot.slane %v11351_v29, 5  ;;  %11352 = vst [vmem:[#allocation14_spill] sm:$0xff] %v8226_v51  ;;  %v8236_v35 = vld [vmem:[%s7912_s27 + $0x64] sm:$0xf]  ;;  %v11357_v29 = vshll.u32 %v8194_v2, 16 }
  0x35   : > { %v396_v60 = vrot.slane %v11350_v15, 4  ;;  %v379_v25 = vsel %vm7986_vm3, %v374_v38, %v378_v62  ;;  %v387_v62 = vor.u32 %v386_v56, %v383_v10  ;;  %v11354_v38 = vshll.u32 %v8160_v12, 16  ;;  %11355 = vst [vmem:[#allocation16_spill] sm:$0xff] %v8236_v35  ;;  %v8239_v30 = vld [vmem:[%s7912_s27 + $0x6c] sm:$0xf] }
  0x36   : > { %11349 = vst [vmem:[#allocation13_spill] sm:$0xff] %v8206_v31  ;;  %7224 = vmatprep.mubr.msk.bf16.mxu0 %vm685_vm2, %v8206_v31  ;;  %v8230_v15 = vcombine.low %v369_v33, %v379_v25  ;;  %11356 = vst [vmem:[#allocation17_spill] sm:$0xff] %v8239_v30  ;;  %v402_v16 = vrot.slane %v11357_v29, 5  ;;  %v411_v4 = vor.u32 %v410_v58, %v407_v24  ;;  %v11358_v39 = vshrl.u32 %v8176_v11, 16  ;;  %v8247_v33 = vld [vmem:[%s7912_s27 + $0x70] sm:$0xf] }
  0x37   : > { %v392_v57 = vrot.slane %v11354_v38, 5  ;;  %v11170_v25 = vshll.u32 %v8214_v28, 16  ;;  %11359 = vst [vmem:[#allocation18_spill] sm:$0xff] %v8247_v33  ;;  %v388_v10 = vrot.slane %v387_v62, 4  ;;  %v416_v38 = vrot.slane %v11169_v21, 5 }
  0x38   : > { %11353 = vst [vmem:[#allocation15_spill] sm:$0xff] %v8230_v15  ;;  %v420_v31 = vrot.slane %v11358_v39, 4  ;;  %7225 = vmatmul.mubr.msk.bf16.gmra.mxu0 %vm685_vm2, %v8230_v15  ;;  %v412_v29 = vrot.slane %v411_v4, 4  ;;  %v8265_v21 = vcombine.low %v8226_v51, %v8236_v35  ;;  %v11367_v24 = vshll.u32 %v8226_v51, 16 }
  0x39   : > { %v397_v56 = vor.u32 %v396_v60, %v392_v57  ;;  %v426_v58 = vrot.slane %v11170_v25, 5  ;;  %v393_v60 = vsel %vm7986_vm3, %v388_v10, %v392_v57  ;;  %v8281_v10 = vcombine.low %v8239_v30, %v8247_v33 }
  0x3a   : > { %v421_v15 = vor.u32 %v420_v31, %v416_v38  ;;  %11361 = vst [vmem:[#allocation20_spill] sm:$0xff] %v8265_v21  ;;  %v417_v4 = vsel %vm7986_vm3, %v412_v29, %v416_v38  ;;  %7268 = vmatprep.mubr.msk.bf16.mxu1 %vm685_vm2, %v8265_v21  ;;  %v8286_v29 = vld [vmem:[%s7912_s27 + $0x78] sm:$0xf]  ;;  %v8296_v21 = vld [vmem:[%s7912_s27 + $0x7c] sm:$0xf]  ;;  %v11373_v53 = vshll.u32 %v8236_v35, 16 }
  0x3b   : > { %v398_v62 = vrot.slane %v397_v56, 4  ;;  %11363 = vst [vmem:[#allocation22_spill] sm:$0xff] %v8281_v10  ;;  %v11364_v56 = vshrl.u32 %v8226_v51, 16  ;;  %11365 = vst [vmem:[#allocation23_spill] sm:$0xff] %v8286_v29  ;;  %7269 = vmatmul.mubr.msk.bf16.gmra.mxu1 %vm685_vm2, %v8281_v10  ;;  %v8315_v10 = vld [vmem:[%s7912_s27 + $0x84] sm:$0xf] }
  0x3c   : > { %v422_v31 = vrot.slane %v421_v15, 4  ;;  %11369 = vst [vmem:[#allocation25_spill] sm:$0xff] %v8296_v21  ;;  %11374 = vst [vmem:[#allocation27_spill] sm:$0xff] %v8315_v10  ;;  %v11377_v51 = vshrl.u32 %v8247_v33, 16  ;;  %vm6346_vm4 = vcmask 1047559   ;;  %vm6405_vm5 = vcmask 523264  }
  0x3d   : > { %v403_v57 = vsel %vm7986_vm3, %v398_v62, %v402_v16  ;;  %v431_v38 = vrot.slane %v11364_v56, 4  ;;  %v434_v16 = vrot.slane %v11367_v24, 5  ;;  %v11368_v62 = vshrl.u32 %v8236_v35, 16 }
  0x3e   : > { %v8288_v39 = vcombine.low %v393_v60, %v403_v57  ;;  %v427_v41 = vsel %vm7986_vm3, %v422_v31, %v426_v58  ;;  %v11370_v57 = vshrl.u32 %v8239_v30, 16  ;;  %v11371_v24 = vshll.u32 %v8239_v30, 16  ;;  %v8318_v60 = vld [vmem:[%s7912_s27 + $0x88] sm:$0xf] }
  0x3f   : > { %v444_v25 = vrot.slane %v11368_v62, 4  ;;  %v8309_v62 = vcombine.low %v417_v4, %v427_v41  ;;  %v435_v15 = vor.u32 %v434_v16, %v431_v38  ;;  %v440_v58 = vrot.slane %v11373_v53, 5  ;;  %11375 = vst [vmem:[#allocation28_spill] sm:$0xff] %v8318_v60  ;;  %v8349_v16 = vld [vmem:[%s7912_s27 + $0x8c] sm:$0x3] }
  0x40   : > { %11366 = vst [vmem:[#allocation24_spill] sm:$0xff] %v8288_v39  ;;  %v455_v56 = vrot.slane %v11370_v57, 4  ;;  %v458_v23 = vrot.slane %v11371_v24, 5  ;;  %7228 = vmatprep.mubr.msk.bf16.mxu0 %vm685_vm2, %v8288_v39  ;;  %v11189_v31 = vshll.u32 %v8247_v33, 16  ;;  %v11376_v57 = vshll.u32 %v8259_v55, 16  ;;  %11379 = vst [vmem:[#allocation30_spill] sm:$0xff] %v8349_v16 }
  0x41   : > { %11372 = vst [vmem:[#allocation26_spill] sm:$0xff] %v8309_v62  ;;  %v468_v39 = vrot.slane %v11377_v51, 4  ;;  %v11190_v41 = vshll.u32 %v8273_v34, 16  ;;  %7229 = vmatmul.mubr.msk.bf16.gmra.mxu0 %vm685_vm2, %v8309_v62  ;;  %v436_v53 = vrot.slane %v435_v15, 4  ;;  %v445_v4 = vor.u32 %v444_v25, %v440_v58 }
  0x42   : > { %v450_v30 = vrot.slane %v11376_v57, 5  ;;  %v459_v24 = vor.u32 %v458_v23, %v455_v56  ;;  %v464_v38 = vrot.slane %v11189_v31, 5  ;;  %v8335_v57 = vld [vmem:[%s7912_s27 + $0x80] sm:$0x3]  ;;  %v8341_v31 = vcombine.low %v8286_v29, %v8296_v21 }
  0x43   : > { %v474_v23 = vrot.slane %v11190_v41, 5  ;;  %v441_v25 = vsel %vm7986_vm3, %v436_v53, %v440_v58  ;;  %v446_v15 = vrot.slane %v445_v4, 4  ;;  %v8357_v53 = vcombine.low %v8315_v10, %v8318_v60 }
  0x44   : > { %v460_v35 = vrot.slane %v459_v24, 4  ;;  %v469_v62 = vor.u32 %v468_v39, %v464_v38  ;;  %11378 = vst [vmem:[#allocation29_spill] sm:$0xff] %v8341_v31  ;;  %7272 = vmatprep.mubr.msk.bf16.mxu1 %vm685_vm2, %v8341_v31  ;;  %v11384_v51 = vshll.u32 %v8286_v29, 16  ;;  %v8372_v31 = vld [vmem:[%s7912_s27 + $0x94] sm:$0xf]  ;;  %v11390_v33 = vshll.u32 %v8296_v21, 16 }
  0x45   : > { %v451_v58 = vsel %vm7986_vm3, %v446_v15, %v450_v30  ;;  %11380 = vst [vmem:[#allocation31_spill] sm:$0xff] %v8357_v53  ;;  %v11385_v15 = vshrl.u32 %v8296_v21, 16  ;;  %11386 = vst [vmem:[#allocation34_spill] sm:$0xff] %v8372_v31  ;;  %7273 = vmatmul.mubr.msk.bf16.gmra.mxu1 %vm685_vm2, %v8357_v53  ;;  %v8391_v53 = vld [vmem:[%s7912_s27 + $0x9c] sm:$0xf]  ;;  %v11394_v55 = vshrl.u32 %v8318_v60, 16 }
  0x46   : > { %v465_v24 = vsel %vm7986_vm3, %v460_v35, %v464_v38  ;;  %v470_v39 = vrot.slane %v469_v62, 4  ;;  %v11381_v35 = vshrl.u32 %v8286_v29, 16  ;;  %v8362_v38 = vld [vmem:[%s7912_s27 + $0x90] sm:$0xf]  ;;  %v8364_v56 = vcombine.low %v441_v25, %v451_v58  ;;  %11391 = vst [vmem:[#allocation36_spill] sm:$0xff] %v8391_v53 }
  0x47   : > { %11382 = vst [vmem:[#allocation32_spill] sm:$0xff] %v8362_v38  ;;  %v482_v30 = vrot.slane %v11384_v51, 5  ;;  %v492_v41 = vrot.slane %v11385_v15, 4  ;;  %v11387_v58 = vshrl.u32 %v8315_v10, 16  ;;  %v11388_v51 = vshll.u32 %v8315_v10, 16 }
  0x48   : > { %v479_v4 = vrot.slane %v11381_v35, 4  ;;  %11383 = vst [vmem:[#allocation33_spill] sm:$0xff] %v8364_v56  ;;  %v475_v34 = vsel %vm7986_vm3, %v470_v39, %v474_v23  ;;  %7232 = vmatprep.mubr.msk.bf16.mxu0 %vm685_vm2, %v8364_v56  ;;  %v488_v23 = vrot.slane %v11390_v33, 5  ;;  %v11211_v39 = vshll.u32 %v8318_v60, 16  ;;  %v8394_v25 = vld [vmem:[%s7912_s27 + $0xa0] sm:$0xf] }
  0x49   : > { %v503_v35 = vrot.slane %v11387_v58, 4  ;;  %v506_v29 = vrot.slane %v11388_v51, 5  ;;  %v8385_v15 = vcombine.low %v465_v24, %v475_v34  ;;  %11392 = vst [vmem:[#allocation37_spill] sm:$0xff] %v8394_v25  ;;  %v11393_v58 = vshll.u32 %v8335_v57, 16 }
  0x4a   : > { %v483_v62 = vor.u32 %v482_v30, %v479_v4  ;;  %v516_v56 = vrot.slane %v11394_v55, 4  ;;  %v11212_v34 = vshll.u32 %v8349_v16, 16  ;;  %v493_v24 = vor.u32 %v492_v41, %v488_v23  ;;  %v8425_v30 = vld [vmem:[%s7912_s27 + $0xa4] sm:$0x3] }
  0x4b   : > { %11389 = vst [vmem:[#allocation35_spill] sm:$0xff] %v8385_v15  ;;  %v498_v10 = vrot.slane %v11393_v58, 5  ;;  %v507_v51 = vor.u32 %v506_v29, %v503_v35  ;;  %7233 = vmatmul.mubr.msk.bf16.gmra.mxu0 %vm685_vm2, %v8385_v15  ;;  %v512_v4 = vrot.slane %v11211_v39, 5  ;;  %v8411_v58 = vld [vmem:[%s7912_s27 + $0x98] sm:$0x3]  ;;  %v8417_v39 = vcombine.low %v8362_v38, %v8372_v31  ;;  %11397 = vst [vmem:[#allocation40_spill] sm:$0xff] %v8425_v30 }
  0x4c   : > { %v484_v33 = vrot.slane %v483_v62, 4  ;;  %v522_v29 = vrot.slane %v11212_v34, 5  ;;  %11395 = vst [vmem:[#allocation38_spill] sm:$0xff] %v8411_v58  ;;  %v494_v62 = vrot.slane %v493_v24, 4  ;;  %v11402_v55 = vshll.u32 %v8362_v38, 16 }
  0x4d   : > { %v508_v21 = vrot.slane %v507_v51, 4  ;;  %v517_v15 = vor.u32 %v516_v56, %v512_v4  ;;  %11396 = vst [vmem:[#allocation39_spill] sm:$0xff] %v8417_v39  ;;  %7276 = vmatprep.mubr.msk.bf16.mxu1 %vm685_vm2, %v8417_v39  ;;  %v8448_v39 = vld [vmem:[%s7912_s27 + $0xac] sm:$0xf]  ;;  %v11407_v60 = vshll.u32 %v8372_v31, 16 }
  0x4e   : > { %v489_v41 = vsel %vm7986_vm3, %v484_v33, %v488_v23  ;;  %v499_v23 = vsel %vm7986_vm3, %v494_v62, %v498_v10  ;;  %v8433_v33 = vcombine.low %v8391_v53, %v8394_v25  ;;  %v530_v10 = vrot.slane %v11402_v55, 5 }
  0x4f   : > { %v513_v51 = vsel %vm7986_vm3, %v508_v21, %v512_v4  ;;  %v518_v56 = vrot.slane %v517_v15, 4  ;;  %v11399_v21 = vshrl.u32 %v8362_v38, 16  ;;  %v8438_v4 = vld [vmem:[%s7912_s27 + $0xa8] sm:$0xf]  ;;  %v8440_v35 = vcombine.low %v489_v41, %v499_v23  ;;  %v8470_v41 = vld [vmem:[%s7912_s27 + $0xb8] sm:$0xf] }
  0x50   : > { %11398 = vst [vmem:[#allocation41_spill] sm:$0xff] %v8433_v33  ;;  %11400 = vst [vmem:[#allocation42_spill] sm:$0xff] %v8438_v4  ;;  %v11403_v62 = vshrl.u32 %v8372_v31, 16  ;;  %7277 = vmatmul.mubr.msk.bf16.gmra.mxu1 %vm685_vm2, %v8433_v33  ;;  %v11404_v23 = vshrl.u32 %v8391_v53, 16  ;;  %v11405_v55 = vshll.u32 %v8391_v53, 16 }
  0x51   : > { %v527_v24 = vrot.slane %v11399_v21, 4  ;;  %11401 = vst [vmem:[#allocation43_spill] sm:$0xff] %v8440_v35  ;;  %v523_v16 = vsel %vm7986_vm3, %v518_v56, %v522_v29  ;;  %7236 = vmatprep.mubr.msk.bf16.mxu0 %vm685_vm2, %v8440_v35  ;;  %v536_v29 = vrot.slane %v11407_v60, 5  ;;  %v11233_v56 = vshll.u32 %v8394_v25, 16  ;;  %v8467_v33 = vld [vmem:[%s7912_s27 + $0xb4] sm:$0xf] }
  0x52   : > { %v540_v34 = vrot.slane %v11403_v62, 4  ;;  %v551_v21 = vrot.slane %v11404_v23, 4  ;;  %v554_v38 = vrot.slane %v11405_v55, 5  ;;  %v8461_v62 = vcombine.low %v513_v51, %v523_v16  ;;  %v8501_v31 = vld [vmem:[%s7912_s27 + $0xbc] sm:$0x3] }
  0x53   : > { %v531_v15 = vor.u32 %v530_v10, %v527_v24  ;;  %v11408_v23 = vshll.u32 %v8411_v58, 16  ;;  %v11409_v16 = vshrl.u32 %v8394_v25, 16  ;;  %v11234_v24 = vshll.u32 %v8425_v30, 16 }
  0x54   : > { %11406 = vst [vmem:[#allocation44_spill] sm:$0xff] %v8461_v62  ;;  %v555_v53 = vor.u32 %v554_v38, %v551_v21  ;;  %7237 = vmatmul.mubr.msk.bf16.gmra.mxu0 %vm685_vm2, %v8461_v62  ;;  %v541_v10 = vor.u32 %v540_v34, %v536_v29  ;;  %v560_v35 = vrot.slane %v11233_v56, 5  ;;  %v8493_v56 = vcombine.low %v8438_v4, %v8448_v39 }
  0x55   : > { %v546_v55 = vrot.slane %v11408_v23, 5  ;;  %v564_v51 = vrot.slane %v11409_v16, 4  ;;  %v532_v60 = vrot.slane %v531_v15, 4  ;;  %v570_v38 = vrot.slane %v11234_v24, 5  ;;  %v8487_v16 = vld [vmem:[%s7912_s27 + $0xb0] sm:$0x3] }
  0x56   : > { %v556_v58 = vrot.slane %v555_v53, 4  ;;  %v542_v34 = vrot.slane %v541_v10, 4  ;;  %11410 = vst [vmem:[#allocation45_spill] sm:$0xff] %v8493_v56  ;;  %7280 = vmatprep.mubr.msk.bf16.mxu1 %vm685_vm2, %v8493_v56  ;;  %v11414_v23 = vshll.u32 %v8438_v4, 16  ;;  %v11247_v24 = vshll.u32 %v8448_v39, 16 }
  0x57   : > { %v537_v15 = vsel %vm7986_vm3, %v532_v60, %v536_v29  ;;  %v565_v62 = vor.u32 %v564_v51, %v560_v35  ;;  %v8509_v51 = vcombine.low %v8467_v33, %v8470_v41  ;;  %v11246_v56 = vshll.u32 %v8487_v16, 16 }
  0x58   : > { %v561_v53 = vsel %vm7986_vm3, %v556_v58, %v560_v35  ;;  %v547_v29 = vsel %vm7986_vm3, %v542_v34, %v546_v55  ;;  %v11412_v35 = vshrl.u32 %v8438_v4, 16  ;;  %v578_v21 = vrot.slane %v11414_v23, 5 }
  0x59   : > { %v566_v60 = vrot.slane %v565_v62, 4  ;;  %11411 = vst [vmem:[#allocation46_spill] sm:$0xff] %v8509_v51  ;;  %v8513_v10 = vcombine.low %v537_v15, %v547_v29  ;;  %v11415_v55 = vshrl.u32 %v8448_v39, 16  ;;  %7281 = vmatmul.mubr.msk.bf16.gmra.mxu1 %vm685_vm2, %v8509_v51  ;;  %v11417_v29 = vshll.u32 %v8467_v33, 16 }
  0x5a   : > { %v575_v58 = vrot.slane %v11412_v35, 4  ;;  %v11416_v35 = vshrl.u32 %v8467_v33, 16  ;;  %v594_v51 = vrot.slane %v11246_v56, 5 }
  0x5b   : > { %11413 = vst [vmem:[#allocation47_spill] sm:$0xff] %v8513_v10  ;;  %v588_v62 = vrot.slane %v11415_v55, 4  ;;  %v571_v34 = vsel %vm7986_vm3, %v566_v60, %v570_v38  ;;  %v602_v4 = vrot.slane %v11417_v29, 5  ;;  %7240 = vmatprep.mubr.msk.bf16.mxu0 %vm685_vm2, %v8513_v10  ;;  %v584_v38 = vrot.slane %v11247_v24, 5 }
  0x5c   : > { %v599_v15 = vrot.slane %v11416_v35, 4  ;;  %v8531_v23 = vcombine.low %v561_v53, %v571_v34  ;;  %v579_v55 = vor.u32 %v578_v21, %v575_v58  ;;  %v11245_v60 = vshll.u32 %v8470_v41, 16 }
  0x5d   : > { %v11419_v35 = vshrl.u32 %v8470_v41, 16  ;;  %v11248_v29 = vshll.u32 %v8501_v31, 16  ;;  %v589_v34 = vor.u32 %v588_v62, %v584_v38  ;;  %v11420_v58 = vmov 0 }
  0x5e   : > { %11418 = vst [vmem:[#allocation48_spill] sm:$0xff] %v8531_v23  ;;  %v603_v30 = vor.u32 %v602_v4, %v599_v15  ;;  %7241 = vmatmul.mubr.msk.bf16.gmra.mxu0 %vm685_vm2, %v8531_v23  ;;  %v580_v53 = vrot.slane %v579_v55, 4  ;;  %v608_v21 = vrot.slane %v11245_v60, 5  ;;  %v11421_v58 = vsel %vm8547_vm8, 4294967295, %v11420_v58 }
  0x5f   : > { %v612_v25 = vrot.slane %v11419_v35, 4  ;;  %11422 = vst [vmem:[#allocation49_spill] sm:$0xff] %v11421_v58  ;;  %v618_v15 = vrot.slane %v11248_v29, 5  ;;  %v1638_v62 = vor.u32 %v7942_v19, %v7940_v18  ;;  %v1642_v55 = vor.u32 %v7972_v42, %v7944_v20  ;;  %v11571_v58 = vld [vmem:[#allocation29_spill] sm:$0xff] }
  0x60   : > { %v604_v4 = vrot.slane %v603_v30, 4  ;;  %v585_v60 = vsel %vm7986_vm3, %v580_v53, %v584_v38  ;;  %v590_v56 = vrot.slane %v589_v34, 4  ;;  %v1649_v30 = vor.u32 %v7992_v50, %v7990_v49 }
  0x61   : > { %v613_v24 = vor.u32 %v612_v25, %v608_v21  ;;  %v1639_v23 = vrot.slane %v1638_v62, 4  ;;  %v1644_v10 = vrot.slane %v1642_v55, 4  ;;  %v1658_v18 = vsel %vm8554_vm9, %v7982_v46, %v8022_v27 }
  0x62   : > { %v609_v29 = vsel %vm7986_vm3, %v604_v4, %v608_v21  ;;  %v595_v19 = vsel %vm7986_vm3, %v590_v56, %v594_v51  ;;  %v11425_v42 = vor.u32 %v8009_v5, %v8007_v3  ;;  %v11426_v25 = vrot.slane %v8022_v27, 4  ;;  %v7826_v4 = vld [vmem:[%s11123_s1 + $0x50] sm:$0xff]  }
  0x63   : > { %v614_v20 = vrot.slane %v613_v24, 4  ;;  %v11427_v50 = vrot.slane %v7921_v7, 5  ;;  %v11428_v38 = vrot.slane %v7918_v6, 9  ;;  %v8587_v46 = vcombine.low %v585_v60, %v595_v19 }
  0x64   : > { %v1665_v49 = vsel %vm8554_vm9, %v11426_v25, %v11425_v42  ;;  %v1643_v56 = vsel %vm8554_vm9, %v1639_v23, %v1642_v55  ;;  %v1650_v3 = vsel %vm8554_vm9, %v1644_v10, %v1649_v30  ;;  %v1220_v7 = vrot.slane %v7958_v26, 5 }
  0x65   : > { %v1218_v53 = vsel %vm8547_vm8, %v11428_v38, %v11427_v50  ;;  %11429 = vst [vmem:[#allocation50_spill] sm:$0xff] %v8587_v46  ;;  %v8593_v5 = vcombine.low %v1658_v18, %v1665_v49  ;;  %v619_v27 = vsel %vm7986_vm3, %v614_v20, %v618_v15  ;;  %v6607_v24 = vcombine.low %v1643_v56, %v1650_v3 }
  0x66   : > { %v11430_v6 = vrot.slane %v7932_v13, 5  ;;  %v11431_v51 = vrot.slane %v7924_v8, 9  ;;  %7244 = vmatprep.mubr.msk.bf16.mxu0 %vm685_vm2, %v8587_v46  ;;  %v8606_v23 = vcombine.low %v609_v29, %v619_v27  ;;  %v11433_v10 = vrot.slane %v7975_v43, 5 }
  0x67   : > { %v11434_v26 = vshrl.u32 %v7999_v59, 16  ;;  %v11435_v13 = vshll.u32 %v7999_v59, 16  ;;  %7324 = vmatprep.mubr.msk.bf16.mxu1 %vm685_vm2, %v6607_v24  ;;  %v1221_v43 = vsel %vm8547_vm8, %v7949_v22, %v1220_v7  ;;  %v11437_v62 = vshll.u32 %v8004_v0, 16 }
  0x68   : > { %v1225_v60 = vsel %vm8547_vm8, %v11431_v51, %v11430_v6  ;;  %11432 = vst [vmem:[#allocation51_spill] sm:$0xff] %v8606_v23  ;;  %v1228_v34 = vsel %vm8547_vm8, %v7967_v32, %v11433_v10  ;;  %v11436_v32 = vshrl.u32 %v8004_v0, 16  ;;  %7245 = vmatmul.mubr.msk.bf16.gmra.mxu0 %vm685_vm2, %v8606_v23  ;;  %7325 = vmatmul.mubr.msk.bf16.vlgmr.msra.gmra.mxu1 %vm685_vm2, %v8593_v5  ;;  %v1675_v19 = vshrl.u32 %v8034_v36, 16 }
  0x69   : > { %v1666_v21 = vrot.slane %v11434_v26, 5  ;;  %v1667_v8 = vrot.slane %v11435_v13, 6  ;;  %v8624_v29 = vcombine.low %v1225_v60, %v1228_v34  ;;  %v1671_v55 = vrot.slane %v11437_v62, 6  ;;  %7393 = vmatpush3.bf16.msra.mxu1 %v7980_v45  ;;  %v8651_v45 = vld [vmem:[%s11123_s1 + $0x78] sm:$0xff]  }
  0x6a   : > { %v1670_v15 = vrot.slane %v11436_v32, 5  ;;  %v6569_v30 = vcombine.low %v1218_v53, %v1221_v43  ;;  %v11438_v22 = vshll.u32 %v8034_v36, 16  ;;  %v11439_v25 = vshrl.u32 %v8012_v9, 16  ;;  %7394 = vmatprep.subr.bf16.mxu1 %v7826_v4 }
  0x6b   : > { %v1668_v18 = vor.u32 %v1667_v8, %v1666_v21  ;;  %v11440_v50 = vshll.u32 %v8012_v9, 16  ;;  %v11441_v56 = vshrl.u32 %v8020_v17, 16  ;;  %v1677_v27 = vrot.slane %v1675_v19, 5 }
  0x6c   : > { %v1678_v20 = vrot.slane %v11438_v22, 6  ;;  %v1672_v42 = vor.u32 %v1671_v55, %v1670_v15  ;;  %v1681_v49 = vrot.slane %v11439_v25, 5  ;;  %7288 = vmatprep.mubr.msk.bf16.mxu0 %vm685_vm2, %v6569_v30  ;;  %v11442_v24 = vshll.u32 %v8020_v17, 16  ;;  %v7825_v22 = vld [vmem:[%s11123_s1 + $0x40] sm:$0xff]  }
  0x6d   : > { %v1682_v38 = vrot.slane %v11440_v50, 6  ;;  %v1685_v3 = vrot.slane %v11441_v56, 5  ;;  %v1669_v53 = vrot.slane %v1668_v18, 4  ;;  %v1690_v6 = vshrl.u32 %v8045_v40, 16  ;;  %7395 = vmatpush3.bf16.msra.mxu1 %v7826_v4 }
  0x6e   : > { %v1686_v7 = vrot.slane %v11442_v24, 6  ;;  %v1674_v51 = vrot.slane %v1672_v42, 4  ;;  %v11443_v10 = vshll.u32 %v8045_v40, 16  ;;  %v6551_v26 = vrot.slane %v7999_v59, 9  ;;  %7464 = vmatprep.subr.bf16.mxu1 %v8651_v45 }
  0x6f   : > { %v1683_v60 = vor.u32 %v1682_v38, %v1681_v49  ;;  %v1673_v21 = vsel %vm8554_vm9, %v1669_v53, %v1672_v42  ;;  %v1679_v13 = vor.u32 %v1678_v20, %v1677_v27  ;;  %v1692_v43 = vrot.slane %v1690_v6, 5 }
  0x70   : > { %v1693_v34 = vrot.slane %v11443_v10, 6  ;;  %v1687_v8 = vor.u32 %v1686_v7, %v1685_v3  ;;  %v1231_v15 = vrot.slane %v8004_v0, 5  ;;  %v1234_v62 = vrot.slane %v8034_v36, 5  ;;  %7289 = vmatmul.mubr.msk.bf16.vlgmr.msra.gmra.mxu0 %vm685_vm2, %v8624_v29 }
  0x71   : > { %v1684_v32 = vrot.slane %v1683_v60, 4  ;;  %v6552_v55 = vrot.slane %v8012_v9, 9  ;;  %v1680_v30 = vsel %vm8554_vm9, %v1674_v51, %v1679_v13  ;;  %v1238_v59 = vrot.slane %v8020_v17, 5  ;;  %7357 = vmatpush3.bf16.msra.mxu0 %v8107_v54  ;;  %v8703_v51 = vld [vmem:[%s11123_s1 + $0x68] sm:$0xff]  }
  0x72   : > { %v1689_v18 = vrot.slane %v1687_v8, 4  ;;  %v1694_v19 = vor.u32 %v1693_v34, %v1692_v43  ;;  %v8668_v20 = vcombine.low %v1673_v21, %v1680_v30  ;;  %v1232_v9 = vsel %vm8547_vm8, %v6551_v26, %v1231_v15  ;;  %7358 = vmatprep.subr.bf16.mxu0 %v7825_v22 }
  0x73   : > { %v1688_v0 = vsel %vm8554_vm9, %v1684_v32, %v1687_v8  ;;  %v1233_v36 = vrot.slane %v1231_v15, 4  ;;  %v1239_v4 = vsel %vm8547_vm8, %v6552_v55, %v1238_v59  ;;  %v1240_v42 = vrot.slane %v1238_v59, 4 }
  0x74   : > { %11444 = vst [vmem:[#allocation52_spill] sm:$0xff] %v8668_v20  ;;  %v1695_v17 = vsel %vm8554_vm9, %v1689_v18, %v1694_v19  ;;  %v1241_v25 = vrot.slane %v8045_v40, 5  ;;  %7328 = vmatprep.mubr.msk.bf16.mxu1 %vm685_vm2, %v8668_v20  ;;  %v11446_v38 = vshrl.u32 %v8057_v52, 16  ;;  %v11447_v3 = vshll.u32 %v8057_v52, 16 }
  0x75   : > { %v8684_v49 = vcombine.low %v1688_v0, %v1695_v17  ;;  %v1235_v50 = vsel %vm8547_vm8, %v1233_v36, %v1234_v62  ;;  %v11449_v54 = vshrl.u32 %v8077_v1, 16  ;;  %v11450_v7 = vshll.u32 %v8077_v1, 16  ;;  %7359 = vmatpush3.bf16.msra.mxu0 %v7825_v22 }
  0x76   : > { %v1696_v56 = vrot.slane %v11446_v38, 5  ;;  %v1697_v53 = vrot.slane %v11447_v3, 6  ;;  %v8692_v27 = vcombine.low %v1232_v9, %v1235_v50  ;;  %v1242_v40 = vsel %vm8547_vm8, %v1240_v42, %v1241_v25  ;;  %7428 = vmatprep.subr.bf16.mxu0 %v8703_v51 }
  0x77   : > { %11445 = vst [vmem:[#allocation53_spill] sm:$0xff] %v8684_v49  ;;  %v1700_v24 = vrot.slane %v11449_v54, 5  ;;  %v1701_v6 = vrot.slane %v11450_v7, 6  ;;  %7329 = vmatmul.mubr.msk.bf16.gmra.mxu1 %vm685_vm2, %v8684_v49  ;;  %v8707_v60 = vcombine.low %v1239_v4, %v1242_v40  ;;  %v1705_v34 = vshrl.u32 %v8112_v63, 16 }
  0x78   : > { %11448 = vst [vmem:[#allocation54_spill] sm:$0xff] %v8692_v27  ;;  %v1698_v10 = vor.u32 %v1697_v53, %v1696_v56  ;;  %v11452_v26 = vshll.u32 %v8112_v63, 16  ;;  %7292 = vmatprep.mubr.msk.bf16.mxu0 %vm685_vm2, %v8692_v27  ;;  %v11453_v8 = vshrl.u32 %v8091_v48, 16  ;;  %v11454_v32 = vshll.u32 %v8091_v48, 16 }
  0x79   : > { %11451 = vst [vmem:[#allocation55_spill] sm:$0xff] %v8707_v60  ;;  %v1702_v13 = vor.u32 %v1701_v6, %v1700_v24  ;;  %v11455_v62 = vshrl.u32 %v8094_v37, 16  ;;  %v1707_v18 = vrot.slane %v1705_v34, 5  ;;  %v11456_v19 = vshll.u32 %v8094_v37, 16  ;;  %7293 = vmatmul.mubr.msk.bf16.gmra.mxu0 %vm685_vm2, %v8707_v60 }
  0x7a   : > { %v1708_v21 = vrot.slane %v11452_v26, 6  ;;  %v1711_v43 = vrot.slane %v11453_v8, 5  ;;  %v1712_v15 = vrot.slane %v11454_v32, 6  ;;  %v1699_v30 = vrot.slane %v1698_v10, 4 }
  0x7b   : > { %v1715_v55 = vrot.slane %v11455_v62, 5  ;;  %v1716_v59 = vrot.slane %v11456_v19, 6  ;;  %v1720_v0 = vshrl.u32 %v8139_v44, 16  ;;  %v1704_v9 = vrot.slane %v1702_v13, 4 }
  0x7c   : > { %v1713_v36 = vor.u32 %v1712_v15, %v1711_v43  ;;  %v11457_v17 = vshll.u32 %v8139_v44, 16  ;;  %v6553_v42 = vrot.slane %v8057_v52, 9  ;;  %v1703_v25 = vsel %vm8554_vm9, %v1699_v30, %v1702_v13 }
  0x7d   : > { %v1709_v50 = vor.u32 %v1708_v21, %v1707_v18  ;;  %v1717_v38 = vor.u32 %v1716_v59, %v1715_v55  ;;  %v1722_v56 = vrot.slane %v1720_v0, 5  ;;  %v1245_v22 = vrot.slane %v8077_v1, 5 }
  0x7e   : > { %v1723_v4 = vrot.slane %v11457_v17, 6  ;;  %v1714_v3 = vrot.slane %v1713_v36, 4  ;;  %v1248_v53 = vrot.slane %v8112_v63, 5  ;;  %v6554_v40 = vrot.slane %v8091_v48, 9 }
  0x7f   : > { %v1710_v52 = vsel %vm8554_vm9, %v1704_v9, %v1709_v50  ;;  %v1719_v54 = vrot.slane %v1717_v38, 4  ;;  %v1252_v7 = vrot.slane %v8094_v37, 5  ;;  %v1246_v34 = vsel %vm8547_vm8, %v6553_v42, %v1245_v22 }
  0x80   : > { %v1724_v24 = vor.u32 %v1723_v4, %v1722_v56  ;;  %v8737_v6 = vcombine.low %v1703_v25, %v1710_v52  ;;  %v1718_v10 = vsel %vm8554_vm9, %v1714_v3, %v1717_v38  ;;  %v1247_v1 = vrot.slane %v1245_v22, 4 }
  0x81   : > { %v1253_v48 = vsel %vm8547_vm8, %v6554_v40, %v1252_v7  ;;  %v1254_v26 = vrot.slane %v1252_v7, 4  ;;  %v1255_v21 = vrot.slane %v8139_v44, 5  ;;  %v11460_v8 = vshrl.u32 %v8150_v61, 16 }
  0x82   : > { %11458 = vst [vmem:[#allocation56_spill] sm:$0xff] %v8737_v6  ;;  %v1725_v63 = vsel %vm8554_vm9, %v1719_v54, %v1724_v24  ;;  %7332 = vmatprep.mubr.msk.bf16.mxu1 %vm685_vm2, %v8737_v6  ;;  %v1249_v13 = vsel %vm8547_vm8, %v1247_v1, %v1248_v53  ;;  %v11461_v32 = vshll.u32 %v8150_v61, 16  ;;  %v11463_v44 = vshrl.u32 %v8160_v12, 16 }
  0x83   : > { %v8750_v37 = vcombine.low %v1718_v10, %v1725_v63  ;;  %v1726_v43 = vrot.slane %v11460_v8, 5  ;;  %v8758_v62 = vcombine.low %v1246_v34, %v1249_v13  ;;  %v1256_v55 = vsel %vm8547_vm8, %v1254_v26, %v1255_v21 }
  0x84   : > { %v1727_v15 = vrot.slane %v11461_v32, 6  ;;  %v1730_v30 = vrot.slane %v11463_v44, 5  ;;  %v11464_v18 = vshll.u32 %v8160_v12, 16  ;;  %v8768_v59 = vcombine.low %v1253_v48, %v1256_v55 }
  0x85   : > { %11459 = vst [vmem:[#allocation57_spill] sm:$0xff] %v8750_v37  ;;  %11462 = vst [vmem:[#allocation58_spill] sm:$0xff] %v8758_v62  ;;  %7333 = vmatmul.mubr.msk.bf16.gmra.mxu1 %vm685_vm2, %v8750_v37  ;;  %v1735_v9 = vshrl.u32 %v8194_v2, 16  ;;  %v11466_v36 = vshll.u32 %v8194_v2, 16  ;;  %7296 = vmatprep.mubr.msk.bf16.mxu0 %vm685_vm2, %v8758_v62  ;;  %v11467_v42 = vshrl.u32 %v8168_v14, 16  ;;  %v11468_v50 = vshll.u32 %v8168_v14, 16 }
  0x86   : > { %v1731_v19 = vrot.slane %v11464_v18, 6  ;;  %11465 = vst [vmem:[#allocation59_spill] sm:$0xff] %v8768_v59  ;;  %v1728_v0 = vor.u32 %v1727_v15, %v1726_v43  ;;  %v11469_v56 = vshrl.u32 %v8176_v11, 16  ;;  %7297 = vmatmul.mubr.msk.bf16.gmra.mxu0 %vm685_vm2, %v8768_v59  ;;  %v11470_v40 = vshll.u32 %v8176_v11, 16 }
  0x87   : > { %v1738_v17 = vrot.slane %v11466_v36, 6  ;;  %v1741_v25 = vrot.slane %v11467_v42, 5  ;;  %v1742_v38 = vrot.slane %v11468_v50, 6  ;;  %v1737_v53 = vrot.slane %v1735_v9, 5 }
  0x88   : > { %v1732_v4 = vor.u32 %v1731_v19, %v1730_v30  ;;  %v1745_v3 = vrot.slane %v11469_v56, 5  ;;  %v1729_v22 = vrot.slane %v1728_v0, 4  ;;  %v1746_v52 = vrot.slane %v11470_v40, 6 }
  0x89   : > { %v1750_v54 = vshrl.u32 %v8214_v28, 16  ;;  %v1743_v7 = vor.u32 %v1742_v38, %v1741_v25  ;;  %v11471_v10 = vshll.u32 %v8214_v28, 16  ;;  %v6555_v1 = vrot.slane %v8150_v61, 9 }
  0x8a   : > { %v1734_v24 = vrot.slane %v1732_v4, 4  ;;  %v1733_v63 = vsel %vm8554_vm9, %v1729_v22, %v1732_v4  ;;  %v1739_v48 = vor.u32 %v1738_v17, %v1737_v53  ;;  %v1747_v26 = vor.u32 %v1746_v52, %v1745_v3  ;;  %v11474_v17 = vld [vmem:[#allocation14_spill] sm:$0xff] }
  0x8b   : > { %v1753_v34 = vrot.slane %v11471_v10, 6  ;;  %v1752_v21 = vrot.slane %v1750_v54, 5  ;;  %v1744_v13 = vrot.slane %v1743_v7, 4  ;;  %v1259_v8 = vrot.slane %v8160_v12, 5 }
  0x8c   : > { %v1262_v43 = vrot.slane %v8194_v2, 5  ;;  %v6556_v32 = vrot.slane %v8168_v14, 9  ;;  %v1740_v15 = vsel %vm8554_vm9, %v1734_v24, %v1739_v48  ;;  %v1749_v55 = vrot.slane %v1747_v26, 4  ;;  %v11482_v24 = vld [vmem:[#allocation19_spill] sm:$0xff] }
  0x8d   : > { %v1754_v44 = vor.u32 %v1753_v34, %v1752_v21  ;;  %v1266_v61 = vrot.slane %v8176_v11, 5  ;;  %v8797_v30 = vcombine.low %v1733_v63, %v1740_v15  ;;  %v1748_v18 = vsel %vm8554_vm9, %v1744_v13, %v1747_v26  ;;  %v11484_v63 = vld [vmem:[#allocation17_spill] sm:$0xff] }
  0x8e   : > { %v1260_v19 = vsel %vm8547_vm8, %v6555_v1, %v1259_v8  ;;  %v1261_v12 = vrot.slane %v1259_v8, 4  ;;  %v1269_v9 = vrot.slane %v8214_v28, 5  ;;  %v11475_v4 = vshrl.u32 %v11474_v17, 16  ;;  %v11478_v28 = vld [vmem:[#allocation16_spill] sm:$0xff]  ;;  %v11487_v8 = vld [vmem:[#allocation18_spill] sm:$0xff] }
  0x8f   : > { %11472 = vst [vmem:[#allocation60_spill] sm:$0xff] %v8797_v30  ;;  %v1755_v2 = vsel %vm8554_vm9, %v1749_v55, %v1754_v44  ;;  %v1267_v14 = vsel %vm8547_vm8, %v6556_v32, %v1266_v61  ;;  %v1268_v0 = vrot.slane %v1266_v61, 4  ;;  %7336 = vmatprep.mubr.msk.bf16.mxu1 %vm685_vm2, %v8797_v30  ;;  %v11476_v25 = vshll.u32 %v11474_v17, 16 }
  0x90   : > { %v8810_v11 = vcombine.low %v1748_v18, %v1755_v2  ;;  %v1263_v36 = vsel %vm8547_vm8, %v1261_v12, %v1262_v43  ;;  %v1756_v42 = vrot.slane %v11475_v4, 5  ;;  %v11479_v3 = vshrl.u32 %v11478_v28, 16  ;;  %v11490_v18 = vld [vmem:[#allocation21_spill] sm:$0xff] }
  0x91   : > { %v1757_v50 = vrot.slane %v11476_v25, 6  ;;  %v8818_v38 = vcombine.low %v1260_v19, %v1263_v36  ;;  %v1270_v56 = vsel %vm8547_vm8, %v1268_v0, %v1269_v9  ;;  %v11480_v53 = vshll.u32 %v11478_v28, 16 }
  0x92   : > { %11473 = vst [vmem:[#allocation61_spill] sm:$0xff] %v8810_v11  ;;  %v1760_v22 = vrot.slane %v11479_v3, 5  ;;  %7337 = vmatmul.mubr.msk.bf16.gmra.mxu1 %vm685_vm2, %v8810_v11  ;;  %v8828_v52 = vcombine.low %v1267_v14, %v1270_v56  ;;  %v1765_v7 = vshrl.u32 %v11482_v24, 16  ;;  %v11483_v10 = vshll.u32 %v11482_v24, 16 }
  0x93   : > { %11477 = vst [vmem:[#allocation14_spill] sm:$0xff] %v8818_v38  ;;  %v1761_v40 = vrot.slane %v11480_v53, 6  ;;  %v1758_v54 = vor.u32 %v1757_v50, %v1756_v42  ;;  %7300 = vmatprep.mubr.msk.bf16.mxu0 %vm685_vm2, %v8818_v38  ;;  %v11485_v48 = vshrl.u32 %v11484_v63, 16  ;;  %v11486_v21 = vshll.u32 %v11484_v63, 16 }
  0x94   : > { %11481 = vst [vmem:[#allocation16_spill] sm:$0xff] %v8828_v52  ;;  %v1768_v34 = vrot.slane %v11483_v10, 6  ;;  %v11488_v43 = vshrl.u32 %v11487_v8, 16  ;;  %7301 = vmatmul.mubr.msk.bf16.gmra.mxu0 %vm685_vm2, %v8828_v52  ;;  %v1767_v55 = vrot.slane %v1765_v7, 5  ;;  %v11489_v44 = vshll.u32 %v11487_v8, 16 }
  0x95   : > { %v1762_v1 = vor.u32 %v1761_v40, %v1760_v22  ;;  %v1771_v26 = vrot.slane %v11485_v48, 5  ;;  %v1772_v13 = vrot.slane %v11486_v21, 6  ;;  %v1759_v15 = vrot.slane %v1758_v54, 4 }
  0x96   : > { %v1775_v32 = vrot.slane %v11488_v43, 5  ;;  %v1776_v61 = vrot.slane %v11489_v44, 6  ;;  %v1780_v19 = vshrl.u32 %v11490_v18, 16  ;;  %v11491_v14 = vshll.u32 %v11490_v18, 16 }
  0x97   : > { %v1764_v12 = vrot.slane %v1762_v1, 4  ;;  %v1773_v2 = vor.u32 %v1772_v13, %v1771_v26  ;;  %v6557_v9 = vrot.slane %v11474_v17, 9  ;;  %v1763_v36 = vsel %vm8554_vm9, %v1759_v15, %v1762_v1  ;;  %v11494_v13 = vld [vmem:[#allocation23_spill] sm:$0xff] }
  0x98   : > { %v1783_v0 = vrot.slane %v11491_v14, 6  ;;  %v1769_v4 = vor.u32 %v1768_v34, %v1767_v55  ;;  %v1777_v42 = vor.u32 %v1776_v61, %v1775_v32  ;;  %v1782_v25 = vrot.slane %v1780_v19, 5  ;;  %v11498_v61 = vld [vmem:[#allocation25_spill] sm:$0xff] }
  0x99   : > { %v1774_v50 = vrot.slane %v1773_v2, 4  ;;  %v1273_v56 = vrot.slane %v11478_v28, 5  ;;  %v1276_v3 = vrot.slane %v11482_v24, 5  ;;  %v6558_v22 = vrot.slane %v11484_v63, 9 }
  0x9a   : > { %v1770_v53 = vsel %vm8554_vm9, %v1764_v12, %v1769_v4  ;;  %v1779_v40 = vrot.slane %v1777_v42, 4  ;;  %v1784_v54 = vor.u32 %v1783_v0, %v1782_v25  ;;  %v1280_v17 = vrot.slane %v11487_v8, 5  ;;  %v11503_v25 = vld [vmem:[#allocation27_spill] sm:$0xff] }
  0x9b   : > { %v8857_v7 = vcombine.low %v1763_v36, %v1770_v53  ;;  %v1778_v10 = vsel %vm8554_vm9, %v1774_v50, %v1777_v42  ;;  %v1274_v34 = vsel %vm8547_vm8, %v6557_v9, %v1273_v56  ;;  %v1275_v28 = vrot.slane %v1273_v56, 4  ;;  %v11506_v53 = vld [vmem:[#allocation28_spill] sm:$0xff] }
  0x9c   : > { %v1785_v24 = vsel %vm8554_vm9, %v1779_v40, %v1784_v54  ;;  %v1281_v1 = vsel %vm8547_vm8, %v6558_v22, %v1280_v17  ;;  %v1282_v63 = vrot.slane %v1280_v17, 4  ;;  %v1283_v48 = vrot.slane %v11490_v18, 5 }
  0x9d   : > { %11492 = vst [vmem:[#allocation19_spill] sm:$0xff] %v8857_v7  ;;  %7340 = vmatprep.mubr.msk.bf16.mxu1 %vm685_vm2, %v8857_v7  ;;  %v8870_v26 = vcombine.low %v1778_v10, %v1785_v24  ;;  %v1277_v21 = vsel %vm8547_vm8, %v1275_v28, %v1276_v3  ;;  %v11495_v8 = vshrl.u32 %v11494_v13, 16  ;;  %v11496_v32 = vshll.u32 %v11494_v13, 16  ;;  %v11509_v24 = vld [vmem:[#allocation30_spill] sm:$0xff] }
  0x9e   : > { %v8878_v55 = vcombine.low %v1274_v34, %v1277_v21  ;;  %v1284_v44 = vsel %vm8547_vm8, %v1282_v63, %v1283_v48  ;;  %v11499_v18 = vshrl.u32 %v11498_v61, 16  ;;  %v11500_v12 = vshll.u32 %v11498_v61, 16 }
  0x9f   : > { %11493 = vst [vmem:[#allocation17_spill] sm:$0xff] %v8870_v26  ;;  %v1786_v43 = vrot.slane %v11495_v8, 5  ;;  %v1787_v15 = vrot.slane %v11496_v32, 6  ;;  %7341 = vmatmul.mubr.msk.bf16.gmra.mxu1 %vm685_vm2, %v8870_v26  ;;  %v8888_v14 = vcombine.low %v1281_v1, %v1284_v44  ;;  %v1795_v9 = vshrl.u32 %v8335_v57, 16 }
  0xa0   : > { %11497 = vst [vmem:[#allocation18_spill] sm:$0xff] %v8878_v55  ;;  %v1790_v19 = vrot.slane %v11499_v18, 5  ;;  %v1791_v2 = vrot.slane %v11500_v12, 6  ;;  %v11502_v36 = vshll.u32 %v8335_v57, 16  ;;  %7304 = vmatprep.mubr.msk.bf16.mxu0 %vm685_vm2, %v8878_v55  ;;  %v11504_v50 = vshrl.u32 %v11503_v25, 16 }
  0xa1   : > { %11501 = vst [vmem:[#allocation21_spill] sm:$0xff] %v8888_v14  ;;  %v1788_v0 = vor.u32 %v1787_v15, %v1786_v43  ;;  %v11505_v3 = vshll.u32 %v11503_v25, 16  ;;  %v11507_v40 = vshrl.u32 %v11506_v53, 16  ;;  %7305 = vmatmul.mubr.msk.bf16.gmra.mxu0 %vm685_vm2, %v8888_v14  ;;  %v1797_v10 = vrot.slane %v1795_v9, 5 }
  0xa2   : > { %v1798_v4 = vrot.slane %v11502_v36, 6  ;;  %v1792_v42 = vor.u32 %v1791_v2, %v1790_v19  ;;  %v1801_v56 = vrot.slane %v11504_v50, 5  ;;  %v11508_v34 = vshll.u32 %v11506_v53, 16 }
  0xa3   : > { %v1802_v22 = vrot.slane %v11505_v3, 6  ;;  %v1805_v54 = vrot.slane %v11507_v40, 5  ;;  %v1789_v17 = vrot.slane %v1788_v0, 4  ;;  %v1810_v1 = vshrl.u32 %v11509_v24, 16 }
  0xa4   : > { %v1806_v28 = vrot.slane %v11508_v34, 6  ;;  %v1794_v63 = vrot.slane %v1792_v42, 4  ;;  %v11510_v21 = vshll.u32 %v11509_v24, 16  ;;  %v6559_v43 = vrot.slane %v11494_v13, 9 }
  0xa5   : > { %v1803_v48 = vor.u32 %v1802_v22, %v1801_v56  ;;  %v1793_v32 = vsel %vm8554_vm9, %v1789_v17, %v1792_v42  ;;  %v1799_v15 = vor.u32 %v1798_v4, %v1797_v10  ;;  %v1812_v18 = vrot.slane %v1810_v1, 5 }
  0xa6   : > { %v1813_v8 = vrot.slane %v11510_v21, 6  ;;  %v1807_v44 = vor.u32 %v1806_v28, %v1805_v54  ;;  %v1287_v12 = vrot.slane %v11498_v61, 5  ;;  %v1290_v2 = vrot.slane %v8335_v57, 5  ;;  %v11513_v54 = vld [vmem:[#allocation32_spill] sm:$0xff] }
  0xa7   : > { %v1804_v19 = vrot.slane %v1803_v48, 4  ;;  %v6560_v0 = vrot.slane %v11503_v25, 9  ;;  %v1800_v9 = vsel %vm8554_vm9, %v1794_v63, %v1799_v15  ;;  %v1294_v13 = vrot.slane %v11506_v53, 5 }
  0xa8   : > { %v1809_v36 = vrot.slane %v1807_v44, 4  ;;  %v1814_v50 = vor.u32 %v1813_v8, %v1812_v18  ;;  %v8917_v56 = vcombine.low %v1793_v32, %v1800_v9  ;;  %v1288_v42 = vsel %vm8547_vm8, %v6559_v43, %v1287_v12 }
  0xa9   : > { %v1808_v4 = vsel %vm8554_vm9, %v1804_v19, %v1807_v44  ;;  %v1289_v61 = vrot.slane %v1287_v12, 4  ;;  %v1295_v25 = vsel %vm8547_vm8, %v6560_v0, %v1294_v13  ;;  %v1296_v3 = vrot.slane %v1294_v13, 4  ;;  %v11521_v44 = vld [vmem:[#allocation38_spill] sm:$0xff]  ;;  %v11523_v0 = vld [vmem:[#allocation36_spill] sm:$0xff] }
  0xaa   : > { %11511 = vst [vmem:[#allocation23_spill] sm:$0xff] %v8917_v56  ;;  %v1815_v57 = vsel %vm8554_vm9, %v1809_v36, %v1814_v50  ;;  %v1297_v22 = vrot.slane %v11509_v24, 5  ;;  %7344 = vmatprep.mubr.msk.bf16.mxu1 %vm685_vm2, %v8917_v56  ;;  %v11514_v17 = vshrl.u32 %v11513_v54, 16  ;;  %v11515_v34 = vshll.u32 %v11513_v54, 16  ;;  %v11517_v24 = vld [vmem:[#allocation34_spill] sm:$0xff] }
  0xab   : > { %v8930_v53 = vcombine.low %v1808_v4, %v1815_v57  ;;  %v1291_v40 = vsel %vm8547_vm8, %v1289_v61, %v1290_v2  ;;  %v11518_v48 = vshrl.u32 %v11517_v24, 16  ;;  %v11519_v8 = vshll.u32 %v11517_v24, 16  ;;  %v11526_v4 = vld [vmem:[#allocation37_spill] sm:$0xff] }
  0xac   : > { %v1816_v10 = vrot.slane %v11514_v17, 5  ;;  %v1817_v28 = vrot.slane %v11515_v34, 6  ;;  %v8938_v1 = vcombine.low %v1288_v42, %v1291_v40  ;;  %v1298_v63 = vsel %vm8547_vm8, %v1296_v3, %v1297_v22  ;;  %v11529_v40 = vld [vmem:[#allocation40_spill] sm:$0xff] }
  0xad   : > { %11512 = vst [vmem:[#allocation25_spill] sm:$0xff] %v8930_v53  ;;  %v1820_v21 = vrot.slane %v11518_v48, 5  ;;  %v1821_v43 = vrot.slane %v11519_v8, 6  ;;  %7345 = vmatmul.mubr.msk.bf16.gmra.mxu1 %vm685_vm2, %v8930_v53  ;;  %v8948_v32 = vcombine.low %v1295_v25, %v1298_v63  ;;  %v1825_v18 = vshrl.u32 %v11521_v44, 16 }
  0xae   : > { %11516 = vst [vmem:[#allocation27_spill] sm:$0xff] %v8938_v1  ;;  %v1818_v15 = vor.u32 %v1817_v28, %v1816_v10  ;;  %v11522_v19 = vshll.u32 %v11521_v44, 16  ;;  %7308 = vmatprep.mubr.msk.bf16.mxu0 %vm685_vm2, %v8938_v1  ;;  %v11524_v9 = vshrl.u32 %v11523_v0, 16  ;;  %v11525_v50 = vshll.u32 %v11523_v0, 16 }
  0xaf   : > { %11520 = vst [vmem:[#allocation28_spill] sm:$0xff] %v8948_v32  ;;  %v1822_v2 = vor.u32 %v1821_v43, %v1820_v21  ;;  %v11527_v42 = vshrl.u32 %v11526_v4, 16  ;;  %7309 = vmatmul.mubr.msk.bf16.gmra.mxu0 %vm685_vm2, %v8948_v32  ;;  %v1827_v25 = vrot.slane %v1825_v18, 5  ;;  %v11528_v3 = vshll.u32 %v11526_v4, 16 }
  0xb0   : > { %v1828_v12 = vrot.slane %v11522_v19, 6  ;;  %v1831_v36 = vrot.slane %v11524_v9, 5  ;;  %v1832_v13 = vrot.slane %v11525_v50, 6  ;;  %v1819_v57 = vrot.slane %v1818_v15, 4 }
  0xb1   : > { %v1835_v61 = vrot.slane %v11527_v42, 5  ;;  %v1836_v22 = vrot.slane %v11528_v3, 6  ;;  %v1840_v17 = vshrl.u32 %v11529_v40, 16  ;;  %v1824_v10 = vrot.slane %v1822_v2, 4 }
  0xb2   : > { %v1833_v34 = vor.u32 %v1832_v13, %v1831_v36  ;;  %v11530_v28 = vshll.u32 %v11529_v40, 16  ;;  %v6561_v48 = vrot.slane %v11513_v54, 9  ;;  %v1823_v21 = vsel %vm8554_vm9, %v1819_v57, %v1822_v2 }
  0xb3   : > { %v1829_v8 = vor.u32 %v1828_v12, %v1827_v25  ;;  %v1837_v43 = vor.u32 %v1836_v22, %v1835_v61  ;;  %v1842_v19 = vrot.slane %v1840_v17, 5  ;;  %v1301_v18 = vrot.slane %v11517_v24, 5  ;;  %v11533_v22 = vld [vmem:[#allocation42_spill] sm:$0xff] }
  0xb4   : > { %v1843_v63 = vrot.slane %v11530_v28, 6  ;;  %v1834_v15 = vrot.slane %v1833_v34, 4  ;;  %v1304_v9 = vrot.slane %v11521_v44, 5  ;;  %v6562_v50 = vrot.slane %v11523_v0, 9 }
  0xb5   : > { %v1830_v36 = vsel %vm8554_vm9, %v1824_v10, %v1829_v8  ;;  %v1839_v13 = vrot.slane %v1837_v43, 4  ;;  %v1308_v54 = vrot.slane %v11526_v4, 5  ;;  %v1302_v2 = vsel %vm8547_vm8, %v6561_v48, %v1301_v18 }
  0xb6   : > { %v1844_v42 = vor.u32 %v1843_v63, %v1842_v19  ;;  %v8977_v3 = vcombine.low %v1823_v21, %v1830_v36  ;;  %v1838_v12 = vsel %vm8554_vm9, %v1834_v15, %v1837_v43  ;;  %v1303_v24 = vrot.slane %v1301_v18, 4 }
  0xb7   : > { %v1309_v0 = vsel %vm8547_vm8, %v6562_v50, %v1308_v54  ;;  %v1310_v61 = vrot.slane %v1308_v54, 4  ;;  %v1311_v57 = vrot.slane %v11529_v40, 5  ;;  %v11534_v17 = vshrl.u32 %v11533_v22, 16 }
  0xb8   : > { %11531 = vst [vmem:[#allocation30_spill] sm:$0xff] %v8977_v3  ;;  %v1845_v44 = vsel %vm8554_vm9, %v1839_v13, %v1844_v42  ;;  %7348 = vmatprep.mubr.msk.bf16.mxu1 %vm685_vm2, %v8977_v3  ;;  %v1305_v25 = vsel %vm8547_vm8, %v1303_v24, %v1304_v9  ;;  %v11535_v34 = vshll.u32 %v11533_v22, 16  ;;  %v11537_v40 = vshrl.u32 %v8448_v39, 16 }
  0xb9   : > { %v8990_v4 = vcombine.low %v1838_v12, %v1845_v44  ;;  %v1846_v10 = vrot.slane %v11534_v17, 5  ;;  %v8998_v63 = vcombine.low %v1302_v2, %v1305_v25  ;;  %v1312_v48 = vsel %vm8547_vm8, %v1310_v61, %v1311_v57 }
  0xba   : > { %v1847_v28 = vrot.slane %v11535_v34, 6  ;;  %v1850_v21 = vrot.slane %v11537_v40, 5  ;;  %v11538_v8 = vshll.u32 %v8448_v39, 16  ;;  %v9008_v19 = vcombine.low %v1309_v0, %v1312_v48 }
  0xbb   : > { %11532 = vst [vmem:[#allocation32_spill] sm:$0xff] %v8990_v4  ;;  %11536 = vst [vmem:[#allocation34_spill] sm:$0xff] %v8998_v63  ;;  %7349 = vmatmul.mubr.msk.bf16.gmra.mxu1 %vm685_vm2, %v8990_v4  ;;  %v1855_v18 = vshrl.u32 %v8487_v16, 16  ;;  %v11540_v9 = vshll.u32 %v8487_v16, 16  ;;  %7312 = vmatprep.mubr.msk.bf16.mxu0 %vm685_vm2, %v8998_v63  ;;  %v11541_v13 = vshrl.u32 %v8467_v33, 16  ;;  %v11542_v54 = vshll.u32 %v8467_v33, 16 }
  0xbc   : > { %v1851_v43 = vrot.slane %v11538_v8, 6  ;;  %11539 = vst [vmem:[#allocation38_spill] sm:$0xff] %v9008_v19  ;;  %v1848_v15 = vor.u32 %v1847_v28, %v1846_v10  ;;  %v11543_v2 = vshrl.u32 %v8470_v41, 16  ;;  %7313 = vmatmul.mubr.msk.bf16.gmra.mxu0 %vm685_vm2, %v9008_v19  ;;  %v11544_v61 = vshll.u32 %v8470_v41, 16 }
  0xbd   : > { %v1858_v50 = vrot.slane %v11540_v9, 6  ;;  %v1861_v42 = vrot.slane %v11541_v13, 5  ;;  %v1862_v12 = vrot.slane %v11542_v54, 6  ;;  %v1857_v0 = vrot.slane %v1855_v18, 5 }
  0xbe   : > { %v1852_v36 = vor.u32 %v1851_v43, %v1850_v21  ;;  %v1865_v24 = vrot.slane %v11543_v2, 5  ;;  %v1849_v44 = vrot.slane %v1848_v15, 4  ;;  %v1866_v57 = vrot.slane %v11544_v61, 6 }
  0xbf   : > { %v1870_v25 = vshrl.u32 %v8501_v31, 16  ;;  %v1863_v10 = vor.u32 %v1862_v12, %v1861_v42  ;;  %v11545_v34 = vshll.u32 %v8501_v31, 16  ;;  %v6563_v48 = vrot.slane %v11533_v22, 9 }
  0xc0   : > { %v1854_v17 = vrot.slane %v1852_v36, 4  ;;  %v1853_v40 = vsel %vm8554_vm9, %v1849_v44, %v1852_v36  ;;  %v1859_v21 = vor.u32 %v1858_v50, %v1857_v0  ;;  %v1867_v8 = vor.u32 %v1866_v57, %v1865_v24  ;;  %v9052_v0 = vld [vmem:[%s7912_s27 + $0xc4] sm:$0xf] }
  0xc1   : > { %v1873_v28 = vrot.slane %v11545_v34, 6  ;;  %v1872_v43 = vrot.slane %v1870_v25, 5  ;;  %v1864_v15 = vrot.slane %v1863_v10, 4  ;;  %v1315_v18 = vrot.slane %v8448_v39, 5  ;;  %v9061_v25 = vld [vmem:[%s7912_s27 + $0xc8] sm:$0x3] }
  0xc2   : > { %v1318_v9 = vrot.slane %v8487_v16, 5  ;;  %v6564_v13 = vrot.slane %v8467_v33, 9  ;;  %v1860_v42 = vsel %vm8554_vm9, %v1854_v17, %v1859_v21  ;;  %v1869_v54 = vrot.slane %v1867_v8, 4  ;;  %v9044_v16 = vld [vmem:[%s7912_s27 + $0xc0] sm:$0xf] }
  0xc3   : > { %v1874_v22 = vor.u32 %v1873_v28, %v1872_v43  ;;  %v1322_v36 = vrot.slane %v8470_v41, 5  ;;  %v9037_v12 = vcombine.low %v1853_v40, %v1860_v42  ;;  %v1868_v50 = vsel %vm8554_vm9, %v1864_v15, %v1867_v8  ;;  %v11550_v40 = vld [vmem:[#allocation6_spill] sm:$0xff] }
  0xc4   : > { %v1316_v39 = vsel %vm8547_vm8, %v6563_v48, %v1315_v18  ;;  %v1317_v2 = vrot.slane %v1315_v18, 4  ;;  %v1325_v41 = vrot.slane %v8501_v31, 5  ;;  %v11256_v34 = vshrl.u32 %v9044_v16, 16 }
  0xc5   : > { %11546 = vst [vmem:[#allocation36_spill] sm:$0xff] %v9037_v12  ;;  %v1875_v33 = vsel %vm8554_vm9, %v1869_v54, %v1874_v22  ;;  %v1323_v24 = vsel %vm8547_vm8, %v6564_v13, %v1322_v36  ;;  %v1324_v44 = vrot.slane %v1322_v36, 4  ;;  %7352 = vmatprep.mubr.msk.bf16.mxu1 %vm685_vm2, %v9037_v12  ;;  %v11255_v31 = vshll.u32 %v9044_v16, 16  ;;  %v11551_v13 = vld [vmem:[#allocation2_spill] sm:$0xff] }
  0xc6   : > { %v9056_v61 = vcombine.low %v1868_v50, %v1875_v33  ;;  %v1319_v57 = vsel %vm8547_vm8, %v1317_v2, %v1318_v9  ;;  %v11254_v48 = vshll.u32 %v9052_v0, 16  ;;  %v11253_v21 = vshll.u32 %v9061_v25, 16 }
  0xc7   : > { %v9063_v17 = vcombine.low %v1316_v39, %v1319_v57  ;;  %v1326_v10 = vsel %vm8547_vm8, %v1324_v44, %v1325_v41  ;;  %v2864_v8 = vrot.slane %v11256_v34, 5  ;;  %v2865_v43 = vrot.slane %v11255_v31, 6  ;;  %v11570_v31 = vld [vmem:[#allocation44_spill] sm:$0xff] }
  0xc8   : > { %11547 = vst [vmem:[#allocation37_spill] sm:$0xff] %v9056_v61  ;;  %7353 = vmatmul.mubr.msk.bf16.gmra.mxu1 %vm685_vm2, %v9056_v61  ;;  %v9071_v28 = vcombine.low %v1323_v24, %v1326_v10  ;;  %v2414_v15 = vshrl.u32 %v9052_v0, 16  ;;  %v2869_v18 = vrot.slane %v11254_v48, 6  ;;  %v2873_v9 = vshrl.u32 %v9061_v25, 16  ;;  %v7830_v24 = vld [vmem:[%s11123_s1 + $0x70] sm:$0xff]   ;;  %v11569_v48 = vld [vmem:[#allocation43_spill] sm:$0xff] }
  0xc9   : > { %11548 = vst [vmem:[#allocation40_spill] sm:$0xff] %v9063_v17  ;;  %7316 = vmatprep.mubr.msk.bf16.mxu0 %vm685_vm2, %v9063_v17  ;;  %7396 = vmatprep.mubr.msk.bf16.mxu1 %vm685_vm2, %v11550_v40  ;;  %v2876_v42 = vrot.slane %v11253_v21, 6  ;;  %v2866_v54 = vor.u32 %v2865_v43, %v2864_v8  ;;  %v6687_v50 = vrot.slane %v9044_v16, 9  ;;  %v2643_v2 = vrot.slane %v9052_v0, 5  ;;  %v11552_v40 = vld [vmem:[#allocation9_spill] sm:$0xff]  ;;  %v7829_v8 = vld [vmem:[%s11123_s1 + $0x60] sm:$0xff]  }
  0xca   : > { %11549 = vst [vmem:[#allocation42_spill] sm:$0xff] %v9071_v28  ;;  %7317 = vmatmul.mubr.msk.bf16.gmra.mxu0 %vm685_vm2, %v9071_v28  ;;  %v2868_v22 = vrot.slane %v2414_v15, 5  ;;  %v2875_v36 = vrot.slane %v2873_v9, 5  ;;  %v2646_v33 = vrot.slane %v9061_v25, 5 }
  0xcb   : > { %7360 = vmatprep.mubr.msk.bf16.mxu0 %vm685_vm2, %v11551_v13  ;;  %v2867_v39 = vrot.slane %v2866_v54, 4  ;;  %v2644_v57 = vsel %vm8547_vm8, %v6687_v50, %v2643_v2  ;;  %v2645_v10 = vrot.slane %v2643_v2, 4  ;;  %v11553_v13 = vld [vmem:[#allocation10_spill] sm:$0xff]  ;;  %v9118_v54 = vld [vmem:[%s11123_s1 + $0x98] sm:$0xff]  }
  0xcc   : > { %v2870_v44 = vor.u32 %v2869_v18, %v2868_v22  ;;  %v2877_v41 = vor.u32 %v2876_v42, %v2875_v36  ;;  %v11554_v42 = vld [vmem:[#allocation4_spill] sm:$0xff]  ;;  %v11557_v2 = vld [vmem:[#allocation13_spill] sm:$0xff] }
  0xcd   : > { %v2647_v18 = vsel %vm8547_vm8, %v2645_v10, %v2646_v33  ;;  %v11559_v33 = vld [vmem:[#allocation7_spill] sm:$0xff]  ;;  %v11564_v10 = vld [vmem:[#allocation12_spill] sm:$0xff] }
  0xce   : > { %v2871_v43 = vsel %vm8554_vm9, %v2867_v39, %v2870_v44  ;;  %v2872_v9 = vrot.slane %v2870_v44, 4  ;;  %v9122_v36 = vcombine.low %v2644_v57, %v2647_v18  ;;  %v9132_v39 = vld [vmem:[%s11123_s1 + $0x88] sm:$0xff]   ;;  %v11560_v44 = vld [vmem:[#allocation8_spill] sm:$0xff]  ;;  %v11568_v18 = vld [vmem:[#allocation22_spill] sm:$0xff] }
  0xcf   : > { %v11563_v57 = vld [vmem:[#allocation11_spill] sm:$0xff] }
  0xd0   : > { %7397 = vmatmul.mubr.msk.bf16.vlgmr.msra.gmra.mxu1 %vm685_vm2, %v11552_v40  ;;  %v2878_v22 = vsel %vm8554_vm9, %v2872_v9, %v2877_v41  ;;  %v11561_v41 = vld [vmem:[#allocation24_spill] sm:$0xff] }
  0xd1   : > { %7465 = vmatpush3.bf16.msra.mxu1 %v8651_v45  ;;  %7400 = vmatprep.mubr.msk.bf16.mxu1 %vm685_vm2, %v11553_v13  ;;  %v11555_v45 = vld [vmem:[#allocation5_spill] sm:$0xff]  ;;  %v9127_v50 = vcombine.low %v2871_v43, %v2878_v22  ;;  %v11566_v43 = vld [vmem:[#allocation35_spill] sm:$0xff]  ;;  %v11567_v9 = vld [vmem:[#allocation20_spill] sm:$0xff] }
  0xd2   : > { %7361 = vmatmul.mubr.msk.bf16.vlgmr.msra.gmra.mxu0 %vm685_vm2, %v11554_v42  ;;  %7466 = vmatprep.subr.bf16.mxu1 %v7830_v24 }
  0xd3   : > { %7429 = vmatpush3.bf16.msra.mxu0 %v8703_v51  ;;  %7364 = vmatprep.mubr.msk.bf16.mxu0 %vm685_vm2, %v11555_v45  ;;  %11556 = vst [vmem:[#allocation6_spill] sm:$0xff] %v9127_v50  ;;  %v11558_v51 = vld [vmem:[#allocation15_spill] sm:$0xff] }
  0xd4   : > { %7430 = vmatprep.subr.bf16.mxu0 %v7829_v8 }
  0xd5   : > { %7467 = vmatpush3.bf16.msra.mxu1 %v7830_v24  ;;  %v11562_v24 = vld [vmem:[#allocation26_spill] sm:$0xff] }
  0xd6   : > { %7536 = vmatprep.subr.bf16.mxu1 %v9118_v54  ;;  %v7254_v22 = vpop.f32.mrf.mxu1 }
  0xd7   : > { %7431 = vmatpush3.bf16.msra.mxu0 %v7829_v8  ;;  %v11565_v8 = vld [vmem:[#allocation33_spill] sm:$0xff] }
  0xd8   : > { %7401 = vmatmul.mubr.msk.bf16.gmra.mxu1 %vm685_vm2, %v11557_v2  ;;  %7500 = vmatprep.subr.bf16.mxu0 %v9132_v39  ;;  %v1069_v21 = vpop.f32.mrf.mxu1 }
  0xd9   : > { %7404 = vmatprep.mubr.msk.bf16.mxu1 %vm685_vm2, %v11558_v51 }
  0xda   : > { %7365 = vmatmul.mubr.msk.bf16.gmra.mxu0 %vm685_vm2, %v11559_v33  ;;  %v7255_v34 = vpop.f32.mrf.mxu1  ;;  %v11578_v33 = vld [vmem:[#allocation39_spill] sm:$0xff] }
  0xdb   : > { %7368 = vmatprep.mubr.msk.bf16.mxu0 %vm685_vm2, %v11560_v44 }
  0xdc   : > { %v1072_v44 = vpop.f32.mrf.mxu1 }
  0xe0   : > { %7405 = vmatmul.mubr.msk.bf16.gmra.mxu1 %vm685_vm2, %v11561_v41  ;;  %v11576_v41 = vld [vmem:[#allocation47_spill] sm:$0xff] }
  0xe1   : > { %7408 = vmatprep.mubr.msk.bf16.mxu1 %vm685_vm2, %v11562_v24  ;;  %v11575_v24 = vshll.u32 %v9052_v0, 16 }
  0xe2   : > { %7369 = vmatmul.mubr.msk.bf16.gmra.mxu0 %vm685_vm2, %v11563_v57 }
  0xe3   : > { %7372 = vmatprep.mubr.msk.bf16.mxu0 %vm685_vm2, %v11564_v10  ;;  %v11572_v10 = vld [vmem:[#allocation31_spill] sm:$0xff]  ;;  %v2412_v57 = vrot.slane %v11575_v24, 5 }
  0xe8   : > { %7409 = vmatmul.mubr.msk.bf16.gmra.mxu1 %vm685_vm2, %v11565_v8 }
  0xe9   : > { %7412 = vmatprep.mubr.msk.bf16.mxu1 %vm685_vm2, %v11566_v43  ;;  %v11573_v43 = vshrl.u32 %v9044_v16, 16 }
  0xea   : > { %7373 = vmatmul.mubr.msk.bf16.gmra.mxu0 %vm685_vm2, %v11567_v9 }
  0xeb   : > { %7376 = vmatprep.mubr.msk.bf16.mxu0 %vm685_vm2, %v11568_v18  ;;  %v2403_v9 = vrot.slane %v11573_v43, 4  ;;  %v11574_v18 = vshll.u32 %v9044_v16, 16  ;;  %v11579_v43 = vld [vmem:[#allocation41_spill] sm:$0xff] }
  0xed   : > { %v2406_v8 = vrot.slane %v11574_v18, 5  ;;  %v7218_v18 = vpop.f32.mrf.mxu0 }
  0xee   : > { %v9182_v24 = vadd.f32 %v7254_v22, %v7218_v18  ;;  %v11582_v22 = vld [vmem:[#allocation46_spill] sm:$0xff] }
  0xef   : > { %v768_v42 = vpop.f32.mrf.mxu0 }
  0xf0   : > { %7413 = vmatmul.mubr.msk.bf16.gmra.mxu1 %vm685_vm2, %v11569_v48  ;;  %v2416_v48 = vrot.slane %v2414_v15, 4 }
  0xf1   : > { %7416 = vmatprep.mubr.msk.bf16.mxu1 %vm685_vm2, %v11570_v31  ;;  %v11577_v31 = vld [vmem:[#allocation48_spill] sm:$0xff] }
  0xf2   : > { %7377 = vmatmul.mubr.msk.bf16.gmra.mxu0 %vm685_vm2, %v11571_v58  ;;  %v2407_v58 = vor.u32 %v2406_v8, %v2403_v9  ;;  %v2417_v51 = vor.u32 %v2416_v48, %v2412_v57  ;;  %v9186_v8 = vadd.f32 %v1069_v21, %v768_v42  ;;  %v7219_v48 = vpop.f32.mrf.mxu0  ;;  %v11581_v21 = vld [vmem:[#allocation45_spill] sm:$0xff] }
  0xf3   : > { %7380 = vmatprep.mubr.msk.bf16.mxu0 %vm685_vm2, %v11572_v10  ;;  %v7258_v10 = vpop.f32.mrf.mxu1 }
  0xf4   : > { %v2408_v15 = vrot.slane %v2407_v58, 4  ;;  %v2418_v2 = vrot.slane %v2417_v51, 4  ;;  %v771_v51 = vpop.f32.mrf.mxu0 }
  0xf5   : > { %v1085_v45 = vpop.f32.mrf.mxu1  ;;  %v9200_v42 = vadd.f32 %v1072_v44, %v771_v51 }
  0xf6   : > { %v2413_v58 = vsel %vm7986_vm3, %v2408_v15, %v2412_v57  ;;  %v9208_v57 = vcombine.low %v9044_v16, %v9052_v0 }
  0xf8   : > { %7417 = vmatmul.mubr.msk.bf16.gmra.mxu1 %vm685_vm2, %v11576_v41  ;;  %v11580_v41 = vshll.u32 %v9061_v25, 16  ;;  %11584 = vst [vmem:[#allocation9_spill] sm:$0xff] %v9208_v57 }
  0xf9   : > { %7420 = vmatprep.mubr.msk.bf16.mxu1 %vm685_vm2, %v11577_v31  ;;  %v7259_v31 = vpop.f32.mrf.mxu1 }
  0xfa   : > { %7381 = vmatmul.mubr.msk.bf16.gmra.mxu0 %vm685_vm2, %v11578_v33  ;;  %v2422_v13 = vrot.slane %v11580_v41, 5  ;;  %v9190_v33 = vadd.f32 %v7255_v34, %v7219_v48  ;;  %v7222_v48 = vpop.f32.mrf.mxu0 }
  0xfb   : > { %7384 = vmatprep.mubr.msk.bf16.mxu0 %vm685_vm2, %v11579_v43  ;;  %v1088_v9 = vpop.f32.mrf.mxu1 }
  0xfc   : > { %v2423_v25 = vsel %vm7986_vm3, %v2418_v2, %v2422_v13  ;;  %v9210_v13 = vadd.f32 %v7258_v10, %v7222_v48  ;;  %v784_v2 = vpop.f32.mrf.mxu0 }
  0xfd   : > { %v7262_v41 = vpop.f32.mrf.mxu1  ;;  %v9204_v18 = vcombine.low %v2413_v58, %v2423_v25  ;;  %v9214_v44 = vadd.f32 %v1085_v45, %v784_v2  ;;  %v7835_v45 = vld [vmem:[%s11123_s1 + $0x90] sm:$0xff]  }
  0xfe   : > { %v7223_v58 = vpop.f32.mrf.mxu0 }
  0xff   : > { %v1101_v34 = vpop.f32.mrf.mxu1  ;;  %11583 = vst [vmem:[#allocation2_spill] sm:$0xff] %v9204_v18  ;;  %v9220_v25 = vadd.f32 %v7259_v31, %v7223_v58 }
 0x100   : > { %7421 = vmatmul.mubr.msk.bf16.gmra.mxu1 %vm685_vm2, %v8587_v46  ;;  %v787_v16 = vpop.f32.mrf.mxu0 }
 0x101   : > { %7424 = vmatprep.mubr.msk.bf16.mxu1 %vm685_vm2, %v8606_v23  ;;  %v7263_v23 = vpop.f32.mrf.mxu1  ;;  %v9224_v10 = vadd.f32 %v1088_v9, %v787_v16  ;;  %v9246_v16 = vld [vmem:[%s11123_s1 + $0xb8] sm:$0xff]  }
 0x102   : > { %7385 = vmatmul.mubr.msk.bf16.gmra.mxu0 %vm685_vm2, %v11581_v21  ;;  %v7226_v48 = vpop.f32.mrf.mxu0 }
 0x103   : > { %7388 = vmatprep.mubr.msk.bf16.mxu0 %vm685_vm2, %v11582_v22  ;;  %v1104_v15 = vpop.f32.mrf.mxu1 }
 0x104   : > { %v800_v31 = vpop.f32.mrf.mxu0 }
 0x105   : > { %v7266_v0 = vpop.f32.mrf.mxu1  ;;  %v9239_v9 = vadd.f32 %v1101_v34, %v800_v31  ;;  %v9256_v31 = vld [vmem:[%s11123_s1 + $0xa8] sm:$0xff]  }
 0x107   : > { %v1117_v51 = vpop.f32.mrf.mxu1 }
 0x108   : > { %7425 = vmatmul.mubr.msk.bf16.gmra.mxu1 %vm685_vm2, %v9204_v18 }
 0x109   : > { %7468 = vmatprep.mubr.msk.bf16.mxu1 %vm685_vm2, %v8593_v5  ;;  %v9229_v5 = vadd.f32 %v7262_v41, %v7226_v48  ;;  %v7267_v2 = vpop.f32.mrf.mxu1  ;;  %v7227_v41 = vpop.f32.mrf.mxu0 }
 0x10a   : > { %7389 = vmatmul.mubr.msk.bf16.gmra.mxu0 %vm685_vm2, %v9208_v57 }
 0x10b   : > { %7432 = vmatprep.mubr.msk.bf16.mxu0 %vm685_vm2, %v8624_v29  ;;  %v7834_v29 = vld [vmem:[%s11123_s1 + $0x80] sm:$0xff]   ;;  %v1120_v58 = vpop.f32.mrf.mxu1  ;;  %v803_v34 = vpop.f32.mrf.mxu0 }
 0x10d   : > { %v7270_v48 = vpop.f32.mrf.mxu1 }
 0x110   : > { %7469 = vmatmul.mubr.msk.bf16.vlgmr.msra.gmra.mxu1 %vm685_vm2, %v8668_v20 }
 0x111   : > { %7537 = vmatpush3.bf16.msra.mxu1 %v9118_v54  ;;  %7472 = vmatprep.mubr.msk.bf16.mxu1 %vm685_vm2, %v8684_v49  ;;  %v9251_v54 = vadd.f32 %v7263_v23, %v7227_v41  ;;  %v9258_v49 = vadd.f32 %v1104_v15, %v803_v34 }
 0x112   : > { %7433 = vmatmul.mubr.msk.bf16.vlgmr.msra.gmra.mxu0 %vm685_vm2, %v8692_v27  ;;  %7538 = vmatprep.subr.bf16.mxu1 %v7835_v45  ;;  %v1133_v27 = vpop.f32.mrf.mxu1 }
 0x113   : > { %7501 = vmatpush3.bf16.msra.mxu0 %v9132_v39  ;;  %7436 = vmatprep.mubr.msk.bf16.mxu0 %vm685_vm2, %v8707_v60  ;;  %v7230_v39 = vpop.f32.mrf.mxu0 }
 0x114   : > { %7502 = vmatprep.subr.bf16.mxu0 %v7834_v29  ;;  %v9263_v23 = vadd.f32 %v7266_v0, %v7230_v39  ;;  %v7271_v41 = vpop.f32.mrf.mxu1 }
 0x115   : > { %7539 = vmatpush3.bf16.msra.mxu1 %v7835_v45  ;;  %v816_v60 = vpop.f32.mrf.mxu0 }
 0x116   : > { %7608 = vmatprep.subr.bf16.mxu1 %v9246_v16  ;;  %v9270_v15 = vadd.f32 %v1117_v51, %v816_v60  ;;  %v1136_v45 = vpop.f32.mrf.mxu1 }
 0x117   : > { %7503 = vmatpush3.bf16.msra.mxu0 %v7834_v29  ;;  %v7231_v29 = vpop.f32.mrf.mxu0 }
 0x118   : > { %7473 = vmatmul.mubr.msk.bf16.gmra.mxu1 %vm685_vm2, %v8737_v6  ;;  %7572 = vmatprep.subr.bf16.mxu0 %v9256_v31  ;;  %v9274_v34 = vadd.f32 %v7267_v2, %v7231_v29  ;;  %v7274_v39 = vpop.f32.mrf.mxu1 }
 0x119   : > { %7476 = vmatprep.mubr.msk.bf16.mxu1 %vm685_vm2, %v8750_v37  ;;  %v819_v0 = vpop.f32.mrf.mxu0 }
 0x11a   : > { %7437 = vmatmul.mubr.msk.bf16.gmra.mxu0 %vm685_vm2, %v8758_v62  ;;  %v9276_v6 = vadd.f32 %v1120_v58, %v819_v0  ;;  %v1149_v20 = vpop.f32.mrf.mxu1 }
 0x11b   : > { %7440 = vmatprep.mubr.msk.bf16.mxu0 %vm685_vm2, %v8768_v59  ;;  %v7234_v37 = vpop.f32.mrf.mxu0 }
 0x11c   : > { %v9282_v60 = vadd.f32 %v7270_v48, %v7234_v37  ;;  %v7275_v51 = vpop.f32.mrf.mxu1 }
 0x11d   : > { %v832_v2 = vpop.f32.mrf.mxu0 }
 0x11e   : > { %v9288_v58 = vadd.f32 %v1133_v27, %v832_v2  ;;  %v1152_v29 = vpop.f32.mrf.mxu1 }
 0x11f   : > { %v7235_v0 = vpop.f32.mrf.mxu0 }
 0x120   : > { %7477 = vmatmul.mubr.msk.bf16.gmra.mxu1 %vm685_vm2, %v8797_v30  ;;  %v9290_v59 = vadd.f32 %v7271_v41, %v7235_v0  ;;  %v7278_v62 = vpop.f32.mrf.mxu1 }
 0x121   : > { %7480 = vmatprep.mubr.msk.bf16.mxu1 %vm685_vm2, %v8810_v11  ;;  %v835_v30 = vpop.f32.mrf.mxu0 }
 0x122   : > { %7441 = vmatmul.mubr.msk.bf16.gmra.mxu0 %vm685_vm2, %v8818_v38  ;;  %v9292_v57 = vadd.f32 %v1136_v45, %v835_v30  ;;  %v1165_v37 = vpop.f32.mrf.mxu1 }
 0x123   : > { %7444 = vmatprep.mubr.msk.bf16.mxu0 %vm685_vm2, %v8828_v52  ;;  %v7238_v48 = vpop.f32.mrf.mxu0 }
 0x124   : > { %v9300_v27 = vadd.f32 %v7274_v39, %v7238_v48  ;;  %v7279_v2 = vpop.f32.mrf.mxu1 }
 0x125   : > { %v848_v41 = vpop.f32.mrf.mxu0 }
 0x126   : > { %v9304_v30 = vadd.f32 %v1149_v20, %v848_v41  ;;  %v1168_v45 = vpop.f32.mrf.mxu1 }
 0x127   : > { %v7239_v0 = vpop.f32.mrf.mxu0 }
 0x128   : > { %7481 = vmatmul.mubr.msk.bf16.gmra.mxu1 %vm685_vm2, %v8857_v7  ;;  %v9306_v52 = vadd.f32 %v7275_v51, %v7239_v0  ;;  %v7282_v11 = vpop.f32.mrf.mxu1 }
 0x129   : > { %7484 = vmatprep.mubr.msk.bf16.mxu1 %vm685_vm2, %v8870_v26  ;;  %v851_v7 = vpop.f32.mrf.mxu0 }
 0x12a   : > { %7445 = vmatmul.mubr.msk.bf16.gmra.mxu0 %vm685_vm2, %v8878_v55  ;;  %v9310_v26 = vadd.f32 %v1152_v29, %v851_v7  ;;  %v1181_v39 = vpop.f32.mrf.mxu1 }
 0x12b   : > { %7448 = vmatprep.mubr.msk.bf16.mxu0 %vm685_vm2, %v8888_v14  ;;  %v7242_v20 = vpop.f32.mrf.mxu0 }
 0x12c   : > { %v9318_v51 = vadd.f32 %v7278_v62, %v7242_v20  ;;  %v7283_v48 = vpop.f32.mrf.mxu1  ;;  %v9333_v62 = vld [vmem:[%s7912_s27 + $0xcc] sm:$0xf] }
 0x12d   : > { %v864_v41 = vpop.f32.mrf.mxu0 }
 0x12e   : > { %v9320_v7 = vadd.f32 %v1165_v37, %v864_v41  ;;  %v9336_v37 = vld [vmem:[%s7912_s27 + $0xd0] sm:$0xf]  ;;  %v9341_v41 = vld [vmem:[%s7912_s27 + $0xd4] sm:$0x3] }
 0x12f   : > { %v7243_v29 = vpop.f32.mrf.mxu0  ;;  %v9563_v47 = vcombine.low %v9333_v62, %v9336_v37 }
 0x130   : > { %7485 = vmatmul.mubr.msk.bf16.gmra.mxu1 %vm685_vm2, %v8917_v56  ;;  %v9322_v0 = vadd.f32 %v7279_v2, %v7243_v29 }
 0x131   : > { %7488 = vmatprep.mubr.msk.bf16.mxu1 %vm685_vm2, %v8930_v53  ;;  %v1184_v53 = vpop.f32.mrf.mxu1 }
 0x132   : > { %7449 = vmatmul.mubr.msk.bf16.gmra.mxu0 %vm685_vm2, %v8938_v1  ;;  %11585 = vst [vmem:[#allocation41_spill] sm:$0xff] %v9322_v0  ;;  %v867_v1 = vpop.f32.mrf.mxu0 }
 0x133   : > { %7452 = vmatprep.mubr.msk.bf16.mxu0 %vm685_vm2, %v8948_v32  ;;  %v9328_v14 = vadd.f32 %v1168_v45, %v867_v1  ;;  %v7326_v20 = vpop.f32.mrf.mxu1  ;;  %v11309_v1 = vshrl.u32 %v9333_v62, 16  ;;  %v11310_v45 = vshll.u32 %v9333_v62, 16 }
 0x134   : > { %v7246_v2 = vpop.f32.mrf.mxu0 }
 0x135   : > { %11586 = vst [vmem:[#allocation62_spill] sm:$0xff] %v9328_v14  ;;  %v9343_v29 = vadd.f32 %v7282_v11, %v7246_v2  ;;  %v3777_v11 = vrot.slane %v11309_v1, 5  ;;  %v3778_v2 = vrot.slane %v11310_v45, 6  ;;  %v11590_v45 = vshll.u32 %v9341_v41, 16 }
 0x136   : > { %v880_v32 = vpop.f32.mrf.mxu0 }
 0x137   : > { %11587 = vst [vmem:[#allocation63_spill] sm:$0xff] %v9343_v29  ;;  %v9349_v56 = vadd.f32 %v1181_v39, %v880_v32  ;;  %v3786_v39 = vshrl.u32 %v9341_v41, 16  ;;  %v3789_v0 = vrot.slane %v11590_v45, 6 }
 0x138   : > { %7489 = vmatmul.mubr.msk.bf16.gmra.mxu1 %vm685_vm2, %v8977_v3  ;;  %v11311_v3 = vshrl.u32 %v9336_v37, 16  ;;  %v7247_v55 = vpop.f32.mrf.mxu0 }
 0x139   : > { %7492 = vmatprep.mubr.msk.bf16.mxu1 %vm685_vm2, %v8990_v4  ;;  %v2023_v4 = vpop.f32.mrf.mxu1  ;;  %11588 = vst [vmem:[#allocation64_spill] sm:$0xff] %v9349_v56  ;;  %v9362_v32 = vadd.f32 %v7283_v48, %v7247_v55 }
 0x13a   : > { %7453 = vmatmul.mubr.msk.bf16.gmra.mxu0 %vm685_vm2, %v8998_v63  ;;  %v11312_v63 = vshll.u32 %v9336_v37, 16  ;;  %v3781_v29 = vrot.slane %v11311_v3, 5  ;;  %v883_v1 = vpop.f32.mrf.mxu0 }
 0x13b   : > { %7456 = vmatprep.mubr.msk.bf16.mxu0 %vm685_vm2, %v9008_v19  ;;  %v7327_v38 = vpop.f32.mrf.mxu1  ;;  %11589 = vst [vmem:[#allocation65_spill] sm:$0xff] %v9362_v32  ;;  %v3779_v19 = vor.u32 %v3778_v2, %v3777_v11  ;;  %v9371_v3 = vadd.f32 %v1184_v53, %v883_v1 }
 0x13c   : > { %v3782_v14 = vrot.slane %v11312_v63, 6  ;;  %v7290_v55 = vpop.f32.mrf.mxu0 }
 0x13d   : > { %v2026_v63 = vpop.f32.mrf.mxu1  ;;  %v3780_v48 = vrot.slane %v3779_v19, 4 }
 0x13e   : > { %v3783_v56 = vor.u32 %v3782_v14, %v3781_v29  ;;  %v1474_v14 = vpop.f32.mrf.mxu0 }
 0x13f   : > { %v1601_v45 = vadd.f32 %v1474_v14, %v9186_v8  ;;  %v7330_v2 = vpop.f32.mrf.mxu1  ;;  %v11592_v14 = vld [vmem:[#allocation10_spill] sm:$0xff] }
 0x140   : > { %7493 = vmatmul.mubr.msk.bf16.gmra.mxu1 %vm685_vm2, %v9037_v12  ;;  %v3788_v12 = vrot.slane %v3786_v39, 5  ;;  %v3785_v32 = vrot.slane %v3783_v56, 4  ;;  %v3784_v29 = vsel %vm8554_vm9, %v3780_v48, %v3783_v56  ;;  %v7291_v39 = vpop.f32.mrf.mxu0  ;;  %11623 = vst [vmem:[#allocation10_spill] sm:$0xff] %v9563_v47 }
 0x141   : > { %7496 = vmatprep.mubr.msk.bf16.mxu1 %vm685_vm2, %v9056_v61  ;;  %v1603_v61 = vadd.f32 %v7290_v55, %v9182_v24  ;;  %v1604_v19 = vadd.f32 %v7291_v39, %v9190_v33  ;;  %v9388_v24 = vadd.f32 %v2023_v4, %v1601_v45 }
 0x142   : > { %7457 = vmatmul.mubr.msk.bf16.gmra.mxu0 %vm685_vm2, %v9063_v17  ;;  %v3790_v11 = vor.u32 %v3789_v0, %v3788_v12  ;;  %v2039_v12 = vpop.f32.mrf.mxu1  ;;  %v1477_v56 = vpop.f32.mrf.mxu0 }
 0x143   : > { %7460 = vmatprep.mubr.msk.bf16.mxu0 %vm685_vm2, %v9071_v28  ;;  %v9379_v53 = vadd.f32 %v7326_v20, %v1603_v61  ;;  %v1602_v61 = vadd.f32 %v1477_v56, %v9200_v42  ;;  %v9395_v0 = vadd.f32 %v7327_v38, %v1604_v19  ;;  %v11591_v20 = vld [vmem:[#allocation4_spill] sm:$0xff] }
 0x144   : > { %v3791_v1 = vsel %vm8554_vm9, %v3785_v32, %v3790_v11  ;;  %v7331_v8 = vpop.f32.mrf.mxu1  ;;  %v7294_v32 = vpop.f32.mrf.mxu0  ;;  %v7839_v11 = vld [vmem:[%s11123_s1 + $0xb0] sm:$0xff]  }
 0x145   : > { %v9383_v28 = vcombine.low %v3784_v29, %v3791_v1  ;;  %v1607_v33 = vadd.f32 %v7294_v32, %v9210_v13  ;;  %v9400_v4 = vadd.f32 %v2026_v63, %v1602_v61  ;;  %v7838_v63 = vld [vmem:[%s11123_s1 + $0xa0] sm:$0xff]   ;;  %v11594_v1 = vld [vmem:[#allocation5_spill] sm:$0xff] }
 0x146   : > { %v1490_v55 = vpop.f32.mrf.mxu0  ;;  %v2042_v48 = vpop.f32.mrf.mxu1 }
 0x147   : > { %v9406_v42 = vadd.f32 %v7330_v2, %v1607_v33 }
 0x148   : > { %7497 = vmatmul.mubr.msk.bf16.gmra.mxu1 %vm685_vm2, %v9127_v50  ;;  %v7295_v38 = vpop.f32.mrf.mxu0  ;;  %v7334_v45 = vpop.f32.mrf.mxu1 }
 0x149   : > { %7540 = vmatprep.mubr.msk.bf16.mxu1 %vm685_vm2, %v11552_v40  ;;  %v1605_v40 = vadd.f32 %v1490_v55, %v9214_v44  ;;  %v1608_v29 = vadd.f32 %v7295_v38, %v9220_v25  ;;  %v11593_v44 = vld [vmem:[#allocation13_spill] sm:$0xff] }
 0x14a   : > { %7461 = vmatmul.mubr.msk.bf16.gmra.mxu0 %vm685_vm2, %v9122_v36  ;;  %v1493_v2 = vpop.f32.mrf.mxu0  ;;  %v9425_v25 = vld [vmem:[%s11123_s1 + $0xd8] sm:$0xff]  }
 0x14b   : > { %7504 = vmatprep.mubr.msk.bf16.mxu0 %vm685_vm2, %v11591_v20  ;;  %v9414_v13 = vadd.f32 %v2039_v12, %v1605_v40  ;;  %v1606_v39 = vadd.f32 %v1493_v2, %v9224_v10  ;;  %v9427_v19 = vadd.f32 %v7331_v8, %v1608_v29  ;;  %v2055_v12 = vpop.f32.mrf.mxu1  ;;  %v9436_v10 = vld [vmem:[%s11123_s1 + $0xc8] sm:$0xff]   ;;  %v11597_v29 = vld [vmem:[#allocation24_spill] sm:$0xff] }
 0x14c   : > { %v7298_v56 = vpop.f32.mrf.mxu0  ;;  %v11599_v2 = vld [vmem:[#allocation11_spill] sm:$0xff] }
 0x14d   : > { %v1611_v61 = vadd.f32 %v7298_v56, %v9229_v5  ;;  %v9438_v20 = vadd.f32 %v2042_v48, %v1606_v39  ;;  %v7335_v32 = vpop.f32.mrf.mxu1  ;;  %v11596_v5 = vld [vmem:[#allocation15_spill] sm:$0xff] }
 0x14e   : > { %v1506_v8 = vpop.f32.mrf.mxu0 }
 0x14f   : > { %v9442_v33 = vadd.f32 %v7334_v45, %v1611_v61  ;;  %v2058_v40 = vpop.f32.mrf.mxu1 }
 0x150   : > { %7541 = vmatmul.mubr.msk.bf16.vlgmr.msra.gmra.mxu1 %vm685_vm2, %v11592_v14  ;;  %v7299_v55 = vpop.f32.mrf.mxu0 }
 0x151   : > { %7609 = vmatpush3.bf16.msra.mxu1 %v9246_v16  ;;  %7544 = vmatprep.mubr.msk.bf16.mxu1 %vm685_vm2, %v11593_v44  ;;  %v11595_v16 = vld [vmem:[#allocation7_spill] sm:$0xff]  ;;  %v1612_v38 = vadd.f32 %v7299_v55, %v9251_v54 }
 0x152   : > { %7505 = vmatmul.mubr.msk.bf16.vlgmr.msra.gmra.mxu0 %vm685_vm2, %v11594_v1  ;;  %7610 = vmatprep.subr.bf16.mxu1 %v7839_v11  ;;  %v7338_v39 = vpop.f32.mrf.mxu1 }
 0x153   : > { %7573 = vmatpush3.bf16.msra.mxu0 %v9256_v31  ;;  %7508 = vmatprep.mubr.msk.bf16.mxu0 %vm685_vm2, %v11595_v16  ;;  %v1609_v31 = vadd.f32 %v1506_v8, %v9239_v9  ;;  %v1509_v9 = vpop.f32.mrf.mxu0  ;;  %v11600_v8 = vld [vmem:[#allocation26_spill] sm:$0xff]  ;;  %v11616_v16 = vld [vmem:[#allocation48_spill] sm:$0xff] }
 0x154   : > { %7574 = vmatprep.subr.bf16.mxu0 %v7838_v63  ;;  %v1610_v45 = vadd.f32 %v1509_v9, %v9258_v49  ;;  %v2071_v56 = vpop.f32.mrf.mxu1  ;;  %v11603_v9 = vld [vmem:[#allocation20_spill] sm:$0xff] }
 0x155   : > { %7611 = vmatpush3.bf16.msra.mxu1 %v7839_v11  ;;  %v9448_v48 = vadd.f32 %v2055_v12, %v1609_v31  ;;  %v11598_v11 = vld [vmem:[#allocation8_spill] sm:$0xff]  ;;  %v7302_v12 = vpop.f32.mrf.mxu0 }
 0x156   : > { %7680 = vmatprep.subr.bf16.mxu1 %v9425_v25  ;;  %v9459_v54 = vadd.f32 %v2058_v40, %v1610_v45  ;;  %v1615_v61 = vadd.f32 %v7302_v12, %v9263_v23  ;;  %v7339_v31 = vpop.f32.mrf.mxu1 }
 0x157   : > { %7575 = vmatpush3.bf16.msra.mxu0 %v7838_v63  ;;  %v9455_v63 = vadd.f32 %v7335_v32, %v1612_v38  ;;  %v1522_v55 = vpop.f32.mrf.mxu0  ;;  %v11602_v38 = vld [vmem:[#allocation12_spill] sm:$0xff] }
 0x158   : > { %7545 = vmatmul.mubr.msk.bf16.gmra.mxu1 %vm685_vm2, %v11596_v5  ;;  %7644 = vmatprep.subr.bf16.mxu0 %v9436_v10  ;;  %v1613_v49 = vadd.f32 %v1522_v55, %v9270_v15  ;;  %v9467_v32 = vadd.f32 %v7338_v39, %v1615_v61  ;;  %v2074_v23 = vpop.f32.mrf.mxu1  ;;  %v11604_v61 = vld [vmem:[#allocation35_spill] sm:$0xff] }
 0x159   : > { %7548 = vmatprep.mubr.msk.bf16.mxu1 %vm685_vm2, %v11597_v29  ;;  %v11601_v29 = vld [vmem:[#allocation33_spill] sm:$0xff]  ;;  %v7303_v40 = vpop.f32.mrf.mxu0  ;;  %v11605_v55 = vld [vmem:[#allocation43_spill] sm:$0xff] }
 0x15a   : > { %7509 = vmatmul.mubr.msk.bf16.gmra.mxu0 %vm685_vm2, %v11598_v11  ;;  %v1616_v45 = vadd.f32 %v7303_v40, %v9274_v34  ;;  %v9474_v12 = vadd.f32 %v2071_v56, %v1613_v49  ;;  %v11606_v11 = vld [vmem:[#allocation22_spill] sm:$0xff]  ;;  %v11607_v56 = vld [vmem:[#allocation29_spill] sm:$0xff] }
 0x15b   : > { %7512 = vmatprep.mubr.msk.bf16.mxu0 %vm685_vm2, %v11599_v2  ;;  %v1525_v2 = vpop.f32.mrf.mxu0 }
 0x15f   : > { %v7342_v15 = vpop.f32.mrf.mxu1 }
 0x160   : > { %7549 = vmatmul.mubr.msk.bf16.gmra.mxu1 %vm685_vm2, %v11600_v8  ;;  %v1614_v8 = vadd.f32 %v1525_v2, %v9276_v6 }
 0x161   : > { %7552 = vmatprep.mubr.msk.bf16.mxu1 %vm685_vm2, %v11601_v29  ;;  %v9477_v29 = vadd.f32 %v7339_v31, %v1616_v45 }
 0x162   : > { %7513 = vmatmul.mubr.msk.bf16.gmra.mxu0 %vm685_vm2, %v11602_v38  ;;  %v9479_v39 = vadd.f32 %v2074_v23, %v1614_v8  ;;  %v7306_v38 = vpop.f32.mrf.mxu0 }
 0x163   : > { %7516 = vmatprep.mubr.msk.bf16.mxu0 %vm685_vm2, %v11603_v9  ;;  %v2087_v9 = vpop.f32.mrf.mxu1  ;;  %v1619_v34 = vadd.f32 %v7306_v38, %v9282_v60 }
 0x164   : > { %v1538_v2 = vpop.f32.mrf.mxu0 }
 0x165   : > { %v7343_v6 = vpop.f32.mrf.mxu1  ;;  %v1617_v8 = vadd.f32 %v1538_v2, %v9288_v58  ;;  %v9491_v31 = vadd.f32 %v7342_v15, %v1619_v34  ;;  %v11610_v58 = vld [vmem:[#allocation31_spill] sm:$0xff] }
 0x166   : > { %v7307_v49 = vpop.f32.mrf.mxu0 }
 0x167   : > { %v2090_v40 = vpop.f32.mrf.mxu1  ;;  %v1620_v23 = vadd.f32 %v7307_v49, %v9290_v59  ;;  %v9494_v45 = vadd.f32 %v2087_v9, %v1617_v8  ;;  %v11611_v59 = vld [vmem:[#allocation39_spill] sm:$0xff]  ;;  %v11612_v8 = vshrl.u32 %v9333_v62, 16 }
 0x168   : > { %7553 = vmatmul.mubr.msk.bf16.gmra.mxu1 %vm685_vm2, %v11604_v61  ;;  %v11608_v61 = vld [vmem:[#allocation44_spill] sm:$0xff] }
 0x169   : > { %7556 = vmatprep.mubr.msk.bf16.mxu1 %vm685_vm2, %v11605_v55  ;;  %v1541_v55 = vpop.f32.mrf.mxu0  ;;  %v9499_v38 = vadd.f32 %v7343_v6, %v1620_v23  ;;  %v3316_v49 = vrot.slane %v11612_v8, 4  ;;  %v11614_v23 = vshll.u32 %v9336_v37, 16 }
 0x16a   : > { %7517 = vmatmul.mubr.msk.bf16.gmra.mxu0 %vm685_vm2, %v11606_v11  ;;  %v1618_v60 = vadd.f32 %v1541_v55, %v9292_v57  ;;  %v11613_v55 = vshll.u32 %v9333_v62, 16 }
 0x16b   : > { %7520 = vmatprep.mubr.msk.bf16.mxu0 %vm685_vm2, %v11607_v56  ;;  %v11609_v56 = vld [vmem:[#allocation47_spill] sm:$0xff] }
 0x16c   : > { %v9505_v34 = vadd.f32 %v2090_v40, %v1618_v60  ;;  %v3319_v6 = vrot.slane %v11613_v55, 5 }
 0x16d   : > { %v7346_v15 = vpop.f32.mrf.mxu1 }
 0x16e   : > { %v3320_v55 = vor.u32 %v3319_v6, %v3316_v49 }
 0x16f   : > { %v2103_v9 = vpop.f32.mrf.mxu1  ;;  %v7310_v2 = vpop.f32.mrf.mxu0 }
 0x170   : > { %7557 = vmatmul.mubr.msk.bf16.gmra.mxu1 %vm685_vm2, %v11608_v61  ;;  %v1623_v57 = vadd.f32 %v7310_v2, %v9300_v27 }
 0x171   : > { %7560 = vmatprep.mubr.msk.bf16.mxu1 %vm685_vm2, %v11609_v56  ;;  %v3325_v56 = vrot.slane %v11614_v23, 5  ;;  %v7347_v60 = vpop.f32.mrf.mxu1  ;;  %v1554_v61 = vpop.f32.mrf.mxu0 }
 0x172   : > { %7521 = vmatmul.mubr.msk.bf16.gmra.mxu0 %vm685_vm2, %v11610_v58  ;;  %v11615_v58 = vshrl.u32 %v9336_v37, 16  ;;  %v9519_v11 = vadd.f32 %v7346_v15, %v1623_v57  ;;  %v3321_v57 = vrot.slane %v3320_v55, 4 }
 0x173   : > { %7524 = vmatprep.mubr.msk.bf16.mxu0 %vm685_vm2, %v11611_v59  ;;  %v1621_v59 = vadd.f32 %v1554_v61, %v9304_v30  ;;  %v7311_v8 = vpop.f32.mrf.mxu0  ;;  %v2106_v27 = vpop.f32.mrf.mxu1 }
 0x174   : > { %v3329_v40 = vrot.slane %v11615_v58, 4  ;;  %v1624_v2 = vadd.f32 %v7311_v8, %v9306_v52  ;;  %v11617_v52 = vshll.u32 %v9341_v41, 16 }
 0x175   : > { %v9526_v5 = vadd.f32 %v2103_v9, %v1621_v59  ;;  %v1557_v30 = vpop.f32.mrf.mxu0 }
 0x176   : > { %v3330_v23 = vor.u32 %v3329_v40, %v3325_v56  ;;  %v1622_v61 = vadd.f32 %v1557_v30, %v9310_v26  ;;  %v9533_v58 = vadd.f32 %v7347_v60, %v1624_v2  ;;  %v3335_v49 = vrot.slane %v11617_v52, 5  ;;  %v11618_v40 = vld [vmem:[#allocation51_spill] sm:$0xff]  ;;  %v11620_v52 = vld [vmem:[#allocation41_spill] sm:$0xff] }
 0x177   : > { %v3326_v60 = vsel %vm7986_vm3, %v3321_v57, %v3325_v56 }
 0x178   : > { %7561 = vmatmul.mubr.msk.bf16.gmra.mxu1 %vm685_vm2, %v11616_v16  ;;  %v9537_v6 = vadd.f32 %v2106_v27, %v1622_v61 }
 0x179   : > { %7564 = vmatprep.mubr.msk.bf16.mxu1 %vm685_vm2, %v8587_v46  ;;  %v3331_v46 = vrot.slane %v3330_v23, 4 }
 0x17a   : > { %7525 = vmatmul.mubr.msk.bf16.gmra.mxu0 %vm685_vm2, %v11579_v43 }
 0x17b   : > { %7528 = vmatprep.mubr.msk.bf16.mxu0 %vm685_vm2, %v11581_v21  ;;  %v7350_v15 = vpop.f32.mrf.mxu1  ;;  %v3336_v2 = vsel %vm7986_vm3, %v3331_v46, %v3335_v49  ;;  %v11622_v46 = vld [vmem:[#allocation62_spill] sm:$0xff] }
 0x17c   : > { %v7314_v9 = vpop.f32.mrf.mxu0 }
 0x17d   : > { %v2119_v59 = vpop.f32.mrf.mxu1  ;;  %v1627_v26 = vadd.f32 %v7314_v9, %v9318_v51  ;;  %v11619_v51 = vld [vmem:[#allocation9_spill] sm:$0xff] }
 0x17e   : > { %v1570_v30 = vpop.f32.mrf.mxu0 }
 0x17f   : > { %v7351_v8 = vpop.f32.mrf.mxu1  ;;  %v1625_v27 = vadd.f32 %v1570_v30, %v9320_v7  ;;  %v9551_v55 = vadd.f32 %v7350_v15, %v1627_v26  ;;  %v11624_v30 = vld [vmem:[#allocation52_spill] sm:$0xff] }
 0x180   : > { %7565 = vmatmul.mubr.msk.bf16.gmra.mxu1 %vm685_vm2, %v11618_v40  ;;  %v7315_v23 = vpop.f32.mrf.mxu0  ;;  %v11637_v40 = vld [vmem:[#allocation61_spill] sm:$0xff] }
 0x181   : > { %7568 = vmatprep.mubr.msk.bf16.mxu1 %vm685_vm2, %v9204_v18  ;;  %v2122_v61 = vpop.f32.mrf.mxu1  ;;  %v1628_v9 = vadd.f32 %v7315_v23, %v11620_v52  ;;  %v9556_v18 = vcombine.low %v3326_v60, %v3336_v2  ;;  %v9558_v56 = vadd.f32 %v2119_v59, %v1625_v27  ;;  %v11625_v2 = vld [vmem:[#allocation63_spill] sm:$0xff]  ;;  %v11626_v23 = vld [vmem:[#allocation54_spill] sm:$0xff] }
 0x182   : > { %7529 = vmatmul.mubr.msk.bf16.gmra.mxu0 %vm685_vm2, %v11582_v22  ;;  %v1573_v57 = vpop.f32.mrf.mxu0 }
 0x183   : > { %7532 = vmatprep.mubr.msk.bf16.mxu0 %vm685_vm2, %v11619_v51  ;;  %11621 = vst [vmem:[#allocation4_spill] sm:$0xff] %v9556_v18  ;;  %v1626_v49 = vadd.f32 %v1573_v57, %v11622_v46  ;;  %v9565_v7 = vadd.f32 %v7351_v8, %v1628_v9  ;;  %v11627_v9 = vld [vmem:[#allocation64_spill] sm:$0xff]  ;;  %v11628_v51 = vld [vmem:[#allocation65_spill] sm:$0xff] }
 0x185   : > { %v9569_v26 = vadd.f32 %v2122_v61, %v1626_v49 }
 0x188   : > { %v7354_v15 = vpop.f32.mrf.mxu1  ;;  %7569 = vmatmul.mubr.msk.bf16.gmra.mxu1 %vm685_vm2, %v9556_v18 }
 0x189   : > { %7612 = vmatprep.mubr.msk.bf16.mxu1 %vm685_vm2, %v11624_v30  ;;  %v7844_v30 = vld [vmem:[%s11123_s1 + $0xd0] sm:$0xff]  }
 0x18a   : > { %v2135_v59 = vpop.f32.mrf.mxu1  ;;  %v7318_v60 = vpop.f32.mrf.mxu0  ;;  %7533 = vmatmul.mubr.msk.bf16.gmra.mxu0 %vm685_vm2, %v9563_v47 }
 0x18b   : > { %v1631_v27 = vadd.f32 %v7318_v60, %v11625_v2  ;;  %7576 = vmatprep.mubr.msk.bf16.mxu0 %vm685_vm2, %v11626_v23  ;;  %v11629_v2 = vld [vmem:[#allocation53_spill] sm:$0xff] }
 0x18c   : > { %v7355_v8 = vpop.f32.mrf.mxu1  ;;  %v1586_v52 = vpop.f32.mrf.mxu0 }
 0x18d   : > { %v1629_v57 = vadd.f32 %v1586_v52, %v11627_v9  ;;  %v9579_v46 = vadd.f32 %v7354_v15, %v1631_v27  ;;  %v7843_v15 = vld [vmem:[%s11123_s1 + $0xc0] sm:$0xff]   ;;  %v11630_v52 = vld [vmem:[#allocation56_spill] sm:$0xff] }
 0x18e   : > { %v2138_v61 = vpop.f32.mrf.mxu1  ;;  %v7319_v49 = vpop.f32.mrf.mxu0 }
 0x18f   : > { %v1632_v18 = vadd.f32 %v7319_v49, %v11628_v51  ;;  %v9585_v47 = vadd.f32 %v2135_v59, %v1629_v57  ;;  %v11631_v57 = vld [vmem:[#allocation55_spill] sm:$0xff]  ;;  %v9603_v49 = vld [vmem:[%s11123_s1 + $0xf8] sm:$0xff]  }
 0x190   : > { %v7398_v60 = vpop.f32.mrf.mxu1  ;;  %7613 = vmatmul.mubr.msk.bf16.vlgmr.msra.gmra.mxu1 %vm685_vm2, %v11629_v2  ;;  %v1589_v23 = vpop.f32.mrf.mxu0 }
 0x191   : > { %v1630_v27 = vadd.f32 %v1589_v23, %v9371_v3  ;;  %7681 = vmatpush3.bf16.msra.mxu1 %v9425_v25  ;;  %7616 = vmatprep.mubr.msk.bf16.mxu1 %vm685_vm2, %v11630_v52  ;;  %v9596_v9 = vadd.f32 %v7355_v8, %v1632_v18  ;;  %v11632_v25 = vld [vmem:[#allocation58_spill] sm:$0xff]  ;;  %v9614_v52 = vld [vmem:[%s11123_s1 + $0xe8] sm:$0xff]  }
 0x192   : > { %v2481_v51 = vpop.f32.mrf.mxu1  ;;  %v7362_v59 = vpop.f32.mrf.mxu0  ;;  %7577 = vmatmul.mubr.msk.bf16.vlgmr.msra.gmra.mxu0 %vm685_vm2, %v11631_v57  ;;  %7682 = vmatprep.subr.bf16.mxu1 %v7844_v30 }
 0x193   : > { %v2370_v3 = vadd.f32 %v7362_v59, %v9379_v53  ;;  %7645 = vmatpush3.bf16.msra.mxu0 %v9436_v10  ;;  %7580 = vmatprep.mubr.msk.bf16.mxu0 %vm685_vm2, %v11632_v25  ;;  %v9609_v18 = vadd.f32 %v2138_v61, %v1630_v27  ;;  %v11633_v25 = vld [vmem:[#allocation57_spill] sm:$0xff] }
 0x194   : > { %v7399_v8 = vpop.f32.mrf.mxu1  ;;  %v2241_v23 = vpop.f32.mrf.mxu0  ;;  %7646 = vmatprep.subr.bf16.mxu0 %v7843_v15 }
 0x195   : > { %v2368_v57 = vadd.f32 %v2241_v23, %v9388_v24  ;;  %7683 = vmatpush3.bf16.msra.mxu1 %v7844_v30  ;;  %v9617_v2 = vadd.f32 %v7398_v60, %v2370_v3  ;;  %v11634_v30 = vld [vmem:[#allocation60_spill] sm:$0xff] }
 0x196   : > { %v2484_v53 = vpop.f32.mrf.mxu1  ;;  %v7363_v10 = vpop.f32.mrf.mxu0  ;;  %7752 = vmatprep.subr.bf16.mxu1 %v9603_v49 }
 0x197   : > { %v2371_v61 = vadd.f32 %v7363_v10, %v9395_v0  ;;  %7647 = vmatpush3.bf16.msra.mxu0 %v7843_v15  ;;  %v9621_v27 = vadd.f32 %v2481_v51, %v2368_v57  ;;  %v11635_v0 = vld [vmem:[#allocation59_spill] sm:$0xff]  ;;  %v11636_v51 = vld [vmem:[#allocation14_spill] sm:$0xff] }
 0x198   : > { %v7402_v59 = vpop.f32.mrf.mxu1  ;;  %7617 = vmatmul.mubr.msk.bf16.gmra.mxu1 %vm685_vm2, %v11633_v25  ;;  %v2244_v22 = vpop.f32.mrf.mxu0  ;;  %7716 = vmatprep.subr.bf16.mxu0 %v9614_v52 }
 0x199   : > { %v2369_v24 = vadd.f32 %v2244_v22, %v9400_v4  ;;  %7620 = vmatprep.mubr.msk.bf16.mxu1 %vm685_vm2, %v11634_v30  ;;  %v9629_v60 = vadd.f32 %v7399_v8, %v2371_v61 }
 0x19a   : > { %v2497_v3 = vpop.f32.mrf.mxu1  ;;  %v7366_v23 = vpop.f32.mrf.mxu0  ;;  %7581 = vmatmul.mubr.msk.bf16.gmra.mxu0 %vm685_vm2, %v11635_v0 }
 0x19b   : > { %v2374_v15 = vadd.f32 %v7366_v23, %v9406_v42  ;;  %7584 = vmatprep.mubr.msk.bf16.mxu0 %vm685_vm2, %v11636_v51  ;;  %v9636_v57 = vadd.f32 %v2484_v53, %v2369_v24  ;;  %v11638_v24 = vld [vmem:[#allocation19_spill] sm:$0xff] }
 0x19c   : > { %v7403_v10 = vpop.f32.mrf.mxu1  ;;  %v2257_v25 = vpop.f32.mrf.mxu0 }
 0x19d   : > { %v2372_v22 = vadd.f32 %v2257_v25, %v9414_v13  ;;  %v9639_v4 = vadd.f32 %v7402_v59, %v2374_v15  ;;  %v11639_v59 = vld [vmem:[#allocation16_spill] sm:$0xff] }
 0x19e   : > { %v2500_v8 = vpop.f32.mrf.mxu1  ;;  %v7367_v61 = vpop.f32.mrf.mxu0 }
 0x19f   : > { %v2375_v30 = vadd.f32 %v7367_v61, %v9427_v19  ;;  %v9642_v21 = vadd.f32 %v2497_v3, %v2372_v22  ;;  %v11640_v3 = vld [vmem:[#allocation18_spill] sm:$0xff] }
 0x1a0   : > { %v7406_v0 = vpop.f32.mrf.mxu1  ;;  %7621 = vmatmul.mubr.msk.bf16.gmra.mxu1 %vm685_vm2, %v11637_v40  ;;  %v2260_v42 = vpop.f32.mrf.mxu0  ;;  %v11641_v40 = vld [vmem:[#allocation17_spill] sm:$0xff] }
 0x1a1   : > { %v2373_v53 = vadd.f32 %v2260_v42, %v9438_v20  ;;  %7624 = vmatprep.mubr.msk.bf16.mxu1 %vm685_vm2, %v11638_v24  ;;  %v9649_v23 = vadd.f32 %v7403_v10, %v2375_v30 }
 0x1a2   : > { %v2513_v13 = vpop.f32.mrf.mxu1  ;;  %v7370_v25 = vpop.f32.mrf.mxu0  ;;  %7585 = vmatmul.mubr.msk.bf16.gmra.mxu0 %vm685_vm2, %v11639_v59 }
 0x1a3   : > { %v2378_v19 = vadd.f32 %v7370_v25, %v9442_v33  ;;  %7588 = vmatprep.mubr.msk.bf16.mxu0 %vm685_vm2, %v11640_v3  ;;  %v9656_v15 = vadd.f32 %v2500_v8, %v2373_v53  ;;  %v11642_v53 = vld [vmem:[#allocation23_spill] sm:$0xff] }
 0x1a4   : > { %v7407_v22 = vpop.f32.mrf.mxu1  ;;  %v2273_v61 = vpop.f32.mrf.mxu0 }
 0x1a5   : > { %v2376_v20 = vadd.f32 %v2273_v61, %v9448_v48  ;;  %v9659_v42 = vadd.f32 %v7406_v0, %v2378_v19  ;;  %v11643_v19 = vld [vmem:[#allocation21_spill] sm:$0xff] }
 0x1a6   : > { %v2516_v30 = vpop.f32.mrf.mxu1  ;;  %v7371_v10 = vpop.f32.mrf.mxu0 }
 0x1a7   : > { %v2379_v24 = vadd.f32 %v7371_v10, %v9455_v63  ;;  %v9662_v51 = vadd.f32 %v2513_v13, %v2376_v20  ;;  %v11644_v13 = vld [vmem:[#allocation27_spill] sm:$0xff] }
 0x1a8   : > { %v7410_v59 = vpop.f32.mrf.mxu1  ;;  %7625 = vmatmul.mubr.msk.bf16.gmra.mxu1 %vm685_vm2, %v11641_v40  ;;  %v2276_v33 = vpop.f32.mrf.mxu0  ;;  %v11645_v40 = vld [vmem:[#allocation25_spill] sm:$0xff] }
 0x1a9   : > { %v2377_v8 = vadd.f32 %v2276_v33, %v9459_v54  ;;  %7628 = vmatprep.mubr.msk.bf16.mxu1 %vm685_vm2, %v11642_v53  ;;  %v9669_v25 = vadd.f32 %v7407_v22, %v2379_v24 }
 0x1aa   : > { %v2529_v48 = vpop.f32.mrf.mxu1  ;;  %v7374_v0 = vpop.f32.mrf.mxu0  ;;  %7589 = vmatmul.mubr.msk.bf16.gmra.mxu0 %vm685_vm2, %v11643_v19 }
 0x1ab   : > { %v2382_v63 = vadd.f32 %v7374_v0, %v9467_v32  ;;  %7592 = vmatprep.mubr.msk.bf16.mxu0 %vm685_vm2, %v11644_v13  ;;  %v9676_v61 = vadd.f32 %v2516_v30, %v2377_v8  ;;  %v11646_v8 = vld [vmem:[#allocation30_spill] sm:$0xff] }
 0x1ac   : > { %v7411_v20 = vpop.f32.mrf.mxu1  ;;  %v2289_v10 = vpop.f32.mrf.mxu0 }
 0x1ad   : > { %v2380_v54 = vadd.f32 %v2289_v10, %v9474_v12  ;;  %v9679_v33 = vadd.f32 %v7410_v59, %v2382_v63  ;;  %v11647_v63 = vld [vmem:[#allocation28_spill] sm:$0xff] }
 0x1ae   : > { %v2532_v24 = vpop.f32.mrf.mxu1  ;;  %v7375_v22 = vpop.f32.mrf.mxu0 }
 0x1af   : > { %v2383_v53 = vadd.f32 %v7375_v22, %v9477_v29  ;;  %v9682_v3 = vadd.f32 %v2529_v48, %v2380_v54  ;;  %v11648_v48 = vld [vmem:[#allocation34_spill] sm:$0xff] }
 0x1b0   : > { %v7414_v19 = vpop.f32.mrf.mxu1  ;;  %7629 = vmatmul.mubr.msk.bf16.gmra.mxu1 %vm685_vm2, %v11645_v40  ;;  %v2292_v32 = vpop.f32.mrf.mxu0 }
 0x1b1   : > { %v2381_v30 = vadd.f32 %v2292_v32, %v9479_v39  ;;  %7632 = vmatprep.mubr.msk.bf16.mxu1 %vm685_vm2, %v11646_v8  ;;  %v9689_v0 = vadd.f32 %v7411_v20, %v2383_v53 }
 0x1b2   : > { %v2545_v12 = vpop.f32.mrf.mxu1  ;;  %v7378_v59 = vpop.f32.mrf.mxu0  ;;  %7593 = vmatmul.mubr.msk.bf16.gmra.mxu0 %vm685_vm2, %v11647_v63 }
 0x1b3   : > { %v2386_v29 = vadd.f32 %v7378_v59, %v9491_v31  ;;  %7596 = vmatprep.mubr.msk.bf16.mxu0 %vm685_vm2, %v11648_v48  ;;  %v9696_v10 = vadd.f32 %v2532_v24, %v2381_v30  ;;  %v11650_v59 = vld [vmem:[#allocation32_spill] sm:$0xff]  ;;  %v3556_v30 = vrot.slane %v9336_v37, 5 }
 0x1b4   : > { %v7415_v54 = vpop.f32.mrf.mxu1  ;;  %v2305_v22 = vpop.f32.mrf.mxu0 }
 0x1b5   : > { %v2384_v39 = vadd.f32 %v2305_v22, %v9494_v45  ;;  %v9699_v32 = vadd.f32 %v7414_v19, %v2386_v29  ;;  %v11651_v22 = vld [vmem:[#allocation36_spill] sm:$0xff]  ;;  %v3558_v48 = vrot.slane %v3556_v30, 4 }
 0x1b6   : > { %v2548_v53 = vpop.f32.mrf.mxu1  ;;  %v7379_v20 = vpop.f32.mrf.mxu0 }
 0x1b7   : > { %v2387_v8 = vadd.f32 %v7379_v20, %v9499_v38  ;;  %v9702_v63 = vadd.f32 %v2545_v12, %v2384_v39  ;;  %v11653_v20 = vld [vmem:[#allocation38_spill] sm:$0xff]  ;;  %v9715_v12 = vld [vmem:[%s7912_s27 + $0xd8] sm:$0xf] }
 0x1b8   : > { %v7418_v31 = vpop.f32.mrf.mxu1  ;;  %7633 = vmatmul.mubr.msk.bf16.gmra.mxu1 %vm685_vm2, %v11650_v59  ;;  %v2308_v24 = vpop.f32.mrf.mxu0  ;;  %11654 = vst [vmem:[#allocation48_spill] sm:$0xff] %v9715_v12 }
 0x1b9   : > { %11649 = vst [vmem:[#allocation13_spill] sm:$0xff] %v9702_v63  ;;  %v2385_v45 = vadd.f32 %v2308_v24, %v9505_v34  ;;  %7636 = vmatprep.mubr.msk.bf16.mxu1 %vm685_vm2, %v11651_v22  ;;  %v9710_v19 = vadd.f32 %v7415_v54, %v2387_v8  ;;  %v9723_v34 = vld [vmem:[%s7912_s27 + $0xdc] sm:$0xf]  ;;  %v9726_v24 = vld [vmem:[%s7912_s27 + $0xe0] sm:$0x3]  ;;  %v6780_v22 = vrot.slane %v9333_v62, 9 }
 0x1ba   : > { %v2561_v29 = vpop.f32.mrf.mxu1  ;;  %v7382_v38 = vpop.f32.mrf.mxu0  ;;  %7597 = vmatmul.mubr.msk.bf16.gmra.mxu0 %vm685_vm2, %v11653_v20  ;;  %11656 = vst [vmem:[#allocation62_spill] sm:$0xff] %v9723_v34  ;;  %v11330_v40 = vshrl.u32 %v9723_v34, 16  ;;  %v11662_v63 = vld [vmem:[#allocation42_spill] sm:$0xff] }
 0x1bb   : > { %11652 = vst [vmem:[#allocation5_spill] sm:$0xff] %v9710_v19  ;;  %v2390_v39 = vadd.f32 %v7382_v38, %v9519_v11  ;;  %7600 = vmatprep.mubr.msk.bf16.mxu0 %vm685_vm2, %v9063_v17  ;;  %v9720_v37 = vadd.f32 %v2548_v53, %v2385_v45  ;;  %v11329_v11 = vshrl.u32 %v9715_v12, 16  ;;  %v11328_v38 = vshll.u32 %v9715_v12, 16 }
 0x1bc   : > { %v7419_v8 = vpop.f32.mrf.mxu1  ;;  %v2321_v54 = vpop.f32.mrf.mxu0  ;;  %v3559_v45 = vrot.slane %v9341_v41, 5  ;;  %v4694_v13 = vrot.slane %v11330_v40, 5 }
 0x1bd   : > { %11655 = vst [vmem:[#allocation41_spill] sm:$0xff] %v9720_v37  ;;  %v2388_v20 = vadd.f32 %v2321_v54, %v9526_v5  ;;  %v9730_v59 = vadd.f32 %v7418_v31, %v2390_v39  ;;  %v4690_v5 = vrot.slane %v11329_v11, 5  ;;  %v4691_v31 = vrot.slane %v11328_v38, 6  ;;  %v11659_v54 = vld [vmem:[#allocation37_spill] sm:$0xff] }
 0x1be   : > { %v2564_v17 = vpop.f32.mrf.mxu1  ;;  %v7383_v53 = vpop.f32.mrf.mxu0  ;;  %v11660_v37 = vshll.u32 %v9723_v34, 16  ;;  %v11661_v38 = vshll.u32 %v9726_v24, 16 }
 0x1bf   : > { %11657 = vst [vmem:[#allocation52_spill] sm:$0xff] %v9730_v59  ;;  %v2391_v62 = vadd.f32 %v7383_v53, %v9533_v58  ;;  %v9739_v19 = vadd.f32 %v2561_v29, %v2388_v20  ;;  %v4699_v58 = vshrl.u32 %v9726_v24, 16  ;;  %v4692_v53 = vor.u32 %v4691_v31, %v4690_v5 }
 0x1c0   : > { %v7422_v39 = vpop.f32.mrf.mxu1  ;;  %7637 = vmatmul.mubr.msk.bf16.gmra.mxu1 %vm685_vm2, %v11659_v54  ;;  %v2324_v41 = vpop.f32.mrf.mxu0  ;;  %v4695_v59 = vrot.slane %v11660_v37, 6  ;;  %v4702_v11 = vrot.slane %v11661_v38, 6  ;;  %v3557_v37 = vsel %vm8547_vm8, %v6780_v22, %v3556_v30 }
 0x1c1   : > { %11658 = vst [vmem:[#allocation63_spill] sm:$0xff] %v9739_v19  ;;  %v2389_v29 = vadd.f32 %v2324_v41, %v9537_v6  ;;  %7640 = vmatprep.mubr.msk.bf16.mxu1 %vm685_vm2, %v9127_v50  ;;  %v9755_v20 = vadd.f32 %v7419_v8, %v2391_v62  ;;  %v4701_v12 = vrot.slane %v4699_v58, 5  ;;  %v3560_v8 = vsel %vm8547_vm8, %v3558_v48, %v3559_v45 }
 0x1c2   : > { %v2577_v54 = vpop.f32.mrf.mxu1  ;;  %v7386_v19 = vpop.f32.mrf.mxu0  ;;  %7601 = vmatmul.mubr.msk.bf16.gmra.mxu0 %vm685_vm2, %v11662_v63  ;;  %v4696_v34 = vor.u32 %v4695_v59, %v4694_v13  ;;  %v4693_v38 = vrot.slane %v4692_v53, 4  ;;  %v9775_v22 = vcombine.low %v3557_v37, %v3560_v8  ;;  %v7848_v53 = vld [vmem:[%s11123_s1 + $0xf0] sm:$0xff]  }
 0x1c3   : > { %v2394_v6 = vadd.f32 %v7386_v19, %v9551_v55  ;;  %7604 = vmatprep.mubr.msk.bf16.mxu0 %vm685_vm2, %v9122_v36  ;;  %v9768_v62 = vadd.f32 %v2564_v17, %v2389_v29  ;;  %v4703_v50 = vor.u32 %v4702_v11, %v4701_v12 }
 0x1c4   : > { %v7423_v5 = vpop.f32.mrf.mxu1  ;;  %v2337_v31 = vpop.f32.mrf.mxu0  ;;  %v4698_v41 = vrot.slane %v4696_v34, 4  ;;  %v4697_v55 = vsel %vm8554_vm9, %v4693_v38, %v4696_v34  ;;  %v11664_v38 = vld [vmem:[#allocation15_spill] sm:$0xff] }
 0x1c5   : > { %v2392_v63 = vadd.f32 %v2337_v31, %v9558_v56  ;;  %v9771_v30 = vadd.f32 %v7422_v39, %v2394_v6 }
 0x1c6   : > { %v2580_v13 = vpop.f32.mrf.mxu1  ;;  %v7387_v59 = vpop.f32.mrf.mxu0  ;;  %v4704_v17 = vsel %vm8554_vm9, %v4698_v41, %v4703_v50  ;;  %v11665_v41 = vld [vmem:[#allocation7_spill] sm:$0xff] }
 0x1c7   : > { %v2395_v48 = vadd.f32 %v7387_v59, %v9565_v7  ;;  %v9780_v19 = vadd.f32 %v2577_v54, %v2392_v63  ;;  %v9782_v45 = vcombine.low %v4697_v55, %v4704_v17  ;;  %v11666_v55 = vld [vmem:[#allocation8_spill] sm:$0xff] }
 0x1c8   : > { %v7426_v12 = vpop.f32.mrf.mxu1  ;;  %7641 = vmatmul.mubr.msk.bf16.gmra.mxu1 %vm685_vm2, %v9383_v28  ;;  %v2340_v56 = vpop.f32.mrf.mxu0 }
 0x1c9   : > { %v2393_v34 = vadd.f32 %v2340_v56, %v9569_v26  ;;  %7684 = vmatprep.mubr.msk.bf16.mxu1 %vm685_vm2, %v11592_v14  ;;  %v9789_v11 = vadd.f32 %v7423_v5, %v2395_v48 }
 0x1ca   : > { %v2593_v35 = vpop.f32.mrf.mxu1  ;;  %v7390_v50 = vpop.f32.mrf.mxu0  ;;  %7605 = vmatmul.mubr.msk.bf16.gmra.mxu0 %vm685_vm2, %v9775_v22 }
 0x1cb   : > { %v2398_v7 = vadd.f32 %v7390_v50, %v9579_v46  ;;  %7648 = vmatprep.mubr.msk.bf16.mxu0 %vm685_vm2, %v11594_v1  ;;  %v9796_v63 = vadd.f32 %v2580_v13, %v2393_v34  ;;  %v11667_v34 = vld [vmem:[#allocation24_spill] sm:$0xff] }
 0x1cc   : > { %v7427_v39 = vpop.f32.mrf.mxu1  ;;  %v2353_v54 = vpop.f32.mrf.mxu0 }
 0x1cd   : > { %v2396_v26 = vadd.f32 %v2353_v54, %v9585_v47  ;;  %v9799_v58 = vadd.f32 %v7426_v12, %v2398_v7  ;;  %v7847_v47 = vld [vmem:[%s11123_s1 + $0xe0] sm:$0xff]  }
 0x1ce   : > { %v2596_v14 = vpop.f32.mrf.mxu1  ;;  %v7391_v29 = vpop.f32.mrf.mxu0  ;;  %v11668_v7 = vld [vmem:[#allocation26_spill] sm:$0xff] }
 0x1cf   : > { %v2399_v37 = vadd.f32 %v7391_v29, %v9596_v9  ;;  %v9805_v46 = vadd.f32 %v2593_v35, %v2396_v26  ;;  %v11669_v26 = vld [vmem:[#allocation11_spill] sm:$0xff] }
 0x1d0   : > { %v7470_v6 = vpop.f32.mrf.mxu1  ;;  %7685 = vmatmul.mubr.msk.bf16.vlgmr.msra.gmra.mxu1 %vm685_vm2, %v11593_v44  ;;  %v2356_v1 = vpop.f32.mrf.mxu0 }
 0x1d1   : > { %v2397_v8 = vadd.f32 %v2356_v1, %v9609_v18  ;;  %7753 = vmatpush3.bf16.msra.mxu1 %v9603_v49  ;;  %7688 = vmatprep.mubr.msk.bf16.mxu1 %vm685_vm2, %v11664_v38  ;;  %v9816_v5 = vadd.f32 %v7427_v39, %v2399_v37 }
 0x1d2   : > { %v2936_v9 = vpop.f32.mrf.mxu1  ;;  %v7434_v31 = vpop.f32.mrf.mxu0  ;;  %7649 = vmatmul.mubr.msk.bf16.vlgmr.msra.gmra.mxu0 %vm685_vm2, %v11665_v41  ;;  %7754 = vmatprep.subr.bf16.mxu1 %v7848_v53 }
 0x1d3   : > { %v2834_v44 = vadd.f32 %v7434_v31, %v9617_v2  ;;  %7717 = vmatpush3.bf16.msra.mxu0 %v9614_v52  ;;  %7652 = vmatprep.mubr.msk.bf16.mxu0 %vm685_vm2, %v11666_v55  ;;  %v9824_v18 = vadd.f32 %v2596_v14, %v2397_v8  ;;  %v11670_v14 = vld [vmem:[#allocation12_spill] sm:$0xff]  ;;  %v11671_v31 = vld [vmem:[#allocation33_spill] sm:$0xff] }
 0x1d4   : > { %v7471_v49 = vpop.f32.mrf.mxu1  ;;  %v2705_v13 = vpop.f32.mrf.mxu0  ;;  %7718 = vmatprep.subr.bf16.mxu0 %v7847_v47 }
 0x1d5   : > { %v2832_v59 = vadd.f32 %v2705_v13, %v9621_v27  ;;  %7755 = vmatpush3.bf16.msra.mxu1 %v7848_v53  ;;  %v9827_v17 = vadd.f32 %v7470_v6, %v2834_v44  ;;  %v11672_v44 = vld [vmem:[#allocation35_spill] sm:$0xff]  ;;  %v11673_v13 = vld [vmem:[#allocation20_spill] sm:$0xff] }
 0x1d6   : > { %v2939_v48 = vpop.f32.mrf.mxu1  ;;  %v7435_v12 = vpop.f32.mrf.mxu0 }
 0x1d7   : > { %v2835_v56 = vadd.f32 %v7435_v12, %v9629_v60  ;;  %7719 = vmatpush3.bf16.msra.mxu0 %v7847_v47  ;;  %v9830_v2 = vadd.f32 %v2936_v9, %v2832_v59  ;;  %v11674_v59 = vld [vmem:[#allocation22_spill] sm:$0xff] }
 0x1d8   : > { %v7474_v52 = vpop.f32.mrf.mxu1  ;;  %7689 = vmatmul.mubr.msk.bf16.gmra.mxu1 %vm685_vm2, %v11667_v34  ;;  %v2708_v35 = vpop.f32.mrf.mxu0 }
 0x1d9   : > { %v2833_v50 = vadd.f32 %v2708_v35, %v9636_v57  ;;  %7692 = vmatprep.mubr.msk.bf16.mxu1 %vm685_vm2, %v11668_v7  ;;  %v9837_v27 = vadd.f32 %v7471_v49, %v2835_v56 }
 0x1da   : > { %v2952_v39 = vpop.f32.mrf.mxu1  ;;  %v7438_v54 = vpop.f32.mrf.mxu0  ;;  %7653 = vmatmul.mubr.msk.bf16.gmra.mxu0 %vm685_vm2, %v11669_v26 }
 0x1db   : > { %v2838_v60 = vadd.f32 %v7438_v54, %v9639_v4  ;;  %7656 = vmatprep.mubr.msk.bf16.mxu0 %vm685_vm2, %v11670_v14  ;;  %v9844_v29 = vadd.f32 %v2939_v48, %v2833_v50  ;;  %v11675_v54 = vld [vmem:[#allocation43_spill] sm:$0xff] }
 0x1dc   : > { %v7475_v53 = vpop.f32.mrf.mxu1  ;;  %v2721_v37 = vpop.f32.mrf.mxu0 }
 0x1dd   : > { %v2836_v57 = vadd.f32 %v2721_v37, %v9642_v21  ;;  %v9847_v6 = vadd.f32 %v7474_v52, %v2838_v60  ;;  %v11676_v60 = vld [vmem:[#allocation44_spill] sm:$0xff]  ;;  %v11677_v37 = vld [vmem:[#allocation29_spill] sm:$0xff] }
 0x1de   : > { %v2955_v1 = vpop.f32.mrf.mxu1  ;;  %v7439_v47 = vpop.f32.mrf.mxu0 }
 0x1df   : > { %v2839_v8 = vadd.f32 %v7439_v47, %v9649_v23  ;;  %v9850_v38 = vadd.f32 %v2952_v39, %v2836_v57  ;;  %v11678_v57 = vld [vmem:[#allocation31_spill] sm:$0xff] }
 0x1e0   : > { %v7478_v9 = vpop.f32.mrf.mxu1  ;;  %7693 = vmatmul.mubr.msk.bf16.gmra.mxu1 %vm685_vm2, %v11671_v31  ;;  %v2724_v4 = vpop.f32.mrf.mxu0 }
 0x1e1   : > { %v2837_v41 = vadd.f32 %v2724_v4, %v9656_v15  ;;  %7696 = vmatprep.mubr.msk.bf16.mxu1 %vm685_vm2, %v11672_v44  ;;  %v9857_v55 = vadd.f32 %v7475_v53, %v2839_v8 }
 0x1e2   : > { %v2968_v21 = vpop.f32.mrf.mxu1  ;;  %v7442_v49 = vpop.f32.mrf.mxu0  ;;  %7657 = vmatmul.mubr.msk.bf16.gmra.mxu0 %vm685_vm2, %v11673_v13 }
 0x1e3   : > { %v2842_v23 = vadd.f32 %v7442_v49, %v9659_v42  ;;  %7660 = vmatprep.mubr.msk.bf16.mxu0 %vm685_vm2, %v11674_v59  ;;  %v9864_v48 = vadd.f32 %v2955_v1, %v2837_v41  ;;  %v11679_v49 = vld [vmem:[#allocation47_spill] sm:$0xff] }
 0x1e4   : > { %v7479_v12 = vpop.f32.mrf.mxu1  ;;  %v2737_v56 = vpop.f32.mrf.mxu0 }
 0x1e5   : > { %v2840_v15 = vadd.f32 %v2737_v56, %v9662_v51  ;;  %v9867_v52 = vadd.f32 %v7478_v9, %v2842_v23 }
 0x1e6   : > { %v2971_v34 = vpop.f32.mrf.mxu1  ;;  %v7443_v35 = vpop.f32.mrf.mxu0 }
 0x1e7   : > { %v2843_v50 = vadd.f32 %v7443_v35, %v9669_v25  ;;  %v9870_v7 = vadd.f32 %v2968_v21, %v2840_v15 }
 0x1e8   : > { %v7482_v39 = vpop.f32.mrf.mxu1  ;;  %7697 = vmatmul.mubr.msk.bf16.gmra.mxu1 %vm685_vm2, %v11675_v54  ;;  %v2740_v42 = vpop.f32.mrf.mxu0  ;;  %v11684_v54 = vld [vmem:[#allocation13_spill] sm:$0xff] }
 0x1e9   : > { %v2841_v26 = vadd.f32 %v2740_v42, %v9676_v61  ;;  %7700 = vmatprep.mubr.msk.bf16.mxu1 %vm685_vm2, %v11676_v60  ;;  %v9877_v14 = vadd.f32 %v7479_v12, %v2843_v50  ;;  %v11680_v12 = vld [vmem:[#allocation39_spill] sm:$0xff] }
 0x1ea   : > { %v2984_v51 = vpop.f32.mrf.mxu1  ;;  %v7446_v53 = vpop.f32.mrf.mxu0  ;;  %7661 = vmatmul.mubr.msk.bf16.gmra.mxu0 %vm685_vm2, %v11677_v37 }
 0x1eb   : > { %v2846_v25 = vadd.f32 %v7446_v53, %v9679_v33  ;;  %7664 = vmatprep.mubr.msk.bf16.mxu0 %vm685_vm2, %v11678_v57  ;;  %v9884_v1 = vadd.f32 %v2971_v34, %v2841_v26  ;;  %v11685_v26 = vld [vmem:[#allocation62_spill] sm:$0xff]  ;;  %v11688_v57 = vld [vmem:[#allocation5_spill] sm:$0xff] }
 0x1ec   : > { %v7483_v47 = vpop.f32.mrf.mxu1  ;;  %v2753_v8 = vpop.f32.mrf.mxu0  ;;  %v11686_v60 = vshll.u32 %v11685_v26, 16 }
 0x1ed   : > { %v2844_v61 = vadd.f32 %v2753_v8, %v9682_v3  ;;  %v9887_v9 = vadd.f32 %v7482_v39, %v2846_v25 }
 0x1ee   : > { %v2987_v31 = vpop.f32.mrf.mxu1  ;;  %v7447_v4 = vpop.f32.mrf.mxu0 }
 0x1ef   : > { %v2847_v41 = vadd.f32 %v7447_v4, %v9689_v0  ;;  %v9890_v44 = vadd.f32 %v2984_v51, %v2844_v61  ;;  %v4238_v51 = vrot.slane %v11686_v60, 5  ;;  %v11695_v60 = vld [vmem:[#allocation63_spill] sm:$0xff] }
 0x1f0   : > { %v7486_v21 = vpop.f32.mrf.mxu1  ;;  %7701 = vmatmul.mubr.msk.bf16.gmra.mxu1 %vm685_vm2, %v11679_v49  ;;  %v2756_v33 = vpop.f32.mrf.mxu0  ;;  %v11690_v49 = vld [vmem:[#allocation41_spill] sm:$0xff] }
 0x1f1   : > { %v2845_v13 = vadd.f32 %v2756_v33, %v9696_v10  ;;  %7704 = vmatprep.mubr.msk.bf16.mxu1 %vm685_vm2, %v11616_v16  ;;  %v9897_v23 = vadd.f32 %v7483_v47, %v2847_v41  ;;  %v11681_v10 = vld [vmem:[#allocation48_spill] sm:$0xff] }
 0x1f2   : > { %v3000_v3 = vpop.f32.mrf.mxu1  ;;  %v7450_v59 = vpop.f32.mrf.mxu0  ;;  %7665 = vmatmul.mubr.msk.bf16.gmra.mxu0 %vm685_vm2, %v11680_v12  ;;  %v11682_v35 = vshrl.u32 %v11681_v10, 16  ;;  %v11683_v16 = vshll.u32 %v11681_v10, 16 }
 0x1f3   : > { %v2850_v0 = vadd.f32 %v7450_v59, %v9699_v32  ;;  %7668 = vmatprep.mubr.msk.bf16.mxu0 %vm685_vm2, %v11579_v43  ;;  %v9904_v56 = vadd.f32 %v2987_v31, %v2845_v13  ;;  %v11687_v32 = vshrl.u32 %v11685_v26, 16  ;;  %v11689_v31 = vld [vmem:[#allocation50_spill] sm:$0xff]  ;;  %v11691_v13 = vld [vmem:[#allocation51_spill] sm:$0xff] }
 0x1f4   : > { %v7487_v15 = vpop.f32.mrf.mxu1  ;;  %v2769_v34 = vpop.f32.mrf.mxu0  ;;  %v4229_v50 = vrot.slane %v11682_v35, 4  ;;  %v4232_v39 = vrot.slane %v11683_v16, 5  ;;  %v11694_v16 = vld [vmem:[#allocation46_spill] sm:$0xff] }
 0x1f5   : > { %v2848_v42 = vadd.f32 %v2769_v34, %v11684_v54  ;;  %v4242_v53 = vrot.slane %v11687_v32, 4  ;;  %v9915_v37 = vadd.f32 %v7486_v21, %v2850_v0  ;;  %v11692_v34 = vld [vmem:[#allocation45_spill] sm:$0xff] }
 0x1f6   : > { %v3003_v43 = vpop.f32.mrf.mxu1  ;;  %v7451_v25 = vpop.f32.mrf.mxu0  ;;  %v4233_v41 = vor.u32 %v4232_v39, %v4229_v50 }
 0x1f7   : > { %v2851_v47 = vadd.f32 %v7451_v25, %v11688_v57  ;;  %v9918_v8 = vadd.f32 %v3000_v3, %v2848_v42  ;;  %v4243_v59 = vor.u32 %v4242_v53, %v4238_v51  ;;  %v11693_v3 = vld [vmem:[#allocation52_spill] sm:$0xff] }
 0x1f8   : > { %v7490_v61 = vpop.f32.mrf.mxu1  ;;  %7705 = vmatmul.mubr.msk.bf16.gmra.mxu1 %vm685_vm2, %v11689_v31  ;;  %v2772_v4 = vpop.f32.mrf.mxu0  ;;  %v4234_v42 = vrot.slane %v4233_v41, 4 }
 0x1f9   : > { %v2849_v33 = vadd.f32 %v2772_v4, %v11690_v49  ;;  %7708 = vmatprep.mubr.msk.bf16.mxu1 %vm685_vm2, %v11691_v13  ;;  %v9925_v21 = vadd.f32 %v7487_v15, %v2851_v47  ;;  %v4244_v53 = vrot.slane %v4243_v59, 4  ;;  %v11696_v15 = vshll.u32 %v9726_v24, 16 }
 0x1fa   : > { %v3016_v12 = vpop.f32.mrf.mxu1  ;;  %v7454_v0 = vpop.f32.mrf.mxu0  ;;  %7669 = vmatmul.mubr.msk.bf16.gmra.mxu0 %vm685_vm2, %v11692_v34 }
 0x1fb   : > { %v2854_v35 = vadd.f32 %v7454_v0, %v11693_v3  ;;  %7672 = vmatprep.mubr.msk.bf16.mxu0 %vm685_vm2, %v11694_v16  ;;  %v9932_v54 = vadd.f32 %v3003_v43, %v2849_v33  ;;  %v4248_v25 = vrot.slane %v11696_v15, 5  ;;  %v11697_v43 = vld [vmem:[#allocation2_spill] sm:$0xff]  ;;  %v11698_v0 = vld [vmem:[#allocation4_spill] sm:$0xff] }
 0x1fc   : > { %v7491_v50 = vpop.f32.mrf.mxu1  ;;  %v2785_v39 = vpop.f32.mrf.mxu0 }
 0x1fd   : > { %v2852_v32 = vadd.f32 %v2785_v39, %v11695_v60  ;;  %v9937_v57 = vadd.f32 %v7490_v61, %v2854_v35  ;;  %v4239_v61 = vsel %vm7986_vm3, %v4234_v42, %v4238_v51  ;;  %v4249_v34 = vsel %vm7986_vm3, %v4244_v53, %v4248_v25  ;;  %v11700_v35 = vld [vmem:[#allocation9_spill] sm:$0xff]  ;;  %v11701_v39 = vld [vmem:[#allocation10_spill] sm:$0xff] }
 0x1fe   : > { %v3019_v47 = vpop.f32.mrf.mxu1  ;;  %v7455_v31 = vpop.f32.mrf.mxu0  ;;  %v6854_v51 = vcombine.low %v4239_v61, %v4249_v34  ;;  %v6831_v25 = vcombine.low %v11681_v10, %v11685_v26  ;;  %vm6344_vm3 = vcmask 1046534  }
 0x1ff   : > { %v2855_v4 = vadd.f32 %v7455_v31, %v9755_v20  ;;  %v9940_v49 = vadd.f32 %v3016_v12, %v2852_v32 }
 0x200   : > { %v7494_v13 = vpop.f32.mrf.mxu1  ;;  %7709 = vmatmul.mubr.msk.bf16.gmra.mxu1 %vm685_vm2, %v11697_v43  ;;  %v2788_v33 = vpop.f32.mrf.mxu0 }
 0x201   : > { %v2853_v41 = vadd.f32 %v2788_v33, %v9768_v62  ;;  %7712 = vmatprep.mubr.msk.bf16.mxu1 %vm685_vm2, %v11698_v0  ;;  %v9951_v3 = vadd.f32 %v7491_v50, %v2855_v4  ;;  %v11702_v33 = vld [vmem:[#allocation53_spill] sm:$0xff] }
 0x202   : > { %v3032_v20 = vpop.f32.mrf.mxu1  ;;  %v7458_v12 = vpop.f32.mrf.mxu0  ;;  %7673 = vmatmul.mubr.msk.bf16.gmra.mxu0 %vm685_vm2, %v11700_v35 }
 0x203   : > { %v2858_v16 = vadd.f32 %v7458_v12, %v9771_v30  ;;  %7676 = vmatprep.mubr.msk.bf16.mxu0 %vm685_vm2, %v11701_v39  ;;  %v9958_v62 = vadd.f32 %v3019_v47, %v2853_v41 }
 0x204   : > { %v7495_v60 = vpop.f32.mrf.mxu1  ;;  %v2801_v32 = vpop.f32.mrf.mxu0 }
 0x205   : > { %v2856_v42 = vadd.f32 %v2801_v32, %v9780_v19  ;;  %v9961_v53 = vadd.f32 %v7494_v13, %v2858_v16  ;;  %v11704_v32 = vld [vmem:[#allocation56_spill] sm:$0xff] }
 0x206   : > { %v3035_v50 = vpop.f32.mrf.mxu1  ;;  %v7459_v15 = vpop.f32.mrf.mxu0 }
 0x207   : > { %v2859_v31 = vadd.f32 %v7459_v15, %v9789_v11  ;;  %v9966_v30 = vadd.f32 %v3032_v20, %v2856_v42  ;;  %v11703_v11 = vld [vmem:[#allocation55_spill] sm:$0xff]  ;;  %v11705_v42 = vld [vmem:[#allocation57_spill] sm:$0xff] }
 0x208   : > { %v7498_v4 = vpop.f32.mrf.mxu1  ;;  %7713 = vmatmul.mubr.msk.bf16.gmra.mxu1 %vm685_vm2, %v6854_v51  ;;  %v2804_v47 = vpop.f32.mrf.mxu0 }
 0x209   : > { %v2857_v43 = vadd.f32 %v2804_v47, %v9796_v63  ;;  %7756 = vmatprep.mubr.msk.bf16.mxu1 %vm685_vm2, %v11702_v33  ;;  %v9972_v19 = vadd.f32 %v7495_v60, %v2859_v31  ;;  %v11707_v31 = vld [vmem:[#allocation59_spill] sm:$0xff] }
 0x20a   : > { %v3048_v13 = vpop.f32.mrf.mxu1  ;;  %v7462_v41 = vpop.f32.mrf.mxu0  ;;  %7677 = vmatmul.mubr.msk.bf16.gmra.mxu0 %vm685_vm2, %v6831_v25  ;;  %v11706_v25 = vld [vmem:[#allocation58_spill] sm:$0xff] }
 0x20b   : > { %v2862_v0 = vadd.f32 %v7462_v41, %v9799_v58  ;;  %7720 = vmatprep.mubr.msk.bf16.mxu0 %vm685_vm2, %v11703_v11  ;;  %v9978_v59 = vadd.f32 %v3035_v50, %v2857_v43 }
 0x20c   : > { %v7499_v61 = vpop.f32.mrf.mxu1  ;;  %v2817_v34 = vpop.f32.mrf.mxu0 }
 0x20d   : > { %v2860_v63 = vadd.f32 %v2817_v34, %v9805_v46  ;;  %v9981_v20 = vadd.f32 %v7498_v4, %v2862_v0  ;;  %v11708_v34 = vld [vmem:[#allocation60_spill] sm:$0xff] }
 0x20e   : > { %v3051_v12 = vpop.f32.mrf.mxu1  ;;  %v7463_v35 = vpop.f32.mrf.mxu0 }
 0x20f   : > { %v2863_v16 = vadd.f32 %v7463_v35, %v9816_v5  ;;  %v9984_v39 = vadd.f32 %v3048_v13, %v2860_v63 }
 0x210   : > { %v7542_v60 = vpop.f32.mrf.mxu1  ;;  %7757 = vmatmul.mubr.msk.bf16.vlgmr.msra.gmra.mxu1 %vm685_vm2, %v11704_v32  ;;  %v2820_v58 = vpop.f32.mrf.mxu0  ;;  %v11711_v32 = vld [vmem:[#allocation16_spill] sm:$0xff] }
 0x211   : > { %v2861_v51 = vadd.f32 %v2820_v58, %v9824_v18  ;;  %7760 = vmatprep.mubr.msk.bf16.mxu1 %vm685_vm2, %v11705_v42  ;;  %v9991_v50 = vadd.f32 %v7499_v61, %v2863_v16 }
 0x212   : > { %v3394_v46 = vpop.f32.mrf.mxu1  ;;  %v7506_v15 = vpop.f32.mrf.mxu0  ;;  %7721 = vmatmul.mubr.msk.bf16.vlgmr.msra.gmra.mxu0 %vm685_vm2, %v11706_v25 }
 0x213   : > { %v3283_v5 = vadd.f32 %v7506_v15, %v9827_v17  ;;  %7724 = vmatprep.mubr.msk.bf16.mxu0 %vm685_vm2, %v11707_v31  ;;  %v9998_v4 = vadd.f32 %v3051_v12, %v2861_v51  ;;  %v11709_v12 = vld [vmem:[#allocation61_spill] sm:$0xff] }
 0x214   : > { %v7543_v47 = vpop.f32.mrf.mxu1  ;;  %v3154_v43 = vpop.f32.mrf.mxu0 }
 0x215   : > { %v3281_v18 = vadd.f32 %v3154_v43, %v9830_v2  ;;  %v10001_v33 = vadd.f32 %v7542_v60, %v3283_v5  ;;  %v11710_v60 = vld [vmem:[#allocation14_spill] sm:$0xff]  ;;  %v11712_v43 = vld [vmem:[#allocation19_spill] sm:$0xff] }
 0x216   : > { %v3397_v13 = vpop.f32.mrf.mxu1  ;;  %v7507_v41 = vpop.f32.mrf.mxu0 }
 0x217   : > { %v3284_v0 = vadd.f32 %v7507_v41, %v9837_v27  ;;  %v10004_v11 = vadd.f32 %v3394_v46, %v3281_v18 }
 0x218   : > { %v7546_v61 = vpop.f32.mrf.mxu1  ;;  %7761 = vmatmul.mubr.msk.bf16.gmra.mxu1 %vm685_vm2, %v11708_v34  ;;  %v3157_v17 = vpop.f32.mrf.mxu0  ;;  %v11715_v34 = vld [vmem:[#allocation21_spill] sm:$0xff] }
 0x219   : > { %v3282_v63 = vadd.f32 %v3157_v17, %v9844_v29  ;;  %7764 = vmatprep.mubr.msk.bf16.mxu1 %vm685_vm2, %v11709_v12  ;;  %v10011_v35 = vadd.f32 %v7543_v47, %v3284_v0 }
 0x21a   : > { %v3410_v2 = vpop.f32.mrf.mxu1  ;;  %v7510_v16 = vpop.f32.mrf.mxu0  ;;  %7725 = vmatmul.mubr.msk.bf16.gmra.mxu0 %vm685_vm2, %v11710_v60 }
 0x21b   : > { %v3287_v27 = vadd.f32 %v7510_v16, %v9847_v6  ;;  %7728 = vmatprep.mubr.msk.bf16.mxu0 %vm685_vm2, %v11711_v32  ;;  %v10018_v58 = vadd.f32 %v3397_v13, %v3282_v63  ;;  %v11713_v13 = vld [vmem:[#allocation17_spill] sm:$0xff] }
 0x21c   : > { %v7547_v51 = vpop.f32.mrf.mxu1  ;;  %v3170_v42 = vpop.f32.mrf.mxu0 }
 0x21d   : > { %v3285_v29 = vadd.f32 %v3170_v42, %v9850_v38  ;;  %v10021_v46 = vadd.f32 %v7546_v61, %v3287_v27  ;;  %v11714_v61 = vld [vmem:[#allocation18_spill] sm:$0xff]  ;;  %v11716_v42 = vld [vmem:[#allocation23_spill] sm:$0xff] }
 0x21e   : > { %v3413_v15 = vpop.f32.mrf.mxu1  ;;  %v7511_v25 = vpop.f32.mrf.mxu0 }
 0x21f   : > { %v3288_v5 = vadd.f32 %v7511_v25, %v9857_v55  ;;  %v10024_v31 = vadd.f32 %v3410_v2, %v3285_v29 }
 0x220   : > { %v7550_v47 = vpop.f32.mrf.mxu1  ;;  %7765 = vmatmul.mubr.msk.bf16.gmra.mxu1 %vm685_vm2, %v11712_v43  ;;  %v3173_v6 = vpop.f32.mrf.mxu0  ;;  %v11719_v43 = vld [vmem:[#allocation28_spill] sm:$0xff] }
 0x221   : > { %v3286_v18 = vadd.f32 %v3173_v6, %v9864_v48  ;;  %7768 = vmatprep.mubr.msk.bf16.mxu1 %vm685_vm2, %v11713_v13  ;;  %v10031_v41 = vadd.f32 %v7547_v51, %v3288_v5 }
 0x222   : > { %v3426_v38 = vpop.f32.mrf.mxu1  ;;  %v7514_v0 = vpop.f32.mrf.mxu0  ;;  %7729 = vmatmul.mubr.msk.bf16.gmra.mxu0 %vm685_vm2, %v11714_v61 }
 0x223   : > { %v3291_v55 = vadd.f32 %v7514_v0, %v9867_v52  ;;  %7732 = vmatprep.mubr.msk.bf16.mxu0 %vm685_vm2, %v11715_v34  ;;  %v10038_v17 = vadd.f32 %v3413_v15, %v3286_v18  ;;  %v11717_v15 = vld [vmem:[#allocation25_spill] sm:$0xff] }
 0x224   : > { %v7551_v63 = vpop.f32.mrf.mxu1  ;;  %v3186_v12 = vpop.f32.mrf.mxu0 }
 0x225   : > { %v3289_v48 = vadd.f32 %v3186_v12, %v9870_v7  ;;  %v10041_v2 = vadd.f32 %v7550_v47, %v3291_v55  ;;  %v11718_v47 = vld [vmem:[#allocation27_spill] sm:$0xff]  ;;  %v11720_v12 = vld [vmem:[#allocation30_spill] sm:$0xff] }
 0x226   : > { %v3429_v16 = vpop.f32.mrf.mxu1  ;;  %v7515_v60 = vpop.f32.mrf.mxu0 }
 0x227   : > { %v3292_v27 = vadd.f32 %v7515_v60, %v9877_v14  ;;  %v10044_v32 = vadd.f32 %v3426_v38, %v3289_v48 }
 0x228   : > { %v7554_v51 = vpop.f32.mrf.mxu1  ;;  %7769 = vmatmul.mubr.msk.bf16.gmra.mxu1 %vm685_vm2, %v11716_v42  ;;  %v3189_v52 = vpop.f32.mrf.mxu0  ;;  %v11723_v42 = vld [vmem:[#allocation38_spill] sm:$0xff] }
 0x229   : > { %v3290_v29 = vadd.f32 %v3189_v52, %v9884_v1  ;;  %7772 = vmatprep.mubr.msk.bf16.mxu1 %vm685_vm2, %v11717_v15  ;;  %v10051_v25 = vadd.f32 %v7551_v63, %v3292_v27 }
 0x22a   : > { %v3442_v7 = vpop.f32.mrf.mxu1  ;;  %v7518_v5 = vpop.f32.mrf.mxu0  ;;  %7733 = vmatmul.mubr.msk.bf16.gmra.mxu0 %vm685_vm2, %v11718_v47 }
 0x22b   : > { %v3295_v14 = vadd.f32 %v7518_v5, %v9887_v9  ;;  %7736 = vmatprep.mubr.msk.bf16.mxu0 %vm685_vm2, %v11719_v43  ;;  %v10058_v6 = vadd.f32 %v3429_v16, %v3290_v29  ;;  %v11721_v16 = vld [vmem:[#allocation32_spill] sm:$0xff] }
 0x22c   : > { %v7555_v18 = vpop.f32.mrf.mxu1  ;;  %v3202_v13 = vpop.f32.mrf.mxu0 }
 0x22d   : > { %v3293_v1 = vadd.f32 %v3202_v13, %v9890_v44  ;;  %v10061_v38 = vadd.f32 %v7554_v51, %v3295_v14  ;;  %v11722_v51 = vld [vmem:[#allocation34_spill] sm:$0xff]  ;;  %v11724_v13 = vld [vmem:[#allocation36_spill] sm:$0xff] }
 0x22e   : > { %v3445_v0 = vpop.f32.mrf.mxu1  ;;  %v7519_v61 = vpop.f32.mrf.mxu0 }
 0x22f   : > { %v3296_v55 = vadd.f32 %v7519_v61, %v9897_v23  ;;  %v10064_v34 = vadd.f32 %v3442_v7, %v3293_v1 }
 0x230   : > { %v7558_v63 = vpop.f32.mrf.mxu1  ;;  %7773 = vmatmul.mubr.msk.bf16.gmra.mxu1 %vm685_vm2, %v11720_v12  ;;  %v3205_v9 = vpop.f32.mrf.mxu0  ;;  %v11727_v12 = vld [vmem:[#allocation42_spill] sm:$0xff] }
 0x231   : > { %v3294_v48 = vadd.f32 %v3205_v9, %v9904_v56  ;;  %7776 = vmatprep.mubr.msk.bf16.mxu1 %vm685_vm2, %v11721_v16  ;;  %v10071_v60 = vadd.f32 %v7555_v18, %v3296_v55  ;;  %v4469_v9 = vrot.slane %v11685_v26, 5 }
 0x232   : > { %v3458_v44 = vpop.f32.mrf.mxu1  ;;  %v7522_v27 = vpop.f32.mrf.mxu0  ;;  %7737 = vmatmul.mubr.msk.bf16.gmra.mxu0 %vm685_vm2, %v11722_v51 }
 0x233   : > { %v3299_v23 = vadd.f32 %v7522_v27, %v9915_v37  ;;  %7740 = vmatprep.mubr.msk.bf16.mxu0 %vm685_vm2, %v11723_v42  ;;  %v10078_v52 = vadd.f32 %v3445_v0, %v3294_v48  ;;  %v11725_v0 = vld [vmem:[#allocation37_spill] sm:$0xff]  ;;  %v6873_v42 = vrot.slane %v11681_v10, 9 }
 0x234   : > { %v7559_v29 = vpop.f32.mrf.mxu1  ;;  %v3218_v15 = vpop.f32.mrf.mxu0 }
 0x235   : > { %v3297_v56 = vadd.f32 %v3218_v15, %v9918_v8  ;;  %v10081_v7 = vadd.f32 %v7558_v63, %v3299_v23  ;;  %v11726_v63 = vld [vmem:[#allocation40_spill] sm:$0xff]  ;;  %v4472_v15 = vrot.slane %v9726_v24, 5 }
 0x236   : > { %v3461_v5 = vpop.f32.mrf.mxu1  ;;  %v7523_v47 = vpop.f32.mrf.mxu0 }
 0x237   : > { %v3300_v14 = vadd.f32 %v7523_v47, %v9925_v21  ;;  %v10084_v43 = vadd.f32 %v3458_v44, %v3297_v56 }
 0x238   : > { %v7562_v18 = vpop.f32.mrf.mxu1  ;;  %7777 = vmatmul.mubr.msk.bf16.gmra.mxu1 %vm685_vm2, %v11724_v13  ;;  %v3221_v37 = vpop.f32.mrf.mxu0 }
 0x239   : > { %v3298_v1 = vadd.f32 %v3221_v37, %v9932_v54  ;;  %7780 = vmatprep.mubr.msk.bf16.mxu1 %vm685_vm2, %v11725_v0  ;;  %v10091_v61 = vadd.f32 %v7559_v29, %v3300_v14 }
 0x23a   : > { %v3474_v8 = vpop.f32.mrf.mxu1  ;;  %v7526_v55 = vpop.f32.mrf.mxu0  ;;  %7741 = vmatmul.mubr.msk.bf16.gmra.mxu0 %vm685_vm2, %v11726_v63 }
 0x23b   : > { %v3303_v21 = vadd.f32 %v7526_v55, %v9937_v57  ;;  %7744 = vmatprep.mubr.msk.bf16.mxu0 %vm685_vm2, %v11727_v12  ;;  %v10099_v48 = vadd.f32 %v3461_v5, %v3298_v1  ;;  %v4471_v57 = vrot.slane %v4469_v9, 4  ;;  %v11728_v5 = vld [vmem:[#allocation6_spill] sm:$0xff] }
 0x23c   : > { %v7563_v54 = vpop.f32.mrf.mxu1  ;;  %v3234_v16 = vpop.f32.mrf.mxu0 }
 0x23d   : > { %v3301_v44 = vadd.f32 %v3234_v16, %v9940_v49  ;;  %v10102_v27 = vadd.f32 %v7562_v18, %v3303_v21 }
 0x23e   : > { %v3477_v51 = vpop.f32.mrf.mxu1  ;;  %v7527_v23 = vpop.f32.mrf.mxu0 }
 0x23f   : > { %v3304_v29 = vadd.f32 %v7527_v23, %v9951_v3  ;;  %v10107_v56 = vadd.f32 %v3474_v8, %v3301_v44  ;;  %v4470_v3 = vsel %vm8547_vm8, %v6873_v42, %v4469_v9 }
 0x240   : > { %v7566_v26 = vpop.f32.mrf.mxu1  ;;  %7781 = vmatmul.mubr.msk.bf16.gmra.mxu1 %vm685_vm2, %v11728_v5  ;;  %v3237_v47 = vpop.f32.mrf.mxu0 }
 0x241   : > { %v3302_v49 = vadd.f32 %v3237_v47, %v9958_v62  ;;  %7784 = vmatprep.mubr.msk.bf16.mxu1 %vm685_vm2, %v9383_v28  ;;  %v10114_v14 = vadd.f32 %v7563_v54, %v3304_v29  ;;  %v4473_v62 = vsel %vm8547_vm8, %v4471_v57, %v4472_v15 }
 0x242   : > { %v3490_v10 = vpop.f32.mrf.mxu1  ;;  %v7530_v18 = vpop.f32.mrf.mxu0  ;;  %7745 = vmatmul.mubr.msk.bf16.gmra.mxu0 %vm685_vm2, %v9122_v36 }
 0x243   : > { %v3307_v24 = vadd.f32 %v7530_v18, %v9961_v53  ;;  %7748 = vmatprep.mubr.msk.bf16.mxu0 %vm685_vm2, %v9775_v22  ;;  %v10125_v13 = vadd.f32 %v3477_v51, %v3302_v49  ;;  %v6878_v53 = vcombine.low %v4470_v3, %v4473_v62 }
 0x244   : > { %v7567_v28 = vpop.f32.mrf.mxu1  ;;  %v3250_v37 = vpop.f32.mrf.mxu0 }
 0x245   : > { %v3305_v1 = vadd.f32 %v3250_v37, %v9966_v30  ;;  %v10128_v0 = vadd.f32 %v7566_v26, %v3307_v24 }
 0x246   : > { %v3493_v36 = vpop.f32.mrf.mxu1  ;;  %v7531_v8 = vpop.f32.mrf.mxu0 }
 0x247   : > { %v3308_v55 = vadd.f32 %v7531_v8, %v9972_v19  ;;  %v10131_v22 = vadd.f32 %v3490_v10, %v3305_v1 }
 0x248   : > { %v7570_v63 = vpop.f32.mrf.mxu1  ;;  %7785 = vmatmul.mubr.msk.bf16.gmra.mxu1 %vm685_vm2, %v9782_v45  ;;  %v3253_v40 = vpop.f32.mrf.mxu0 }
 0x249   : > { %v3306_v21 = vadd.f32 %v3253_v40, %v9978_v59  ;;  %v10136_v12 = vadd.f32 %v7567_v28, %v3308_v55 }
 0x24a   : > { %v3506_v9 = vpop.f32.mrf.mxu1  ;;  %v7534_v30 = vpop.f32.mrf.mxu0  ;;  %7749 = vmatmul.mubr.msk.bf16.gmra.mxu0 %vm685_vm2, %v6878_v53  ;;  %vm6342_vm2 = vcmask 1045509  }
 0x24b   : > { %v3311_v54 = vadd.f32 %v7534_v30, %v9981_v20  ;;  %v10140_v16 = vadd.f32 %v3493_v36, %v3306_v21 }
 0x24c   : > { %v7571_v19 = vpop.f32.mrf.mxu1  ;;  %v3266_v44 = vpop.f32.mrf.mxu0 }
 0x24d   : > { %v3309_v51 = vadd.f32 %v3266_v44, %v9984_v39  ;;  %v10143_v23 = vadd.f32 %v7570_v63, %v3311_v54 }
 0x24e   : > { %v3509_v45 = vpop.f32.mrf.mxu1  ;;  %v7535_v42 = vpop.f32.mrf.mxu0 }
 0x24f   : > { %v3312_v59 = vadd.f32 %v7535_v42, %v9991_v50  ;;  %v10146_v29 = vadd.f32 %v3506_v9, %v3309_v51 }
 0x250   : > { %v7614_v57 = vpop.f32.mrf.mxu1  ;;  %v3269_v15 = vpop.f32.mrf.mxu0 }
 0x251   : > { %v3310_v26 = vadd.f32 %v3269_v15, %v9998_v4  ;;  %v10149_v5 = vadd.f32 %v7571_v19, %v3312_v59 }
 0x252   : > { %v3849_v20 = vpop.f32.mrf.mxu1  ;;  %v7578_v47 = vpop.f32.mrf.mxu0 }
 0x253   : > { %v3747_v49 = vadd.f32 %v7578_v47, %v10001_v33  ;;  %v10152_v10 = vadd.f32 %v3509_v45, %v3310_v26 }
 0x254   : > { %v7615_v39 = vpop.f32.mrf.mxu1  ;;  %v3618_v18 = vpop.f32.mrf.mxu0 }
 0x255   : > { %v3745_v24 = vadd.f32 %v3618_v18, %v10004_v11  ;;  %v10155_v3 = vadd.f32 %v7614_v57, %v3747_v49 }
 0x256   : > { %v3852_v50 = vpop.f32.mrf.mxu1  ;;  %v7579_v62 = vpop.f32.mrf.mxu0 }
 0x257   : > { %v3748_v28 = vadd.f32 %v7579_v62, %v10011_v35  ;;  %v10158_v37 = vadd.f32 %v3849_v20, %v3745_v24 }
 0x258   : > { %v7618_v4 = vpop.f32.mrf.mxu1  ;;  %v3621_v1 = vpop.f32.mrf.mxu0 }
 0x259   : > { %v3746_v36 = vadd.f32 %v3621_v1, %v10018_v58  ;;  %v10161_v8 = vadd.f32 %v7615_v39, %v3748_v28 }
 0x25a   : > { %v3865_v33 = vpop.f32.mrf.mxu1  ;;  %v7582_v53 = vpop.f32.mrf.mxu0 }
 0x25b   : > { %v3751_v55 = vadd.f32 %v7582_v53, %v10021_v46  ;;  %v10164_v63 = vadd.f32 %v3852_v50, %v3746_v36 }
 0x25c   : > { %v7619_v11 = vpop.f32.mrf.mxu1  ;;  %v3634_v40 = vpop.f32.mrf.mxu0 }
 0x25d   : > { %v3749_v21 = vadd.f32 %v3634_v40, %v10024_v31  ;;  %v10167_v9 = vadd.f32 %v7618_v4, %v3751_v55 }
 0x25e   : > { %v3868_v35 = vpop.f32.mrf.mxu1  ;;  %v7583_v30 = vpop.f32.mrf.mxu0 }
 0x25f   : > { %v3752_v54 = vadd.f32 %v7583_v30, %v10031_v41  ;;  %v10170_v19 = vadd.f32 %v3865_v33, %v3749_v21 }
 0x260   : > { %v7622_v58 = vpop.f32.mrf.mxu1  ;;  %v3637_v44 = vpop.f32.mrf.mxu0 }
 0x261   : > { %v3750_v51 = vadd.f32 %v3637_v44, %v10038_v17  ;;  %v10173_v45 = vadd.f32 %v7619_v11, %v3752_v54 }
 0x262   : > { %v3881_v46 = vpop.f32.mrf.mxu1  ;;  %v7586_v42 = vpop.f32.mrf.mxu0 }
 0x263   : > { %v3755_v59 = vadd.f32 %v7586_v42, %v10041_v2  ;;  %v10176_v57 = vadd.f32 %v3868_v35, %v3750_v51 }
 0x264   : > { %v7623_v31 = vpop.f32.mrf.mxu1  ;;  %v3650_v15 = vpop.f32.mrf.mxu0 }
 0x265   : > { %v3753_v26 = vadd.f32 %v3650_v15, %v10044_v32  ;;  %v10179_v20 = vadd.f32 %v7622_v58, %v3755_v59 }
 0x266   : > { %v3884_v41 = vpop.f32.mrf.mxu1  ;;  %v7587_v47 = vpop.f32.mrf.mxu0 }
 0x267   : > { %v3756_v49 = vadd.f32 %v7587_v47, %v10051_v25  ;;  %v10182_v39 = vadd.f32 %v3881_v46, %v3753_v26 }
 0x268   : > { %v7626_v17 = vpop.f32.mrf.mxu1  ;;  %v3653_v18 = vpop.f32.mrf.mxu0 }
 0x269   : > { %v3754_v24 = vadd.f32 %v3653_v18, %v10058_v6  ;;  %v10185_v50 = vadd.f32 %v7623_v31, %v3756_v49 }
 0x26a   : > { %v3897_v2 = vpop.f32.mrf.mxu1  ;;  %v7590_v62 = vpop.f32.mrf.mxu0 }
 0x26b   : > { %v3759_v28 = vadd.f32 %v7590_v62, %v10061_v38  ;;  %v10188_v4 = vadd.f32 %v3884_v41, %v3754_v24 }
 0x26c   : > { %v7627_v32 = vpop.f32.mrf.mxu1  ;;  %v3666_v1 = vpop.f32.mrf.mxu0 }
 0x26d   : > { %v3757_v36 = vadd.f32 %v3666_v1, %v10064_v34  ;;  %v10191_v33 = vadd.f32 %v7626_v17, %v3759_v28 }
 0x26e   : > { %v3900_v25 = vpop.f32.mrf.mxu1  ;;  %v7591_v53 = vpop.f32.mrf.mxu0 }
 0x26f   : > { %v3760_v55 = vadd.f32 %v7591_v53, %v10071_v60  ;;  %v10194_v11 = vadd.f32 %v3897_v2, %v3757_v36 }
 0x270   : > { %v7630_v6 = vpop.f32.mrf.mxu1  ;;  %v3669_v40 = vpop.f32.mrf.mxu0 }
 0x271   : > { %v3758_v21 = vadd.f32 %v3669_v40, %v10078_v52  ;;  %v10197_v35 = vadd.f32 %v7627_v32, %v3760_v55 }
 0x272   : > { %v3913_v38 = vpop.f32.mrf.mxu1  ;;  %v7594_v30 = vpop.f32.mrf.mxu0 }
 0x273   : > { %v3763_v54 = vadd.f32 %v7594_v30, %v10081_v7  ;;  %v10200_v58 = vadd.f32 %v3900_v25, %v3758_v21 }
 0x274   : > { %v7631_v34 = vpop.f32.mrf.mxu1  ;;  %v3682_v44 = vpop.f32.mrf.mxu0 }
 0x275   : > { %v3761_v51 = vadd.f32 %v3682_v44, %v10084_v43  ;;  %v10203_v46 = vadd.f32 %v7630_v6, %v3763_v54 }
 0x276   : > { %v3916_v60 = vpop.f32.mrf.mxu1  ;;  %v7595_v42 = vpop.f32.mrf.mxu0 }
 0x277   : > { %v3764_v59 = vadd.f32 %v7595_v42, %v10091_v61  ;;  %v10206_v31 = vadd.f32 %v3913_v38, %v3761_v51 }
 0x278   : > { %v7634_v52 = vpop.f32.mrf.mxu1  ;;  %v3685_v15 = vpop.f32.mrf.mxu0 }
 0x279   : > { %v3762_v26 = vadd.f32 %v3685_v15, %v10099_v48  ;;  %v10209_v41 = vadd.f32 %v7631_v34, %v3764_v59 }
 0x27a   : > { %v3929_v7 = vpop.f32.mrf.mxu1  ;;  %v7598_v47 = vpop.f32.mrf.mxu0 }
 0x27b   : > { %v3767_v49 = vadd.f32 %v7598_v47, %v10102_v27  ;;  %v10212_v17 = vadd.f32 %v3916_v60, %v3762_v26 }
 0x27c   : > { %v7635_v43 = vpop.f32.mrf.mxu1  ;;  %v3698_v18 = vpop.f32.mrf.mxu0 }
 0x27d   : > { %v3765_v24 = vadd.f32 %v3698_v18, %v10107_v56  ;;  %v10215_v2 = vadd.f32 %v7634_v52, %v3767_v49 }
 0x27e   : > { %v3932_v61 = vpop.f32.mrf.mxu1  ;;  %v7599_v62 = vpop.f32.mrf.mxu0 }
 0x27f   : > { %v3768_v28 = vadd.f32 %v7599_v62, %v10114_v14  ;;  %v10218_v32 = vadd.f32 %v3929_v7, %v3765_v24 }
 0x280   : > { %v7638_v48 = vpop.f32.mrf.mxu1  ;;  %v3701_v1 = vpop.f32.mrf.mxu0 }
 0x281   : > { %v3766_v36 = vadd.f32 %v3701_v1, %v10125_v13  ;;  %v10221_v25 = vadd.f32 %v7635_v43, %v3768_v28 }
 0x282   : > { %v3945_v27 = vpop.f32.mrf.mxu1  ;;  %v7602_v53 = vpop.f32.mrf.mxu0 }
 0x283   : > { %v3771_v55 = vadd.f32 %v7602_v53, %v10128_v0  ;;  %v10224_v6 = vadd.f32 %v3932_v61, %v3766_v36 }
 0x284   : > { %v7639_v56 = vpop.f32.mrf.mxu1  ;;  %v3714_v40 = vpop.f32.mrf.mxu0 }
 0x285   : > { %v3769_v21 = vadd.f32 %v3714_v40, %v10131_v22  ;;  %v10227_v38 = vadd.f32 %v7638_v48, %v3771_v55 }
 0x286   : > { %v3948_v14 = vpop.f32.mrf.mxu1  ;;  %v7603_v30 = vpop.f32.mrf.mxu0 }
 0x287   : > { %v3772_v54 = vadd.f32 %v7603_v30, %v10136_v12  ;;  %v10230_v34 = vadd.f32 %v3945_v27, %v3769_v21 }
 0x288   : > { %v7642_v13 = vpop.f32.mrf.mxu1  ;;  %v3717_v44 = vpop.f32.mrf.mxu0 }
 0x289   : > { %v3770_v51 = vadd.f32 %v3717_v44, %v10140_v16  ;;  %v10233_v60 = vadd.f32 %v7639_v56, %v3772_v54 }
 0x28a   : > { %v3961_v0 = vpop.f32.mrf.mxu1  ;;  %v7606_v42 = vpop.f32.mrf.mxu0 }
 0x28b   : > { %v3775_v59 = vadd.f32 %v7606_v42, %v10143_v23  ;;  %v10236_v52 = vadd.f32 %v3948_v14, %v3770_v51 }
 0x28c   : > { %v7643_v22 = vpop.f32.mrf.mxu1  ;;  %v3730_v15 = vpop.f32.mrf.mxu0 }
 0x28d   : > { %v3773_v26 = vadd.f32 %v3730_v15, %v10146_v29  ;;  %v10239_v7 = vadd.f32 %v7642_v13, %v3775_v59 }
 0x28e   : > { %v3964_v12 = vpop.f32.mrf.mxu1  ;;  %v7607_v47 = vpop.f32.mrf.mxu0 }
 0x28f   : > { %v3776_v49 = vadd.f32 %v7607_v47, %v10149_v5  ;;  %v10242_v43 = vadd.f32 %v3961_v0, %v3773_v26 }
 0x290   : > { %v7686_v16 = vpop.f32.mrf.mxu1  ;;  %v3733_v18 = vpop.f32.mrf.mxu0 }
 0x291   : > { %v3774_v24 = vadd.f32 %v3733_v18, %v10152_v10  ;;  %v10245_v61 = vadd.f32 %v7643_v22, %v3776_v49 }
 0x292   : > { %v4307_v23 = vpop.f32.mrf.mxu1  ;;  %v7650_v62 = vpop.f32.mrf.mxu0 }
 0x293   : > { %v4196_v28 = vadd.f32 %v7650_v62, %v10155_v3  ;;  %v10248_v48 = vadd.f32 %v3964_v12, %v3774_v24 }
 0x294   : > { %v10250_v29 = vpop.f32.mrf.mxu1  ;;  %v4067_v1 = vpop.f32.mrf.mxu0 }
 0x295   : > { %v4194_v36 = vadd.f32 %v4067_v1, %v10158_v37  ;;  %v10253_v5 = vadd.f32 %v7686_v16, %v4196_v28 }
 0x296   : > { %v10255_v27 = vpop.f32.mrf.mxu1  ;;  %v10257_v53 = vpop.f32.mrf.mxu0 }
 0x297   : > { %v10259_v10 = vadd.f32 %v4307_v23, %v4194_v36 }
 0x298   : > { %v7690_v55 = vpop.f32.mrf.mxu1  ;;  %v10261_v56 = vpop.f32.mrf.mxu0 }
 0x29a   : > { %v4323_v40 = vpop.f32.mrf.mxu1  ;;  %v7654_v3 = vpop.f32.mrf.mxu0 }
 0x29b   : > { %v4200_v21 = vadd.f32 %v7654_v3, %v10167_v9 }
 0x29c   : > { %v7691_v14 = vpop.f32.mrf.mxu1  ;;  %v4083_v30 = vpop.f32.mrf.mxu0 }
 0x29d   : > { %v4198_v54 = vadd.f32 %v4083_v30, %v10170_v19  ;;  %v10265_v37 = vadd.f32 %v7690_v55, %v4200_v21 }
 0x29e   : > { %v4326_v13 = vpop.f32.mrf.mxu1  ;;  %v7655_v44 = vpop.f32.mrf.mxu0 }
 0x29f   : > { %v4201_v51 = vadd.f32 %v7655_v44, %v10173_v45  ;;  %v10268_v0 = vadd.f32 %v4323_v40, %v4198_v54 }
 0x2a0   : > { %v7694_v42 = vpop.f32.mrf.mxu1  ;;  %v4086_v59 = vpop.f32.mrf.mxu0 }
 0x2a1   : > { %v4199_v22 = vadd.f32 %v4086_v59, %v10176_v57  ;;  %v10271_v15 = vadd.f32 %v7691_v14, %v4201_v51 }
 0x2a2   : > { %v4339_v26 = vpop.f32.mrf.mxu1  ;;  %v7658_v9 = vpop.f32.mrf.mxu0 }
 0x2a3   : > { %v4204_v12 = vadd.f32 %v7658_v9, %v10179_v20  ;;  %v10274_v47 = vadd.f32 %v4326_v13, %v4199_v22 }
 0x2a4   : > { %v7695_v19 = vpop.f32.mrf.mxu1  ;;  %v4099_v49 = vpop.f32.mrf.mxu0 }
 0x2a5   : > { %v4202_v16 = vadd.f32 %v4099_v49, %v10182_v39  ;;  %v10277_v18 = vadd.f32 %v7694_v42, %v4204_v12 }
 0x2a6   : > { %v4342_v45 = vpop.f32.mrf.mxu1  ;;  %v7659_v24 = vpop.f32.mrf.mxu0 }
 0x2a7   : > { %v4205_v23 = vadd.f32 %v7659_v24, %v10185_v50  ;;  %v10280_v62 = vadd.f32 %v4339_v26, %v4202_v16 }
 0x2a8   : > { %v7698_v57 = vpop.f32.mrf.mxu1  ;;  %v4102_v28 = vpop.f32.mrf.mxu0 }
 0x2a9   : > { %v4203_v1 = vadd.f32 %v4102_v28, %v10188_v4  ;;  %v10283_v36 = vadd.f32 %v7695_v19, %v4205_v23 }
 0x2aa   : > { %v4355_v20 = vpop.f32.mrf.mxu1  ;;  %v7662_v55 = vpop.f32.mrf.mxu0 }
 0x2ab   : > { %v4208_v40 = vadd.f32 %v7662_v55, %v10191_v33  ;;  %v10286_v3 = vadd.f32 %v4342_v45, %v4203_v1 }
 0x2ac   : > { %v7699_v39 = vpop.f32.mrf.mxu1  ;;  %v4115_v21 = vpop.f32.mrf.mxu0 }
 0x2ad   : > { %v4206_v14 = vadd.f32 %v4115_v21, %v10194_v11  ;;  %v10289_v30 = vadd.f32 %v7698_v57, %v4208_v40 }
 0x2ae   : > { %v4358_v50 = vpop.f32.mrf.mxu1  ;;  %v7663_v54 = vpop.f32.mrf.mxu0 }
 0x2af   : > { %v4209_v13 = vadd.f32 %v7663_v54, %v10197_v35  ;;  %v10292_v44 = vadd.f32 %v4355_v20, %v4206_v14 }
 0x2b0   : > { %v7702_v4 = vpop.f32.mrf.mxu1  ;;  %v4118_v51 = vpop.f32.mrf.mxu0 }
 0x2b1   : > { %v4207_v42 = vadd.f32 %v4118_v51, %v10200_v58  ;;  %v10295_v59 = vadd.f32 %v7699_v39, %v4209_v13 }
 0x2b2   : > { %v4371_v33 = vpop.f32.mrf.mxu1  ;;  %v7666_v22 = vpop.f32.mrf.mxu0 }
 0x2b3   : > { %v4212_v26 = vadd.f32 %v7666_v22, %v10203_v46  ;;  %v10298_v9 = vadd.f32 %v4358_v50, %v4207_v42 }
 0x2b4   : > { %v7703_v11 = vpop.f32.mrf.mxu1  ;;  %v4131_v12 = vpop.f32.mrf.mxu0 }
 0x2b5   : > { %v4210_v19 = vadd.f32 %v4131_v12, %v10206_v31  ;;  %v10301_v49 = vadd.f32 %v7702_v4, %v4212_v26 }
 0x2b6   : > { %v4374_v35 = vpop.f32.mrf.mxu1  ;;  %v7667_v16 = vpop.f32.mrf.mxu0 }
 0x2b7   : > { %v4213_v45 = vadd.f32 %v7667_v16, %v10209_v41  ;;  %v10304_v24 = vadd.f32 %v4371_v33, %v4210_v19 }
 0x2b8   : > { %v7706_v58 = vpop.f32.mrf.mxu1  ;;  %v4134_v23 = vpop.f32.mrf.mxu0 }
 0x2b9   : > { %v4211_v57 = vadd.f32 %v4134_v23, %v10212_v17  ;;  %v10307_v28 = vadd.f32 %v7703_v11, %v4213_v45 }
 0x2ba   : > { %v4387_v46 = vpop.f32.mrf.mxu1  ;;  %v7670_v1 = vpop.f32.mrf.mxu0 }
 0x2bb   : > { %v4216_v20 = vadd.f32 %v7670_v1, %v10215_v2  ;;  %v10310_v55 = vadd.f32 %v4374_v35, %v4211_v57 }
 0x2bc   : > { %v7707_v31 = vpop.f32.mrf.mxu1  ;;  %v4147_v40 = vpop.f32.mrf.mxu0 }
 0x2bd   : > { %v4214_v39 = vadd.f32 %v4147_v40, %v10218_v32  ;;  %v10313_v21 = vadd.f32 %v7706_v58, %v4216_v20 }
 0x2be   : > { %v4390_v41 = vpop.f32.mrf.mxu1  ;;  %v7671_v14 = vpop.f32.mrf.mxu0 }
 0x2bf   : > { %v4217_v50 = vadd.f32 %v7671_v14, %v10221_v25  ;;  %v10316_v54 = vadd.f32 %v4387_v46, %v4214_v39 }
 0x2c0   : > { %v7710_v17 = vpop.f32.mrf.mxu1  ;;  %v4150_v13 = vpop.f32.mrf.mxu0 }
 0x2c1   : > { %v4215_v4 = vadd.f32 %v4150_v13, %v10224_v6  ;;  %v10319_v51 = vadd.f32 %v7707_v31, %v4217_v50  ;;  %v7859_v31 = vmov 0.0  }
 0x2c2   : > { %v4403_v2 = vpop.f32.mrf.mxu1  ;;  %v7674_v42 = vpop.f32.mrf.mxu0  ;;  %v10336_v40 = vrot.slane %v7859_v31, 7 }
 0x2c3   : > { %v4220_v33 = vadd.f32 %v7674_v42, %v10227_v38  ;;  %v10322_v22 = vadd.f32 %v4390_v41, %v4215_v4 }
 0x2c4   : > { %v7711_v32 = vpop.f32.mrf.mxu1  ;;  %v4163_v26 = vpop.f32.mrf.mxu0  ;;  %v10346_v13 = vsel %vm5025_vm10, 0.0, %v10336_v40  ;;  %v10350_v4 = vsel %vm5025_vm10, %v10336_v40, 0.0 }
 0x2c5   : > { %v4218_v11 = vadd.f32 %v4163_v26, %v10230_v34  ;;  %v10325_v12 = vadd.f32 %v7710_v17, %v4220_v33  ;;  %v5178_v26 = vrot.slane %v10336_v40, 1 }
 0x2c6   : > { %v4406_v25 = vpop.f32.mrf.mxu1  ;;  %v7675_v19 = vpop.f32.mrf.mxu0 }
 0x2c7   : > { %v4221_v35 = vadd.f32 %v7675_v19, %v10233_v60  ;;  %v10328_v16 = vadd.f32 %v4403_v2, %v4218_v11  ;;  %v4195_v11 = vadd.f32 %v10261_v56, %v10164_v63 }
 0x2c8   : > { %v7714_v6 = vpop.f32.mrf.mxu1  ;;  %v4166_v45 = vpop.f32.mrf.mxu0 }
 0x2c9   : > { %11729 = vst [vmem:[#allocation54_spill] sm:$0xff] %v10328_v16  ;;  %v4219_v58 = vadd.f32 %v4166_v45, %v10236_v52  ;;  %v10331_v23 = vadd.f32 %v7711_v32, %v4221_v35  ;;  %v5177_v32 = vrot.slane %v10346_v13, 1  ;;  %v5180_v35 = vrot.slane %v10350_v4, 1 }
 0x2ca   : > { %v4419_v38 = vpop.f32.mrf.mxu1  ;;  %v7678_v57 = vpop.f32.mrf.mxu0 }
 0x2cb   : > { %11730 = vst [vmem:[#allocation64_spill] sm:$0xff] %v10331_v23  ;;  %v4224_v46 = vadd.f32 %v7678_v57, %v10239_v7  ;;  %v10334_v1 = vadd.f32 %v4406_v25, %v4219_v58  ;;  %v5810_v58 = vlaneseq }
 0x2cc   : > { %v7715_v34 = vpop.f32.mrf.mxu1  ;;  %v4179_v20 = vpop.f32.mrf.mxu0 }
 0x2cd   : > { %11731 = vst [vmem:[#allocation65_spill] sm:$0xff] %v10334_v1  ;;  %v4222_v60 = vadd.f32 %v4179_v20, %v10242_v43  ;;  %v10339_v39 = vadd.f32 %v7714_v6, %v4224_v46  ;;  %v4197_v43 = vadd.f32 %v10257_v53, %v10161_v8  ;;  %v10367_v8 = vld [vmem:[%s11124_s2] ss:$0 sm:$0xff]  ;;  %v7860_v6 = vmov 1983009808  }
 0x2ce   : > { %v4422_v41 = vpop.f32.mrf.mxu1  ;;  %v7679_v14 = vpop.f32.mrf.mxu0  ;;  %v5808_v45 = vunpack.c.l.s4 %v7860_v6 }
 0x2cf   : > { %11732 = vst [vmem:[#allocation49_spill] sm:$0xff] %v10339_v39  ;;  %v4225_v52 = vadd.f32 %v7679_v14, %v10245_v61  ;;  %v10342_v50 = vadd.f32 %v4419_v38, %v4222_v60  ;;  %v4437_v63 = vadd.f32 %v10250_v29, %v4197_v43  ;;  %v4435_v60 = vadd.f32 %v10255_v27, %v4195_v11 }
 0x2d0   : > { %v7758_v17 = vpop.f32.mrf.mxu1  ;;  %v4182_v7 = vpop.f32.mrf.mxu0 }
 0x2d1   : > { %11733 = vst [vmem:[#allocation15_spill] sm:$0xff] %v10342_v50  ;;  %v4223_v2 = vadd.f32 %v4182_v7, %v10248_v48  ;;  %v10355_v42 = vadd.f32 %v7715_v34, %v4225_v52  ;;  %v10378_v52 = vsel %vm5176_vm11, %v5178_v26, %v5180_v35 }
 0x2d2   : > { %v4762_v61 = vpop.f32.mrf.mxu1  ;;  %v7722_v33 = vpop.f32.mrf.mxu0 }
 0x2d3   : > { %11734 = vst [vmem:[#allocation7_spill] sm:$0xff] %v10355_v42  ;;  %v4660_v25 = vadd.f32 %v7722_v33, %v10253_v5  ;;  %v10362_v19 = vadd.f32 %v4422_v41, %v4223_v2  ;;  %v10373_v5 = vsel %vm5176_vm11, %v5177_v32, %v5178_v26 }
 0x2d4   : > { %v7759_v48 = vpop.f32.mrf.mxu1  ;;  %v4531_v53 = vpop.f32.mrf.mxu0 }
 0x2d5   : > { %11735 = vst [vmem:[#allocation8_spill] sm:$0xff] %v10362_v19  ;;  %v4891_v38 = vadd.f32 %v7758_v17, %v4660_v25  ;;  %v4658_v57 = vadd.f32 %v4531_v53, %v10259_v10  ;;  %v5809_v10 = vunpack.c.0.s8 %v5808_v45  ;;  %v5811_v17 = vshrl.u32 %v5810_v58, 7 }
 0x2d6   : > { %v4765_v56 = vpop.f32.mrf.mxu1  ;;  %v7723_v46 = vpop.f32.mrf.mxu0 }
 0x2d7   : > { %v4930_v34 = vadd.f32 %v10367_v8, %v4891_v38  ;;  %v4889_v20 = vadd.f32 %v4762_v61, %v4658_v57  ;;  %v4661_v31 = vadd.f32 %v7723_v46, %v4437_v63  ;;  %v10386_v53 = vsub.s32 %v5809_v10, %v5811_v17 }
 0x2d8   : > { %v7762_v41 = vpop.f32.mrf.mxu1  ;;  %v4534_v14 = vpop.f32.mrf.mxu0  ;;  %v10388_v35 = vsub.s32 0, %v5811_v17 }
 0x2d9   : > { %v4962_v7 = vmax.f32 %v4930_v34, 0.0  ;;  %v4928_v29 = vadd.f32 %v10367_v8, %v4889_v20  ;;  %v4892_v43 = vadd.f32 %v7759_v48, %v4661_v31  ;;  %v4659_v2 = vadd.f32 %v4534_v14, %v4435_v60 }
 0x2da   : > { %v7726_v61 = vpop.f32.mrf.mxu0  ;;  %v4778_v48 = vpop.f32.mrf.mxu1 }
 0x2db   : > { %v5031_v32 = vrot.slane %v4962_v7, 7  ;;  %v4960_v25 = vmax.f32 %v4928_v29, 0.0  ;;  %v4931_v27 = vadd.f32 %v10367_v8, %v4892_v43  ;;  %v4890_v11 = vadd.f32 %v4765_v56, %v4659_v2 }
 0x2dc   : > { %v4664_v6 = vadd.f32 %v7726_v61, %v10265_v37  ;;  %v4547_v45 = vpop.f32.mrf.mxu0  ;;  %v7763_v43 = vpop.f32.mrf.mxu1 }
 0x2dd   : > { %v10392_v58 = vsel %vm5025_vm10, 0.0, %v5031_v32  ;;  %v5028_v38 = vrot.slane %v4960_v25, 7  ;;  %v4963_v57 = vmax.f32 %v4931_v27, 0.0  ;;  %v4929_v63 = vadd.f32 %v10367_v8, %v4890_v11 }
 0x2de   : > { %v5182_v56 = vrot.slane %v10392_v58, 1  ;;  %v5718_v46 = vrot.slane %v10392_v58, 2  ;;  %v4895_v34 = vadd.f32 %v7762_v41, %v4664_v6  ;;  %v4662_v20 = vadd.f32 %v4547_v45, %v10268_v0  ;;  %v7727_v31 = vpop.f32.mrf.mxu0 }
 0x2df   : > { %v5127_v60 = vsel %vm5025_vm10, 0.0, %v5028_v38  ;;  %v5032_v14 = vrot.slane %v4963_v57, 7  ;;  %v4961_v37 = vmax.f32 %v4929_v63, 0.0  ;;  %v4665_v10 = vadd.f32 %v7727_v31, %v10271_v15 }
 0x2e0   : > { %v5258_v17 = vrot.slane %v5127_v60, 6  ;;  %v5338_v7 = vrot.slane %v5127_v60, 1  ;;  %v4934_v29 = vadd.f32 %v10367_v8, %v4895_v34  ;;  %v4893_v2 = vadd.f32 %v4778_v48, %v4662_v20  ;;  %v4550_v45 = vpop.f32.mrf.mxu0 }
 0x2e1   : > { %v10402_v61 = vsel %vm5025_vm10, %v5031_v32, %v5032_v14  ;;  %v10405_v41 = vsel %vm5025_vm10, %v5032_v14, 0.0  ;;  %v5029_v0 = vrot.slane %v4961_v37, 7  ;;  %v4896_v25 = vadd.f32 %v7763_v43, %v4665_v10 }
 0x2e2   : > { %v5306_v27 = vmax.f32 %v10346_v13, %v5258_v17  ;;  %v5183_v11 = vrot.slane %v10402_v61, 1  ;;  %v5185_v15 = vrot.slane %v10405_v41, 1  ;;  %v5719_v6 = vrot.slane %v10402_v61, 2 }
 0x2e3   : > { %v5721_v57 = vrot.slane %v10405_v41, 2  ;;  %v5030_v48 = vsel %vm5025_vm10, %v5028_v38, %v5029_v0  ;;  %v5144_v32 = vsel %vm5025_vm10, %v5029_v0, 0.0  ;;  %v4966_v63 = vmax.f32 %v4934_v29, 0.0 }
 0x2e4   : > { %v5462_v34 = vrot.slane %v5306_v27, 2  ;;  %v5184_v20 = vsel %vm5176_vm11, %v5182_v56, %v5183_v11  ;;  %v5186_v31 = vsel %vm5176_vm11, %v5183_v11, %v5185_v15  ;;  %v5720_v14 = vsel %vm5461_vm12, %v5718_v46, %v5719_v6  ;;  %v4781_v56 = vpop.f32.mrf.mxu1  ;;  %v7730_v27 = vpop.f32.mrf.mxu0 }
 0x2e5   : > { %v10418_v37 = vmax.f32 %v10392_v58, %v5184_v20  ;;  %v10421_v10 = vmax.f32 %v10402_v61, %v5186_v31  ;;  %v5722_v43 = vsel %vm5461_vm12, %v5719_v6, %v5721_v57  ;;  %v5259_v26 = vrot.slane %v5030_v48, 6 }
 0x2e6   : > { %v5339_v38 = vrot.slane %v5030_v48, 1  ;;  %v5341_v33 = vrot.slane %v5144_v32, 1  ;;  %v10424_v0 = vrot.slane %v4966_v63, 7  ;;  %v4932_v29 = vadd.f32 %v10367_v8, %v4893_v2  ;;  %v7766_v1 = vpop.f32.mrf.mxu1  ;;  %v4563_v23 = vpop.f32.mrf.mxu0 }
 0x2e7   : > { %v5260_v11 = vsel %vm5257_vm13, %v5258_v17, %v5259_v26  ;;  %v5308_v46 = vmax.f32 %v10350_v4, %v5259_v26  ;;  %v5550_v15 = vrot.slane %v10418_v37, 7  ;;  %v5551_v20 = vrot.slane %v10421_v10, 7 }
 0x2e8   : > { %v5307_v31 = vmax.f32 %v10336_v40, %v5260_v11  ;;  %v5340_v6 = vsel %vm5176_vm11, %v5338_v7, %v5339_v38  ;;  %v5342_v57 = vsel %vm5176_vm11, %v5339_v38, %v5341_v33  ;;  %v5404_v63 = vmax.f32 %v5144_v32, %v5341_v33 }
 0x2e9   : > { %v5402_v19 = vmax.f32 %v5127_v60, %v5340_v6  ;;  %v5403_v42 = vmax.f32 %v5030_v48, %v5342_v57  ;;  %v5465_v2 = vrot.slane %v5308_v46, 2  ;;  %v5552_v50 = vsel %vm5025_vm10, %v5550_v15, %v5551_v20  ;;  %v7731_v57 = vpop.f32.mrf.mxu0 }
 0x2ea   : > { %v5463_v39 = vrot.slane %v5307_v31, 2  ;;  %v5600_v17 = vmax.f32 %v5404_v63, %v5551_v20  ;;  %v10437_v4 = vsel %vm5025_vm10, 0.0, %v10424_v0  ;;  %v4964_v26 = vmax.f32 %v4932_v29, 0.0  ;;  %v4794_v31 = vpop.f32.mrf.mxu1 }
 0x2eb   : > { %v5598_v11 = vmax.f32 %v5402_v19, %v5550_v15  ;;  %v5599_v16 = vmax.f32 %v5403_v42, %v5552_v50  ;;  %v5187_v7 = vrot.slane %v10437_v4, 1  ;;  %v5723_v33 = vrot.slane %v10437_v4, 2 }
 0x2ec   : > { %v5464_v60 = vsel %vm5461_vm12, %v5462_v34, %v5463_v39  ;;  %v5466_v48 = vsel %vm5461_vm12, %v5463_v39, %v5465_v2  ;;  %v5649_v32 = vrot.slane %v5600_v17, 1  ;;  %v10443_v38 = vrot.slane %v4964_v26, 7 }
 0x2ed   : > { %v11736_v46 = vmax.f32 %v10346_v13, %v10373_v5  ;;  %v11737_v29 = vmax.f32 %v10336_v40, %v10378_v52  ;;  %v5646_v50 = vrot.slane %v5598_v11, 1  ;;  %v5647_v42 = vrot.slane %v5599_v16, 1 }
 0x2ee   : > { %v10453_v15 = vsel %vm5025_vm10, 0.0, %v10443_v38  ;;  %v4935_v34 = vadd.f32 %v10367_v8, %v4896_v25  ;;  %v4663_v39 = vadd.f32 %v4550_v45, %v10274_v47  ;;  %v4668_v6 = vadd.f32 %v7730_v27, %v10277_v18 }
 0x2ef   : > { %v5518_v20 = vmax.f32 %v11736_v46, %v5464_v60  ;;  %v5519_v19 = vmax.f32 %v11737_v29, %v5466_v48  ;;  %v5648_v13 = vsel %vm5176_vm11, %v5646_v50, %v5647_v42  ;;  %v5650_v5 = vsel %vm5176_vm11, %v5647_v42, %v5649_v32  ;;  %v7767_v48 = vpop.f32.mrf.mxu1 }
 0x2f0   : > { %v5261_v40 = vrot.slane %v10453_v15, 6  ;;  %v5343_v16 = vrot.slane %v10453_v15, 1  ;;  %v4967_v2 = vmax.f32 %v4935_v34, 0.0  ;;  %v4894_v25 = vadd.f32 %v4781_v56, %v4663_v39 }
 0x2f1   : > { %v5702_v52 = vmax.f32 %v5518_v20, %v5648_v13  ;;  %v5703_v63 = vmax.f32 %v5519_v19, %v5650_v5  ;;  %v4899_v18 = vadd.f32 %v7766_v1, %v4668_v6  ;;  %v4666_v45 = vadd.f32 %v4563_v23, %v10280_v62 }
 0x2f2   : > { %v10465_v47 = vmax.f32 %v10392_v58, %v5261_v40  ;;  %v4669_v27 = vadd.f32 %v7731_v57, %v10283_v36  ;;  %v5038_v11 = vrot.slane %v4967_v2, 7  ;;  %v4933_v60 = vadd.f32 %v10367_v8, %v4894_v25 }
 0x2f3   : > { %v5774_v17 = vmax.f32 %v5702_v52, %v5720_v14  ;;  %v5775_v26 = vmax.f32 %v5703_v63, %v5722_v43  ;;  %v4938_v32 = vadd.f32 %v10367_v8, %v4899_v18  ;;  %v10472_v46 = vadd.f32 %v4794_v31, %v4666_v45 }
 0x2f4   : > { %v5467_v56 = vrot.slane %v10465_v47, 2  ;;  %v10474_v58 = vadd.f32 %v7767_v48, %v4669_v27  ;;  %v10480_v14 = vsel %vm5025_vm10, %v10424_v0, %v5038_v11  ;;  %v10483_v43 = vsel %vm5025_vm10, %v5038_v11, 0.0 }
 0x2f5   : > { %v5806_v1 = vcombine.high %v5774_v17, %v5774_v17  ;;  %v5813_v62 = vrot.slane %v5774_v17, %v10386_v53  ;;  %v5823_v36 = vcombine.high %v5775_v26, %v5775_v26  ;;  %v5830_v23 = vrot.slane %v5775_v26, %v10386_v53 }
 0x2f6   : > { %v4965_v20 = vmax.f32 %v4933_v60, 0.0  ;;  %v4970_v29 = vmax.f32 %v4938_v32, 0.0  ;;  %v5188_v0 = vrot.slane %v10480_v14, 1  ;;  %v5190_v6 = vrot.slane %v10483_v43, 1 }
 0x2f7   : > { %v5820_v19 = vrot.slane %v5806_v1, %v10386_v53  ;;  %v5821_v50 = vcombine.high %v5813_v62, %v5813_v62  ;;  %v5837_v42 = vrot.slane %v5823_v36, %v10386_v53  ;;  %v5838_v34 = vcombine.high %v5830_v23, %v5830_v23 }
 0x2f8   : > { %v6081_v39 = vrot.slane %v5813_v62, %v10388_v35  ;;  %v6097_v31 = vrot.slane %v5830_v23, %v10388_v35  ;;  %v5189_v25 = vsel %vm5176_vm11, %v5187_v7, %v5188_v0  ;;  %v5191_v18 = vsel %vm5176_vm11, %v5188_v0, %v5190_v6 }
 0x2f9   : > { %v5822_v57 = vcombine.high %v5820_v19, %v5820_v19  ;;  %v5839_v13 = vcombine.high %v5837_v42, %v5837_v42  ;;  %v6085_v5 = vrot.slane %v5821_v50, %v10388_v35  ;;  %v6089_v52 = vrot.slane %v5820_v19, %v10388_v35 }
 0x2fa   : > { %v6101_v63 = vrot.slane %v5838_v34, %v10388_v35  ;;  %v6105_v2 = vrot.slane %v5837_v42, %v10388_v35  ;;  %v10503_v26 = vmax.f32 %v10437_v4, %v5189_v25  ;;  %v10508_v60 = vmax.f32 %v10480_v14, %v5191_v18 }
 0x2fb   : > { %v6093_v45 = vrot.slane %v5822_v57, %v10388_v35  ;;  %v6109_v27 = vrot.slane %v5839_v13, %v10388_v35  ;;  %v6335_v17 = vsel %vm6334_vm14, %v6085_v5, %v6081_v39  ;;  %v5724_v48 = vrot.slane %v10480_v14, 2  ;;  %v4566_v39 = vpop.f32.mrf.mxu0 }
 0x2fc   : > { %v6337_v11 = vsel %vm6336_vm15, %v6089_v52, %v6335_v17  ;;  %v5726_v7 = vrot.slane %v10483_v43, 2  ;;  %v5035_v1 = vrot.slane %v4965_v20, 7  ;;  %v5553_v62 = vrot.slane %v10503_v26, 7 }
 0x2fd   : > { %v6339_v32 = vsel %vm6338_vm0, %v6093_v45, %v6337_v11  ;;  %v10514_v36 = vrot.slane %v4970_v29, 7  ;;  %v10520_v19 = vsel %vm5461_vm12, %v5723_v33, %v5724_v48  ;;  %v5554_v42 = vrot.slane %v10508_v60, 7 }
 0x2fe   : > { %v6341_v23 = vsel %vm6340_vm1, %v6097_v31, %v6339_v32  ;;  %v10523_v50 = vsel %vm5461_vm12, %v5724_v48, %v5726_v7  ;;  %v5036_v29 = vsel %vm5025_vm10, %v10443_v38, %v5035_v1  ;;  %v5146_v34 = vsel %vm5025_vm10, %v5035_v1, 0.0  ;;  %v7734_v48 = vpop.f32.mrf.mxu0 }
 0x2ff   : > { %v6343_v20 = vsel %vm6342_vm2, %v6101_v63, %v6341_v23  ;;  %v10537_v33 = vsel %vm5025_vm10, 0.0, %v10514_v36  ;;  %v5262_v0 = vrot.slane %v5036_v29, 6  ;;  %v5344_v6 = vrot.slane %v5036_v29, 1 }
 0x300   : > { %v6345_v31 = vsel %vm6344_vm3, %v6105_v2, %v6343_v20  ;;  %v5346_v57 = vrot.slane %v5146_v34, 1  ;;  %v5555_v5 = vsel %vm5025_vm10, %v5553_v62, %v5554_v42  ;;  %v5192_v52 = vrot.slane %v10537_v33, 1 }
 0x301   : > { %v6347_v13 = vsel %vm6346_vm4, %v6109_v27, %v6345_v31  ;;  %v5728_v38 = vrot.slane %v10537_v33, 2  ;;  %v5263_v63 = vsel %vm5257_vm13, %v5261_v40, %v5262_v0  ;;  %v5311_v25 = vmax.f32 %v10405_v41, %v5262_v0  ;;  %v4797_v40 = vpop.f32.mrf.mxu1 }
 0x302   : > { %6406 = vst.msk [vmem:[%s10529_s10] sm:$0xff] %vm6405_vm5, %v6347_v13  ;;  %v5345_v2 = vsel %vm5176_vm11, %v5343_v16, %v5344_v6  ;;  %v5347_v18 = vsel %vm5176_vm11, %v5344_v6, %v5346_v57  ;;  %v5310_v45 = vmax.f32 %v10402_v61, %v5263_v63  ;;  %v5407_v11 = vmax.f32 %v5146_v34, %v5346_v57 }
 0x303   : > { %v5405_v27 = vmax.f32 %v10453_v15, %v5345_v2  ;;  %v5406_v17 = vmax.f32 %v5036_v29, %v5347_v18  ;;  %v5470_v7 = vrot.slane %v5311_v25, 2  ;;  %v4936_v32 = vadd.f32 %v10367_v8, %v10472_v46  ;;  %v7770_v13 = vpop.f32.mrf.mxu1 }
 0x304   : > { %v4939_v41 = vadd.f32 %v10367_v8, %v10474_v58  ;;  %v4667_v1 = vadd.f32 %v4566_v39, %v10286_v3  ;;  %v5468_v16 = vrot.slane %v5310_v45, 2  ;;  %v5603_v31 = vmax.f32 %v5407_v11, %v5554_v42  ;;  %v4579_v58 = vpop.f32.mrf.mxu0 }
 0x305   : > { %v5601_v23 = vmax.f32 %v5405_v27, %v5553_v62  ;;  %v5602_v20 = vmax.f32 %v5406_v17, %v5555_v5  ;;  %v4968_v61 = vmax.f32 %v4936_v32, 0.0  ;;  %v4672_v29 = vadd.f32 %v7734_v48, %v10289_v30 }
 0x306   : > { %v4971_v0 = vmax.f32 %v4939_v41, 0.0  ;;  %v4898_v15 = vadd.f32 %v4797_v40, %v4667_v1  ;;  %v5469_v34 = vsel %vm5461_vm12, %v5467_v56, %v5468_v16  ;;  %v5471_v46 = vsel %vm5461_vm12, %v5468_v16, %v5470_v7 }
 0x307   : > { %v5651_v6 = vrot.slane %v5601_v23, 1  ;;  %v5652_v57 = vrot.slane %v5602_v20, 1  ;;  %v5520_v3 = vmax.f32 %v10418_v37, %v5469_v34  ;;  %v5521_v62 = vmax.f32 %v10421_v10, %v5471_v46  ;;  %v7735_v46 = vpop.f32.mrf.mxu0 }
 0x308   : > { %v5654_v39 = vrot.slane %v5603_v31, 1  ;;  %v10568_v42 = vrot.slane %v4968_v61, 7  ;;  %v5044_v30 = vrot.slane %v4971_v0, 7  ;;  %v4937_v47 = vadd.f32 %v10367_v8, %v4898_v15 }
 0x309   : > { %v5653_v5 = vsel %vm5176_vm11, %v5651_v6, %v5652_v57  ;;  %v4903_v63 = vadd.f32 %v7770_v13, %v4672_v29  ;;  %v4670_v37 = vadd.f32 %v4579_v58, %v10292_v44 }
 0x30a   : > { %v5655_v56 = vsel %vm5176_vm11, %v5652_v57, %v5654_v39  ;;  %v5704_v25 = vmax.f32 %v5520_v3, %v5653_v5  ;;  %v10575_v2 = vsel %vm5025_vm10, 0.0, %v10568_v42  ;;  %v10582_v27 = vsel %vm5025_vm10, %v10514_v36, %v5044_v30 }
 0x30b   : > { %v5705_v10 = vmax.f32 %v5521_v62, %v5655_v56  ;;  %v5264_v18 = vrot.slane %v10575_v2, 6  ;;  %v5348_v45 = vrot.slane %v10575_v2, 1  ;;  %v10586_v11 = vsel %vm5025_vm10, %v5044_v30, 0.0  ;;  %v4810_v30 = vpop.f32.mrf.mxu1 }
 0x30c   : > { %v5776_v17 = vmax.f32 %v5704_v25, %v10520_v19  ;;  %v5193_v48 = vrot.slane %v10582_v27, 1  ;;  %v5729_v7 = vrot.slane %v10582_v27, 2  ;;  %v5195_v40 = vrot.slane %v10586_v11, 1 }
 0x30d   : > { %v5777_v44 = vmax.f32 %v5705_v10, %v10523_v50  ;;  %v10594_v32 = vmax.f32 %v10437_v4, %v5264_v18  ;;  %v5731_v36 = vrot.slane %v10586_v11, 2  ;;  %v4969_v5 = vmax.f32 %v4937_v47, 0.0 }
 0x30e   : > { %v5840_v41 = vcombine.high %v5776_v17, %v5776_v17  ;;  %v5847_v19 = vrot.slane %v5776_v17, %v10386_v53  ;;  %v5194_v1 = vsel %vm5176_vm11, %v5192_v52, %v5193_v48  ;;  %v10601_v16 = vsel %vm5461_vm12, %v5728_v38, %v5729_v7 }
 0x30f   : > { %v5857_v23 = vcombine.high %v5777_v44, %v5777_v44  ;;  %v5864_v50 = vrot.slane %v5777_v44, %v10386_v53  ;;  %v5472_v20 = vrot.slane %v10594_v32, 2  ;;  %v5196_v4 = vsel %vm5176_vm11, %v5193_v48, %v5195_v40 }
 0x310   : > { %v5854_v31 = vrot.slane %v5840_v41, %v10386_v53  ;;  %v5855_v61 = vcombine.high %v5847_v19, %v5847_v19  ;;  %v6113_v0 = vrot.slane %v5847_v19, %v10388_v35  ;;  %v10609_v15 = vmax.f32 %v10537_v33, %v5194_v1 }
 0x311   : > { %v5871_v52 = vrot.slane %v5857_v23, %v10386_v53  ;;  %v5872_v29 = vcombine.high %v5864_v50, %v5864_v50  ;;  %v6129_v38 = vrot.slane %v5864_v50, %v10388_v35  ;;  %v10614_v34 = vmax.f32 %v10582_v27, %v5196_v4 }
 0x312   : > { %v5856_v6 = vcombine.high %v5854_v31, %v5854_v31  ;;  %v6117_v57 = vrot.slane %v5855_v61, %v10388_v35  ;;  %v6121_v58 = vrot.slane %v5854_v31, %v10388_v35  ;;  %v10619_v3 = vsel %vm5461_vm12, %v5729_v7, %v5731_v36  ;;  %v4582_v36 = vpop.f32.mrf.mxu0  ;;  %v7771_v61 = vpop.f32.mrf.mxu1 }
 0x313   : > { %v5873_v62 = vcombine.high %v5871_v52, %v5871_v52  ;;  %v6133_v39 = vrot.slane %v5872_v29, %v10388_v35  ;;  %v6137_v13 = vrot.slane %v5871_v52, %v10388_v35  ;;  %v5556_v10 = vrot.slane %v10609_v15, 7 }
 0x314   : > { %v6125_v56 = vrot.slane %v5856_v6, %v10388_v35  ;;  %v6348_v25 = vsel %vm6334_vm14, %v6117_v57, %v6113_v0  ;;  %v5557_v17 = vrot.slane %v10614_v34, 7  ;;  %v5041_v44 = vrot.slane %v4969_v5, 7 }
 0x315   : > { %v6141_v48 = vrot.slane %v5873_v62, %v10388_v35  ;;  %v6349_v7 = vsel %vm6336_vm15, %v6121_v58, %v6348_v25  ;;  %v4942_v40 = vadd.f32 %v10367_v8, %v4903_v63  ;;  %v4901_v19 = vadd.f32 %v4810_v30, %v4670_v37 }
 0x316   : > { %v6350_v41 = vsel %vm6338_vm0, %v6125_v56, %v6349_v7  ;;  %v5558_v47 = vsel %vm5025_vm10, %v5556_v10, %v5557_v17  ;;  %v4673_v1 = vadd.f32 %v7735_v46, %v10295_v59  ;;  %v5042_v50 = vsel %vm5025_vm10, %v10568_v42, %v5041_v44  ;;  %v4813_v56 = vpop.f32.mrf.mxu1 }
 0x317   : > { %v6351_v23 = vsel %vm6340_vm1, %v6129_v38, %v6350_v41  ;;  %v5148_v4 = vsel %vm5025_vm10, %v5041_v44, 0.0  ;;  %v4974_v31 = vmax.f32 %v4942_v40, 0.0  ;;  %v5265_v0 = vrot.slane %v5042_v50, 6  ;;  %v7738_v38 = vpop.f32.mrf.mxu0 }
 0x318   : > { %v6352_v63 = vsel %vm6342_vm2, %v6133_v39, %v6351_v23  ;;  %v5349_v52 = vrot.slane %v5042_v50, 1  ;;  %v5351_v29 = vrot.slane %v5148_v4, 1  ;;  %v4940_v59 = vadd.f32 %v10367_v8, %v4901_v19 }
 0x319   : > { %v6353_v6 = vsel %vm6344_vm3, %v6137_v13, %v6352_v63  ;;  %v5049_v37 = vrot.slane %v4974_v31, 7  ;;  %v4904_v46 = vadd.f32 %v7771_v61, %v4673_v1  ;;  %v5266_v42 = vsel %vm5257_vm13, %v5264_v18, %v5265_v0  ;;  %v4595_v41 = vpop.f32.mrf.mxu0 }
 0x31a   : > { %v6354_v57 = vsel %vm6346_vm4, %v6141_v48, %v6353_v6  ;;  %v5314_v58 = vmax.f32 %v10483_v43, %v5265_v0  ;;  %v5350_v62 = vsel %vm5176_vm11, %v5348_v45, %v5349_v52  ;;  %v5313_v39 = vmax.f32 %v10480_v14, %v5266_v42 }
 0x31b   : > { %6407 = vst.msk [vmem:[%s10529_s10 + $0x8] sm:$0xff] %vm6405_vm5, %v6354_v57  ;;  %v5352_v13 = vsel %vm5176_vm11, %v5349_v52, %v5351_v29  ;;  %v5408_v5 = vmax.f32 %v10575_v2, %v5350_v62  ;;  %v5410_v30 = vmax.f32 %v5148_v4, %v5351_v29  ;;  %v10654_v18 = vsel %vm5025_vm10, 0.0, %v5049_v37  ;;  %v7739_v29 = vpop.f32.mrf.mxu0 }
 0x31c   : > { %v5409_v25 = vmax.f32 %v5042_v50, %v5352_v13  ;;  %v5475_v48 = vrot.slane %v5314_v58, 2  ;;  %v4972_v43 = vmax.f32 %v4940_v59, 0.0  ;;  %v5473_v7 = vrot.slane %v5313_v39, 2 }
 0x31d   : > { %v5604_v44 = vmax.f32 %v5408_v5, %v5556_v10  ;;  %v5606_v40 = vmax.f32 %v5410_v30, %v5557_v17  ;;  %v5197_v45 = vrot.slane %v10654_v18, 1  ;;  %v5733_v14 = vrot.slane %v10654_v18, 2  ;;  %v7774_v10 = vpop.f32.mrf.mxu1 }
 0x31e   : > { %v5605_v19 = vmax.f32 %v5409_v25, %v5558_v47  ;;  %v10658_v1 = vrot.slane %v4972_v43, 7  ;;  %v4943_v2 = vadd.f32 %v10367_v8, %v4904_v46  ;;  %v5474_v23 = vsel %vm5461_vm12, %v5472_v20, %v5473_v7 }
 0x31f   : > { %v5476_v50 = vsel %vm5461_vm12, %v5473_v7, %v5475_v48  ;;  %v5656_v4 = vrot.slane %v5604_v44, 1  ;;  %v5659_v31 = vrot.slane %v5606_v40, 1  ;;  %v5522_v17 = vmax.f32 %v10503_v26, %v5474_v23  ;;  %v4826_v62 = vpop.f32.mrf.mxu1 }
 0x320   : > { %v5523_v61 = vmax.f32 %v10508_v60, %v5476_v50  ;;  %v5657_v47 = vrot.slane %v5605_v19, 1  ;;  %v10669_v63 = vsel %vm5025_vm10, 0.0, %v10658_v1  ;;  %v4975_v52 = vmax.f32 %v4943_v2, 0.0 }
 0x321   : > { %v5267_v0 = vrot.slane %v10669_v63, 6  ;;  %v5353_v32 = vrot.slane %v10669_v63, 1  ;;  %v4671_v20 = vadd.f32 %v4582_v36, %v10298_v9  ;;  %v4676_v26 = vadd.f32 %v7738_v38, %v10301_v49 }
 0x322   : > { %v5658_v6 = vsel %vm5176_vm11, %v5656_v4, %v5657_v47  ;;  %v5660_v59 = vsel %vm5176_vm11, %v5657_v47, %v5659_v31  ;;  %v4674_v60 = vadd.f32 %v4595_v41, %v10304_v24  ;;  %v5050_v58 = vrot.slane %v4975_v52, 7 }
 0x323   : > { %v5706_v46 = vmax.f32 %v5522_v17, %v5658_v6  ;;  %v5707_v57 = vmax.f32 %v5523_v61, %v5660_v59  ;;  %v10681_v42 = vmax.f32 %v10537_v33, %v5267_v0  ;;  %v4902_v39 = vadd.f32 %v4813_v56, %v4671_v20 }
 0x324   : > { %v4907_v9 = vadd.f32 %v7774_v10, %v4676_v26  ;;  %v4905_v36 = vadd.f32 %v4826_v62, %v4674_v60  ;;  %v4677_v13 = vadd.f32 %v7739_v29, %v10307_v28  ;;  %v10688_v38 = vsel %vm5025_vm10, %v5049_v37, %v5050_v58  ;;  %v4598_v60 = vpop.f32.mrf.mxu0 }
 0x325   : > { %v5778_v5 = vmax.f32 %v5706_v46, %v10601_v16  ;;  %v5779_v49 = vmax.f32 %v5707_v57, %v10619_v3  ;;  %v5477_v24 = vrot.slane %v10681_v42, 2  ;;  %v10691_v30 = vsel %vm5025_vm10, %v5050_v58, 0.0 }
 0x326   : > { %v5198_v33 = vrot.slane %v10688_v38, 1  ;;  %v5734_v56 = vrot.slane %v10688_v38, 2  ;;  %v4941_v25 = vadd.f32 %v10367_v8, %v4902_v39  ;;  %v5200_v37 = vrot.slane %v10691_v30, 1  ;;  %v7775_v39 = vpop.f32.mrf.mxu1 }
 0x327   : > { %v5874_v48 = vcombine.high %v5778_v5, %v5778_v5  ;;  %v5881_v28 = vrot.slane %v5778_v5, %v10386_v53  ;;  %v5891_v16 = vcombine.high %v5779_v49, %v5779_v49  ;;  %v5898_v3 = vrot.slane %v5779_v49, %v10386_v53 }
 0x328   : > { %v5199_v43 = vsel %vm5176_vm11, %v5197_v45, %v5198_v33  ;;  %v10701_v7 = vsel %vm5461_vm12, %v5733_v14, %v5734_v56  ;;  %v5736_v44 = vrot.slane %v10691_v30, 2  ;;  %v5201_v4 = vsel %vm5176_vm11, %v5198_v33, %v5200_v37 }
 0x329   : > { %v5888_v40 = vrot.slane %v5874_v48, %v10386_v53  ;;  %v5889_v41 = vcombine.high %v5881_v28, %v5881_v28  ;;  %v5905_v19 = vrot.slane %v5891_v16, %v10386_v53  ;;  %v5906_v2 = vcombine.high %v5898_v3, %v5898_v3 }
 0x32a   : > { %v6145_v23 = vrot.slane %v5881_v28, %v10388_v35  ;;  %v6161_v50 = vrot.slane %v5898_v3, %v10388_v35  ;;  %v10710_v45 = vmax.f32 %v10654_v18, %v5199_v43  ;;  %v10717_v52 = vmax.f32 %v10688_v38, %v5201_v4 }
 0x32b   : > { %v5890_v31 = vcombine.high %v5888_v40, %v5888_v40  ;;  %v5907_v14 = vcombine.high %v5905_v19, %v5905_v19  ;;  %v6149_v10 = vrot.slane %v5889_v41, %v10388_v35  ;;  %v6153_v17 = vrot.slane %v5888_v40, %v10388_v35 }
 0x32c   : > { %v6165_v61 = vrot.slane %v5906_v2, %v10388_v35  ;;  %v6169_v47 = vrot.slane %v5905_v19, %v10388_v35  ;;  %v10720_v20 = vsel %vm5461_vm12, %v5734_v56, %v5736_v44  ;;  %v4973_v26 = vmax.f32 %v4941_v25, 0.0 }
 0x32d   : > { %v6157_v29 = vrot.slane %v5890_v31, %v10388_v35  ;;  %v6173_v6 = vrot.slane %v5907_v14, %v10388_v35  ;;  %v6355_v59 = vsel %vm6334_vm14, %v6149_v10, %v6145_v23  ;;  %v5559_v57 = vrot.slane %v10710_v45, 7 }
 0x32e   : > { %v6356_v46 = vsel %vm6336_vm15, %v6153_v17, %v6355_v59  ;;  %v5560_v58 = vrot.slane %v10717_v52, 7  ;;  %v4946_v62 = vadd.f32 %v10367_v8, %v4907_v9  ;;  %v5047_v49 = vrot.slane %v4973_v26, 7 }
 0x32f   : > { %v6357_v5 = vsel %vm6338_vm0, %v6157_v29, %v6356_v46  ;;  %v4944_v33 = vadd.f32 %v10367_v8, %v4905_v36  ;;  %v4908_v56 = vadd.f32 %v7775_v39, %v4677_v13  ;;  %v4675_v16 = vadd.f32 %v4598_v60, %v10310_v55 }
 0x330   : > { %v6358_v48 = vsel %vm6340_vm1, %v6161_v50, %v6357_v5  ;;  %v5561_v25 = vsel %vm5025_vm10, %v5559_v57, %v5560_v58  ;;  %v4978_v28 = vmax.f32 %v4946_v62, 0.0  ;;  %v5048_v9 = vsel %vm5025_vm10, %v10658_v1, %v5047_v49 }
 0x331   : > { %v6359_v3 = vsel %vm6342_vm2, %v6165_v61, %v6358_v48  ;;  %v5150_v43 = vsel %vm5025_vm10, %v5047_v49, 0.0  ;;  %v4976_v37 = vmax.f32 %v4944_v33, 0.0  ;;  %v5268_v36 = vrot.slane %v5048_v9, 6  ;;  %v7742_v61 = vpop.f32.mrf.mxu0 }
 0x332   : > { %v6360_v44 = vsel %vm6344_vm3, %v6169_v47, %v6359_v3  ;;  %v5354_v13 = vrot.slane %v5048_v9, 1  ;;  %v5356_v40 = vrot.slane %v5150_v43, 1  ;;  %v5055_v19 = vrot.slane %v4978_v28, 7 }
 0x333   : > { %v6361_v41 = vsel %vm6346_vm4, %v6173_v6, %v6360_v44  ;;  %v10740_v2 = vrot.slane %v4976_v37, 7  ;;  %v4947_v55 = vadd.f32 %v10367_v8, %v4908_v56  ;;  %v5269_v1 = vsel %vm5257_vm13, %v5267_v0, %v5268_v36  ;;  %v4611_v33 = vpop.f32.mrf.mxu0 }
 0x334   : > { %6408 = vst.msk [vmem:[%s10529_s10 + $0x10] sm:$0xff] %vm6405_vm5, %v6361_v41  ;;  %v5317_v23 = vmax.f32 %v10586_v11, %v5268_v36  ;;  %v5355_v50 = vsel %vm5176_vm11, %v5353_v32, %v5354_v13  ;;  %v5357_v4 = vsel %vm5176_vm11, %v5354_v13, %v5356_v40  ;;  %v5316_v31 = vmax.f32 %v10582_v27, %v5269_v1 }
 0x335   : > { %v5411_v14 = vmax.f32 %v10669_v63, %v5355_v50  ;;  %v5412_v10 = vmax.f32 %v5048_v9, %v5357_v4  ;;  %v5413_v17 = vmax.f32 %v5150_v43, %v5356_v40  ;;  %v10756_v29 = vsel %vm5025_vm10, 0.0, %v5055_v19 }
 0x336   : > { %v5480_v47 = vrot.slane %v5317_v23, 2  ;;  %v10760_v11 = vsel %vm5025_vm10, 0.0, %v10740_v2  ;;  %v4979_v0 = vmax.f32 %v4947_v55, 0.0  ;;  %v5478_v6 = vrot.slane %v5316_v31, 2 }
 0x337   : > { %v5607_v32 = vmax.f32 %v5411_v14, %v5559_v57  ;;  %v5608_v59 = vmax.f32 %v5412_v10, %v5561_v25  ;;  %v5609_v26 = vmax.f32 %v5413_v17, %v5560_v58  ;;  %v5202_v27 = vrot.slane %v10756_v29, 1  ;;  %v4829_v25 = vpop.f32.mrf.mxu1 }
 0x338   : > { %v5738_v63 = vrot.slane %v10756_v29, 2  ;;  %v5270_v60 = vrot.slane %v10760_v11, 6  ;;  %v5358_v46 = vrot.slane %v10760_v11, 1  ;;  %v5479_v62 = vsel %vm5461_vm12, %v5477_v24, %v5478_v6 }
 0x339   : > { %v5481_v39 = vsel %vm5461_vm12, %v5478_v6, %v5480_v47  ;;  %v5661_v5 = vrot.slane %v5607_v32, 1  ;;  %v5662_v49 = vrot.slane %v5608_v59, 1  ;;  %v5524_v57 = vmax.f32 %v10609_v15, %v5479_v62  ;;  %v7778_v41 = vpop.f32.mrf.mxu1 }
 0x33a   : > { %v5525_v58 = vmax.f32 %v10614_v34, %v5481_v39  ;;  %v5664_v56 = vrot.slane %v5609_v26, 1  ;;  %v10775_v48 = vmax.f32 %v10654_v18, %v5270_v60  ;;  %v5056_v28 = vrot.slane %v4979_v0, 7  ;;  %v7743_v0 = vpop.f32.mrf.mxu0 }
 0x33b   : > { %v5663_v42 = vsel %vm5176_vm11, %v5661_v5, %v5662_v49  ;;  %v4906_v24 = vadd.f32 %v4829_v25, %v4675_v16  ;;  %v4680_v3 = vadd.f32 %v7742_v61, %v10313_v21  ;;  %v10782_v34 = vadd.f32 %v4611_v33, %v10316_v54 }
 0x33c   : > { %v5665_v9 = vsel %vm5176_vm11, %v5662_v49, %v5664_v56  ;;  %v5708_v43 = vmax.f32 %v5524_v57, %v5663_v42  ;;  %v5482_v15 = vrot.slane %v10775_v48, 2  ;;  %v10785_v44 = vsel %vm5025_vm10, %v5055_v19, %v5056_v28  ;;  %v4842_v49 = vpop.f32.mrf.mxu1 }
 0x33d   : > { %v5709_v37 = vmax.f32 %v5525_v58, %v5665_v9  ;;  %v10788_v18 = vsel %vm5025_vm10, %v5056_v28, 0.0  ;;  %v4945_v36 = vadd.f32 %v10367_v8, %v4906_v24  ;;  %v5203_v21 = vrot.slane %v10785_v44, 1  ;;  %v4614_v24 = vpop.f32.mrf.mxu0 }
 0x33e   : > { %v5780_v16 = vmax.f32 %v5708_v43, %v10701_v7  ;;  %v5205_v13 = vrot.slane %v10788_v18, 1  ;;  %v5739_v40 = vrot.slane %v10785_v44, 2  ;;  %v5741_v55 = vrot.slane %v10788_v18, 2 }
 0x33f   : > { %v5781_v54 = vmax.f32 %v5709_v37, %v10720_v20  ;;  %v4977_v19 = vmax.f32 %v4945_v36, 0.0  ;;  %v4911_v1 = vadd.f32 %v7778_v41, %v4680_v3  ;;  %v5204_v8 = vsel %vm5176_vm11, %v5202_v27, %v5203_v21 }
 0x340   : > { %v5908_v23 = vcombine.high %v5780_v16, %v5780_v16  ;;  %v5915_v50 = vrot.slane %v5780_v16, %v10386_v53  ;;  %v5206_v7 = vsel %vm5176_vm11, %v5203_v21, %v5205_v13  ;;  %v10802_v14 = vmax.f32 %v10756_v29, %v5204_v8  ;;  %v10834_v13 = vld [vmem:[%s11124_s2] ss:$0 sm:$0xff] }
 0x341   : > { %v5925_v4 = vcombine.high %v5781_v54, %v5781_v54  ;;  %v5932_v31 = vrot.slane %v5781_v54, %v10386_v53  ;;  %v10805_v10 = vmax.f32 %v10785_v44, %v5206_v7  ;;  %v10810_v47 = vsel %vm5461_vm12, %v5738_v63, %v5739_v40  ;;  %v7746_v7 = vpop.f32.mrf.mxu0 }
 0x342   : > { %v5922_v20 = vrot.slane %v5908_v23, %v10386_v53  ;;  %v5923_v17 = vcombine.high %v5915_v50, %v5915_v50  ;;  %v6177_v61 = vrot.slane %v5915_v50, %v10388_v35  ;;  %v10815_v26 = vsel %vm5461_vm12, %v5739_v40, %v5741_v55  ;;  %v7779_v40 = vpop.f32.mrf.mxu1 }
 0x343   : > { %v5939_v6 = vrot.slane %v5925_v4, %v10386_v53  ;;  %v5940_v32 = vcombine.high %v5932_v31, %v5932_v31  ;;  %v6193_v59 = vrot.slane %v5932_v31, %v10388_v35  ;;  %v5053_v5 = vrot.slane %v4977_v19, 7 }
 0x344   : > { %v5924_v27 = vcombine.high %v5922_v20, %v5922_v20  ;;  %v6181_v62 = vrot.slane %v5923_v17, %v10388_v35  ;;  %v6185_v39 = vrot.slane %v5922_v20, %v10388_v35  ;;  %v5562_v58 = vrot.slane %v10802_v14, 7 }
 0x345   : > { %v5941_v33 = vcombine.high %v5939_v6, %v5939_v6  ;;  %v6197_v63 = vrot.slane %v5940_v32, %v10388_v35  ;;  %v6201_v57 = vrot.slane %v5939_v6, %v10388_v35  ;;  %v5054_v42 = vsel %vm5025_vm10, %v10740_v2, %v5053_v5  ;;  %v4845_v6 = vpop.f32.mrf.mxu1 }
 0x346   : > { %v6189_v56 = vrot.slane %v5924_v27, %v10388_v35  ;;  %v6362_v25 = vsel %vm6334_vm14, %v6181_v62, %v6177_v61  ;;  %v5152_v28 = vsel %vm5025_vm10, %v5053_v5, 0.0  ;;  %v5271_v43 = vrot.slane %v5054_v42, 6 }
 0x347   : > { %v6205_v3 = vrot.slane %v5941_v33, %v10388_v35  ;;  %v6363_v9 = vsel %vm6336_vm15, %v6185_v39, %v6362_v25  ;;  %v5359_v37 = vrot.slane %v5054_v42, 1  ;;  %v5361_v16 = vrot.slane %v5152_v28, 1  ;;  %v4627_v33 = vpop.f32.mrf.mxu0 }
 0x348   : > { %v6364_v36 = vsel %vm6338_vm0, %v6189_v56, %v6363_v9  ;;  %v5563_v21 = vrot.slane %v10805_v10, 7  ;;  %v4950_v2 = vadd.f32 %v10834_v13, %v4911_v1  ;;  %v5272_v54 = vsel %vm5257_vm13, %v5270_v60, %v5271_v43 }
 0x349   : > { %v6365_v41 = vsel %vm6340_vm1, %v6193_v59, %v6364_v36  ;;  %v5320_v55 = vmax.f32 %v10691_v30, %v5271_v43  ;;  %v5360_v19 = vsel %vm5176_vm11, %v5358_v46, %v5359_v37  ;;  %v5319_v50 = vmax.f32 %v10688_v38, %v5272_v54 }
 0x34a   : > { %v6366_v23 = vsel %vm6342_vm2, %v6197_v63, %v6365_v41  ;;  %v5362_v1 = vsel %vm5176_vm11, %v5359_v37, %v5361_v16  ;;  %v5414_v8 = vmax.f32 %v10760_v11, %v5360_v19  ;;  %v5416_v60 = vmax.f32 %v5152_v28, %v5361_v16  ;;  %v7747_v37 = vpop.f32.mrf.mxu0 }
 0x34b   : > { %v6367_v4 = vsel %vm6344_vm3, %v6201_v57, %v6366_v23  ;;  %v5415_v31 = vmax.f32 %v5054_v42, %v5362_v1  ;;  %v5485_v20 = vrot.slane %v5320_v55, 2  ;;  %v5483_v17 = vrot.slane %v5319_v50, 2  ;;  %v11739_v23 = vld [vmem:[#allocation64_spill] sm:$0xff] }
 0x34c   : > { %v6368_v30 = vsel %vm6346_vm4, %v6205_v3, %v6367_v4  ;;  %v5564_v61 = vsel %vm5025_vm10, %v5562_v58, %v5563_v21  ;;  %v5610_v46 = vmax.f32 %v5414_v8, %v5562_v58  ;;  %v5612_v32 = vmax.f32 %v5416_v60, %v5563_v21 }
 0x34d   : > { %6409 = vst.msk [vmem:[%s10529_s10 + $0x18] sm:$0xff] %vm6405_vm5, %v6368_v30  ;;  %v5611_v38 = vmax.f32 %v5415_v31, %v5564_v61  ;;  %v4982_v59 = vmax.f32 %v4950_v2, 0.0  ;;  %v4909_v11 = vadd.f32 %v4842_v49, %v10782_v34  ;;  %v5484_v27 = vsel %vm5461_vm12, %v5482_v15, %v5483_v17  ;;  %v7782_v49 = vpop.f32.mrf.mxu1 }
 0x34e   : > { %v5486_v62 = vsel %vm5461_vm12, %v5483_v17, %v5485_v20  ;;  %v5666_v39 = vrot.slane %v5610_v46, 1  ;;  %v4681_v5 = vadd.f32 %v7743_v0, %v10319_v51  ;;  %v5526_v63 = vmax.f32 %v10710_v45, %v5484_v27  ;;  %v11738_v0 = vld [vmem:[#allocation54_spill] sm:$0xff] }
 0x34f   : > { %v5527_v57 = vmax.f32 %v10717_v52, %v5486_v62  ;;  %v5667_v58 = vrot.slane %v5611_v38, 1  ;;  %v5669_v56 = vrot.slane %v5612_v32, 1  ;;  %v5061_v25 = vrot.slane %v4982_v59, 7 }
 0x350   : > { %v4948_v42 = vadd.f32 %v10834_v13, %v4909_v11  ;;  %v4912_v34 = vadd.f32 %v7779_v40, %v4681_v5  ;;  %v4679_v48 = vadd.f32 %v4614_v24, %v10322_v22  ;;  %v4684_v51 = vadd.f32 %v7746_v7, %v10325_v12  ;;  %v4858_v40 = vpop.f32.mrf.mxu1 }
 0x351   : > { %v5668_v15 = vsel %vm5176_vm11, %v5666_v39, %v5667_v58  ;;  %v5670_v28 = vsel %vm5176_vm11, %v5667_v58, %v5669_v56  ;;  %v4682_v3 = vadd.f32 %v4627_v33, %v11738_v0  ;;  %v10869_v52 = vsel %vm5025_vm10, 0.0, %v5061_v25 }
 0x352   : > { %v5710_v45 = vmax.f32 %v5526_v63, %v5668_v15  ;;  %v5711_v9 = vmax.f32 %v5527_v57, %v5670_v28  ;;  %v4980_v43 = vmax.f32 %v4948_v42, 0.0  ;;  %v5207_v36 = vrot.slane %v10869_v52, 1 }
 0x353   : > { %v5743_v16 = vrot.slane %v10869_v52, 2  ;;  %v4951_v22 = vadd.f32 %v10834_v13, %v4912_v34  ;;  %v4910_v24 = vadd.f32 %v4845_v6, %v4679_v48  ;;  %v4915_v41 = vadd.f32 %v7782_v49, %v4684_v51 }
 0x354   : > { %v5782_v21 = vmax.f32 %v5710_v45, %v10810_v47  ;;  %v5783_v12 = vmax.f32 %v5711_v9, %v10815_v26  ;;  %v5058_v2 = vrot.slane %v4980_v43, 7  ;;  %v4913_v19 = vadd.f32 %v4858_v40, %v4682_v3 }
 0x355   : > { %v4983_v54 = vmax.f32 %v4951_v22, 0.0  ;;  %v4949_v55 = vadd.f32 %v10834_v13, %v4910_v24  ;;  %v10878_v50 = vadd.f32 %v7747_v37, %v11739_v23  ;;  %v4954_v60 = vadd.f32 %v10834_v13, %v4915_v41 }
 0x356   : > { %v5942_v1 = vcombine.high %v5782_v21, %v5782_v21  ;;  %v5949_v8 = vrot.slane %v5782_v21, %v10386_v53  ;;  %v5959_v7 = vcombine.high %v5783_v12, %v5783_v12  ;;  %v5966_v4 = vrot.slane %v5783_v12, %v10386_v53  ;;  %v4630_v21 = vpop.f32.mrf.mxu0 }
 0x357   : > { %v10883_v47 = vsel %vm5025_vm10, 0.0, %v5058_v2  ;;  %v5062_v26 = vrot.slane %v4983_v54, 7  ;;  %v4981_v31 = vmax.f32 %v4949_v55, 0.0  ;;  %v4986_v9 = vmax.f32 %v4954_v60, 0.0 }
 0x358   : > { %v5956_v20 = vrot.slane %v5942_v1, %v10386_v53  ;;  %v5957_v30 = vcombine.high %v5949_v8, %v5949_v8  ;;  %v5973_v17 = vrot.slane %v5959_v7, %v10386_v53  ;;  %v5974_v61 = vcombine.high %v5966_v4, %v5966_v4 }
 0x359   : > { %v6209_v46 = vrot.slane %v5949_v8, %v10388_v35  ;;  %v6225_v6 = vrot.slane %v5966_v4, %v10388_v35  ;;  %v5273_v38 = vrot.slane %v10883_v47, 6  ;;  %v5363_v32 = vrot.slane %v10883_v47, 1  ;;  %v7783_v8 = vpop.f32.mrf.mxu1 }
 0x35a   : > { %v5958_v59 = vcombine.high %v5956_v20, %v5956_v20  ;;  %v5975_v11 = vcombine.high %v5973_v17, %v5973_v17  ;;  %v6213_v27 = vrot.slane %v5957_v30, %v10388_v35  ;;  %v6217_v62 = vrot.slane %v5956_v20, %v10388_v35  ;;  %v7750_v30 = vpop.f32.mrf.mxu0 }
 0x35b   : > { %v6229_v39 = vrot.slane %v5974_v61, %v10388_v35  ;;  %v6233_v5 = vrot.slane %v5973_v17, %v10388_v35  ;;  %v5321_v33 = vmax.f32 %v10756_v29, %v5273_v38  ;;  %v10898_v63 = vsel %vm5025_vm10, %v5061_v25, %v5062_v26 }
 0x35c   : > { %v6221_v57 = vrot.slane %v5958_v59, %v10388_v35  ;;  %v6237_v58 = vrot.slane %v5975_v11, %v10388_v35  ;;  %v6369_v56 = vsel %vm6334_vm14, %v6213_v27, %v6209_v46  ;;  %v10904_v42 = vsel %vm5025_vm10, %v5062_v26, 0.0  ;;  %v4861_v27 = vpop.f32.mrf.mxu1 }
 0x35d   : > { %v6370_v34 = vsel %vm6336_vm15, %v6217_v62, %v6369_v56  ;;  %v5487_v49 = vrot.slane %v5321_v33, 2  ;;  %v5208_v48 = vrot.slane %v10898_v63, 1  ;;  %v5210_v15 = vrot.slane %v10904_v42, 1 }
 0x35e   : > { %v6371_v29 = vsel %vm6338_vm0, %v6221_v57, %v6370_v34  ;;  %v5744_v25 = vrot.slane %v10898_v63, 2  ;;  %v5746_v28 = vrot.slane %v10904_v42, 2  ;;  %v5059_v51 = vrot.slane %v4981_v31, 7 }
 0x35f   : > { %v6372_v0 = vsel %vm6340_vm1, %v6225_v6, %v6371_v29  ;;  %v5209_v3 = vsel %vm5176_vm11, %v5207_v36, %v5208_v48  ;;  %v5211_v45 = vsel %vm5176_vm11, %v5208_v48, %v5210_v15  ;;  %v5067_v4 = vrot.slane %v4986_v9, 7 }
 0x360   : > { %v6373_v43 = vsel %vm6342_vm2, %v6229_v39, %v6372_v0  ;;  %v10917_v37 = vmax.f32 %v10869_v52, %v5209_v3  ;;  %v10920_v22 = vmax.f32 %v10898_v63, %v5211_v45  ;;  %v5745_v24 = vsel %vm5461_vm12, %v5743_v16, %v5744_v25 }
 0x361   : > { %v6374_v12 = vsel %vm6344_vm3, %v6233_v5, %v6373_v43  ;;  %v5747_v40 = vsel %vm5461_vm12, %v5744_v25, %v5746_v28  ;;  %v5060_v36 = vsel %vm5025_vm10, %v5058_v2, %v5059_v51  ;;  %v5154_v41 = vsel %vm5025_vm10, %v5059_v51, 0.0  ;;  %v7786_v28 = vpop.f32.mrf.mxu1 }
 0x362   : > { %v6375_v54 = vsel %vm6346_vm4, %v6237_v58, %v6374_v12  ;;  %v5274_v55 = vrot.slane %v5060_v36, 6  ;;  %v5364_v23 = vrot.slane %v5060_v36, 1  ;;  %v5366_v1 = vrot.slane %v5154_v41, 1 }
 0x363   : > { %6410 = vst.msk [vmem:[%s10529_s10 + $0x20] sm:$0xff] %vm6405_vm5, %v6375_v54  ;;  %v5565_v7 = vrot.slane %v10917_v37, 7  ;;  %v5566_v16 = vrot.slane %v10920_v22, 7  ;;  %v4952_v26 = vadd.f32 %v10834_v13, %v4913_v19  ;;  %v10941_v19 = vsel %vm5025_vm10, 0.0, %v5067_v4 }
 0x364   : > { %v5275_v31 = vsel %vm5257_vm13, %v5273_v38, %v5274_v55  ;;  %v5323_v2 = vmax.f32 %v10788_v18, %v5274_v55  ;;  %v5365_v60 = vsel %vm5176_vm11, %v5363_v32, %v5364_v23  ;;  %v5367_v20 = vsel %vm5176_vm11, %v5364_v23, %v5366_v1  ;;  %v11742_v55 = vld [vmem:[#allocation15_spill] sm:$0xff] }
 0x365   : > { %v5322_v17 = vmax.f32 %v10785_v44, %v5275_v31  ;;  %v5417_v61 = vmax.f32 %v10883_v47, %v5365_v60  ;;  %v5418_v46 = vmax.f32 %v5060_v36, %v5367_v20  ;;  %v5419_v6 = vmax.f32 %v5154_v41, %v5366_v1  ;;  %v4643_v47 = vpop.f32.mrf.mxu0  ;;  %v11743_v60 = vld [vmem:[#allocation7_spill] sm:$0xff] }
 0x366   : > { %v5490_v59 = vrot.slane %v5323_v2, 2  ;;  %v5567_v11 = vsel %vm5025_vm10, %v5565_v7, %v5566_v16  ;;  %v4984_v38 = vmax.f32 %v4952_v26, 0.0  ;;  %v5212_v5 = vrot.slane %v10941_v19, 1 }
 0x367   : > { %v5488_v18 = vrot.slane %v5322_v17, 2  ;;  %v5613_v62 = vmax.f32 %v5417_v61, %v5565_v7  ;;  %v5614_v32 = vmax.f32 %v5418_v46, %v5567_v11  ;;  %v5615_v39 = vmax.f32 %v5419_v6, %v5566_v16  ;;  %v7751_v12 = vpop.f32.mrf.mxu0  ;;  %v4874_v16 = vpop.f32.mrf.mxu1 }
 0x368   : > { %v10944_v33 = vrot.slane %v4984_v38, 7  ;;  %v4916_v44 = vadd.f32 %v7783_v8, %v10878_v50  ;;  %v5748_v50 = vrot.slane %v10941_v19, 2  ;;  %v4686_v23 = vadd.f32 %v4643_v47, %v11742_v55 }
 0x369   : > { %v5489_v57 = vsel %vm5461_vm12, %v5487_v49, %v5488_v18  ;;  %v5491_v58 = vsel %vm5461_vm12, %v5488_v18, %v5490_v59  ;;  %v5671_v56 = vrot.slane %v5613_v62, 1  ;;  %v5672_v34 = vrot.slane %v5614_v32, 1 }
 0x36a   : > { %v5528_v48 = vmax.f32 %v10802_v14, %v5489_v57  ;;  %v5529_v15 = vmax.f32 %v10805_v10, %v5491_v58  ;;  %v5674_v29 = vrot.slane %v5615_v39, 1  ;;  %v10953_v25 = vsel %vm5025_vm10, 0.0, %v10944_v33  ;;  %v11740_v14 = vld [vmem:[#allocation65_spill] sm:$0xff] }
 0x36b   : > { %v5673_v51 = vsel %vm5176_vm11, %v5671_v56, %v5672_v34  ;;  %v5276_v49 = vrot.slane %v10953_v25, 6  ;;  %v4955_v0 = vadd.f32 %v10834_v13, %v4916_v44  ;;  %v4683_v9 = vadd.f32 %v4630_v21, %v11740_v14  ;;  %v11741_v10 = vld [vmem:[#allocation49_spill] sm:$0xff] }
 0x36c   : > { %v5675_v3 = vsel %vm5176_vm11, %v5672_v34, %v5674_v29  ;;  %v5712_v45 = vmax.f32 %v5528_v48, %v5673_v51  ;;  %v4688_v43 = vadd.f32 %v7750_v30, %v11741_v10  ;;  %v5368_v8 = vrot.slane %v10953_v25, 1 }
 0x36d   : > { %v5713_v36 = vmax.f32 %v5529_v15, %v5675_v3  ;;  %v10965_v41 = vmax.f32 %v10869_v52, %v5276_v49  ;;  %v4987_v54 = vmax.f32 %v4955_v0, 0.0  ;;  %v4914_v7 = vadd.f32 %v4861_v27, %v4683_v9 }
 0x36e   : > { %v5784_v1 = vmax.f32 %v5712_v45, %v5745_v24  ;;  %v4919_v26 = vadd.f32 %v7786_v28, %v4688_v43  ;;  %v4917_v2 = vadd.f32 %v4874_v16, %v4686_v23  ;;  %v4689_v20 = vadd.f32 %v7751_v12, %v11743_v60  ;;  %v4646_v12 = vpop.f32.mrf.mxu0 }
 0x36f   : > { %v5785_v31 = vmax.f32 %v5713_v36, %v5747_v40  ;;  %v5068_v21 = vrot.slane %v4987_v54, 7  ;;  %v4953_v52 = vadd.f32 %v10834_v13, %v4914_v7 }
 0x370   : > { %v5976_v30 = vcombine.high %v5784_v1, %v5784_v1  ;;  %v5983_v17 = vrot.slane %v5784_v1, %v10386_v53  ;;  %v4958_v61 = vadd.f32 %v10834_v13, %v4919_v26  ;;  %v7787_v26 = vpop.f32.mrf.mxu1 }
 0x371   : > { %v5993_v46 = vcombine.high %v5785_v31, %v5785_v31  ;;  %v6000_v24 = vrot.slane %v5785_v31, %v10386_v53  ;;  %v10975_v6 = vsel %vm5025_vm10, %v5067_v4, %v5068_v21  ;;  %v10978_v59 = vsel %vm5025_vm10, %v5068_v21, 0.0 }
 0x372   : > { %v5990_v40 = vrot.slane %v5976_v30, %v10386_v53  ;;  %v5991_v11 = vcombine.high %v5983_v17, %v5983_v17  ;;  %v6241_v38 = vrot.slane %v5983_v17, %v10388_v35  ;;  %v5213_v27 = vrot.slane %v10975_v6, 1  ;;  %v11744_v17 = vld [vmem:[#allocation8_spill] sm:$0xff] }
 0x373   : > { %v6007_v18 = vrot.slane %v5993_v46, %v10386_v53  ;;  %v6008_v62 = vcombine.high %v6000_v24, %v6000_v24  ;;  %v6257_v32 = vrot.slane %v6000_v24, %v10388_v35  ;;  %v5215_v39 = vrot.slane %v10978_v59, 1 }
 0x374   : > { %v5992_v44 = vcombine.high %v5990_v40, %v5990_v40  ;;  %v6245_v4 = vrot.slane %v5991_v11, %v10388_v35  ;;  %v6249_v47 = vrot.slane %v5990_v40, %v10388_v35  ;;  %v5214_v57 = vsel %vm5176_vm11, %v5212_v5, %v5213_v27 }
 0x375   : > { %v6009_v58 = vcombine.high %v6007_v18, %v6007_v18  ;;  %v6261_v56 = vrot.slane %v6008_v62, %v10388_v35  ;;  %v6265_v34 = vrot.slane %v6007_v18, %v10388_v35  ;;  %v5216_v48 = vsel %vm5176_vm11, %v5213_v27, %v5215_v39 }
 0x376   : > { %v6253_v15 = vrot.slane %v5992_v44, %v10388_v35  ;;  %v6376_v29 = vsel %vm6334_vm14, %v6245_v4, %v6241_v38  ;;  %v10995_v28 = vmax.f32 %v10941_v19, %v5214_v57  ;;  %v10998_v51 = vmax.f32 %v10975_v6, %v5216_v48 }
 0x377   : > { %v6269_v0 = vrot.slane %v6009_v58, %v10388_v35  ;;  %v6377_v5 = vsel %vm6336_vm15, %v6249_v47, %v6376_v29  ;;  %v5749_v3 = vrot.slane %v10975_v6, 2  ;;  %v5751_v45 = vrot.slane %v10978_v59, 2  ;;  %v4877_v58 = vpop.f32.mrf.mxu1 }
 0x378   : > { %v6378_v14 = vsel %vm6338_vm0, %v6253_v15, %v6377_v5  ;;  %v4985_v9 = vmax.f32 %v4953_v52, 0.0  ;;  %v5568_v10 = vrot.slane %v10995_v28, 7  ;;  %v5569_v43 = vrot.slane %v10998_v51, 7 }
 0x379   : > { %v6379_v36 = vsel %vm6340_vm1, %v6257_v32, %v6378_v14  ;;  %v11009_v54 = vsel %vm5461_vm12, %v5748_v50, %v5749_v3  ;;  %v11012_v55 = vsel %vm5461_vm12, %v5749_v3, %v5751_v45  ;;  %v4990_v23 = vmax.f32 %v4958_v61, 0.0 }
 0x37a   : > { %v6380_v1 = vsel %vm6342_vm2, %v6261_v56, %v6379_v36  ;;  %v5065_v7 = vrot.slane %v4985_v9, 7  ;;  %v5570_v16 = vsel %vm5025_vm10, %v5568_v10, %v5569_v43  ;;  %v4956_v31 = vadd.f32 %v10834_v13, %v4917_v2 }
 0x37b   : > { %v6381_v21 = vsel %vm6344_vm3, %v6265_v34, %v6380_v1  ;;  %v5073_v60 = vrot.slane %v4990_v23, 7  ;;  %v4920_v30 = vadd.f32 %v7787_v26, %v4689_v20  ;;  %v4687_v50 = vadd.f32 %v4646_v12, %v11744_v17 }
 0x37c   : > { %v6382_v52 = vsel %vm6346_vm4, %v6269_v0, %v6381_v21  ;;  %v5066_v46 = vsel %vm5025_vm10, %v10944_v33, %v5065_v7  ;;  %v5156_v61 = vsel %vm5025_vm10, %v5065_v7, 0.0  ;;  %v4988_v24 = vmax.f32 %v4956_v31, 0.0 }
 0x37d   : > { %6411 = vst.msk [vmem:[%s10529_s10 + $0x28] sm:$0xff] %vm6405_vm5, %v6382_v52  ;;  %v5277_v40 = vrot.slane %v5066_v46, 6  ;;  %v5369_v11 = vrot.slane %v5066_v46, 1  ;;  %v5371_v38 = vrot.slane %v5156_v61, 1  ;;  %v5142_v2 = vsel %vm5025_vm10, 0.0, %v5073_v60 }
 0x37e   : > { %v5492_v27 = vrot.slane %v10965_v41, 2  ;;  %v5428_v20 = vrot.slane %v5142_v2, 1  ;;  %v5070_v18 = vrot.slane %v4988_v24, 7  ;;  %v4959_v62 = vadd.f32 %v10834_v13, %v4920_v30 }
 0x37f   : > { %v5278_v33 = vsel %vm5257_vm13, %v5276_v49, %v5277_v40  ;;  %v5326_v32 = vmax.f32 %v10904_v42, %v5277_v40  ;;  %v5370_v39 = vsel %vm5176_vm11, %v5368_v8, %v5369_v11  ;;  %v5372_v44 = vsel %vm5176_vm11, %v5369_v11, %v5371_v38 }
 0x380   : > { %v5325_v4 = vmax.f32 %v10898_v63, %v5278_v33  ;;  %v5420_v41 = vmax.f32 %v10953_v25, %v5370_v39  ;;  %v5421_v47 = vmax.f32 %v5066_v46, %v5372_v44  ;;  %v5422_v57 = vmax.f32 %v5156_v61, %v5371_v38 }
 0x381   : > { %v5495_v56 = vrot.slane %v5326_v32, 2  ;;  %v11039_v34 = vsel %vm5025_vm10, 0.0, %v5070_v18  ;;  %v4991_v49 = vmax.f32 %v4959_v62, 0.0  ;;  %v4918_v48 = vadd.f32 %v4877_v58, %v4687_v50 }
 0x382   : > { %v5493_v42 = vrot.slane %v5325_v4, 2  ;;  %v5616_v15 = vmax.f32 %v5420_v41, %v5568_v10  ;;  %v5617_v29 = vmax.f32 %v5421_v47, %v5570_v16  ;;  %v5618_v0 = vmax.f32 %v5422_v57, %v5569_v43 }
 0x383   : > { %v5753_v8 = vrot.slane %v5142_v2, 2  ;;  %v5279_v5 = vrot.slane %v11039_v34, 6  ;;  %v5074_v3 = vrot.slane %v4991_v49, 7  ;;  %v4957_v63 = vadd.f32 %v10834_v13, %v4918_v48 }
 0x384   : > { %v5494_v25 = vsel %vm5461_vm12, %v5492_v27, %v5493_v42  ;;  %v5496_v45 = vsel %vm5461_vm12, %v5493_v42, %v5495_v56  ;;  %v5676_v14 = vrot.slane %v5616_v15, 1  ;;  %v5677_v9 = vrot.slane %v5617_v29, 1 }
 0x385   : > { %v5530_v12 = vmax.f32 %v10917_v37, %v5494_v25  ;;  %v5531_v36 = vmax.f32 %v10920_v22, %v5496_v45  ;;  %v5679_v23 = vrot.slane %v5618_v0, 1  ;;  %v11048_v10 = vmax.f32 %v10941_v19, %v5279_v5 }
 0x386   : > { %v5678_v43 = vsel %vm5176_vm11, %v5676_v14, %v5677_v9  ;;  %v5075_v1 = vsel %vm5025_vm10, %v5073_v60, %v5074_v3  ;;  %v5159_v13 = vsel %vm5025_vm10, %v5074_v3, 0.0  ;;  %v4989_v7 = vmax.f32 %v4957_v63, 0.0 }
 0x387   : > { %v5680_v16 = vsel %vm5176_vm11, %v5677_v9, %v5679_v23  ;;  %v5714_v26 = vmax.f32 %v5530_v12, %v5678_v43  ;;  %v5373_v31 = vrot.slane %v11039_v34, 1  ;;  %v5429_v21 = vrot.slane %v5075_v1, 1 }
 0x388   : > { %v5715_v37 = vmax.f32 %v5531_v36, %v5680_v16  ;;  %v5431_v30 = vrot.slane %v5159_v13, 1  ;;  %v5754_v22 = vrot.slane %v5075_v1, 2  ;;  %v5756_v17 = vrot.slane %v5159_v13, 2 }
 0x389   : > { %v5786_v19 = vmax.f32 %v5714_v26, %v11009_v54  ;;  %v5497_v50 = vrot.slane %v11048_v10, 2  ;;  %v5430_v52 = vsel %vm5176_vm11, %v5428_v20, %v5429_v21  ;;  %v5071_v60 = vrot.slane %v4989_v7, 7 }
 0x38a   : > { %v5787_v46 = vmax.f32 %v5715_v37, %v11012_v55  ;;  %v5432_v61 = vsel %vm5176_vm11, %v5429_v21, %v5431_v30  ;;  %v5435_v24 = vmax.f32 %v5142_v2, %v5430_v52  ;;  %v5755_v40 = vsel %vm5461_vm12, %v5753_v8, %v5754_v22 }
 0x38b   : > { %v6010_v11 = vcombine.high %v5786_v19, %v5786_v19  ;;  %v6017_v38 = vrot.slane %v5786_v19, %v10386_v53  ;;  %v5436_v27 = vmax.f32 %v5075_v1, %v5432_v61  ;;  %v5757_v62 = vsel %vm5461_vm12, %v5754_v22, %v5756_v17 }
 0x38c   : > { %v6027_v33 = vcombine.high %v5787_v46, %v5787_v46  ;;  %v6034_v54 = vrot.slane %v5787_v46, %v10386_v53  ;;  %v5571_v32 = vrot.slane %v5435_v24, 7  ;;  %v5072_v20 = vsel %vm5025_vm10, %v5070_v18, %v5071_v60 }
 0x38d   : > { %v6024_v39 = vrot.slane %v6010_v11, %v10386_v53  ;;  %v6025_v55 = vcombine.high %v6017_v38, %v6017_v38  ;;  %v6273_v44 = vrot.slane %v6017_v38, %v10388_v35  ;;  %v5158_v2 = vsel %vm5025_vm10, %v5071_v60, 0.0 }
 0x38e   : > { %v6041_v4 = vrot.slane %v6027_v33, %v10386_v53  ;;  %v6042_v41 = vcombine.high %v6034_v54, %v6034_v54  ;;  %v6289_v47 = vrot.slane %v6034_v54, %v10388_v35  ;;  %v5280_v57 = vrot.slane %v5072_v20, 6 }
 0x38f   : > { %v6026_v58 = vcombine.high %v6024_v39, %v6024_v39  ;;  %v6277_v56 = vrot.slane %v6025_v55, %v10388_v35  ;;  %v6281_v49 = vrot.slane %v6024_v39, %v10388_v35  ;;  %v5374_v48 = vrot.slane %v5072_v20, 1 }
 0x390   : > { %v6043_v18 = vcombine.high %v6041_v4, %v6041_v4  ;;  %v6293_v42 = vrot.slane %v6042_v41, %v10388_v35  ;;  %v6297_v15 = vrot.slane %v6041_v4, %v10388_v35  ;;  %v5281_v29 = vsel %vm5257_vm13, %v5279_v5, %v5280_v57 }
 0x391   : > { %v6285_v0 = vrot.slane %v6026_v58, %v10388_v35  ;;  %v6383_v8 = vsel %vm6334_vm14, %v6277_v56, %v6273_v44  ;;  %v5328_v3 = vmax.f32 %v10975_v6, %v5281_v29  ;;  %v5329_v63 = vmax.f32 %v10978_v59, %v5280_v57 }
 0x392   : > { %v6301_v25 = vrot.slane %v6043_v18, %v10388_v35  ;;  %v6384_v45 = vsel %vm6336_vm15, %v6281_v49, %v6383_v8  ;;  %v5375_v14 = vsel %vm5176_vm11, %v5373_v31, %v5374_v48  ;;  %v5376_v9 = vrot.slane %v5158_v2, 1 }
 0x393   : > { %v6385_v12 = vsel %vm6338_vm0, %v6285_v0, %v6384_v45  ;;  %v5423_v36 = vmax.f32 %v11039_v34, %v5375_v14  ;;  %v5498_v5 = vrot.slane %v5328_v3, 2  ;;  %v5500_v23 = vrot.slane %v5329_v63, 2 }
 0x394   : > { %v6386_v10 = vsel %vm6340_vm1, %v6289_v47, %v6385_v12  ;;  %v5377_v6 = vsel %vm5176_vm11, %v5374_v48, %v5376_v9  ;;  %v5425_v43 = vmax.f32 %v5158_v2, %v5376_v9  ;;  %v5572_v59 = vrot.slane %v5436_v27, 7 }
 0x395   : > { %v6387_v1 = vsel %vm6342_vm2, %v6293_v42, %v6386_v10  ;;  %v5424_v13 = vmax.f32 %v5072_v20, %v5377_v6  ;;  %v5499_v7 = vsel %vm5461_vm12, %v5497_v50, %v5498_v5  ;;  %v5501_v16 = vsel %vm5461_vm12, %v5498_v5, %v5500_v23 }
 0x396   : > { %v6388_v26 = vsel %vm6344_vm3, %v6297_v15, %v6387_v1  ;;  %v5532_v34 = vmax.f32 %v10995_v28, %v5499_v7  ;;  %v5533_v31 = vmax.f32 %v10998_v51, %v5501_v16  ;;  %v5573_v21 = vsel %vm5025_vm10, %v5571_v32, %v5572_v59 }
 0x397   : > { %v6389_v37 = vsel %vm6346_vm4, %v6301_v25, %v6388_v26  ;;  %v5619_v30 = vmax.f32 %v5423_v36, %v5571_v32  ;;  %v5620_v22 = vmax.f32 %v5424_v13, %v5573_v21  ;;  %v5621_v17 = vmax.f32 %v5425_v43, %v5572_v59 }
 0x398   : > { %6412 = vst.msk [vmem:[%s10529_s10 + $0x30] sm:$0xff] %vm6405_vm5, %v6389_v37 }
 0x399   : > { %v5681_v19 = vrot.slane %v5619_v30, 1  ;;  %v5682_v52 = vrot.slane %v5620_v22, 1  ;;  %v5684_v50 = vrot.slane %v5621_v17, 1 }
 0x39b   : > { %v5683_v60 = vsel %vm5176_vm11, %v5681_v19, %v5682_v52  ;;  %v5685_v46 = vsel %vm5176_vm11, %v5682_v52, %v5684_v50 }
 0x39c   : > { %v5716_v61 = vmax.f32 %v5532_v34, %v5683_v60  ;;  %v5717_v28 = vmax.f32 %v5533_v31, %v5685_v46 }
 0x39e   : > { %v5788_v24 = vmax.f32 %v5716_v61, %v5755_v40  ;;  %v5789_v51 = vmax.f32 %v5717_v28, %v5757_v62 }
 0x3a0   : > { %v6044_v11 = vcombine.high %v5788_v24, %v5788_v24  ;;  %v6051_v38 = vrot.slane %v5788_v24, %v10386_v53  ;;  %v6061_v27 = vcombine.high %v5789_v51, %v5789_v51  ;;  %v6068_v33 = vrot.slane %v5789_v51, %v10386_v53 }
 0x3a2   : > { %v6058_v54 = vrot.slane %v6044_v11, %v10386_v53  ;;  %v6059_v32 = vcombine.high %v6051_v38, %v6051_v38  ;;  %v6075_v20 = vrot.slane %v6061_v27, %v10386_v53  ;;  %v6076_v39 = vcombine.high %v6068_v33, %v6068_v33 }
 0x3a3   : > { %v6305_v44 = vrot.slane %v6051_v38, %v10388_v35  ;;  %v6321_v47 = vrot.slane %v6068_v33, %v10388_v35 }
 0x3a4   : > { %v6060_v55 = vcombine.high %v6058_v54, %v6058_v54  ;;  %v6309_v2 = vrot.slane %v6059_v32, %v10388_v35  ;;  %v6313_v40 = vrot.slane %v6058_v54, %v10388_v35  ;;  %v6077_v62 = vcombine.high %v6075_v20, %v6075_v20 }
 0x3a5   : > { %v6325_v53 = vrot.slane %v6076_v39, %v10388_v35  ;;  %v6329_v56 = vrot.slane %v6075_v20, %v10388_v35 }
 0x3a6   : > { %v6317_v4 = vrot.slane %v6060_v55, %v10388_v35  ;;  %v6390_v41 = vsel %vm6334_vm14, %v6309_v2, %v6305_v44  ;;  %v6333_v48 = vrot.slane %v6077_v62, %v10388_v35 }
 0x3a7   : > { %v6391_v57 = vsel %vm6336_vm15, %v6313_v40, %v6390_v41 }
 0x3a8   : > { %v6392_v58 = vsel %vm6338_vm0, %v6317_v4, %v6391_v57 }
 0x3a9   : > { %v6393_v49 = vsel %vm6340_vm1, %v6321_v47, %v6392_v58 }
 0x3aa   : > { %v6394_v18 = vsel %vm6342_vm2, %v6325_v53, %v6393_v49 }
 0x3ab   : > { %v6395_v42 = vsel %vm6344_vm3, %v6329_v56, %v6394_v18 }
 0x3ac   : > { %v6396_v15 = vsel %vm6346_vm4, %v6333_v48, %v6395_v42 }
 0x3ad   : > { %6413 = vst.msk [vmem:[%s10529_s10 + $0x38] sm:$0xff] %vm6405_vm5, %v6396_v15 }
 0x3ae PF: > { %s13_s12 = sadd.s32 1, %s7857_s12  }
 0x3af   : > { %p10_p4 = scmp.ge.s32.totalorder %s13_s12, 4  }
 0x3b1   :  { %12 = sbr.rel (!%p10_p4) target bundleno = 1 (0x1), region = 77 }

// kernel: cornet_z_tweak_forward.7
= control target key start
LH: loop header
LB: loop body
LE: loop exit
PB: predicated region body
PF: predicated region fallthrough
CT: control target
= control target key end

     0   :  { %s2641_s12 = smov 0   ;;  %s3378_s0 = inlined_call_operand.vmem [shape: f32[2,4,4,128], index: 0, kind: input, shape index: {}]   ;;  %s3379_s1 = inlined_call_operand.vmem [shape: bf16[9,128,256], index: 1, kind: input, shape index: {}]   ;;  %s3380_s2 = inlined_call_operand.vmem [shape: f32[1,256], index: 2, kind: input, shape index: {}]   ;;  %s3381_s3 = inlined_call_operand.vmem [shape: f32[2,2,2,256], index: 3, kind: output, shape index: {}]  }
   0x1 LB: > { %s2089_s13 = sadd.s32 4294967295, %s2616_s12   ;;  %p2093_p0 = scmp.ge.s32.totalorder %s2616_s12, 1  ;;  %s2616_s12 = sphi %s2641_s12, %s13_s12  }
   0x2   : > { %p137_p1 = scmp.lt.s32.totalorder %s2616_s12, 3 }
   0x4   : > { %p138_p2 = pnand %p2093_p0, %p137_p1 }
   0x5   : > { %p161_p3 = scmp.lt.s32.totalorder (!%p138_p2), %s2089_s13, 1 }
   0x6   : > { %141 = sbr.rel (%p138_p2) target bundleno = 428 (0x1ac), region = 32 }
   0xb   : > { %v2394_v0 = vld [vmem:[%s3379_s1 + $0xf4] ss:$8 sps:$4 sm:$0xff]   ;;  %v2618_v2 = vmov 0   ;;  %v2398_v3 = vld [vmem:[%s3379_s1 + $0xf0] ss:$8 sps:$4 sm:$0xff]   ;;  %s3393_s13 = smov (!%p161_p3, %s2089_s13), 1  ;;  %v259_v19 = vlaneseq }
   0xc   : > { %v2396_v1 = vld [vmem:[%s3379_s1 + $0x74] ss:$8 sps:$4 sm:$0xff]   ;;  %498 = vmatprep.mubr.bf16.mxu0 %v2618_v2  ;;  %639 = vmatprep.mubr.bf16.mxu1 %v2618_v2  ;;  %v2399_v4 = vld [vmem:[%s3379_s1 + $0x70] ss:$8 sps:$4 sm:$0xff]   ;;  %v2400_v5 = vld [vmem:[%s3379_s1 + $0xe4] ss:$8 sps:$4 sm:$0xff]  }
   0xd   : > { %466 = vmatprep.subr.bf16.mxu0 %v2394_v0  ;;  %607 = vmatprep.subr.bf16.mxu1 %v2396_v1  ;;  %v2402_v6 = vld [vmem:[%s3379_s1 + $0x64] ss:$8 sps:$4 sm:$0xff]   ;;  %v2404_v7 = vld [vmem:[%s3379_s1 + $0xe0] ss:$8 sps:$4 sm:$0xff]   ;;  %v2406_v9 = vld [vmem:[%s3379_s1 + $0xd4] ss:$8 sps:$4 sm:$0xff]  }
   0xe   : > { %467 = vmatpush1.bf16.msra.mxu0 %v2398_v3  ;;  %608 = vmatpush1.bf16.msra.mxu1 %v2399_v4  ;;  %v2405_v8 = vld [vmem:[%s3379_s1 + $0x60] ss:$8 sps:$4 sm:$0xff]   ;;  %v2408_v10 = vld [vmem:[%s3379_s1 + $0x54] ss:$8 sps:$4 sm:$0xff]   ;;  %v2410_v11 = vld [vmem:[%s3379_s1 + $0xd0] ss:$8 sps:$4 sm:$0xff]  }
   0xf   : > { %468 = vmatprep.subr.bf16.mxu0 %v2400_v5  ;;  %609 = vmatprep.subr.bf16.mxu1 %v2402_v6  ;;  %v2411_v12 = vld [vmem:[%s3379_s1 + $0x50] ss:$8 sps:$4 sm:$0xff]   ;;  %v2412_v13 = vld [vmem:[%s3379_s1 + $0xc4] ss:$8 sps:$4 sm:$0xff]   ;;  %v2416_v15 = vld [vmem:[%s3379_s1 + $0xc0] ss:$8 sps:$4 sm:$0xff]  }
  0x10   : > { %v2414_v14 = vld [vmem:[%s3379_s1 + $0x44] ss:$8 sps:$4 sm:$0xff]   ;;  %v2417_v16 = vld [vmem:[%s3379_s1 + $0x40] ss:$8 sps:$4 sm:$0xff]   ;;  %v2418_v17 = vld [vmem:[%s3379_s1 + $0xb4] ss:$8 sps:$4 sm:$0xff]  }
  0x11   : > { %v2420_v18 = vld [vmem:[%s3379_s1 + $0x34] ss:$8 sps:$4 sm:$0xff]   ;;  %v2422_v20 = vld [vmem:[%s3379_s1 + $0xb0] ss:$8 sps:$4 sm:$0xff]   ;;  %s2381_s29 = sshll.u32 %s3393_s13, 4  ;;  %v183_v26 = vrot.slane %v2618_v2, 7 }
  0x12   : > { %469 = vmatpush1.bf16.msra.mxu0 %v2404_v7  ;;  %610 = vmatpush1.bf16.msra.mxu1 %v2405_v8  ;;  %v2423_v21 = vld [vmem:[%s3379_s1 + $0x30] ss:$8 sps:$4 sm:$0xff]   ;;  %v2619_v22 = vmov 1983009808   ;;  %v2424_v24 = vld [vmem:[%s3379_s1 + $0xa4] ss:$8 sps:$4 sm:$0xff]   ;;  %s165_s9 = scalar_lea.vmem %s3378_s0, %s2381_s29 }
  0x13   : > { %470 = vmatprep.subr.bf16.mxu0 %v2406_v9  ;;  %611 = vmatprep.subr.bf16.mxu1 %v2408_v10  ;;  %v257_v23 = vunpack.c.l.s4 %v2619_v22  ;;  %v2426_v25 = vld [vmem:[%s3379_s1 + $0x24] ss:$8 sps:$4 sm:$0xff]   ;;  %vm220_vm0 = vcmask 1040384   ;;  %vm221_vm1 = vsmask.f32 256  ;;  %v2728_v27 = vshrl.u32 %v259_v19, 7 }
  0x14   : > { %vm229_vm2 = vsmask.f32 2304  ;;  %v2428_v28 = vld [vmem:[%s3379_s1 + $0xa0] ss:$8 sps:$4 sm:$0xff]   ;;  %vm288_vm3 = vsmask.f32 1280  ;;  %vm2750_vm5 = vmand %vm220_vm0, %vm221_vm1 }
  0x15   : > { %v258_v29 = vunpack.c.0.s8 %v257_v23  ;;  %v2429_v30 = vld [vmem:[%s3379_s1 + $0x20] ss:$8 sps:$4 sm:$0xff]   ;;  %v2430_v31 = vld [vmem:[%s3379_s1 + $0x94] ss:$8 sps:$4 sm:$0xff]   ;;  %vm228_vm4 = vcmask 1042432   ;;  %v223_v44 = vsel %vm2750_vm5, 0, %v183_v26 }
  0x16   : > { %471 = vmatpush1.bf16.msra.mxu0 %v2410_v11  ;;  %612 = vmatpush1.bf16.msra.mxu1 %v2411_v12  ;;  %v2432_v32 = vld [vmem:[%s3379_s1 + $0x14] ss:$8 sps:$4 sm:$0xff]   ;;  %v172_v33 = vld [vmem:[%s165_s9] sm:$0xf]  ;;  %v173_v34 = vld [vmem:[%s165_s9 + $0x4] sm:$0xf] }
  0x17   : > { %472 = vmatprep.subr.bf16.mxu0 %v2412_v13  ;;  %613 = vmatprep.subr.bf16.mxu1 %v2414_v14  ;;  %v2434_v35 = vld [vmem:[%s3379_s1 + $0x90] ss:$8 sps:$4 sm:$0xff]   ;;  %v174_v37 = vld [vmem:[%s165_s9 + $0x8] sm:$0xf]  ;;  %v175_v38 = vld [vmem:[%s165_s9 + $0xc] sm:$0xf]  ;;  %v176_v39 = vpack.c.bf16 %v172_v33, %v172_v33  ;;  %v177_v40 = vpack.c.bf16 %v173_v34, %v173_v34  ;;  %v2763_v46 = vsub.s32 %v258_v29, %v2728_v27 }
  0x18   : > { %v2435_v36 = vld [vmem:[%s3379_s1 + $0x10] ss:$8 sps:$4 sm:$0xff]   ;;  %vm289_vm6 = vsmask.f32 3336  ;;  %v178_v42 = vpack.c.bf16 %v174_v37, %v174_v37  ;;  %v179_v43 = vpack.c.bf16 %v175_v38, %v175_v38  ;;  %vm2758_vm7 = vmand %vm228_vm4, %vm229_vm2  ;;  %v2436_v47 = vld [vmem:[%s3379_s1 + $0x84] ss:$8 sps:$4 sm:$0xff]  }
  0x19   : > { %v188_v48 = vshrl.u32 %v176_v39, 16  ;;  %v191_v49 = vshll.u32 %v176_v39, 16  ;;  %v195_v50 = vshrl.u32 %v177_v40, 16  ;;  %v198_v51 = vshll.u32 %v177_v40, 16  ;;  %v2438_v52 = vld [vmem:[%s3379_s1 + $0x4] ss:$8 sps:$4 sm:$0xff]   ;;  %vm2802_vm9 = vmor %vm288_vm3, %vm289_vm6 }
  0x1a   : > { %473 = vmatpush1.bf16.msra.mxu0 %v2416_v15  ;;  %614 = vmatpush1.bf16.msra.mxu1 %v2417_v16  ;;  %v202_v53 = vshrl.u32 %v178_v42, 16  ;;  %v205_v54 = vshll.u32 %v178_v42, 16  ;;  %v209_v55 = vshrl.u32 %v179_v43, 16  ;;  %v212_v56 = vshll.u32 %v179_v43, 16  ;;  %v2440_v60 = vld [vmem:[%s3379_s1 + $0x80] ss:$8 sps:$4 sm:$0xff]  }
  0x1b   : > { %474 = vmatprep.subr.bf16.mxu0 %v2418_v17  ;;  %615 = vmatprep.subr.bf16.mxu1 %v2420_v18  ;;  %v190_v57 = vrot.slane %v188_v48, 7  ;;  %v197_v58 = vrot.slane %v195_v50, 7  ;;  %v2773_v59 = vsel %vm2758_vm7, %v223_v44, 0  ;;  %v2441_v61 = vld [vmem:[%s3379_s1] ss:$8 sps:$4 sm:$0xff]   ;;  %vm650_vm11 = vcmask 1042434  }
  0x1c   : > { %v204_v62 = vrot.slane %v202_v53, 7  ;;  %v211_v63 = vrot.slane %v209_v55, 7  ;;  %v2783_v0 = vrot.slane %v2773_v59, %v2763_v46  ;;  %vm291_vm8 = vsmask.f32 5392  ;;  %v2444_v4 = vld [vmem:[%s3379_s1 + $0x174] ss:$8 sps:$4 sm:$0xff]   ;;  %vm651_vm15 = vmor %vm220_vm0, %vm650_vm11 }
  0x1d   : > { %v193_v1 = vor.u32 %v191_v49, %v190_v57  ;;  %v200_v3 = vor.u32 %v198_v51, %v197_v58  ;;  %v2447_v9 = vld [vmem:[%s3379_s1 + $0x1f4] ss:$8 sps:$4 sm:$0xff]   ;;  %vm293_vm10 = vsmask.f32 7448  ;;  %vm292_vm12 = vmor %vm2802_vm9, %vm291_vm8  ;;  %vm652_vm14 = vcmask 1044484   ;;  %s2382_s6 = sshll.u32 %s3393_s13, 3 }
  0x1e   : > { %475 = vmatpush1.bf16.msra.mxu0 %v2422_v20  ;;  %616 = vmatpush1.bf16.msra.mxu1 %v2423_v21  ;;  %v207_v5 = vor.u32 %v205_v54, %v204_v62  ;;  %v214_v6 = vor.u32 %v212_v56, %v211_v63  ;;  %v2790_v7 = vcombine.high %v2783_v0, %v2783_v0  ;;  %v296_v8 = vshrl.u32 %v2783_v0, 16  ;;  %vm2859_vm13 = vmor %vm292_vm12, %vm293_vm10  ;;  %s170_s9 = scalar_lea.vmem %s3381_s3, %s2382_s6 }
  0x1f   : > { %476 = vmatprep.subr.bf16.mxu0 %v2424_v24  ;;  %617 = vmatprep.subr.bf16.mxu1 %v2426_v25  ;;  %v224_v10 = vsel %vm2750_vm5, 0, %v193_v1  ;;  %v225_v11 = vsel %vm2750_vm5, 0, %v200_v3  ;;  %v299_v13 = vshll.u32 %v2783_v0, 16  ;;  %vm653_vm1 = vmor %vm651_vm15, %vm652_vm14  ;;  %vm654_vm2 = vcmask 1046534  }
  0x20   : > { %v226_v14 = vsel %vm2750_vm5, 0, %v207_v5  ;;  %v227_v15 = vsel %vm2750_vm5, 0, %v214_v6  ;;  %v2813_v16 = vsel %vm2758_vm7, %v224_v10, 0  ;;  %v2817_v17 = vsel %vm2758_vm7, %v225_v11, 0  ;;  %vm2919_vm3 = vmor %vm653_vm1, %vm654_vm2 }
  0x21   : > { %v2821_v18 = vsel %vm2758_vm7, %v226_v14, 0  ;;  %v2825_v19 = vsel %vm2758_vm7, %v227_v15, 0  ;;  %v2829_v20 = vrot.slane %v2813_v16, %v2763_v46  ;;  %v2833_v21 = vrot.slane %v2817_v17, %v2763_v46  ;;  %v2445_v15 = vld [vmem:[%s3379_s1 + $0x1f0] ss:$8 sps:$4 sm:$0xff]  }
  0x22   : > { %477 = vmatpush1.bf16.msra.mxu0 %v2428_v28  ;;  %618 = vmatpush1.bf16.msra.mxu1 %v2429_v30  ;;  %v2837_v22 = vrot.slane %v2821_v18, %v2763_v46  ;;  %v298_v23 = vrot.slane %v296_v8, 6  ;;  %v301_v24 = vrot.slane %v299_v13, 7  ;;  %v305_v25 = vshll.u32 %v2790_v7, 16 }
  0x23   : > { %478 = vmatprep.subr.bf16.mxu0 %v2430_v31  ;;  %619 = vmatprep.subr.bf16.mxu1 %v2432_v32  ;;  %v2845_v26 = vcombine.high %v2829_v20, %v2829_v20  ;;  %v2849_v28 = vcombine.high %v2833_v21, %v2833_v21  ;;  %v310_v29 = vshrl.u32 %v2829_v20, 16  ;;  %v313_v30 = vshll.u32 %v2829_v20, 16 }
  0x24   : > { %v2855_v31 = vcombine.high %v2837_v22, %v2837_v22  ;;  %v302_v32 = vor.u32 %v301_v24, %v298_v23  ;;  %v307_v33 = vrot.slane %v305_v25, 7  ;;  %v324_v34 = vshrl.u32 %v2833_v21, 16  ;;  %v2453_v25 = vld [vmem:[%s3379_s1 + $0x1e4] ss:$8 sps:$4 sm:$0xff]  }
  0x25   : > { %v315_v37 = vrot.slane %v313_v30, 7  ;;  %v319_v38 = vshll.u32 %v2845_v26, 16  ;;  %v327_v39 = vshll.u32 %v2833_v21, 16  ;;  %v333_v42 = vshll.u32 %v2849_v28, 16 }
  0x26   : > { %479 = vmatpush1.bf16.msra.mxu0 %v2434_v35  ;;  %620 = vmatpush1.bf16.msra.mxu1 %v2435_v36  ;;  %v312_v36 = vrot.slane %v310_v29, 6  ;;  %v303_v40 = vrot.slane %v302_v32, 2  ;;  %v326_v41 = vrot.slane %v324_v34, 6  ;;  %v338_v43 = vshrl.u32 %v2837_v22, 16  ;;  %v2442_v34 = vld [vmem:[%s3379_s1 + $0x170] ss:$8 sps:$4 sm:$0xff]  }
  0x27   : > { %480 = vmatprep.subr.bf16.mxu0 %v2436_v47  ;;  %621 = vmatprep.subr.bf16.mxu1 %v2438_v52  ;;  %v321_v45 = vrot.slane %v319_v38, 7  ;;  %v329_v47 = vrot.slane %v327_v39, 7  ;;  %v341_v48 = vshll.u32 %v2837_v22, 16  ;;  %v335_v50 = vrot.slane %v333_v42, 7  ;;  %v2457_v35 = vld [vmem:[%s3379_s1 + $0x1d0] ss:$8 sps:$4 sm:$0xff]  }
  0x28   : > { %v316_v44 = vor.u32 %v315_v37, %v312_v36  ;;  %v2870_v49 = vsel %vm2859_vm13, %v303_v40, %v307_v33  ;;  %v340_v51 = vrot.slane %v338_v43, 6  ;;  %v347_v52 = vshll.u32 %v2855_v31, 16  ;;  %v2451_v36 = vld [vmem:[%s3379_s1 + $0x1e0] ss:$8 sps:$4 sm:$0xff]   ;;  %v2478_v39 = vld [vmem:[%s3379_s1 + $0x110] ss:$8 sps:$4 sm:$0xff]  }
  0x29   : > { %v330_v54 = vor.u32 %v329_v47, %v326_v41  ;;  %v343_v55 = vrot.slane %v341_v48, 7  ;;  %v2875_v56 = vrot.slane %v2825_v19, %v2763_v46  ;;  %v509_v58 = vcombine.low %v2773_v59, %v2813_v16  ;;  %v2459_v41 = vld [vmem:[%s3379_s1 + $0x1d4] ss:$8 sps:$4 sm:$0xff]  }
  0x2a   : > { %481 = vmatpush1.bf16.msra.mxu0 %v2440_v60  ;;  %622 = vmatpush1.bf16.msra.mxu1 %v2441_v61  ;;  %v317_v53 = vrot.slane %v316_v44, 2  ;;  %v349_v57 = vrot.slane %v347_v52, 7  ;;  %v510_v60 = vcombine.low %v2817_v17, %v2821_v18  ;;  %v2148_v40 = vrot.slane %v2833_v21, 9  ;;  %v2450_v21 = vld [vmem:[%s3379_s1 + $0x164] ss:$8 sps:$4 sm:$0xff]  }
  0x2b   : > { %787 = vmatprep.subr.bf16.mxu0 %v2444_v4  ;;  %950 = vmatprep.subr.bf16.mxu1 %v2447_v9  ;;  %v331_v62 = vrot.slane %v330_v54, 2  ;;  %v344_v63 = vor.u32 %v343_v55, %v340_v51  ;;  %v2885_v1 = vcombine.high %v2875_v56, %v2875_v56  ;;  %v1006_v4 = vshrl.u32 %v2875_v56, 16  ;;  %v2465_v52 = vld [vmem:[%s3379_s1 + $0x1c4] ss:$8 sps:$4 sm:$0xff]  }
  0x2c   : > { %v322_v61 = vsel %vm2859_vm13, %v317_v53, %v321_v45  ;;  %v1009_v5 = vshll.u32 %v2875_v56, 16  ;;  %v517_v6 = vrot.slane %v509_v58, %v2763_v46  ;;  %v2897_v11 = vrot.slane %v510_v60, %v2763_v46 }
  0x2d   : > { %v368_v3 = vcombine.low %v2870_v49, %v322_v61  ;;  %v336_v8 = vsel %vm2859_vm13, %v331_v62, %v335_v50  ;;  %v345_v9 = vrot.slane %v344_v63, 2  ;;  %v1015_v10 = vshll.u32 %v2885_v1, 16  ;;  %v2463_v63 = vld [vmem:[%s3379_s1 + $0x1c0] ss:$8 sps:$4 sm:$0xff]  }
  0x2e   : > { %v1008_v12 = vrot.slane %v1006_v4, 6  ;;  %v1011_v13 = vrot.slane %v1009_v5, 7  ;;  %v1036_v14 = vcombine.low %v322_v61, %v336_v8  ;;  %v525_v24 = vcombine.low %v517_v6, %v2897_v11  ;;  %v2454_v4 = vld [vmem:[%s3379_s1 + $0x150] ss:$8 sps:$4 sm:$0xff]   ;;  %v2471_v5 = vld [vmem:[%s3379_s1 + $0x1b4] ss:$8 sps:$4 sm:$0xff]  }
  0x2f   : > { %v350_v23 = vsel %vm2859_vm13, %v345_v9, %v349_v57  ;;  %v376_v30 = vrot.slane %v368_v3, %v2763_v46  ;;  %v1017_v33 = vrot.slane %v1015_v10, 7  ;;  %v2146_v42 = vrot.slane %v2783_v0, 9 }
  0x30   : > { %v369_v29 = vcombine.low %v336_v8, %v350_v23  ;;  %v1012_v32 = vor.u32 %v1011_v13, %v1008_v12  ;;  %640 = vmatmul.mubr.bf16.vlgmr.msra.gmra.mxu1 %v525_v24  ;;  %v666_v43 = vrot.slane %v2849_v28, 7  ;;  %v2149_v44 = vrot.slane %v2837_v22, 9  ;;  %v2462_v8 = vld [vmem:[%s3379_s1 + $0x144] ss:$8 sps:$4 sm:$0xff]   ;;  %v2469_v12 = vld [vmem:[%s3379_s1 + $0x1b0] ss:$8 sps:$4 sm:$0xff]  }
  0x31   : > { %951 = vmatpush1.bf16.msra.mxu1 %v2445_v15  ;;  %982 = vmatprep.mubr.bf16.mxu1 %v2618_v2  ;;  %v658_v48 = vrot.slane %v2790_v7, 7  ;;  %v670_v50 = vrot.slane %v2855_v31, 7  ;;  %v2945_v22 = vrot.slane %v1036_v14, %v2763_v46  ;;  %v2246_v31 = vrot.slane %v2875_v56, 9  ;;  %v2456_v56 = vld [vmem:[%s3379_s1 + $0x154] ss:$8 sps:$4 sm:$0xff]  }
  0x32   : > { %v2917_v37 = vrot.slane %v369_v29, %v2763_v46  ;;  %v1013_v38 = vrot.slane %v1012_v32, 2  ;;  %952 = vmatprep.subr.bf16.mxu1 %v2453_v25  ;;  %v2942_v28 = vsel %vm2919_vm3, %v2148_v40, %v666_v43  ;;  %v1183_v54 = vrot.slane %v2885_v1, 7  ;;  %v2460_v14 = vld [vmem:[%s3379_s1 + $0x140] ss:$8 sps:$4 sm:$0xff]   ;;  %v2477_v15 = vld [vmem:[%s3379_s1 + $0x1a4] ss:$8 sps:$4 sm:$0xff]  }
  0x33   : > { %v2952_v7 = vsel %vm2919_vm3, %v2149_v44, %v670_v50  ;;  %v1364_v55 = vcombine.low %v2825_v19, %v2773_v59  ;;  %v659_v60 = vsel %vm2919_vm3, %v2146_v42, %v658_v48  ;;  %v2466_v24 = vld [vmem:[%s3379_s1 + $0x130] ss:$8 sps:$4 sm:$0xff]   ;;  %v2475_v25 = vld [vmem:[%s3379_s1 + $0x1a0] ss:$8 sps:$4 sm:$0xff]   ;;  %v2483_v29 = vld [vmem:[%s3379_s1 + $0x194] ss:$8 sps:$4 sm:$0xff]  }
  0x34   : > { %v384_v45 = vcombine.low %v376_v30, %v2917_v37  ;;  %v1018_v47 = vsel %vm2859_vm13, %v1013_v38, %v1017_v33  ;;  %v690_v57 = vcombine.low %v2942_v28, %v2952_v7  ;;  %v2982_v59 = vsel %vm2919_vm3, %v2246_v31, %v1183_v54  ;;  %v2474_v33 = vld [vmem:[%s3379_s1 + $0x124] ss:$8 sps:$4 sm:$0xff]   ;;  %v2481_v38 = vld [vmem:[%s3379_s1 + $0x190] ss:$8 sps:$4 sm:$0xff]   ;;  %v2487_v40 = vld [vmem:[%s3379_s1 + $0x180] ss:$8 sps:$4 sm:$0xff]  }
  0x35   : > { %v1037_v51 = vcombine.low %v350_v23, %v1018_v47  ;;  %v1518_v0 = vcombine.low %v1018_v47, %v2870_v49  ;;  %953 = vmatpush1.bf16.msra.mxu1 %v2451_v36  ;;  %v2448_v49 = vld [vmem:[%s3379_s1 + $0x160] ss:$8 sps:$4 sm:$0xff]   ;;  %v2985_v62 = vrot.slane %v1364_v55, %v2763_v46  ;;  %v1672_v3 = vcombine.low %v2982_v59, %v659_v60  ;;  %v2468_v23 = vld [vmem:[%s3379_s1 + $0x134] ss:$8 sps:$4 sm:$0xff]   ;;  %v2486_v43 = vld [vmem:[%s3379_s1 + $0x104] ss:$8 sps:$4 sm:$0xff]  }
  0x36   : > { %499 = vmatmul.mubr.bf16.vlgmr.msra.gmra.mxu0 %v384_v45  ;;  %954 = vmatprep.subr.bf16.mxu1 %v2459_v41  ;;  %v3005_v9 = vrot.slane %v690_v57, %v2763_v46  ;;  %v2147_v30 = vrot.slane %v2829_v20, 9  ;;  %v662_v32 = vrot.slane %v2845_v26, 7  ;;  %v853_v36 = vcombine.low %v2821_v18, %v2825_v19  ;;  %v2472_v20 = vld [vmem:[%s3379_s1 + $0x120] ss:$8 sps:$4 sm:$0xff]   ;;  %v2489_v26 = vld [vmem:[%s3379_s1 + $0x184] ss:$8 sps:$4 sm:$0xff]  }
  0x37   : > { %788 = vmatpush1.bf16.msra.mxu0 %v2442_v34  ;;  %v2962_v53 = vrot.slane %v1037_v51, %v2763_v46  ;;  %819 = vmatprep.mubr.bf16.mxu0 %v2618_v2  ;;  %v2974_v58 = vrot.slane %v1518_v0, %v2763_v46  ;;  %v1372_v6 = vcombine.low %v2897_v11, %v2985_v62  ;;  %v2495_v42 = vld [vmem:[%s3379_s1 + $0x2f4] ss:$8 sps:$4 sm:$0xff]   ;;  %v2493_v47 = vld [vmem:[%s3379_s1 + $0x2f0] ss:$8 sps:$4 sm:$0xff]   ;;  %v2501_v48 = vld [vmem:[%s3379_s1 + $0x2e4] ss:$8 sps:$4 sm:$0xff]  }
  0x38   : > { %789 = vmatprep.subr.bf16.mxu0 %v2450_v21  ;;  %v3008_v10 = vrot.slane %v1672_v3, %v2763_v46  ;;  %v852_v34 = vcombine.low %v2813_v16, %v2817_v17  ;;  %v3053_v16 = vsel %vm2919_vm3, %v2147_v30, %v662_v32  ;;  %v2480_v17 = vld [vmem:[%s3379_s1 + $0x114] ss:$8 sps:$4 sm:$0xff]   ;;  %v867_v19 = vrot.slane %v853_v36, %v2763_v46  ;;  %v2484_v21 = vld [vmem:[%s3379_s1 + $0x100] ss:$8 sps:$4 sm:$0xff]   ;;  %v2513_v55 = vld [vmem:[%s3379_s1 + $0x2c4] ss:$8 sps:$4 sm:$0xff]  }
  0x39   : > { %v1052_v61 = vcombine.low %v2945_v22, %v2962_v53  ;;  %955 = vmatpush1.bf16.msra.mxu1 %v2457_v35  ;;  %v1526_v1 = vcombine.low %v2917_v37, %v2974_v58  ;;  %v689_v41 = vcombine.low %v659_v60, %v3053_v16  ;;  %v2492_v50 = vld [vmem:[%s3379_s1 + $0x274] ss:$8 sps:$4 sm:$0xff]   ;;  %v2499_v0 = vld [vmem:[%s3379_s1 + $0x2e0] ss:$8 sps:$4 sm:$0xff]   ;;  %v2490_v35 = vld [vmem:[%s3379_s1 + $0x270] ss:$8 sps:$4 sm:$0xff]  }
  0x3a   : > { %956 = vmatprep.subr.bf16.mxu1 %v2465_v52  ;;  %v1680_v13 = vcombine.low %v3005_v9, %v3008_v10  ;;  %v860_v18 = vrot.slane %v852_v34, %v2763_v46  ;;  %v2507_v31 = vld [vmem:[%s3379_s1 + $0x2d4] ss:$8 sps:$4 sm:$0xff]   ;;  %v2505_v52 = vld [vmem:[%s3379_s1 + $0x2d0] ss:$8 sps:$4 sm:$0xff]   ;;  %v2496_v54 = vld [vmem:[%s3379_s1 + $0x260] ss:$8 sps:$4 sm:$0xff]  }
  0x3b   : > { %790 = vmatpush1.bf16.msra.mxu0 %v2448_v49  ;;  %v697_v45 = vrot.slane %v689_v41, %v2763_v46  ;;  %v2498_v49 = vld [vmem:[%s3379_s1 + $0x264] ss:$8 sps:$4 sm:$0xff]   ;;  %v2511_v57 = vld [vmem:[%s3379_s1 + $0x2c0] ss:$8 sps:$4 sm:$0xff]   ;;  %v2502_v60 = vld [vmem:[%s3379_s1 + $0x250] ss:$8 sps:$4 sm:$0xff]  }
  0x3c   : > { %791 = vmatprep.subr.bf16.mxu0 %v2456_v56  ;;  %v868_v44 = vcombine.low %v860_v18, %v867_v19  ;;  %v2504_v56 = vld [vmem:[%s3379_s1 + $0x254] ss:$8 sps:$4 sm:$0xff]   ;;  %v2510_v3 = vld [vmem:[%s3379_s1 + $0x244] ss:$8 sps:$4 sm:$0xff]   ;;  %v2529_v30 = vld [vmem:[%s3379_s1 + $0x290] ss:$8 sps:$4 sm:$0xff]  }
  0x3d   : > { %957 = vmatpush1.bf16.msra.mxu1 %v2463_v63  ;;  %v705_v51 = vcombine.low %v697_v45, %v3005_v9  ;;  %v2519_v63 = vld [vmem:[%s3379_s1 + $0x2b4] ss:$8 sps:$4 sm:$0xff]   ;;  %v2520_v32 = vld [vmem:[%s3379_s1 + $0x220] ss:$8 sps:$4 sm:$0xff]   ;;  %v2526_v36 = vld [vmem:[%s3379_s1 + $0x210] ss:$8 sps:$4 sm:$0xff]  }
  0x3e   : > { %958 = vmatprep.subr.bf16.mxu1 %v2471_v5  ;;  %v2508_v5 = vld [vmem:[%s3379_s1 + $0x240] ss:$8 sps:$4 sm:$0xff]   ;;  %v2549_v18 = vld [vmem:[%s3379_s1 + $0x3e4] ss:$8 sps:$4 sm:$0xff]   ;;  %v2540_v19 = vld [vmem:[%s3379_s1 + $0x374] ss:$8 sps:$4 sm:$0xff]  }
  0x3f   : > { %792 = vmatpush1.bf16.msra.mxu0 %v2454_v4  ;;  %v2517_v4 = vld [vmem:[%s3379_s1 + $0x2b0] ss:$8 sps:$4 sm:$0xff]   ;;  %v2535_v34 = vld [vmem:[%s3379_s1 + $0x280] ss:$8 sps:$4 sm:$0xff]   ;;  %v2561_v45 = vld [vmem:[%s3379_s1 + $0x3c4] ss:$8 sps:$4 sm:$0xff]  }
  0x40   : > { %793 = vmatprep.subr.bf16.mxu0 %v2462_v8  ;;  %v2525_v8 = vld [vmem:[%s3379_s1 + $0x2a4] ss:$8 sps:$4 sm:$0xff]   ;;  %v2538_v41 = vld [vmem:[%s3379_s1 + $0x370] ss:$8 sps:$4 sm:$0xff]   ;;  %v2552_v22 = vld [vmem:[%s3379_s1 + $0x354] ss:$8 sps:$4 sm:$0xff]  }
  0x41   : > { %959 = vmatpush1.bf16.msra.mxu1 %v2469_v12  ;;  %v2516_v12 = vld [vmem:[%s3379_s1 + $0x234] ss:$8 sps:$4 sm:$0xff]   ;;  %v2559_v53 = vld [vmem:[%s3379_s1 + $0x3c0] ss:$8 sps:$4 sm:$0xff]   ;;  %v2597_v11 = vld [vmem:[%s3379_s1 + $0x444] ss:$8 sps:$4 sm:$0xff]  }
  0x42   : > { %960 = vmatprep.subr.bf16.mxu1 %v2477_v15  ;;  %v2514_v15 = vld [vmem:[%s3379_s1 + $0x230] ss:$8 sps:$4 sm:$0xff]   ;;  %v2589_v37 = vld [vmem:[%s3379_s1 + $0x460] ss:$8 sps:$4 sm:$0xff]   ;;  %v2594_v58 = vld [vmem:[%s3379_s1 + $0x454] ss:$8 sps:$4 sm:$0xff]  }
  0x43   : > { %794 = vmatpush1.bf16.msra.mxu0 %v2460_v14  ;;  %v2523_v14 = vld [vmem:[%s3379_s1 + $0x2a0] ss:$8 sps:$4 sm:$0xff]   ;;  %v2600_v62 = vld [vmem:[%s3379_s1 + $0x434] ss:$8 sps:$4 sm:$0xff]   ;;  %vm1870_vm4 = vcmask 1044480   ;;  %vm2017_vm5 = vcmask 1043459  }
  0x44   : > { %795 = vmatprep.subr.bf16.mxu0 %v2468_v23  ;;  %v2531_v23 = vld [vmem:[%s3379_s1 + $0x294] ss:$8 sps:$4 sm:$0xff]   ;;  %vm2019_vm6 = vcmask 1045509   ;;  %vm2021_vm7 = vcmask 1047559  }
  0x45   : > { %961 = vmatpush1.bf16.msra.mxu1 %v2475_v25  ;;  %v1202_v25 = vcombine.low %v3053_v16, %v2942_v28  ;;  %v2528_v28 = vld [vmem:[%s3379_s1 + $0x214] ss:$8 sps:$4 sm:$0xff]   ;;  %v2541_v16 = vld [vmem:[%s3379_s1 + $0x3f0] ss:$8 sps:$4 sm:$0xff]  }
  0x46   : > { %962 = vmatprep.subr.bf16.mxu1 %v2483_v29  ;;  %v1203_v29 = vcombine.low %v2952_v7, %v2982_v59 }
  0x47   : > { %796 = vmatpush1.bf16.msra.mxu0 %v2466_v24  ;;  %v2522_v24 = vld [vmem:[%s3379_s1 + $0x224] ss:$8 sps:$4 sm:$0xff]   ;;  %v1210_v7 = vrot.slane %v1202_v25, %v2763_v46 }
  0x48   : > { %797 = vmatprep.subr.bf16.mxu0 %v2474_v33  ;;  %v2537_v33 = vld [vmem:[%s3379_s1 + $0x284] ss:$8 sps:$4 sm:$0xff]   ;;  %v1217_v59 = vrot.slane %v1203_v29, %v2763_v46  ;;  %v2607_v29 = vld [vmem:[%s3379_s1 + $0x400] ss:$8 sps:$4 sm:$0xff]  }
  0x49   : > { %963 = vmatpush1.bf16.msra.mxu1 %v2481_v38  ;;  %v2543_v38 = vld [vmem:[%s3379_s1 + $0x3f4] ss:$8 sps:$4 sm:$0xff]   ;;  %v2609_v25 = vld [vmem:[%s3379_s1 + $0x404] ss:$8 sps:$4 sm:$0xff]  }
  0x4a   : > { %964 = vmatprep.subr.bf16.mxu1 %v2489_v26  ;;  %v1218_v26 = vcombine.low %v1210_v7, %v1217_v59 }
  0x4b   : > { %798 = vmatpush1.bf16.msra.mxu0 %v2472_v20  ;;  %v2534_v20 = vld [vmem:[%s3379_s1 + $0x204] ss:$8 sps:$4 sm:$0xff]  }
  0x4c   : > { %799 = vmatprep.subr.bf16.mxu0 %v2480_v17  ;;  %v2532_v17 = vld [vmem:[%s3379_s1 + $0x200] ss:$8 sps:$4 sm:$0xff]  }
  0x4d   : > { %965 = vmatpush1.bf16.msra.mxu1 %v2487_v40  ;;  %v2547_v40 = vld [vmem:[%s3379_s1 + $0x3e0] ss:$8 sps:$4 sm:$0xff]  }
  0x4e   : > { %1300 = vmatprep.subr.bf16.mxu1 %v2495_v42  ;;  %v2546_v42 = vld [vmem:[%s3379_s1 + $0x364] ss:$8 sps:$4 sm:$0xff]  }
  0x4f   : > { %800 = vmatpush1.bf16.msra.mxu0 %v2478_v39  ;;  %v2555_v39 = vld [vmem:[%s3379_s1 + $0x3d4] ss:$8 sps:$4 sm:$0xff]  }
  0x50   : > { %801 = vmatprep.subr.bf16.mxu0 %v2486_v43  ;;  %983 = vmatmul.mubr.bf16.vlgmr.msra.gmra.mxu1 %v868_v44  ;;  %v2553_v43 = vld [vmem:[%s3379_s1 + $0x3d0] ss:$8 sps:$4 sm:$0xff]   ;;  %v2544_v44 = vld [vmem:[%s3379_s1 + $0x360] ss:$8 sps:$4 sm:$0xff]  }
  0x51   : > { %1301 = vmatpush1.bf16.msra.mxu1 %v2493_v47  ;;  %1332 = vmatprep.mubr.bf16.mxu1 %v2618_v2  ;;  %v2567_v47 = vld [vmem:[%s3379_s1 + $0x3b4] ss:$8 sps:$4 sm:$0xff]  }
  0x52   : > { %1302 = vmatprep.subr.bf16.mxu1 %v2501_v48  ;;  %v2565_v48 = vld [vmem:[%s3379_s1 + $0x3b0] ss:$8 sps:$4 sm:$0xff]  }
  0x53   : > { %802 = vmatpush1.bf16.msra.mxu0 %v2484_v21  ;;  %v2558_v21 = vld [vmem:[%s3379_s1 + $0x344] ss:$8 sps:$4 sm:$0xff]  }
  0x54   : > { %1134 = vmatprep.subr.bf16.mxu0 %v2492_v50  ;;  %v2556_v50 = vld [vmem:[%s3379_s1 + $0x340] ss:$8 sps:$4 sm:$0xff]  }
  0x55   : > { %1303 = vmatpush1.bf16.msra.mxu1 %v2499_v0  ;;  %v2564_v0 = vld [vmem:[%s3379_s1 + $0x334] ss:$8 sps:$4 sm:$0xff]  }
  0x56   : > { %820 = vmatmul.mubr.bf16.vlgmr.msra.gmra.mxu0 %v705_v51  ;;  %1304 = vmatprep.subr.bf16.mxu1 %v2507_v31  ;;  %v2573_v51 = vld [vmem:[%s3379_s1 + $0x3a4] ss:$8 sps:$4 sm:$0xff]   ;;  %v2562_v31 = vld [vmem:[%s3379_s1 + $0x330] ss:$8 sps:$4 sm:$0xff]  }
  0x57   : > { %1135 = vmatpush1.bf16.msra.mxu0 %v2490_v35  ;;  %1166 = vmatprep.mubr.bf16.mxu0 %v2618_v2  ;;  %v2571_v35 = vld [vmem:[%s3379_s1 + $0x3a0] ss:$8 sps:$4 sm:$0xff]  }
  0x58   : > { %1136 = vmatprep.subr.bf16.mxu0 %v2498_v49  ;;  %v2579_v49 = vld [vmem:[%s3379_s1 + $0x394] ss:$8 sps:$4 sm:$0xff]  }
  0x59   : > { %1305 = vmatpush1.bf16.msra.mxu1 %v2505_v52  ;;  %v2570_v52 = vld [vmem:[%s3379_s1 + $0x324] ss:$8 sps:$4 sm:$0xff]  }
  0x5a   : > { %1306 = vmatprep.subr.bf16.mxu1 %v2513_v55  ;;  %v2568_v55 = vld [vmem:[%s3379_s1 + $0x320] ss:$8 sps:$4 sm:$0xff]  }
  0x5b   : > { %1137 = vmatpush1.bf16.msra.mxu0 %v2496_v54  ;;  %v2577_v54 = vld [vmem:[%s3379_s1 + $0x390] ss:$8 sps:$4 sm:$0xff]  }
  0x5c   : > { %1138 = vmatprep.subr.bf16.mxu0 %v2504_v56  ;;  %v2585_v56 = vld [vmem:[%s3379_s1 + $0x384] ss:$8 sps:$4 sm:$0xff]  }
  0x5d   : > { %1307 = vmatpush1.bf16.msra.mxu1 %v2511_v57  ;;  %v2576_v57 = vld [vmem:[%s3379_s1 + $0x314] ss:$8 sps:$4 sm:$0xff]  }
  0x5e   : > { %1308 = vmatprep.subr.bf16.mxu1 %v2519_v63  ;;  %v2574_v63 = vld [vmem:[%s3379_s1 + $0x310] ss:$8 sps:$4 sm:$0xff]  }
  0x5f   : > { %1139 = vmatpush1.bf16.msra.mxu0 %v2502_v60  ;;  %v2583_v60 = vld [vmem:[%s3379_s1 + $0x380] ss:$8 sps:$4 sm:$0xff]  }
  0x60   : > { %1140 = vmatprep.subr.bf16.mxu0 %v2510_v3  ;;  %v2582_v3 = vld [vmem:[%s3379_s1 + $0x304] ss:$8 sps:$4 sm:$0xff]  }
  0x61   : > { %1309 = vmatpush1.bf16.msra.mxu1 %v2517_v4  ;;  %v2580_v4 = vld [vmem:[%s3379_s1 + $0x300] ss:$8 sps:$4 sm:$0xff]  }
  0x62   : > { %1310 = vmatprep.subr.bf16.mxu1 %v2525_v8  ;;  %v2586_v8 = vld [vmem:[%s3379_s1 + $0x470] ss:$8 sps:$4 sm:$0xff]  }
  0x63   : > { %1141 = vmatpush1.bf16.msra.mxu0 %v2508_v5  ;;  %v2588_v5 = vld [vmem:[%s3379_s1 + $0x474] ss:$8 sps:$4 sm:$0xff]  }
  0x64   : > { %1142 = vmatprep.subr.bf16.mxu0 %v2516_v12  ;;  %v2591_v12 = vld [vmem:[%s3379_s1 + $0x464] ss:$8 sps:$4 sm:$0xff]  }
  0x65   : > { %1311 = vmatpush1.bf16.msra.mxu1 %v2523_v14  ;;  %v2603_v14 = vld [vmem:[%s3379_s1 + $0x424] ss:$8 sps:$4 sm:$0xff]  }
  0x66   : > { %1312 = vmatprep.subr.bf16.mxu1 %v2531_v23  ;;  %v2606_v23 = vld [vmem:[%s3379_s1 + $0x414] ss:$8 sps:$4 sm:$0xff]  }
  0x67   : > { %1143 = vmatpush1.bf16.msra.mxu0 %v2514_v15  ;;  %v2601_v15 = vld [vmem:[%s3379_s1 + $0x420] ss:$8 sps:$4 sm:$0xff]  }
  0x68   : > { %1144 = vmatprep.subr.bf16.mxu0 %v2522_v24  ;;  %v2604_v24 = vld [vmem:[%s3379_s1 + $0x410] ss:$8 sps:$4 sm:$0xff]  }
  0x69   : > { %1313 = vmatpush1.bf16.msra.mxu1 %v2529_v30 }
  0x6a   : > { %1314 = vmatprep.subr.bf16.mxu1 %v2537_v33 }
  0x6b   : > { %1145 = vmatpush1.bf16.msra.mxu0 %v2520_v32 }
  0x6c   : > { %1146 = vmatprep.subr.bf16.mxu0 %v2528_v28 }
  0x6d   : > { %1315 = vmatpush1.bf16.msra.mxu1 %v2535_v34 }
  0x6e   : > { %1608 = vmatprep.subr.bf16.mxu1 %v2543_v38 }
  0x6f   : > { %1147 = vmatpush1.bf16.msra.mxu0 %v2526_v36 }
  0x70   : > { %1148 = vmatprep.subr.bf16.mxu0 %v2534_v20  ;;  %1333 = vmatmul.mubr.bf16.vlgmr.msra.gmra.mxu1 %v1218_v26 }
  0x71   : > { %1609 = vmatpush1.bf16.msra.mxu1 %v2541_v16  ;;  %1640 = vmatprep.mubr.bf16.mxu1 %v2618_v2 }
  0x72   : > { %1610 = vmatprep.subr.bf16.mxu1 %v2549_v18 }
  0x73   : > { %1149 = vmatpush1.bf16.msra.mxu0 %v2532_v17 }
  0x74   : > { %1454 = vmatprep.subr.bf16.mxu0 %v2540_v19 }
  0x75   : > { %1611 = vmatpush1.bf16.msra.mxu1 %v2547_v40 }
  0x76   : > { %1167 = vmatmul.mubr.bf16.vlgmr.msra.gmra.mxu0 %v1052_v61  ;;  %1612 = vmatprep.subr.bf16.mxu1 %v2555_v39  ;;  %v2550_v61 = vld [vmem:[%s3379_s1 + $0x350] ss:$8 sps:$4 sm:$0xff]  }
  0x77   : > { %1455 = vmatpush1.bf16.msra.mxu0 %v2538_v41  ;;  %1486 = vmatprep.mubr.bf16.mxu0 %v2618_v2 }
  0x78   : > { %1456 = vmatprep.subr.bf16.mxu0 %v2546_v42 }
  0x79   : > { %1613 = vmatpush1.bf16.msra.mxu1 %v2553_v43 }
  0x7a   : > { %1614 = vmatprep.subr.bf16.mxu1 %v2561_v45 }
  0x7b   : > { %1457 = vmatpush1.bf16.msra.mxu0 %v2544_v44 }
  0x7c   : > { %1458 = vmatprep.subr.bf16.mxu0 %v2552_v22 }
  0x7d   : > { %1615 = vmatpush1.bf16.msra.mxu1 %v2559_v53 }
  0x7e   : > { %1616 = vmatprep.subr.bf16.mxu1 %v2567_v47 }
  0x7f   : > { %1459 = vmatpush1.bf16.msra.mxu0 %v2550_v61 }
  0x80   : > { %1460 = vmatprep.subr.bf16.mxu0 %v2558_v21 }
  0x81   : > { %1617 = vmatpush1.bf16.msra.mxu1 %v2565_v48 }
  0x82   : > { %1618 = vmatprep.subr.bf16.mxu1 %v2573_v51 }
  0x83   : > { %1461 = vmatpush1.bf16.msra.mxu0 %v2556_v50 }
  0x84   : > { %1462 = vmatprep.subr.bf16.mxu0 %v2564_v0 }
  0x85   : > { %1619 = vmatpush1.bf16.msra.mxu1 %v2571_v35 }
  0x86   : > { %1620 = vmatprep.subr.bf16.mxu1 %v2579_v49 }
  0x87   : > { %1463 = vmatpush1.bf16.msra.mxu0 %v2562_v31 }
  0x88   : > { %1464 = vmatprep.subr.bf16.mxu0 %v2570_v52 }
  0x89   : > { %1621 = vmatpush1.bf16.msra.mxu1 %v2577_v54 }
  0x8a   : > { %1622 = vmatprep.subr.bf16.mxu1 %v2585_v56 }
  0x8b   : > { %1465 = vmatpush1.bf16.msra.mxu0 %v2568_v55 }
  0x8c   : > { %1466 = vmatprep.subr.bf16.mxu0 %v2576_v57 }
  0x8d   : > { %1623 = vmatpush1.bf16.msra.mxu1 %v2583_v60 }
  0x8f   : > { %1467 = vmatpush1.bf16.msra.mxu0 %v2574_v63 }
  0x90   : > { %1468 = vmatprep.subr.bf16.mxu0 %v2582_v3  ;;  %1641 = vmatmul.mubr.bf16.vlgmr.msra.gmra.mxu1 %v1526_v1  ;;  %v2592_v1 = vld [vmem:[%s3379_s1 + $0x450] ss:$8 sps:$4 sm:$0xff]   ;;  %v1813_v3 = vsub.s32 0, %v2728_v27 }
  0x93   : > { %1469 = vmatpush1.bf16.msra.mxu0 %v2580_v4 }
  0x94   : > { %1762 = vmatprep.subr.bf16.mxu0 %v2588_v5 }
  0x96   : > { %1487 = vmatmul.mubr.bf16.vlgmr.msra.gmra.mxu0 %v1372_v6  ;;  %v2598_v6 = vld [vmem:[%s3379_s1 + $0x430] ss:$8 sps:$4 sm:$0xff]  }
  0x97   : > { %1763 = vmatpush1.bf16.msra.mxu0 %v2586_v8  ;;  %1794 = vmatprep.mubr.bf16.mxu0 %v2618_v2  ;;  %v2595_v2 = vld [vmem:[%s3379_s1 + $0x440] ss:$8 sps:$4 sm:$0xff]  }
  0x98   : > { %1764 = vmatprep.subr.bf16.mxu0 %v2591_v12 }
  0x9b   : > { %1765 = vmatpush1.bf16.msra.mxu0 %v2589_v37  ;;  %v1809_v37 = vld [vmem:[%s3380_s2] sm:$0x3] }
  0x9c   : > { %1766 = vmatprep.subr.bf16.mxu0 %v2594_v58 }
  0x9f   : > { %1767 = vmatpush1.bf16.msra.mxu0 %v2592_v1  ;;  %v1817_v1 = vsub.s32 1, %v2728_v27 }
  0xa0   : > { %1768 = vmatprep.subr.bf16.mxu0 %v2597_v11 }
  0xa3   : > { %1769 = vmatpush1.bf16.msra.mxu0 %v2595_v2 }
  0xa4   : > { %1770 = vmatprep.subr.bf16.mxu0 %v2600_v62  ;;  %v2620_v62 = vmov 0.0  }
  0xa7   : > { %1771 = vmatpush1.bf16.msra.mxu0 %v2598_v6  ;;  %v1842_v6 = vrot.slane %v2620_v62, 7 }
  0xa8   : > { %1772 = vmatprep.subr.bf16.mxu0 %v2603_v14 }
  0xab   : > { %1773 = vmatpush1.bf16.msra.mxu0 %v2601_v15 }
  0xac   : > { %1774 = vmatprep.subr.bf16.mxu0 %v2606_v23  ;;  %v1814_v23 = vrot.slane %v1809_v37, %v1813_v3 }
  0xaf   : > { %1775 = vmatpush1.bf16.msra.mxu0 %v2604_v24 }
  0xb0   : > { %1776 = vmatprep.subr.bf16.mxu0 %v2609_v25 }
  0xb3   : > { %1777 = vmatpush1.bf16.msra.mxu0 %v2607_v29 }
  0xb6   : > { %1795 = vmatmul.mubr.bf16.vlgmr.msra.gmra.mxu0 %v1680_v13 }
  0xf0   : > { %v641_v32 = vpop.f32.mrf.mxu1 }
  0xf2   : > { %v643_v28 = vpop.f32.mrf.mxu1 }
  0xf4   : > { %v645_v59 = vpop.f32.mrf.mxu1 }
  0xf6   : > { %v500_v30 = vpop.f32.mrf.mxu0  ;;  %v647_v38 = vpop.f32.mrf.mxu1 }
  0xf7   : > { %v642_v42 = vadd.f32 %v641_v32, %v500_v30 }
  0xf8   : > { %v502_v33 = vpop.f32.mrf.mxu0 }
  0xf9   : > { %v644_v43 = vadd.f32 %v643_v28, %v502_v33  ;;  %v1818_v33 = vrot.slane %v1809_v37, %v1817_v1 }
  0xfa   : > { %v504_v7 = vpop.f32.mrf.mxu0 }
  0xfb   : > { %v646_v48 = vadd.f32 %v645_v59, %v504_v7 }
  0xfc   : > { %v506_v34 = vpop.f32.mrf.mxu0 }
  0xfd   : > { %v648_v47 = vadd.f32 %v647_v38, %v506_v34  ;;  %v1861_v34 = vsel %vm220_vm0, 0.0, %v1842_v6 }
 0x110   : > { %v984_v26 = vpop.f32.mrf.mxu1 }
 0x112   : > { %v986_v17 = vpop.f32.mrf.mxu1 }
 0x114   : > { %v988_v19 = vpop.f32.mrf.mxu1 }
 0x116   : > { %v821_v36 = vpop.f32.mrf.mxu0  ;;  %v990_v41 = vpop.f32.mrf.mxu1 }
 0x117   : > { %v830_v44 = vadd.f32 %v821_v36, %v642_v42 }
 0x118   : > { %v823_v20 = vpop.f32.mrf.mxu0 }
 0x119   : > { %v831_v53 = vadd.f32 %v823_v20, %v644_v43  ;;  %v993_v21 = vadd.f32 %v984_v26, %v830_v44 }
 0x11a   : > { %v825_v16 = vpop.f32.mrf.mxu0 }
 0x11b   : > { %v994_v51 = vadd.f32 %v986_v17, %v831_v53  ;;  %v832_v31 = vadd.f32 %v825_v16, %v646_v48  ;;  %v1871_v16 = vsel %vm1870_vm4, %v1861_v34, 0.0 }
 0x11c   : > { %v827_v18 = vpop.f32.mrf.mxu0 }
 0x11d   : > { %v833_v0 = vadd.f32 %v827_v18, %v648_v47  ;;  %v995_v57 = vadd.f32 %v988_v19, %v832_v31 }
 0x11f   : > { %v996_v55 = vadd.f32 %v990_v41, %v833_v0 }
 0x130   : > { %v1334_v9 = vpop.f32.mrf.mxu1 }
 0x132   : > { %v1336_v13 = vpop.f32.mrf.mxu1 }
 0x134   : > { %v1338_v22 = vpop.f32.mrf.mxu1 }
 0x136   : > { %v1168_v40 = vpop.f32.mrf.mxu0  ;;  %v1340_v50 = vpop.f32.mrf.mxu1 }
 0x137   : > { %v1177_v35 = vadd.f32 %v1168_v40, %v993_v21 }
 0x138   : > { %v1170_v39 = vpop.f32.mrf.mxu0 }
 0x139   : > { %v1178_v54 = vadd.f32 %v1170_v39, %v994_v51  ;;  %v1343_v56 = vadd.f32 %v1334_v9, %v1177_v35  ;;  %v1883_v39 = vrot.slane %v1871_v16, 1 }
 0x13a   : > { %v1172_v10 = vpop.f32.mrf.mxu0 }
 0x13b   : > { %v1344_v4 = vadd.f32 %v1336_v13, %v1178_v54  ;;  %v1179_v12 = vadd.f32 %v1172_v10, %v995_v57  ;;  %v1889_v47 = vmax.f32 %v1871_v16, %v1883_v39 }
 0x13c   : > { %v1174_v45 = vpop.f32.mrf.mxu0 }
 0x13d   : > { %v1180_v5 = vadd.f32 %v1174_v45, %v996_v55  ;;  %v1345_v24 = vadd.f32 %v1338_v22, %v1179_v12 }
 0x13f   : > { %v1346_v14 = vadd.f32 %v1340_v50, %v1180_v5 }
 0x150   : > { %v1642_v52 = vpop.f32.mrf.mxu1 }
 0x152   : > { %v1644_v63 = vpop.f32.mrf.mxu1 }
 0x154   : > { %v1646_v2 = vpop.f32.mrf.mxu1 }
 0x156   : > { %v1488_v61 = vpop.f32.mrf.mxu0  ;;  %v1648_v7 = vpop.f32.mrf.mxu1 }
 0x157   : > { %v1497_v8 = vadd.f32 %v1488_v61, %v1343_v56 }
 0x158   : > { %v1490_v49 = vpop.f32.mrf.mxu0 }
 0x159   : > { %v1498_v58 = vadd.f32 %v1490_v49, %v1344_v4  ;;  %v1651_v15 = vadd.f32 %v1642_v52, %v1497_v8 }
 0x15a   : > { %v1492_v60 = vpop.f32.mrf.mxu0 }
 0x15b   : > { %v1652_v29 = vadd.f32 %v1644_v63, %v1498_v58  ;;  %v1499_v28 = vadd.f32 %v1492_v60, %v1345_v24 }
 0x15c   : > { %v1494_v11 = vpop.f32.mrf.mxu0 }
 0x15d   : > { %v1500_v30 = vadd.f32 %v1494_v11, %v1346_v14  ;;  %v1653_v17 = vadd.f32 %v1646_v2, %v1499_v28 }
 0x15f   : > { %v1654_v20 = vadd.f32 %v1648_v7, %v1500_v30 }
 0x176   : > { %v1796_v25 = vpop.f32.mrf.mxu0 }
 0x177   : > { %v1805_v32 = vadd.f32 %v1796_v25, %v1651_v15 }
 0x178   : > { %v1798_v59 = vpop.f32.mrf.mxu0 }
 0x179   : > { %v1821_v36 = vadd.f32 %v1814_v23, %v1805_v32  ;;  %v1806_v27 = vadd.f32 %v1798_v59, %v1652_v29 }
 0x17a   : > { %v1800_v38 = vpop.f32.mrf.mxu0 }
 0x17b   : > { %v1822_v26 = vadd.f32 %v1818_v33, %v1806_v27  ;;  %v1825_v19 = vmax.f32 %v1821_v36, 0.0  ;;  %v1807_v9 = vadd.f32 %v1800_v38, %v1653_v17 }
 0x17c   : > { %v1802_v18 = vpop.f32.mrf.mxu0 }
 0x17d   : > { %v1826_v40 = vmax.f32 %v1822_v26, 0.0  ;;  %v1808_v41 = vadd.f32 %v1802_v18, %v1654_v20  ;;  %v1823_v21 = vadd.f32 %v1814_v23, %v1807_v9 }
 0x17f   : > { %v1833_v10 = vcombine.low %v1825_v19, %v1826_v40  ;;  %v1834_v13 = vcombine.high %v1825_v19, %v1826_v40  ;;  %v2375_v42 = vcombine.low %v1826_v40, %v1826_v40  ;;  %v2376_v43 = vcombine.high %v1826_v40, %v1826_v40 }
 0x180   : > { %v1824_v44 = vadd.f32 %v1818_v33, %v1808_v41  ;;  %v1827_v5 = vmax.f32 %v1823_v21, 0.0 }
 0x181   : > { %v1843_v45 = vrot.slane %v1833_v10, 7  ;;  %v1844_v22 = vrot.slane %v2375_v42, 7  ;;  %v1845_v53 = vrot.slane %v1834_v13, 7  ;;  %v1846_v61 = vrot.slane %v2376_v43, 7 }
 0x182   : > { %v1828_v48 = vmax.f32 %v1824_v44, 0.0 }
 0x183   : > { %v1862_v50 = vsel %vm220_vm0, 0.0, %v1843_v45  ;;  %v1863_v51 = vsel %vm220_vm0, 0.0, %v1844_v22  ;;  %v1864_v0 = vsel %vm220_vm0, 0.0, %v1845_v53  ;;  %v1865_v35 = vsel %vm220_vm0, 0.0, %v1846_v61 }
 0x184   : > { %v1872_v31 = vsel %vm1870_vm4, %v1862_v50, 0.0  ;;  %v1873_v49 = vsel %vm1870_vm4, %v1863_v51, 0.0  ;;  %v1874_v52 = vsel %vm1870_vm4, %v1864_v0, 0.0  ;;  %v1875_v54 = vsel %vm1870_vm4, %v1865_v35, 0.0 }
 0x185   : > { %v1884_v55 = vrot.slane %v1874_v52, 1  ;;  %v1885_v56 = vrot.slane %v1875_v54, 1  ;;  %v1896_v57 = vrot.slane %v1872_v31, 6  ;;  %v1897_v60 = vrot.slane %v1873_v49, 6 }
 0x186   : > { %v1908_v63 = vrot.slane %v1872_v31, 1  ;;  %v1909_v3 = vrot.slane %v1873_v49, 1  ;;  %v1976_v4 = vrot.slane %v1874_v52, 2  ;;  %v1835_v2 = vcombine.low %v1827_v5, %v1828_v48 }
 0x187   : > { %v1890_v8 = vmax.f32 %v1874_v52, %v1884_v55  ;;  %v1891_v12 = vmax.f32 %v1875_v54, %v1885_v56  ;;  %v1904_v37 = vmax.f32 %v1871_v16, %v1896_v57  ;;  %v1905_v58 = vmax.f32 %v1871_v16, %v1897_v60 }
 0x188   : > { %v1916_v1 = vmax.f32 %v1872_v31, %v1908_v63  ;;  %v1917_v11 = vmax.f32 %v1873_v49, %v1909_v3  ;;  %v1836_v62 = vcombine.high %v1827_v5, %v1828_v48  ;;  %v2377_v24 = vcombine.low %v1828_v48, %v1828_v48 }
 0x189   : > { %v1932_v6 = vrot.slane %v1904_v37, 2  ;;  %v1933_v14 = vrot.slane %v1905_v58, 2  ;;  %v1948_v15 = vrot.slane %v1890_v8, 7  ;;  %v1949_v23 = vrot.slane %v1891_v12, 7 }
 0x18a   : > { %v2378_v25 = vcombine.high %v1828_v48, %v1828_v48  ;;  %v1847_v29 = vrot.slane %v1835_v2, 7  ;;  %v1849_v30 = vrot.slane %v1836_v62, 7  ;;  %v1977_v7 = vrot.slane %v1875_v54, 2 }
 0x18b   : > { %v1940_v32 = vmax.f32 %v1889_v47, %v1932_v6  ;;  %v1956_v33 = vmax.f32 %v1916_v1, %v1948_v15  ;;  %v1957_v28 = vmax.f32 %v1917_v11, %v1949_v23  ;;  %v1848_v59 = vrot.slane %v2377_v24, 7 }
 0x18c   : > { %v1850_v34 = vrot.slane %v2378_v25, 7  ;;  %v1866_v36 = vsel %vm220_vm0, 0.0, %v1847_v29  ;;  %v1868_v27 = vsel %vm220_vm0, 0.0, %v1849_v30  ;;  %v1941_v38 = vmax.f32 %v1889_v47, %v1933_v14 }
 0x18d   : > { %v1964_v20 = vrot.slane %v1956_v33, 1  ;;  %v1965_v26 = vrot.slane %v1957_v28, 1  ;;  %v1876_v16 = vsel %vm1870_vm4, %v1866_v36, 0.0  ;;  %v1867_v17 = vsel %vm220_vm0, 0.0, %v1848_v59 }
 0x18e   : > { %v1869_v18 = vsel %vm220_vm0, 0.0, %v1850_v34  ;;  %v1878_v19 = vsel %vm1870_vm4, %v1868_v27, 0.0  ;;  %v1898_v40 = vrot.slane %v1876_v16, 6  ;;  %v1877_v9 = vsel %vm1870_vm4, %v1867_v17, 0.0 }
 0x18f   : > { %v1972_v41 = vmax.f32 %v1940_v32, %v1964_v20  ;;  %v1973_v39 = vmax.f32 %v1941_v38, %v1965_v26  ;;  %v1879_v10 = vsel %vm1870_vm4, %v1869_v18, 0.0  ;;  %v1899_v13 = vrot.slane %v1877_v9, 6 }
 0x190   : > { %v1906_v42 = vmax.f32 %v1874_v52, %v1898_v40  ;;  %v1910_v43 = vrot.slane %v1876_v16, 1  ;;  %v1911_v44 = vrot.slane %v1877_v9, 1  ;;  %v1922_v53 = vrot.slane %v1878_v19, 1 }
 0x191   : > { %v1984_v45 = vmax.f32 %v1972_v41, %v1976_v4  ;;  %v1985_v22 = vmax.f32 %v1973_v39, %v1977_v7  ;;  %v1923_v61 = vrot.slane %v1879_v10, 1  ;;  %v1907_v47 = vmax.f32 %v1875_v54, %v1899_v13 }
 0x192   : > { %v1926_v48 = vmax.f32 %v1878_v19, %v1922_v53  ;;  %v1918_v51 = vmax.f32 %v1876_v16, %v1910_v43  ;;  %v1919_v0 = vmax.f32 %v1877_v9, %v1911_v44  ;;  %v1934_v35 = vrot.slane %v1906_v42, 2 }
 0x193   : > { %v1992_v21 = vcombine.low %v1984_v45, %v1985_v22  ;;  %v1927_v50 = vmax.f32 %v1879_v10, %v1923_v61  ;;  %v1935_v49 = vrot.slane %v1907_v47, 2  ;;  %vm2015_vm0 = vcmask 1041409  }
 0x194   : > { %v1950_v55 = vrot.slane %v1926_v48, 7  ;;  %v1942_v63 = vmax.f32 %v1890_v8, %v1934_v35  ;;  %v1978_v37 = vrot.slane %v1878_v19, 2  ;;  %v1979_v2 = vrot.slane %v1879_v10, 2 }
 0x195   : > { %v1999_v31 = vrot.slane %v1992_v21, %v2763_v46  ;;  %v1951_v56 = vrot.slane %v1927_v50, 7  ;;  %v1943_v54 = vmax.f32 %v1891_v12, %v1935_v49 }
 0x196   : > { %v1958_v57 = vmax.f32 %v1918_v51, %v1950_v55 }
 0x197   : > { %v2000_v52 = vcombine.high %v1999_v31, %v1999_v31  ;;  %v1959_v60 = vmax.f32 %v1919_v0, %v1951_v56 }
 0x198   : > { %v1966_v4 = vrot.slane %v1958_v57, 1 }
 0x199   : > { %v2014_v3 = vrot.slane %v2000_v52, 7  ;;  %v1967_v5 = vrot.slane %v1959_v60, 1 }
 0x19a   : > { %v1974_v1 = vmax.f32 %v1942_v63, %v1966_v4 }
 0x19b   : > { %v2016_v58 = vsel %vm2015_vm0, %v2014_v3, %v1999_v31  ;;  %v1975_v11 = vmax.f32 %v1943_v54, %v1967_v5 }
 0x19c   : > { %v2018_v62 = vsel %vm2017_vm5, %v2014_v3, %v2016_v58  ;;  %v1986_v6 = vmax.f32 %v1974_v1, %v1978_v37 }
 0x19d   : > { %v2020_v8 = vsel %vm2019_vm6, %v2014_v3, %v2018_v62  ;;  %v1987_v12 = vmax.f32 %v1975_v11, %v1979_v2 }
 0x19e   : > { %v2022_v14 = vsel %vm2021_vm7, %v2014_v3, %v2020_v8 }
 0x19f   : > { %v2001_v15 = vcombine.low %v1986_v6, %v1987_v12  ;;  %2032 = vst [vmem:[%s170_s9] sm:$0xf] %v2022_v14 }
 0x1a1   : > { %v2008_v23 = vrot.slane %v2001_v15, %v2763_v46 }
 0x1a3   : > { %v2009_v24 = vcombine.high %v2008_v23, %v2008_v23 }
 0x1a5   : > { %v2025_v25 = vrot.slane %v2009_v24, 7 }
 0x1a7   : > { %v2026_v29 = vsel %vm2015_vm0, %v2025_v25, %v2008_v23 }
 0x1a8   : > { %v2027_v30 = vsel %vm2017_vm5, %v2025_v25, %v2026_v29 }
 0x1a9   : > { %v2028_v32 = vsel %vm2019_vm6, %v2025_v25, %v2027_v30 }
 0x1aa   : > { %v2029_v33 = vsel %vm2021_vm7, %v2025_v25, %v2028_v32 }
 0x1ab   : > { %2033 = vst [vmem:[%s170_s9 + $0x4] sm:$0xf] %v2029_v33 }
 0x1ac PF: > { %s13_s12 = sadd.s32 1, %s2616_s12  }
 0x1ad   : > { %p10_p4 = scmp.ge.s32.totalorder %s13_s12, 4  }
 0x1af   :  { %12 = sbr.rel (!%p10_p4) target bundleno = 1 (0x1), region = 70 }

// kernel: cornet_z_tweak_forward.9
= control target key start
LH: loop header
LB: loop body
LE: loop exit
PB: predicated region body
PF: predicated region fallthrough
CT: control target
= control target key end

     0   :  { %10 = vsyncpa [#allocation3], 0  ;;  %v422_v28 = vmov 1966171168   ;;  %v108_v30 = vlaneseq  ;;  %s654_s0 = inlined_call_operand.vmem [shape: f32[2,1,512], index: 0, kind: input, shape index: {}]   ;;  %s655_s1 = inlined_call_operand.vmem [shape: f32[512,128], index: 1, kind: input, shape index: {}]   ;;  %s656_s2 = inlined_call_operand.vmem [shape: f32[1,128], index: 2, kind: input, shape index: {}]   ;;  %s657_s3 = inlined_call_operand.hbm [shape: f32[2,512], index: 3, kind: output, shape index: {0}]   ;;  %s658_s4 = inlined_call_operand.hbm [shape: f32[2,128], index: 4, kind: output, shape index: {1}]  }
   0x1   :  { %v65_v0 = vld [vmem:[%s655_s1 + $0xf8] sm:$0xff]  ;;  %v64_v4 = vld [vmem:[%s655_s1 + $0xf0] sm:$0xff]  ;;  %v63_v8 = vld [vmem:[%s655_s1 + $0xe8] sm:$0xff]  ;;  %v106_v29 = vunpack.c.l.s4 %v422_v28 }
   0x2   :  { %v97_v1 = vld [vmem:[%s655_s1 + $0x1f8] sm:$0xff]  ;;  %304 = vmatprep.subr.mxu0 %v65_v0  ;;  %v96_v5 = vld [vmem:[%s655_s1 + $0x1f0] sm:$0xff]  ;;  %v95_v9 = vld [vmem:[%s655_s1 + $0x1e8] sm:$0xff]  ;;  %v109_v40 = vshrl.u32 %v108_v30, 7 }
   0x3   :  { %v49_v2 = vld [vmem:[%s655_s1 + $0x78] sm:$0xff]  ;;  %339 = vmatprep.subr.mxu1 %v97_v1  ;;  %v48_v6 = vld [vmem:[%s655_s1 + $0x70] sm:$0xff]  ;;  %v47_v10 = vld [vmem:[%s655_s1 + $0x68] sm:$0xff]  ;;  %v107_v39 = vunpack.c.0.s8 %v106_v29 }
   0x4   :  { %v81_v3 = vld [vmem:[%s655_s1 + $0x178] sm:$0xff]  ;;  %305 = vmatpush3.msra.mxu0 %v49_v2  ;;  %v80_v7 = vld [vmem:[%s655_s1 + $0x170] sm:$0xff]  ;;  %v79_v11 = vld [vmem:[%s655_s1 + $0x168] sm:$0xff] }
   0x5   :  { %340 = vmatpush3.msra.mxu1 %v81_v3  ;;  %306 = vmatprep.subr.mxu0 %v64_v4  ;;  %v62_v12 = vld [vmem:[%s655_s1 + $0xe0] sm:$0xff]  ;;  %v61_v16 = vld [vmem:[%s655_s1 + $0xd8] sm:$0xff]  ;;  %v60_v20 = vld [vmem:[%s655_s1 + $0xd0] sm:$0xff]  ;;  %v110_v50 = vsub.s32 %v107_v39, %v109_v40 }
   0x6   :  { %341 = vmatprep.subr.mxu1 %v96_v5  ;;  %307 = vmatpush3.msra.mxu0 %v48_v6  ;;  %v94_v13 = vld [vmem:[%s655_s1 + $0x1e0] sm:$0xff]  ;;  %v93_v17 = vld [vmem:[%s655_s1 + $0x1d8] sm:$0xff]  ;;  %v92_v21 = vld [vmem:[%s655_s1 + $0x1d0] sm:$0xff] }
   0x7   :  { %342 = vmatpush3.msra.mxu1 %v80_v7  ;;  %308 = vmatprep.subr.mxu0 %v63_v8  ;;  %v46_v14 = vld [vmem:[%s655_s1 + $0x60] sm:$0xff]  ;;  %v45_v18 = vld [vmem:[%s655_s1 + $0x58] sm:$0xff]  ;;  %v44_v22 = vld [vmem:[%s655_s1 + $0x50] sm:$0xff] }
   0x8   :  { %343 = vmatprep.subr.mxu1 %v95_v9  ;;  %v78_v15 = vld [vmem:[%s655_s1 + $0x160] sm:$0xff]  ;;  %309 = vmatpush3.msra.mxu0 %v47_v10  ;;  %v77_v19 = vld [vmem:[%s655_s1 + $0x158] sm:$0xff]  ;;  %v76_v23 = vld [vmem:[%s655_s1 + $0x150] sm:$0xff] }
   0x9   :  { %344 = vmatpush3.msra.mxu1 %v79_v11  ;;  %310 = vmatprep.subr.mxu0 %v62_v12  ;;  %v59_v24 = vld [vmem:[%s655_s1 + $0xc8] sm:$0xff]  ;;  %v58_v31 = vld [vmem:[%s655_s1 + $0xc0] sm:$0xff]  ;;  %v57_v35 = vld [vmem:[%s655_s1 + $0xb8] sm:$0xff] }
   0xa   :  { %345 = vmatprep.subr.mxu1 %v94_v13  ;;  %311 = vmatpush3.msra.mxu0 %v46_v14  ;;  %v91_v25 = vld [vmem:[%s655_s1 + $0x1c8] sm:$0xff]  ;;  %v90_v32 = vld [vmem:[%s655_s1 + $0x1c0] sm:$0xff]  ;;  %v89_v36 = vld [vmem:[%s655_s1 + $0x1b8] sm:$0xff] }
   0xb   :  { %346 = vmatpush3.msra.mxu1 %v78_v15  ;;  %312 = vmatprep.subr.mxu0 %v61_v16  ;;  %v43_v26 = vld [vmem:[%s655_s1 + $0x48] sm:$0xff]  ;;  %v42_v33 = vld [vmem:[%s655_s1 + $0x40] sm:$0xff]  ;;  %v41_v37 = vld [vmem:[%s655_s1 + $0x38] sm:$0xff] }
   0xc   :  { %347 = vmatprep.subr.mxu1 %v93_v17  ;;  %313 = vmatpush3.msra.mxu0 %v45_v18  ;;  %v75_v27 = vld [vmem:[%s655_s1 + $0x148] sm:$0xff]  ;;  %v74_v34 = vld [vmem:[%s655_s1 + $0x140] sm:$0xff]  ;;  %v73_v38 = vld [vmem:[%s655_s1 + $0x138] sm:$0xff] }
   0xd   :  { %348 = vmatpush3.msra.mxu1 %v77_v19  ;;  %314 = vmatprep.subr.mxu0 %v60_v20  ;;  %v56_v41 = vld [vmem:[%s655_s1 + $0xb0] sm:$0xff]  ;;  %v55_v45 = vld [vmem:[%s655_s1 + $0xa8] sm:$0xff]  ;;  %v54_v49 = vld [vmem:[%s655_s1 + $0xa0] sm:$0xff] }
   0xe   :  { %349 = vmatprep.subr.mxu1 %v92_v21  ;;  %315 = vmatpush3.msra.mxu0 %v44_v22  ;;  %v88_v42 = vld [vmem:[%s655_s1 + $0x1b0] sm:$0xff]  ;;  %v87_v46 = vld [vmem:[%s655_s1 + $0x1a8] sm:$0xff]  ;;  %v86_v51 = vld [vmem:[%s655_s1 + $0x1a0] sm:$0xff] }
   0xf   :  { %350 = vmatpush3.msra.mxu1 %v76_v23  ;;  %316 = vmatprep.subr.mxu0 %v59_v24  ;;  %v40_v43 = vld [vmem:[%s655_s1 + $0x30] sm:$0xff]  ;;  %v39_v47 = vld [vmem:[%s655_s1 + $0x28] sm:$0xff]  ;;  %v38_v52 = vld [vmem:[%s655_s1 + $0x20] sm:$0xff] }
  0x10   :  { %351 = vmatprep.subr.mxu1 %v91_v25  ;;  %317 = vmatpush3.msra.mxu0 %v43_v26  ;;  %v72_v44 = vld [vmem:[%s655_s1 + $0x130] sm:$0xff]  ;;  %v71_v48 = vld [vmem:[%s655_s1 + $0x128] sm:$0xff]  ;;  %v70_v53 = vld [vmem:[%s655_s1 + $0x120] sm:$0xff] }
  0x11   :  { %352 = vmatpush3.msra.mxu1 %v75_v27  ;;  %318 = vmatprep.subr.mxu0 %v58_v31  ;;  %v377_v54 = vld [vmem:[%s654_s0] sm:$0xff]   ;;  %v53_v55 = vld [vmem:[%s655_s1 + $0x98] sm:$0xff] }
  0x12   :  { %353 = vmatprep.subr.mxu1 %v90_v32  ;;  %319 = vmatpush3.msra.mxu0 %v42_v33  ;;  %v85_v56 = vld [vmem:[%s655_s1 + $0x198] sm:$0xff] }
  0x13   :  { %354 = vmatpush3.msra.mxu1 %v74_v34  ;;  %320 = vmatprep.subr.mxu0 %v57_v35 }
  0x14   :  { %355 = vmatprep.subr.mxu1 %v89_v36  ;;  %321 = vmatpush3.msra.mxu0 %v41_v37 }
  0x15   :  { %356 = vmatpush3.msra.mxu1 %v73_v38  ;;  %322 = vmatprep.subr.mxu0 %v56_v41 }
  0x16   :  { %357 = vmatprep.subr.mxu1 %v88_v42  ;;  %323 = vmatpush3.msra.mxu0 %v40_v43 }
  0x17   :  { %358 = vmatpush3.msra.mxu1 %v72_v44  ;;  %324 = vmatprep.subr.mxu0 %v55_v45 }
  0x18   :  { %359 = vmatprep.subr.mxu1 %v87_v46  ;;  %325 = vmatpush3.msra.mxu0 %v39_v47 }
  0x19   :  { %360 = vmatpush3.msra.mxu1 %v71_v48 }
  0x1a   :  { %11 = vsyncpa [#allocation5], 0  ;;  %326 = vmatprep.subr.mxu0 %v54_v49  ;;  %361 = vmatprep.subr.mxu1 %v86_v51  ;;  %v37_v57 = vld [vmem:[%s655_s1 + $0x18] sm:$0xff]  ;;  %v111_v59 = vrot.slane %v377_v54, %v110_v50  ;;  %302 = vst.sshfl [vmem:[#allocation2] sm:$0xff pattern:$0x75316420] %v377_v54 }
  0x1b   :  { %v69_v58 = vld [vmem:[%s655_s1 + $0x118] sm:$0xff]  ;;  %327 = vmatpush3.msra.mxu0 %v38_v52  ;;  %362 = vmatpush3.msra.mxu1 %v70_v53  ;;  %v52_v60 = vld [vmem:[%s655_s1 + $0x90] sm:$0xff]  ;;  %v51_v1 = vld [vmem:[%s655_s1 + $0x88] sm:$0xff]  ;;  %s423_s14 = smov [#allocation2]  }
  0x1c   :  { %v84_v61 = vld [vmem:[%s655_s1 + $0x190] sm:$0xff]  ;;  %328 = vmatprep.subr.mxu0 %v53_v55  ;;  %363 = vmatprep.subr.mxu1 %v85_v56  ;;  %v112_v0 = vcombine.high %v111_v59, %v111_v59  ;;  %v83_v2 = vld [vmem:[%s655_s1 + $0x188] sm:$0xff]  ;;  %v119_v3 = vrot.slane %v111_v59, %v110_v50  ;;  %v50_v7 = vld [vmem:[%s655_s1 + $0x80] sm:$0xff]  ;;  %s280_s15 = sshll.u32 %s423_s14, 4  ;;  %s281_s15 = int_to_ptr.vmem [resolvable:$true] %s280_s15 }
  0x1d   :  { %v36_v62 = vld [vmem:[%s655_s1 + $0x10] sm:$0xff]  ;;  %329 = vmatpush3.msra.mxu0 %v37_v57  ;;  %364 = vmatpush3.msra.mxu1 %v69_v58  ;;  %v35_v4 = vld [vmem:[%s655_s1 + $0x8] sm:$0xff]  ;;  %v82_v8 = vld [vmem:[%s655_s1 + $0x180] sm:$0xff]  ;;  %s378_s16 = scalar_lea.vmem %s281_s15, 128  ;;  %p383_p1 = scmp.lt.s32.totalorder %s281_s15, %s281_s15 }
  0x1e   :  { %v68_v63 = vld [vmem:[%s655_s1 + $0x110] sm:$0xff]  ;;  %330 = vmatprep.subr.mxu0 %v52_v60  ;;  %365 = vmatprep.subr.mxu1 %v84_v61  ;;  %v67_v5 = vld [vmem:[%s655_s1 + $0x108] sm:$0xff]  ;;  %v126_v6 = vrot.slane %v112_v0, %v110_v50  ;;  %v34_v9 = vld [vmem:[%s655_s1] sm:$0xff]  ;;  %v127_v12 = vcombine.high %v119_v3, %v119_v3  ;;  %p379_p0 = scmp.ne.s32.totalorder %s281_s15, %s378_s16  ;;  %p384_p2 = scmp.lt.s32.totalorder %s378_s16, %s378_s16 }
  0x1f   :  { %331 = vmatpush3.msra.mxu0 %v36_v62  ;;  %366 = vmatpush3.msra.mxu1 %v68_v63  ;;  %v66_v11 = vld [vmem:[%s655_s1 + $0x100] sm:$0xff] }
  0x20   :  { %332 = vmatprep.subr.mxu0 %v51_v1  ;;  %367 = vmatprep.subr.mxu1 %v83_v2  ;;  %v128_v10 = vcombine.high %v126_v6, %v126_v6  ;;  %p385_p3 = por %p384_p2, %p383_p1 }
  0x21   :  { %333 = vmatpush3.msra.mxu0 %v35_v4  ;;  %368 = vmatpush3.msra.mxu1 %v67_v5 }
  0x22   :  { %334 = vmatprep.subr.mxu0 %v50_v7  ;;  %369 = vmatprep.subr.mxu1 %v82_v8  ;;  %p386_p4 = pnand %p385_p3, %p379_p0 }
  0x23   :  { %335 = vmatpush3.msra.mxu0 %v34_v9  ;;  %197 = vmatprep.mubr.f32.mxu0 %v126_v6 }
  0x24   :  { %370 = vmatpush3.msra.mxu1 %v66_v11  ;;  %267 = vmatprep.mubr.f32.mxu1 %v128_v10 }
  0x25   :  { %198 = vmatmul.mubr.f32.vlgmr.msra.gmra.mxu0 %v119_v3  ;;  %268 = vmatmul.mubr.f32.vlgmr.msra.gmra.mxu1 %v127_v12 }
  0x26   :  { %389 = shalt.err (!%p386_p4)
}
  0x27   :  { %283 = dma.vmem_to_hbm [thread:$0]  %s281_s15, 128, %s657_s3, [#allocation3]   ;;  %v303_v15 = vld [vmem:[%s656_s2] ss:$0 sm:$0xff] }
  0x28   :  { %s424_s19 = smov [#allocation4]  }
  0x29   :  { %s290_s20 = sshll.u32 %s424_s19, 4  ;;  %s291_s20 = int_to_ptr.vmem [resolvable:$true] %s290_s20 }
  0x2a   :  { %s398_s21 = scalar_lea.vmem %s291_s20, 32  ;;  %p403_p6 = scmp.lt.s32.totalorder %s291_s20, %s291_s20 }
  0x2b   :  { %p399_p5 = scmp.ne.s32.totalorder %s291_s20, %s398_s21  ;;  %p404_p7 = scmp.lt.s32.totalorder %s398_s21, %s398_s21 }
  0x2d   :  { %p405_p8 = por %p404_p7, %p403_p6 }
  0x2f   :  { %p406_p9 = pnand %p405_p8, %p399_p5 }
  0xe5   :  { %v336_v13 = vpop.f32.mrf.mxu0  ;;  %v371_v14 = vpop.f32.mrf.mxu1 }
  0xe7   :  { %v337_v16 = vpop.f32.mrf.mxu0  ;;  %v372_v17 = vpop.f32.mrf.mxu1 }
  0xe8   :  { %v338_v18 = vadd.f32 %v337_v16, %v336_v13  ;;  %v373_v20 = vadd.f32 %v372_v17, %v371_v14 }
  0xea   :  { %v200_v19 = vadd.f32 %v338_v18, %v303_v15 }
  0xec   :  { %v270_v21 = vadd.f32 %v373_v20, %v200_v19 }
  0xee   :  { %273 = vst [vmem:[#allocation4] sm:$0x3] %v270_v21 }
  0xef   :  { %409 = shalt.err (!%p406_p9)
}
  0xf0   :  { %293 = dma.vmem_to_hbm [thread:$0]  %s291_s20, 32, %s658_s4, [#allocation5]  }
  0xf1   :  { %418 = dma.done.wait [#allocation3], 128  }
  0xf2   :  { %419 = vsyncadd [#allocation3], 4294967168 }
  0xf3   :  { %420 = dma.done.wait [#allocation5], 32  }
  0xf4   :  { %421 = vsyncadd [#allocation5], 4294967264 }
  0xf5   :  { %300 = vsyncpa [#allocation3], 1 }
  0xf6   :  { %301 = vsyncpa [#allocation5], 1 }

// kernel: cornet_z_tweak_forward.8
= control target key start
LH: loop header
LB: loop body
LE: loop exit
PB: predicated region body
PF: predicated region fallthrough
CT: control target
= control target key end

     0   :  { %s7158_s12 = smov 0   ;;  %s9190_s0 = inlined_call_operand.vmem [shape: f32[2,2,2,256], index: 0, kind: input, shape index: {}]   ;;  %s9191_s1 = inlined_call_operand.vmem [shape: bf16[9,256,512], index: 1, kind: input, shape index: {}]   ;;  %s9192_s2 = inlined_call_operand.vmem [shape: f32[1,512], index: 2, kind: input, shape index: {}]   ;;  %s9193_s3 = inlined_call_operand.vmem [shape: f32[2,1,1,512], index: 3, kind: output, shape index: {}]  }
   0x1 LB: > { %s5144_s13 = sadd.s32 4294967295, %s7132_s12   ;;  %p5148_p0 = scmp.ge.s32.totalorder %s7132_s12, 1  ;;  %s7132_s12 = sphi %s7158_s12, %s13_s12  }
   0x2   : > { %p137_p1 = scmp.lt.s32.totalorder %s7132_s12, 3 }
   0x4   : > { %p138_p2 = pnand %p5148_p0, %p137_p1 }
   0x5   : > { %p160_p3 = scmp.lt.s32.totalorder (!%p138_p2), %s5144_s13, 1 }
   0x6   : > { %141 = sbr.rel (%p138_p2) target bundleno = 830 (0x33e), region = 32 }
   0xb   : > { %v6262_v0 = vld [vmem:[%s9191_s1 + $0x2e4] ss:$16 sps:$4 sm:$0xff]   ;;  %v6264_v1 = vld [vmem:[%s9191_s1 + $0x2ec] ss:$16 sps:$4 sm:$0xff]   ;;  %v6266_v2 = vld [vmem:[%s9191_s1 + $0x2e0] ss:$16 sps:$4 sm:$0xff]   ;;  %v261_v43 = vlaneseq }
   0xc   : > { %809 = vmatprep.subr.bf16.mxu0 %v6262_v0  ;;  %v6267_v3 = vld [vmem:[%s9191_s1 + $0x2e8] ss:$16 sps:$4 sm:$0xff]   ;;  %850 = vmatprep.subr.bf16.mxu1 %v6264_v1  ;;  %v6268_v4 = vld [vmem:[%s9191_s1 + $0x2c4] ss:$16 sps:$4 sm:$0xff]   ;;  %v6270_v5 = vld [vmem:[%s9191_s1 + $0x2cc] ss:$16 sps:$4 sm:$0xff]  }
   0xd   : > { %810 = vmatpush1.bf16.msra.mxu0 %v6266_v2  ;;  %851 = vmatpush1.bf16.msra.mxu1 %v6267_v3  ;;  %v6272_v6 = vld [vmem:[%s9191_s1 + $0x2c0] ss:$16 sps:$4 sm:$0xff]   ;;  %v6273_v7 = vld [vmem:[%s9191_s1 + $0x2c8] ss:$16 sps:$4 sm:$0xff]   ;;  %v6274_v8 = vld [vmem:[%s9191_s1 + $0x2a4] ss:$16 sps:$4 sm:$0xff]  }
   0xe   : > { %811 = vmatprep.subr.bf16.mxu0 %v6268_v4  ;;  %852 = vmatprep.subr.bf16.mxu1 %v6270_v5  ;;  %v6276_v9 = vld [vmem:[%s9191_s1 + $0x2ac] ss:$16 sps:$4 sm:$0xff]   ;;  %v6278_v10 = vld [vmem:[%s9191_s1 + $0x2a0] ss:$16 sps:$4 sm:$0xff]   ;;  %v6279_v11 = vld [vmem:[%s9191_s1 + $0x2a8] ss:$16 sps:$4 sm:$0xff]  }
   0xf   : > { %v6280_v12 = vld [vmem:[%s9191_s1 + $0x284] ss:$16 sps:$4 sm:$0xff]   ;;  %v6282_v13 = vld [vmem:[%s9191_s1 + $0x28c] ss:$16 sps:$4 sm:$0xff]   ;;  %v6284_v14 = vld [vmem:[%s9191_s1 + $0x280] ss:$16 sps:$4 sm:$0xff]  }
  0x10   : > { %v6285_v15 = vld [vmem:[%s9191_s1 + $0x288] ss:$16 sps:$4 sm:$0xff]   ;;  %v6286_v16 = vld [vmem:[%s9191_s1 + $0x264] ss:$16 sps:$4 sm:$0xff]   ;;  %v6288_v17 = vld [vmem:[%s9191_s1 + $0x26c] ss:$16 sps:$4 sm:$0xff]  }
  0x11   : > { %812 = vmatpush1.bf16.msra.mxu0 %v6272_v6  ;;  %853 = vmatpush1.bf16.msra.mxu1 %v6273_v7  ;;  %v6290_v18 = vld [vmem:[%s9191_s1 + $0x260] ss:$16 sps:$4 sm:$0xff]   ;;  %v6291_v19 = vld [vmem:[%s9191_s1 + $0x268] ss:$16 sps:$4 sm:$0xff]   ;;  %v6292_v20 = vld [vmem:[%s9191_s1 + $0x244] ss:$16 sps:$4 sm:$0xff]  }
  0x12   : > { %813 = vmatprep.subr.bf16.mxu0 %v6274_v8  ;;  %854 = vmatprep.subr.bf16.mxu1 %v6276_v9  ;;  %v6294_v21 = vld [vmem:[%s9191_s1 + $0x24c] ss:$16 sps:$4 sm:$0xff]   ;;  %v6296_v22 = vld [vmem:[%s9191_s1 + $0x240] ss:$16 sps:$4 sm:$0xff]   ;;  %v6297_v23 = vld [vmem:[%s9191_s1 + $0x248] ss:$16 sps:$4 sm:$0xff]  }
  0x13   : > { %v6298_v24 = vld [vmem:[%s9191_s1 + $0x224] ss:$16 sps:$4 sm:$0xff]   ;;  %v6300_v25 = vld [vmem:[%s9191_s1 + $0x22c] ss:$16 sps:$4 sm:$0xff]   ;;  %v6302_v26 = vld [vmem:[%s9191_s1 + $0x220] ss:$16 sps:$4 sm:$0xff]  }
  0x14   : > { %v6303_v27 = vld [vmem:[%s9191_s1 + $0x228] ss:$16 sps:$4 sm:$0xff]   ;;  %v6304_v28 = vld [vmem:[%s9191_s1 + $0x204] ss:$16 sps:$4 sm:$0xff]   ;;  %v6306_v29 = vld [vmem:[%s9191_s1 + $0x20c] ss:$16 sps:$4 sm:$0xff]  }
  0x15   : > { %814 = vmatpush1.bf16.msra.mxu0 %v6278_v10  ;;  %855 = vmatpush1.bf16.msra.mxu1 %v6279_v11  ;;  %v6308_v30 = vld [vmem:[%s9191_s1 + $0x200] ss:$16 sps:$4 sm:$0xff]   ;;  %v6309_v31 = vld [vmem:[%s9191_s1 + $0x208] ss:$16 sps:$4 sm:$0xff]   ;;  %v6310_v32 = vld [vmem:[%s9191_s1 + $0x3e4] ss:$16 sps:$4 sm:$0xff]  }
  0x16   : > { %815 = vmatprep.subr.bf16.mxu0 %v6280_v12  ;;  %856 = vmatprep.subr.bf16.mxu1 %v6282_v13  ;;  %v6312_v33 = vld [vmem:[%s9191_s1 + $0x3ec] ss:$16 sps:$4 sm:$0xff]   ;;  %v6314_v34 = vld [vmem:[%s9191_s1 + $0x3e0] ss:$16 sps:$4 sm:$0xff]   ;;  %v6315_v35 = vld [vmem:[%s9191_s1 + $0x3e8] ss:$16 sps:$4 sm:$0xff]  }
  0x17   : > { %v6316_v36 = vld [vmem:[%s9191_s1 + $0x3c4] ss:$16 sps:$4 sm:$0xff]   ;;  %s9205_s13 = smov (!%p160_p3, %s5144_s13), 1  ;;  %v6318_v37 = vld [vmem:[%s9191_s1 + $0x3cc] ss:$16 sps:$4 sm:$0xff]   ;;  %v7135_v45 = vmov 0  }
  0x18   : > { %v6320_v38 = vld [vmem:[%s9191_s1 + $0x3c0] ss:$16 sps:$4 sm:$0xff]   ;;  %v6321_v39 = vld [vmem:[%s9191_s1 + $0x3c8] ss:$16 sps:$4 sm:$0xff]   ;;  %v6322_v40 = vld [vmem:[%s9191_s1 + $0x3a4] ss:$16 sps:$4 sm:$0xff]  }
  0x19   : > { %816 = vmatpush1.bf16.msra.mxu0 %v6284_v14  ;;  %857 = vmatpush1.bf16.msra.mxu1 %v6285_v15  ;;  %v7134_v41 = vmov 1966171168   ;;  %v6324_v44 = vld [vmem:[%s9191_s1 + $0x3ac] ss:$16 sps:$4 sm:$0xff]   ;;  %s6249_s23 = sshll.u32 %s9205_s13, 3  ;;  %v201_v46 = vrot.slane %v7135_v45, 7 }
  0x1a   : > { %817 = vmatprep.subr.bf16.mxu0 %v6286_v16  ;;  %858 = vmatprep.subr.bf16.mxu1 %v6288_v17  ;;  %v259_v42 = vunpack.c.l.s4 %v7134_v41  ;;  %vm238_vm0 = vcmask 1040384   ;;  %vm239_vm1 = vsmask.f32 256  ;;  %v6326_v47 = vld [vmem:[%s9191_s1 + $0x3a0] ss:$16 sps:$4 sm:$0xff]   ;;  %s164_s5 = scalar_lea.vmem %s9190_s0, %s6249_s23  ;;  %vm246_vm3 = vcmask 1041408  }
  0x1b   : > { %v6327_v48 = vld [vmem:[%s9191_s1 + $0x3a8] ss:$16 sps:$4 sm:$0xff]   ;;  %vm247_vm2 = vsmask.f32 1280  ;;  %v6328_v49 = vld [vmem:[%s9191_s1 + $0x384] ss:$16 sps:$4 sm:$0xff]   ;;  %vm7325_vm5 = vmand %vm238_vm0, %vm239_vm1 }
  0x1c   : > { %v260_v50 = vunpack.c.0.s8 %v259_v42  ;;  %v7312_v51 = vshrl.u32 %v261_v43, 7  ;;  %v6330_v52 = vld [vmem:[%s9191_s1 + $0x38c] ss:$16 sps:$4 sm:$0xff]   ;;  %vm367_vm4 = vsmask.f32 1284  ;;  %v241_v57 = vsel %vm7325_vm5, 0, %v201_v46  ;;  %vm7332_vm7 = vmand %vm246_vm3, %vm247_vm2 }
  0x1d   : > { %818 = vmatpush1.bf16.msra.mxu0 %v6290_v18  ;;  %859 = vmatpush1.bf16.msra.mxu1 %v6291_v19  ;;  %v6332_v53 = vld [vmem:[%s9191_s1 + $0x380] ss:$16 sps:$4 sm:$0xff]   ;;  %v6333_v54 = vld [vmem:[%s9191_s1 + $0x388] ss:$16 sps:$4 sm:$0xff]   ;;  %vm369_vm6 = vsmask.f32 2312  ;;  %vm368_vm8 = vmor %vm239_vm1, %vm367_vm4 }
  0x1e   : > { %819 = vmatprep.subr.bf16.mxu0 %v6292_v20  ;;  %860 = vmatprep.subr.bf16.mxu1 %v6294_v21  ;;  %v5152_v56 = vld.sshfl [vmem:[%s164_s5] sm:$0x33 pattern:$0x76325410]  ;;  %v249_v62 = vsel %vm7332_vm7, %v241_v57, 0  ;;  %v7339_v63 = vsub.s32 %v260_v50, %v7312_v51  ;;  %vm7353_vm10 = vmor %vm368_vm8, %vm369_vm6  ;;  %s5151_s22 = sshll.u32 %s9205_s13, 2 }
  0x1f   : > { %v5153_v59 = vld.sshfl [vmem:[%s164_s5 + $0x4] sm:$0x33 pattern:$0x76325410]  ;;  %v181_v60 = vcombine.high %v5152_v56, %v5152_v56  ;;  %v194_v61 = vpack.c.bf16 %v5152_v56, %v5152_v56  ;;  %v6336_v1 = vld [vmem:[%s9191_s1 + $0x36c] ss:$16 sps:$4 sm:$0xff]   ;;  %v257_v4 = vcombine.low %v249_v62, %v249_v62  ;;  %s168_s25 = scalar_lea.vmem %s9193_s3, %s5151_s22 }
  0x20   : > { %v6334_v0 = vld [vmem:[%s9191_s1 + $0x364] ss:$16 sps:$4 sm:$0xff]   ;;  %v189_v2 = vcombine.high %v5153_v59, %v5153_v59  ;;  %v196_v3 = vpack.c.bf16 %v5153_v59, %v5153_v59  ;;  %vm371_vm9 = vsmask.f32 3340  ;;  %v6338_v5 = vld [vmem:[%s9191_s1 + $0x360] ss:$16 sps:$4 sm:$0xff]  }
  0x21   : > { %820 = vmatpush1.bf16.msra.mxu0 %v6296_v22  ;;  %861 = vmatpush1.bf16.msra.mxu1 %v6297_v23  ;;  %v195_v6 = vpack.c.bf16 %v181_v60, %v181_v60  ;;  %v206_v7 = vshrl.u32 %v194_v61, 16  ;;  %v209_v8 = vshll.u32 %v194_v61, 16  ;;  %vm373_vm11 = vsmask.f32 4368  ;;  %v6339_v10 = vld [vmem:[%s9191_s1 + $0x368] ss:$16 sps:$4 sm:$0xff]   ;;  %vm372_vm12 = vmor %vm7353_vm10, %vm371_vm9 }
  0x22   : > { %821 = vmatprep.subr.bf16.mxu0 %v6298_v24  ;;  %862 = vmatprep.subr.bf16.mxu1 %v6300_v25  ;;  %v6340_v11 = vld [vmem:[%s9191_s1 + $0x344] ss:$16 sps:$4 sm:$0xff]   ;;  %v197_v12 = vpack.c.bf16 %v189_v2, %v189_v2  ;;  %v220_v13 = vshrl.u32 %v196_v3, 16  ;;  %v223_v14 = vshll.u32 %v196_v3, 16  ;;  %v264_v18 = vrot.slane %v257_v4, %v7339_v63  ;;  %v6342_v19 = vld [vmem:[%s9191_s1 + $0x34c] ss:$16 sps:$4 sm:$0xff]   ;;  %vm374_vm13 = vmor %vm372_vm12, %vm373_vm11 }
  0x23   : > { %v208_v15 = vrot.slane %v206_v7, 7  ;;  %v213_v16 = vshrl.u32 %v195_v6, 16  ;;  %v216_v17 = vshll.u32 %v195_v6, 16  ;;  %v6344_v23 = vld [vmem:[%s9191_s1 + $0x340] ss:$16 sps:$4 sm:$0xff]  }
  0x24   : > { %v222_v20 = vrot.slane %v220_v13, 7  ;;  %v227_v21 = vshrl.u32 %v197_v12, 16  ;;  %v230_v22 = vshll.u32 %v197_v12, 16  ;;  %vm375_vm14 = vsmask.f32 5396 }
  0x25   : > { %822 = vmatpush1.bf16.msra.mxu0 %v6302_v26  ;;  %863 = vmatpush1.bf16.msra.mxu1 %v6303_v27  ;;  %v211_v24 = vor.u32 %v209_v8, %v208_v15  ;;  %v215_v25 = vrot.slane %v213_v16, 7  ;;  %v6345_v26 = vld [vmem:[%s9191_s1 + $0x348] ss:$16 sps:$4 sm:$0xff]   ;;  %v6346_v27 = vld [vmem:[%s9191_s1 + $0x324] ss:$16 sps:$4 sm:$0xff]   ;;  %vm7397_vm15 = vmor %vm374_vm13, %vm375_vm14  ;;  %v7410_v46 = vrot.slane %v264_v18, %v7339_v63 }
  0x26   : > { %823 = vmatprep.subr.bf16.mxu0 %v6304_v28  ;;  %864 = vmatprep.subr.bf16.mxu1 %v6306_v29  ;;  %v225_v28 = vor.u32 %v223_v14, %v222_v20  ;;  %v229_v29 = vrot.slane %v227_v21, 7  ;;  %vm377_vm1 = vsmask.f32 6424  ;;  %v6350_v42 = vld [vmem:[%s9191_s1 + $0x320] ss:$16 sps:$4 sm:$0xff]  }
  0x27   : > { %v6354_v50 = vld [vmem:[%s9191_s1 + $0x30c] ss:$16 sps:$4 sm:$0xff]   ;;  %vm378_vm2 = vmor %vm7397_vm15, %vm377_vm1  ;;  %vm379_vm3 = vsmask.f32 7452  ;;  %v6357_v55 = vld [vmem:[%s9191_s1 + $0x308] ss:$16 sps:$4 sm:$0xff]  }
  0x28   : > { %v382_v59 = vshrl.u32 %v7410_v46, 16  ;;  %v6360_v61 = vld [vmem:[%s9191_s1 + $0xe4] ss:$16 sps:$4 sm:$0xff]   ;;  %vm7440_vm4 = vmor %vm378_vm2, %vm379_vm3  ;;  %v6363_v2 = vld [vmem:[%s9191_s1 + $0xec] ss:$16 sps:$4 sm:$0xff]  }
  0x29   : > { %824 = vmatpush1.bf16.msra.mxu0 %v6308_v30  ;;  %865 = vmatpush1.bf16.msra.mxu1 %v6309_v31  ;;  %v218_v30 = vor.u32 %v216_v17, %v215_v25  ;;  %v242_v31 = vsel %vm7325_vm5, 0, %v211_v24  ;;  %v6366_v24 = vld [vmem:[%s9191_s1 + $0xc4] ss:$16 sps:$4 sm:$0xff]   ;;  %v6369_v25 = vld [vmem:[%s9191_s1 + $0xcc] ss:$16 sps:$4 sm:$0xff]  }
  0x2a   : > { %825 = vmatprep.subr.bf16.mxu0 %v6310_v32  ;;  %866 = vmatprep.subr.bf16.mxu1 %v6312_v33  ;;  %v351_v32 = vcombine.high %v264_v18, %v264_v18  ;;  %v6348_v33 = vld [vmem:[%s9191_s1 + $0x32c] ss:$16 sps:$4 sm:$0xff]   ;;  %v6390_v41 = vld [vmem:[%s9191_s1 + $0x44] ss:$16 sps:$4 sm:$0xff]  }
  0x2b   : > { %v6414_v62 = vld [vmem:[%s9191_s1 + $0x1c4] ss:$16 sps:$4 sm:$0xff]  }
  0x2d   : > { %826 = vmatpush2.bf16.msra.mxu0 %v6314_v34  ;;  %867 = vmatpush2.bf16.msra.mxu1 %v6315_v35  ;;  %v232_v34 = vor.u32 %v230_v22, %v229_v29  ;;  %v244_v35 = vsel %vm7325_vm5, 0, %v225_v28  ;;  %v6358_v22 = vld [vmem:[%s9191_s1 + $0xe0] ss:$16 sps:$4 sm:$0xff]   ;;  %v6367_v28 = vld [vmem:[%s9191_s1 + $0xc8] ss:$16 sps:$4 sm:$0xff]  }
  0x2e   : > { %827 = vmatprep.subr.bf16.mxu0 %v6316_v36  ;;  %868 = vmatprep.subr.bf16.mxu1 %v6318_v37  ;;  %v250_v36 = vsel %vm7332_vm7, %v242_v31, 0  ;;  %v243_v37 = vsel %vm7325_vm5, 0, %v218_v30  ;;  %v6372_v29 = vld [vmem:[%s9191_s1 + $0xa4] ss:$16 sps:$4 sm:$0xff]   ;;  %v6375_v30 = vld [vmem:[%s9191_s1 + $0xac] ss:$16 sps:$4 sm:$0xff]  }
  0x2f   : > { %v6370_v31 = vld [vmem:[%s9191_s1 + $0xa0] ss:$16 sps:$4 sm:$0xff]  }
  0x31   : > { %828 = vmatpush2.bf16.msra.mxu0 %v6320_v38  ;;  %869 = vmatpush2.bf16.msra.mxu1 %v6321_v39  ;;  %v252_v38 = vsel %vm7332_vm7, %v244_v35, 0  ;;  %v245_v39 = vsel %vm7325_vm5, 0, %v232_v34  ;;  %v6381_v34 = vld [vmem:[%s9191_s1 + $0x8c] ss:$16 sps:$4 sm:$0xff]   ;;  %v6376_v35 = vld [vmem:[%s9191_s1 + $0x80] ss:$16 sps:$4 sm:$0xff]  }
  0x32   : > { %829 = vmatprep.subr.bf16.mxu0 %v6322_v40  ;;  %870 = vmatprep.subr.bf16.mxu1 %v6324_v44  ;;  %v251_v40 = vsel %vm7332_vm7, %v243_v37, 0  ;;  %v6351_v44 = vld [vmem:[%s9191_s1 + $0x328] ss:$16 sps:$4 sm:$0xff]   ;;  %v253_v45 = vsel %vm7332_vm7, %v245_v39, 0  ;;  %v6384_v37 = vld [vmem:[%s9191_s1 + $0x64] ss:$16 sps:$4 sm:$0xff]  }
  0x33   : > { %v6382_v39 = vld [vmem:[%s9191_s1 + $0x60] ss:$16 sps:$4 sm:$0xff]   ;;  %vm4939_vm5 = vcmask 1042432  }
  0x35   : > { %830 = vmatpush2.bf16.msra.mxu0 %v6326_v47  ;;  %871 = vmatpush2.bf16.msra.mxu1 %v6327_v48  ;;  %v272_v47 = vcombine.low %v250_v36, %v251_v40  ;;  %v7413_v48 = vrot.slane %v351_v32, %v7339_v63  ;;  %v6373_v32 = vld [vmem:[%s9191_s1 + $0xa8] ss:$16 sps:$4 sm:$0xff]  }
  0x36   : > { %831 = vmatprep.subr.bf16.mxu0 %v6328_v49  ;;  %872 = vmatprep.subr.bf16.mxu1 %v6330_v52  ;;  %v6352_v49 = vld [vmem:[%s9191_s1 + $0x304] ss:$16 sps:$4 sm:$0xff]   ;;  %v1816_v52 = vcombine.low %v252_v38, %v253_v45  ;;  %v6379_v36 = vld [vmem:[%s9191_s1 + $0x88] ss:$16 sps:$4 sm:$0xff]   ;;  %v6387_v38 = vld [vmem:[%s9191_s1 + $0x6c] ss:$16 sps:$4 sm:$0xff]  }
  0x37   : > { %v387_v60 = vshll.u32 %v7413_v48, 16  ;;  %v6385_v40 = vld [vmem:[%s9191_s1 + $0x68] ss:$16 sps:$4 sm:$0xff]  }
  0x38   : > { %v1823_v56 = vrot.slane %v1816_v52, %v7339_v63  ;;  %v6391_v45 = vld [vmem:[%s9191_s1 + $0x48] ss:$16 sps:$4 sm:$0xff]  }
  0x39   : > { %832 = vmatpush2.bf16.msra.mxu0 %v6332_v53  ;;  %873 = vmatpush2.bf16.msra.mxu1 %v6333_v54  ;;  %v6356_v53 = vld [vmem:[%s9191_s1 + $0x300] ss:$16 sps:$4 sm:$0xff]   ;;  %v279_v54 = vrot.slane %v272_v47, %v7339_v63  ;;  %v7462_v8 = vsel %vm7440_vm4, %v382_v59, %v387_v60  ;;  %v6396_v47 = vld [vmem:[%s9191_s1 + $0x24] ss:$16 sps:$4 sm:$0xff]   ;;  %v6397_v52 = vld [vmem:[%s9191_s1 + $0x28] ss:$16 sps:$4 sm:$0xff]  }
  0x3a   : > { %833 = vmatprep.subr.bf16.mxu0 %v6334_v0  ;;  %874 = vmatprep.subr.bf16.mxu1 %v6336_v1  ;;  %v7445_v0 = vrot.slane %v1823_v56, %v7339_v63  ;;  %v2327_v1 = vcombine.high %v1823_v56, %v1823_v56  ;;  %v6403_v56 = vld [vmem:[%s9191_s1 + $0x8] ss:$16 sps:$4 sm:$0xff]   ;;  %v6411_v59 = vld [vmem:[%s9191_s1 + $0x1ec] ss:$16 sps:$4 sm:$0xff]   ;;  %v6406_v60 = vld [vmem:[%s9191_s1 + $0x1e0] ss:$16 sps:$4 sm:$0xff]  }
  0x3b   : > { %v7433_v57 = vrot.slane %v279_v54, %v7339_v63  ;;  %v359_v58 = vcombine.high %v279_v54, %v279_v54  ;;  %v6405_v54 = vld [vmem:[%s9191_s1 + $0xc] ss:$16 sps:$4 sm:$0xff]  }
  0x3c   : > { %v2336_v6 = vshrl.u32 %v7445_v0, 16 }
  0x3d   : > { %834 = vmatpush2.bf16.msra.mxu0 %v6338_v5  ;;  %875 = vmatpush2.bf16.msra.mxu1 %v6339_v10  ;;  %v7451_v3 = vrot.slane %v359_v58, %v7339_v63  ;;  %v391_v4 = vshrl.u32 %v7433_v57, 16  ;;  %v7455_v5 = vrot.slane %v2327_v1, %v7339_v63  ;;  %v891_v7 = vcombine.low %v7410_v46, %v7433_v57  ;;  %v6408_v58 = vld [vmem:[%s9191_s1 + $0x1e4] ss:$16 sps:$4 sm:$0xff]   ;;  %v6417_v1 = vld [vmem:[%s9191_s1 + $0x1cc] ss:$16 sps:$4 sm:$0xff]  }
  0x3e   : > { %835 = vmatprep.subr.bf16.mxu0 %v6340_v11  ;;  %876 = vmatprep.subr.bf16.mxu1 %v6342_v19 }
  0x3f   : > { %v396_v9 = vshll.u32 %v7451_v3, 16  ;;  %v2341_v10 = vshll.u32 %v7455_v5, 16  ;;  %v7477_v14 = vrot.slane %v891_v7, %v7339_v63  ;;  %v6423_v7 = vld [vmem:[%s9191_s1 + $0x1ac] ss:$16 sps:$4 sm:$0xff]  }
  0x41   : > { %836 = vmatpush2.bf16.msra.mxu0 %v6344_v23  ;;  %877 = vmatpush2.bf16.msra.mxu1 %v6345_v26  ;;  %v7468_v11 = vsel %vm7440_vm4, %v391_v4, %v396_v9  ;;  %v7474_v13 = vsel %vm7440_vm4, %v2336_v6, %v2341_v10  ;;  %v899_v19 = vcombine.high %v7477_v14, %v7477_v14  ;;  %v6361_v23 = vld [vmem:[%s9191_s1 + $0xe8] ss:$16 sps:$4 sm:$0xff]   ;;  %v6420_v6 = vld [vmem:[%s9191_s1 + $0x1a4] ss:$16 sps:$4 sm:$0xff]   ;;  %v6418_v9 = vld [vmem:[%s9191_s1 + $0x1a0] ss:$16 sps:$4 sm:$0xff]  }
  0x42   : > { %837 = vmatprep.subr.bf16.mxu0 %v6346_v27  ;;  %878 = vmatprep.subr.bf16.mxu1 %v6348_v33  ;;  %v464_v12 = vcombine.low %v7462_v8, %v7468_v11  ;;  %v2409_v15 = vcombine.low %v7468_v11, %v7474_v13  ;;  %v3897_v16 = vcombine.low %v7474_v13, %v7462_v8  ;;  %v6364_v27 = vld [vmem:[%s9191_s1 + $0xc0] ss:$16 sps:$4 sm:$0xff]   ;;  %v6378_v33 = vld [vmem:[%s9191_s1 + $0x84] ss:$16 sps:$4 sm:$0xff]   ;;  %v6415_v4 = vld [vmem:[%s9191_s1 + $0x1c8] ss:$16 sps:$4 sm:$0xff]  }
  0x43   : > { %v913_v26 = vrot.slane %v899_v19, %v7339_v63  ;;  %v6421_v10 = vld [vmem:[%s9191_s1 + $0x1a8] ss:$16 sps:$4 sm:$0xff]   ;;  %v6651_v11 = vld [vmem:[%s9191_s1 + $0x8ec] ss:$16 sps:$4 sm:$0xff]  }
  0x44   : > { %v471_v17 = vrot.slane %v464_v12, %v7339_v63  ;;  %v6426_v12 = vld [vmem:[%s9191_s1 + $0x184] ss:$16 sps:$4 sm:$0xff]   ;;  %v6427_v19 = vld [vmem:[%s9191_s1 + $0x188] ss:$16 sps:$4 sm:$0xff]   ;;  %v6939_v8 = vld [vmem:[%s9191_s1 + $0xeec] ss:$16 sps:$4 sm:$0xff]  }
  0x45   : > { %838 = vmatpush2.bf16.msra.mxu0 %v6350_v42  ;;  %879 = vmatpush2.bf16.msra.mxu1 %v6351_v44  ;;  %v6393_v42 = vld [vmem:[%s9191_s1 + $0x4c] ss:$16 sps:$4 sm:$0xff]   ;;  %v6388_v44 = vld [vmem:[%s9191_s1 + $0x40] ss:$16 sps:$4 sm:$0xff]  }
  0x46   : > { %839 = vmatprep.subr.bf16.mxu0 %v6352_v49  ;;  %880 = vmatprep.subr.bf16.mxu1 %v6354_v50  ;;  %v472_v18 = vcombine.high %v471_v17, %v471_v17  ;;  %v479_v20 = vrot.slane %v471_v17, %v7339_v63  ;;  %v6399_v49 = vld [vmem:[%s9191_s1 + $0x2c] ss:$16 sps:$4 sm:$0xff]   ;;  %v6394_v50 = vld [vmem:[%s9191_s1 + $0x20] ss:$16 sps:$4 sm:$0xff]  }
  0x47   : > { %v6429_v17 = vld [vmem:[%s9191_s1 + $0x18c] ss:$16 sps:$4 sm:$0xff]  }
  0x48   : > { %v486_v21 = vrot.slane %v472_v18, %v7339_v63  ;;  %v6424_v18 = vld [vmem:[%s9191_s1 + $0x180] ss:$16 sps:$4 sm:$0xff]  }
  0x49   : > { %840 = vmatpush2.bf16.msra.mxu0 %v6356_v53  ;;  %881 = vmatpush2.bf16.msra.mxu1 %v6357_v55  ;;  %v6402_v53 = vld [vmem:[%s9191_s1 + $0x4] ss:$16 sps:$4 sm:$0xff]   ;;  %v6400_v55 = vld [vmem:[%s9191_s1] ss:$16 sps:$4 sm:$0xff]  }
  0x4a   : > { %1236 = vmatprep.subr.bf16.mxu0 %v6360_v61  ;;  %1277 = vmatprep.subr.bf16.mxu1 %v6363_v2  ;;  %v6409_v61 = vld [vmem:[%s9191_s1 + $0x1e8] ss:$16 sps:$4 sm:$0xff]   ;;  %v6412_v2 = vld [vmem:[%s9191_s1 + $0x1c0] ss:$16 sps:$4 sm:$0xff]  }
  0x4b   : > { %841 = vmatprep.mubr.bf16.mxu0 %v486_v21  ;;  %882 = vmatprep.mubr.bf16.mxu1 %v486_v21  ;;  %v6435_v21 = vld [vmem:[%s9191_s1 + $0x16c] ss:$16 sps:$4 sm:$0xff]  }
  0x4c   : > { %842 = vmatmul.mubr.bf16.vlgmr.msra.gmra.mxu0 %v479_v20  ;;  %883 = vmatmul.mubr.bf16.vlgmr.msra.gmra.mxu1 %v479_v20  ;;  %v6432_v20 = vld [vmem:[%s9191_s1 + $0x164] ss:$16 sps:$4 sm:$0xff]  }
  0x4d   : > { %1237 = vmatpush1.bf16.msra.mxu0 %v6358_v22  ;;  %1278 = vmatpush1.bf16.msra.mxu1 %v6361_v23  ;;  %v6430_v22 = vld [vmem:[%s9191_s1 + $0x160] ss:$16 sps:$4 sm:$0xff]   ;;  %v6433_v23 = vld [vmem:[%s9191_s1 + $0x168] ss:$16 sps:$4 sm:$0xff]  }
  0x4e   : > { %1238 = vmatprep.subr.bf16.mxu0 %v6366_v24  ;;  %1279 = vmatprep.subr.bf16.mxu1 %v6369_v25  ;;  %v6438_v24 = vld [vmem:[%s9191_s1 + $0x144] ss:$16 sps:$4 sm:$0xff]   ;;  %v6441_v25 = vld [vmem:[%s9191_s1 + $0x14c] ss:$16 sps:$4 sm:$0xff]  }
  0x4f   : > { %1268 = vmatprep.mubr.bf16.mxu0 %v913_v26  ;;  %1309 = vmatprep.mubr.bf16.mxu1 %v913_v26  ;;  %v6436_v26 = vld [vmem:[%s9191_s1 + $0x140] ss:$16 sps:$4 sm:$0xff]  }
  0x51   : > { %1239 = vmatpush1.bf16.msra.mxu0 %v6364_v27  ;;  %1280 = vmatpush1.bf16.msra.mxu1 %v6367_v28  ;;  %v6439_v27 = vld [vmem:[%s9191_s1 + $0x148] ss:$16 sps:$4 sm:$0xff]   ;;  %v6444_v28 = vld [vmem:[%s9191_s1 + $0x124] ss:$16 sps:$4 sm:$0xff]  }
  0x52   : > { %1240 = vmatprep.subr.bf16.mxu0 %v6372_v29  ;;  %1281 = vmatprep.subr.bf16.mxu1 %v6375_v30  ;;  %v6447_v29 = vld [vmem:[%s9191_s1 + $0x12c] ss:$16 sps:$4 sm:$0xff]   ;;  %v1383_v30 = vcombine.low %v7413_v48, %v7451_v3 }
  0x55   : > { %1241 = vmatpush1.bf16.msra.mxu0 %v6370_v31  ;;  %1282 = vmatpush1.bf16.msra.mxu1 %v6373_v32  ;;  %v6442_v31 = vld [vmem:[%s9191_s1 + $0x120] ss:$16 sps:$4 sm:$0xff]   ;;  %v6445_v32 = vld [vmem:[%s9191_s1 + $0x128] ss:$16 sps:$4 sm:$0xff]  }
  0x56   : > { %1242 = vmatprep.subr.bf16.mxu0 %v6378_v33  ;;  %1283 = vmatprep.subr.bf16.mxu1 %v6381_v34  ;;  %v6450_v33 = vld [vmem:[%s9191_s1 + $0x104] ss:$16 sps:$4 sm:$0xff]   ;;  %v6453_v34 = vld [vmem:[%s9191_s1 + $0x10c] ss:$16 sps:$4 sm:$0xff]  }
  0x59   : > { %1243 = vmatpush1.bf16.msra.mxu0 %v6376_v35  ;;  %1284 = vmatpush1.bf16.msra.mxu1 %v6379_v36  ;;  %v7672_v35 = vrot.slane %v1383_v30, %v7339_v63  ;;  %v6448_v36 = vld [vmem:[%s9191_s1 + $0x100] ss:$16 sps:$4 sm:$0xff]   ;;  %v6511_v30 = vld [vmem:[%s9191_s1 + $0x5c8] ss:$16 sps:$4 sm:$0xff]  }
  0x5a   : > { %1244 = vmatprep.subr.bf16.mxu0 %v6384_v37  ;;  %1285 = vmatprep.subr.bf16.mxu1 %v6387_v38  ;;  %v6451_v37 = vld [vmem:[%s9191_s1 + $0x108] ss:$16 sps:$4 sm:$0xff]   ;;  %v6456_v38 = vld [vmem:[%s9191_s1 + $0x4e4] ss:$16 sps:$4 sm:$0xff]  }
  0x5d   : > { %1245 = vmatpush1.bf16.msra.mxu0 %v6382_v39  ;;  %1286 = vmatpush1.bf16.msra.mxu1 %v6385_v40  ;;  %v6459_v39 = vld [vmem:[%s9191_s1 + $0x4ec] ss:$16 sps:$4 sm:$0xff]   ;;  %v1391_v40 = vcombine.high %v7672_v35, %v7672_v35 }
  0x5e   : > { %1246 = vmatprep.subr.bf16.mxu0 %v6390_v41  ;;  %1287 = vmatprep.subr.bf16.mxu1 %v6393_v42  ;;  %v906_v41 = vrot.slane %v7477_v14, %v7339_v63  ;;  %v6454_v42 = vld [vmem:[%s9191_s1 + $0x4e0] ss:$16 sps:$4 sm:$0xff]   ;;  %v6465_v14 = vld [vmem:[%s9191_s1 + $0x4cc] ss:$16 sps:$4 sm:$0xff]  }
  0x61   : > { %1247 = vmatpush1.bf16.msra.mxu0 %v6388_v44  ;;  %1288 = vmatpush1.bf16.msra.mxu1 %v6391_v45  ;;  %v6457_v44 = vld [vmem:[%s9191_s1 + $0x4e8] ss:$16 sps:$4 sm:$0xff]   ;;  %v6462_v45 = vld [vmem:[%s9191_s1 + $0x4c4] ss:$16 sps:$4 sm:$0xff]  }
  0x62   : > { %1248 = vmatprep.subr.bf16.mxu0 %v6396_v47  ;;  %1289 = vmatprep.subr.bf16.mxu1 %v6399_v49  ;;  %v1405_v47 = vrot.slane %v1391_v40, %v7339_v63  ;;  %v6460_v49 = vld [vmem:[%s9191_s1 + $0x4c0] ss:$16 sps:$4 sm:$0xff]   ;;  %v6528_v40 = vld [vmem:[%s9191_s1 + $0x564] ss:$16 sps:$4 sm:$0xff]  }
  0x65   : > { %1249 = vmatpush1.bf16.msra.mxu0 %v6394_v50  ;;  %1290 = vmatpush1.bf16.msra.mxu1 %v6397_v52  ;;  %v6463_v50 = vld [vmem:[%s9191_s1 + $0x4c8] ss:$16 sps:$4 sm:$0xff]   ;;  %v6468_v52 = vld [vmem:[%s9191_s1 + $0x4a4] ss:$16 sps:$4 sm:$0xff]  }
  0x66   : > { %1250 = vmatprep.subr.bf16.mxu0 %v6402_v53  ;;  %1291 = vmatprep.subr.bf16.mxu1 %v6405_v54  ;;  %v6471_v53 = vld [vmem:[%s9191_s1 + $0x4ac] ss:$16 sps:$4 sm:$0xff]   ;;  %v6466_v54 = vld [vmem:[%s9191_s1 + $0x4a0] ss:$16 sps:$4 sm:$0xff]  }
  0x69   : > { %1251 = vmatpush1.bf16.msra.mxu0 %v6400_v55  ;;  %1292 = vmatpush1.bf16.msra.mxu1 %v6403_v56  ;;  %v6469_v55 = vld [vmem:[%s9191_s1 + $0x4a8] ss:$16 sps:$4 sm:$0xff]   ;;  %v6474_v56 = vld [vmem:[%s9191_s1 + $0x484] ss:$16 sps:$4 sm:$0xff]  }
  0x6a   : > { %1252 = vmatprep.subr.bf16.mxu0 %v6408_v58  ;;  %1293 = vmatprep.subr.bf16.mxu1 %v6411_v59  ;;  %v6477_v58 = vld [vmem:[%s9191_s1 + $0x48c] ss:$16 sps:$4 sm:$0xff]   ;;  %v6472_v59 = vld [vmem:[%s9191_s1 + $0x480] ss:$16 sps:$4 sm:$0xff]  }
  0x6d   : > { %1253 = vmatpush2.bf16.msra.mxu0 %v6406_v60  ;;  %1294 = vmatpush2.bf16.msra.mxu1 %v6409_v61  ;;  %v6475_v60 = vld [vmem:[%s9191_s1 + $0x488] ss:$16 sps:$4 sm:$0xff]   ;;  %v6480_v61 = vld [vmem:[%s9191_s1 + $0x464] ss:$16 sps:$4 sm:$0xff]  }
  0x6e   : > { %1254 = vmatprep.subr.bf16.mxu0 %v6414_v62  ;;  %1295 = vmatprep.subr.bf16.mxu1 %v6417_v1  ;;  %v6483_v62 = vld [vmem:[%s9191_s1 + $0x46c] ss:$16 sps:$4 sm:$0xff]   ;;  %v6478_v1 = vld [vmem:[%s9191_s1 + $0x460] ss:$16 sps:$4 sm:$0xff]  }
  0x71   : > { %1255 = vmatpush2.bf16.msra.mxu0 %v6412_v2  ;;  %1296 = vmatpush2.bf16.msra.mxu1 %v6415_v4  ;;  %v6481_v2 = vld [vmem:[%s9191_s1 + $0x468] ss:$16 sps:$4 sm:$0xff]   ;;  %v6486_v4 = vld [vmem:[%s9191_s1 + $0x444] ss:$16 sps:$4 sm:$0xff]  }
  0x72   : > { %1256 = vmatprep.subr.bf16.mxu0 %v6420_v6  ;;  %1297 = vmatprep.subr.bf16.mxu1 %v6423_v7  ;;  %v6489_v6 = vld [vmem:[%s9191_s1 + $0x44c] ss:$16 sps:$4 sm:$0xff]   ;;  %v6484_v7 = vld [vmem:[%s9191_s1 + $0x440] ss:$16 sps:$4 sm:$0xff]  }
  0x75   : > { %1257 = vmatpush2.bf16.msra.mxu0 %v6418_v9  ;;  %1298 = vmatpush2.bf16.msra.mxu1 %v6421_v10  ;;  %v6487_v9 = vld [vmem:[%s9191_s1 + $0x448] ss:$16 sps:$4 sm:$0xff]   ;;  %v6492_v10 = vld [vmem:[%s9191_s1 + $0x424] ss:$16 sps:$4 sm:$0xff]  }
  0x76   : > { %1258 = vmatprep.subr.bf16.mxu0 %v6426_v12  ;;  %1299 = vmatprep.subr.bf16.mxu1 %v6429_v17  ;;  %v6495_v12 = vld [vmem:[%s9191_s1 + $0x42c] ss:$16 sps:$4 sm:$0xff]   ;;  %v6490_v17 = vld [vmem:[%s9191_s1 + $0x420] ss:$16 sps:$4 sm:$0xff]  }
  0x79   : > { %1259 = vmatpush2.bf16.msra.mxu0 %v6424_v18  ;;  %1300 = vmatpush2.bf16.msra.mxu1 %v6427_v19  ;;  %v6493_v18 = vld [vmem:[%s9191_s1 + $0x428] ss:$16 sps:$4 sm:$0xff]   ;;  %v6498_v19 = vld [vmem:[%s9191_s1 + $0x404] ss:$16 sps:$4 sm:$0xff]  }
  0x7a   : > { %1260 = vmatprep.subr.bf16.mxu0 %v6432_v20  ;;  %1301 = vmatprep.subr.bf16.mxu1 %v6435_v21  ;;  %v6501_v20 = vld [vmem:[%s9191_s1 + $0x40c] ss:$16 sps:$4 sm:$0xff]   ;;  %v6496_v21 = vld [vmem:[%s9191_s1 + $0x400] ss:$16 sps:$4 sm:$0xff]  }
  0x7d   : > { %1261 = vmatpush2.bf16.msra.mxu0 %v6430_v22  ;;  %1302 = vmatpush2.bf16.msra.mxu1 %v6433_v23  ;;  %v6499_v22 = vld [vmem:[%s9191_s1 + $0x408] ss:$16 sps:$4 sm:$0xff]   ;;  %v6504_v23 = vld [vmem:[%s9191_s1 + $0x5e4] ss:$16 sps:$4 sm:$0xff]  }
  0x7e   : > { %1262 = vmatprep.subr.bf16.mxu0 %v6438_v24  ;;  %1303 = vmatprep.subr.bf16.mxu1 %v6441_v25  ;;  %v6507_v24 = vld [vmem:[%s9191_s1 + $0x5ec] ss:$16 sps:$4 sm:$0xff]   ;;  %v6502_v25 = vld [vmem:[%s9191_s1 + $0x5e0] ss:$16 sps:$4 sm:$0xff]  }
  0x81   : > { %1263 = vmatpush2.bf16.msra.mxu0 %v6436_v26  ;;  %1304 = vmatpush2.bf16.msra.mxu1 %v6439_v27  ;;  %v6505_v26 = vld [vmem:[%s9191_s1 + $0x5e8] ss:$16 sps:$4 sm:$0xff]   ;;  %v6510_v27 = vld [vmem:[%s9191_s1 + $0x5c4] ss:$16 sps:$4 sm:$0xff]  }
  0x82   : > { %1264 = vmatprep.subr.bf16.mxu0 %v6444_v28  ;;  %1305 = vmatprep.subr.bf16.mxu1 %v6447_v29  ;;  %v6513_v28 = vld [vmem:[%s9191_s1 + $0x5cc] ss:$16 sps:$4 sm:$0xff]   ;;  %v6508_v29 = vld [vmem:[%s9191_s1 + $0x5c0] ss:$16 sps:$4 sm:$0xff]  }
  0x85   : > { %1265 = vmatpush2.bf16.msra.mxu0 %v6442_v31  ;;  %1306 = vmatpush2.bf16.msra.mxu1 %v6445_v32  ;;  %v6516_v31 = vld [vmem:[%s9191_s1 + $0x5a4] ss:$16 sps:$4 sm:$0xff]   ;;  %v6519_v32 = vld [vmem:[%s9191_s1 + $0x5ac] ss:$16 sps:$4 sm:$0xff]  }
  0x86   : > { %1266 = vmatprep.subr.bf16.mxu0 %v6450_v33  ;;  %1307 = vmatprep.subr.bf16.mxu1 %v6453_v34  ;;  %v6514_v33 = vld [vmem:[%s9191_s1 + $0x5a0] ss:$16 sps:$4 sm:$0xff]   ;;  %v6517_v34 = vld [vmem:[%s9191_s1 + $0x5a8] ss:$16 sps:$4 sm:$0xff]  }
  0x89   : > { %1267 = vmatpush2.bf16.msra.mxu0 %v6448_v36  ;;  %1308 = vmatpush2.bf16.msra.mxu1 %v6451_v37  ;;  %v6522_v36 = vld [vmem:[%s9191_s1 + $0x584] ss:$16 sps:$4 sm:$0xff]   ;;  %v6525_v37 = vld [vmem:[%s9191_s1 + $0x58c] ss:$16 sps:$4 sm:$0xff]  }
  0x8a   : > { %1728 = vmatprep.subr.bf16.mxu0 %v6456_v38  ;;  %1769 = vmatprep.subr.bf16.mxu1 %v6459_v39  ;;  %v6520_v38 = vld [vmem:[%s9191_s1 + $0x580] ss:$16 sps:$4 sm:$0xff]   ;;  %v6523_v39 = vld [vmem:[%s9191_s1 + $0x588] ss:$16 sps:$4 sm:$0xff]  }
  0x8c   : > { %1269 = vmatmul.mubr.bf16.vlgmr.msra.gmra.mxu0 %v906_v41  ;;  %1310 = vmatmul.mubr.bf16.vlgmr.msra.gmra.mxu1 %v906_v41  ;;  %v6531_v41 = vld [vmem:[%s9191_s1 + $0x56c] ss:$16 sps:$4 sm:$0xff]  }
  0x8d   : > { %1729 = vmatpush1.bf16.msra.mxu0 %v6454_v42  ;;  %1770 = vmatpush1.bf16.msra.mxu1 %v6457_v44  ;;  %v6526_v42 = vld [vmem:[%s9191_s1 + $0x560] ss:$16 sps:$4 sm:$0xff]   ;;  %v6529_v44 = vld [vmem:[%s9191_s1 + $0x568] ss:$16 sps:$4 sm:$0xff]  }
  0x8e   : > { %1730 = vmatprep.subr.bf16.mxu0 %v6462_v45  ;;  %1771 = vmatprep.subr.bf16.mxu1 %v6465_v14  ;;  %v6534_v45 = vld [vmem:[%s9191_s1 + $0x544] ss:$16 sps:$4 sm:$0xff]   ;;  %v6537_v14 = vld [vmem:[%s9191_s1 + $0x54c] ss:$16 sps:$4 sm:$0xff]  }
  0x8f   : > { %1760 = vmatprep.mubr.bf16.mxu0 %v1405_v47  ;;  %1801 = vmatprep.mubr.bf16.mxu1 %v1405_v47  ;;  %v6532_v47 = vld [vmem:[%s9191_s1 + $0x540] ss:$16 sps:$4 sm:$0xff]  }
  0x91   : > { %1731 = vmatpush1.bf16.msra.mxu0 %v6460_v49  ;;  %1772 = vmatpush1.bf16.msra.mxu1 %v6463_v50  ;;  %v6535_v49 = vld [vmem:[%s9191_s1 + $0x548] ss:$16 sps:$4 sm:$0xff]   ;;  %v6540_v50 = vld [vmem:[%s9191_s1 + $0x524] ss:$16 sps:$4 sm:$0xff]  }
  0x92   : > { %1732 = vmatprep.subr.bf16.mxu0 %v6468_v52  ;;  %1773 = vmatprep.subr.bf16.mxu1 %v6471_v53  ;;  %v6543_v52 = vld [vmem:[%s9191_s1 + $0x52c] ss:$16 sps:$4 sm:$0xff]   ;;  %v1896_v53 = vcombine.low %v7433_v57, %v7445_v0 }
  0x93   : > { %v6549_v57 = vld [vmem:[%s9191_s1 + $0x50c] ss:$16 sps:$4 sm:$0xff]  }
  0x95   : > { %1733 = vmatpush1.bf16.msra.mxu0 %v6466_v54  ;;  %1774 = vmatpush1.bf16.msra.mxu1 %v6469_v55  ;;  %v6538_v54 = vld [vmem:[%s9191_s1 + $0x520] ss:$16 sps:$4 sm:$0xff]   ;;  %v6541_v55 = vld [vmem:[%s9191_s1 + $0x528] ss:$16 sps:$4 sm:$0xff]  }
  0x96   : > { %1734 = vmatprep.subr.bf16.mxu0 %v6474_v56  ;;  %1775 = vmatprep.subr.bf16.mxu1 %v6477_v58  ;;  %v6546_v56 = vld [vmem:[%s9191_s1 + $0x504] ss:$16 sps:$4 sm:$0xff]   ;;  %v7874_v58 = vrot.slane %v1896_v53, %v7339_v63 }
  0x97   : > { %v6612_v53 = vld [vmem:[%s9191_s1 + $0x7a4] ss:$16 sps:$4 sm:$0xff]  }
  0x99   : > { %1735 = vmatpush1.bf16.msra.mxu0 %v6472_v59  ;;  %1776 = vmatpush1.bf16.msra.mxu1 %v6475_v60  ;;  %v6544_v59 = vld [vmem:[%s9191_s1 + $0x500] ss:$16 sps:$4 sm:$0xff]   ;;  %v6547_v60 = vld [vmem:[%s9191_s1 + $0x508] ss:$16 sps:$4 sm:$0xff]  }
  0x9a   : > { %1736 = vmatprep.subr.bf16.mxu0 %v6480_v61  ;;  %1777 = vmatprep.subr.bf16.mxu1 %v6483_v62  ;;  %v6552_v61 = vld [vmem:[%s9191_s1 + $0x6e4] ss:$16 sps:$4 sm:$0xff]   ;;  %v6555_v62 = vld [vmem:[%s9191_s1 + $0x6ec] ss:$16 sps:$4 sm:$0xff]  }
  0x9d   : > { %1737 = vmatpush1.bf16.msra.mxu0 %v6478_v1  ;;  %1778 = vmatpush1.bf16.msra.mxu1 %v6481_v2  ;;  %v1904_v1 = vcombine.high %v7874_v58, %v7874_v58  ;;  %v1398_v2 = vrot.slane %v7672_v35, %v7339_v63  ;;  %v6561_v35 = vld [vmem:[%s9191_s1 + $0x6cc] ss:$16 sps:$4 sm:$0xff]  }
  0x9e   : > { %1738 = vmatprep.subr.bf16.mxu0 %v6486_v4  ;;  %1779 = vmatprep.subr.bf16.mxu1 %v6489_v6  ;;  %v6550_v4 = vld [vmem:[%s9191_s1 + $0x6e0] ss:$16 sps:$4 sm:$0xff]   ;;  %v6553_v6 = vld [vmem:[%s9191_s1 + $0x6e8] ss:$16 sps:$4 sm:$0xff]  }
  0xa1   : > { %1739 = vmatpush1.bf16.msra.mxu0 %v6484_v7  ;;  %1780 = vmatpush1.bf16.msra.mxu1 %v6487_v9  ;;  %v6558_v7 = vld [vmem:[%s9191_s1 + $0x6c4] ss:$16 sps:$4 sm:$0xff]   ;;  %v1918_v9 = vrot.slane %v1904_v1, %v7339_v63  ;;  %v6627_v1 = vld [vmem:[%s9191_s1 + $0x76c] ss:$16 sps:$4 sm:$0xff]  }
  0xa2   : > { %1740 = vmatprep.subr.bf16.mxu0 %v6492_v10  ;;  %1781 = vmatprep.subr.bf16.mxu1 %v6495_v12  ;;  %v6556_v10 = vld [vmem:[%s9191_s1 + $0x6c0] ss:$16 sps:$4 sm:$0xff]   ;;  %v6559_v12 = vld [vmem:[%s9191_s1 + $0x6c8] ss:$16 sps:$4 sm:$0xff]  }
  0xa5   : > { %1741 = vmatpush1.bf16.msra.mxu0 %v6490_v17  ;;  %1782 = vmatpush1.bf16.msra.mxu1 %v6493_v18  ;;  %v6564_v17 = vld [vmem:[%s9191_s1 + $0x6a4] ss:$16 sps:$4 sm:$0xff]   ;;  %v6567_v18 = vld [vmem:[%s9191_s1 + $0x6ac] ss:$16 sps:$4 sm:$0xff]  }
  0xa6   : > { %1742 = vmatprep.subr.bf16.mxu0 %v6498_v19  ;;  %1783 = vmatprep.subr.bf16.mxu1 %v6501_v20  ;;  %v6562_v19 = vld [vmem:[%s9191_s1 + $0x6a0] ss:$16 sps:$4 sm:$0xff]   ;;  %v6565_v20 = vld [vmem:[%s9191_s1 + $0x6a8] ss:$16 sps:$4 sm:$0xff]  }
  0xa9   : > { %1743 = vmatpush1.bf16.msra.mxu0 %v6496_v21  ;;  %1784 = vmatpush1.bf16.msra.mxu1 %v6499_v22  ;;  %v6570_v21 = vld [vmem:[%s9191_s1 + $0x684] ss:$16 sps:$4 sm:$0xff]   ;;  %v6573_v22 = vld [vmem:[%s9191_s1 + $0x68c] ss:$16 sps:$4 sm:$0xff]  }
  0xaa   : > { %1744 = vmatprep.subr.bf16.mxu0 %v6504_v23  ;;  %1785 = vmatprep.subr.bf16.mxu1 %v6507_v24  ;;  %v6568_v23 = vld [vmem:[%s9191_s1 + $0x680] ss:$16 sps:$4 sm:$0xff]   ;;  %v6571_v24 = vld [vmem:[%s9191_s1 + $0x688] ss:$16 sps:$4 sm:$0xff]  }
  0xad   : > { %1745 = vmatpush2.bf16.msra.mxu0 %v6502_v25  ;;  %1786 = vmatpush2.bf16.msra.mxu1 %v6505_v26  ;;  %v6576_v25 = vld [vmem:[%s9191_s1 + $0x664] ss:$16 sps:$4 sm:$0xff]   ;;  %v6579_v26 = vld [vmem:[%s9191_s1 + $0x66c] ss:$16 sps:$4 sm:$0xff]  }
  0xae   : > { %1746 = vmatprep.subr.bf16.mxu0 %v6510_v27  ;;  %1787 = vmatprep.subr.bf16.mxu1 %v6513_v28  ;;  %v6574_v27 = vld [vmem:[%s9191_s1 + $0x660] ss:$16 sps:$4 sm:$0xff]   ;;  %v6577_v28 = vld [vmem:[%s9191_s1 + $0x668] ss:$16 sps:$4 sm:$0xff]  }
  0xb1   : > { %1747 = vmatpush2.bf16.msra.mxu0 %v6508_v29  ;;  %1788 = vmatpush2.bf16.msra.mxu1 %v6511_v30  ;;  %v6582_v29 = vld [vmem:[%s9191_s1 + $0x644] ss:$16 sps:$4 sm:$0xff]   ;;  %v6585_v30 = vld [vmem:[%s9191_s1 + $0x64c] ss:$16 sps:$4 sm:$0xff]  }
  0xb2   : > { %1748 = vmatprep.subr.bf16.mxu0 %v6516_v31  ;;  %1789 = vmatprep.subr.bf16.mxu1 %v6519_v32  ;;  %v6580_v31 = vld [vmem:[%s9191_s1 + $0x640] ss:$16 sps:$4 sm:$0xff]   ;;  %v6583_v32 = vld [vmem:[%s9191_s1 + $0x648] ss:$16 sps:$4 sm:$0xff]  }
  0xb5   : > { %1749 = vmatpush2.bf16.msra.mxu0 %v6514_v33  ;;  %1790 = vmatpush2.bf16.msra.mxu1 %v6517_v34  ;;  %v6588_v33 = vld [vmem:[%s9191_s1 + $0x624] ss:$16 sps:$4 sm:$0xff]   ;;  %v6591_v34 = vld [vmem:[%s9191_s1 + $0x62c] ss:$16 sps:$4 sm:$0xff]  }
  0xb6   : > { %1750 = vmatprep.subr.bf16.mxu0 %v6522_v36  ;;  %1791 = vmatprep.subr.bf16.mxu1 %v6525_v37  ;;  %v6586_v36 = vld [vmem:[%s9191_s1 + $0x620] ss:$16 sps:$4 sm:$0xff]   ;;  %v6589_v37 = vld [vmem:[%s9191_s1 + $0x628] ss:$16 sps:$4 sm:$0xff]  }
  0xb9   : > { %1751 = vmatpush2.bf16.msra.mxu0 %v6520_v38  ;;  %1792 = vmatpush2.bf16.msra.mxu1 %v6523_v39  ;;  %v6594_v38 = vld [vmem:[%s9191_s1 + $0x604] ss:$16 sps:$4 sm:$0xff]   ;;  %v6597_v39 = vld [vmem:[%s9191_s1 + $0x60c] ss:$16 sps:$4 sm:$0xff]  }
  0xba   : > { %1752 = vmatprep.subr.bf16.mxu0 %v6528_v40  ;;  %1793 = vmatprep.subr.bf16.mxu1 %v6531_v41  ;;  %v6592_v40 = vld [vmem:[%s9191_s1 + $0x600] ss:$16 sps:$4 sm:$0xff]   ;;  %v6595_v41 = vld [vmem:[%s9191_s1 + $0x608] ss:$16 sps:$4 sm:$0xff]  }
  0xbd   : > { %1753 = vmatpush2.bf16.msra.mxu0 %v6526_v42  ;;  %1794 = vmatpush2.bf16.msra.mxu1 %v6529_v44  ;;  %v6600_v42 = vld [vmem:[%s9191_s1 + $0x7e4] ss:$16 sps:$4 sm:$0xff]   ;;  %v6603_v44 = vld [vmem:[%s9191_s1 + $0x7ec] ss:$16 sps:$4 sm:$0xff]  }
  0xbe   : > { %1754 = vmatprep.subr.bf16.mxu0 %v6534_v45  ;;  %1795 = vmatprep.subr.bf16.mxu1 %v6537_v14  ;;  %v6598_v45 = vld [vmem:[%s9191_s1 + $0x7e0] ss:$16 sps:$4 sm:$0xff]   ;;  %v6601_v14 = vld [vmem:[%s9191_s1 + $0x7e8] ss:$16 sps:$4 sm:$0xff]  }
  0xc1   : > { %1755 = vmatpush2.bf16.msra.mxu0 %v6532_v47  ;;  %1796 = vmatpush2.bf16.msra.mxu1 %v6535_v49  ;;  %v6606_v47 = vld [vmem:[%s9191_s1 + $0x7c4] ss:$16 sps:$4 sm:$0xff]   ;;  %v6609_v49 = vld [vmem:[%s9191_s1 + $0x7cc] ss:$16 sps:$4 sm:$0xff]  }
  0xc2   : > { %1756 = vmatprep.subr.bf16.mxu0 %v6540_v50  ;;  %1797 = vmatprep.subr.bf16.mxu1 %v6543_v52  ;;  %v6604_v50 = vld [vmem:[%s9191_s1 + $0x7c0] ss:$16 sps:$4 sm:$0xff]   ;;  %v6607_v52 = vld [vmem:[%s9191_s1 + $0x7c8] ss:$16 sps:$4 sm:$0xff]  }
  0xc5   : > { %1757 = vmatpush2.bf16.msra.mxu0 %v6538_v54  ;;  %1798 = vmatpush2.bf16.msra.mxu1 %v6541_v55  ;;  %v6615_v54 = vld [vmem:[%s9191_s1 + $0x7ac] ss:$16 sps:$4 sm:$0xff]   ;;  %v6610_v55 = vld [vmem:[%s9191_s1 + $0x7a0] ss:$16 sps:$4 sm:$0xff]  }
  0xc6   : > { %1758 = vmatprep.subr.bf16.mxu0 %v6546_v56  ;;  %1799 = vmatprep.subr.bf16.mxu1 %v6549_v57  ;;  %v6613_v56 = vld [vmem:[%s9191_s1 + $0x7a8] ss:$16 sps:$4 sm:$0xff]   ;;  %v6618_v57 = vld [vmem:[%s9191_s1 + $0x784] ss:$16 sps:$4 sm:$0xff]  }
  0xc9   : > { %1759 = vmatpush2.bf16.msra.mxu0 %v6544_v59  ;;  %1800 = vmatpush2.bf16.msra.mxu1 %v6547_v60  ;;  %v6621_v59 = vld [vmem:[%s9191_s1 + $0x78c] ss:$16 sps:$4 sm:$0xff]   ;;  %v6616_v60 = vld [vmem:[%s9191_s1 + $0x780] ss:$16 sps:$4 sm:$0xff]  }
  0xca   : > { %2241 = vmatprep.subr.bf16.mxu0 %v6552_v61  ;;  %2282 = vmatprep.subr.bf16.mxu1 %v6555_v62  ;;  %v6619_v61 = vld [vmem:[%s9191_s1 + $0x788] ss:$16 sps:$4 sm:$0xff]   ;;  %v6624_v62 = vld [vmem:[%s9191_s1 + $0x764] ss:$16 sps:$4 sm:$0xff]  }
  0xcc   : > { %1761 = vmatmul.mubr.bf16.vlgmr.msra.gmra.mxu0 %v1398_v2  ;;  %1802 = vmatmul.mubr.bf16.vlgmr.msra.gmra.mxu1 %v1398_v2  ;;  %v6622_v2 = vld [vmem:[%s9191_s1 + $0x760] ss:$16 sps:$4 sm:$0xff]  }
  0xcd   : > { %2242 = vmatpush1.bf16.msra.mxu0 %v6550_v4  ;;  %2283 = vmatpush1.bf16.msra.mxu1 %v6553_v6  ;;  %v6625_v4 = vld [vmem:[%s9191_s1 + $0x768] ss:$16 sps:$4 sm:$0xff]   ;;  %v6630_v6 = vld [vmem:[%s9191_s1 + $0x744] ss:$16 sps:$4 sm:$0xff]  }
  0xce   : > { %2243 = vmatprep.subr.bf16.mxu0 %v6558_v7  ;;  %2284 = vmatprep.subr.bf16.mxu1 %v6561_v35  ;;  %v6633_v7 = vld [vmem:[%s9191_s1 + $0x74c] ss:$16 sps:$4 sm:$0xff]   ;;  %v6628_v35 = vld [vmem:[%s9191_s1 + $0x740] ss:$16 sps:$4 sm:$0xff]  }
  0xcf   : > { %2273 = vmatprep.mubr.bf16.mxu0 %v1918_v9  ;;  %2314 = vmatprep.mubr.bf16.mxu1 %v1918_v9  ;;  %v6631_v9 = vld [vmem:[%s9191_s1 + $0x748] ss:$16 sps:$4 sm:$0xff]  }
  0xd1   : > { %2244 = vmatpush1.bf16.msra.mxu0 %v6556_v10  ;;  %2285 = vmatpush1.bf16.msra.mxu1 %v6559_v12  ;;  %v6636_v10 = vld [vmem:[%s9191_s1 + $0x724] ss:$16 sps:$4 sm:$0xff]   ;;  %v6639_v12 = vld [vmem:[%s9191_s1 + $0x72c] ss:$16 sps:$4 sm:$0xff]  }
  0xd2   : > { %2245 = vmatprep.subr.bf16.mxu0 %v6564_v17  ;;  %2286 = vmatprep.subr.bf16.mxu1 %v6567_v18  ;;  %v6634_v17 = vld [vmem:[%s9191_s1 + $0x720] ss:$16 sps:$4 sm:$0xff]   ;;  %v6637_v18 = vld [vmem:[%s9191_s1 + $0x728] ss:$16 sps:$4 sm:$0xff]  }
  0xd5   : > { %2246 = vmatpush1.bf16.msra.mxu0 %v6562_v19  ;;  %2287 = vmatpush1.bf16.msra.mxu1 %v6565_v20  ;;  %v6642_v19 = vld [vmem:[%s9191_s1 + $0x704] ss:$16 sps:$4 sm:$0xff]   ;;  %v6645_v20 = vld [vmem:[%s9191_s1 + $0x70c] ss:$16 sps:$4 sm:$0xff]  }
  0xd6   : > { %2247 = vmatprep.subr.bf16.mxu0 %v6570_v21  ;;  %2288 = vmatprep.subr.bf16.mxu1 %v6573_v22  ;;  %v8077_v21 = vrot.slane %v2409_v15, %v7339_v63  ;;  %v6640_v22 = vld [vmem:[%s9191_s1 + $0x700] ss:$16 sps:$4 sm:$0xff]  }
  0xd7   : > { %v6646_v15 = vld [vmem:[%s9191_s1 + $0x8e0] ss:$16 sps:$4 sm:$0xff]  }
  0xd9   : > { %2248 = vmatpush1.bf16.msra.mxu0 %v6568_v23  ;;  %2289 = vmatpush1.bf16.msra.mxu1 %v6571_v24  ;;  %v6643_v23 = vld [vmem:[%s9191_s1 + $0x708] ss:$16 sps:$4 sm:$0xff]   ;;  %v6648_v24 = vld [vmem:[%s9191_s1 + $0x8e4] ss:$16 sps:$4 sm:$0xff]  }
  0xda   : > { %2249 = vmatprep.subr.bf16.mxu0 %v6576_v25  ;;  %2290 = vmatprep.subr.bf16.mxu1 %v6579_v26  ;;  %v6649_v25 = vld [vmem:[%s9191_s1 + $0x8e8] ss:$16 sps:$4 sm:$0xff]   ;;  %v2417_v26 = vcombine.high %v8077_v21, %v8077_v21 }
  0xdd   : > { %2250 = vmatpush1.bf16.msra.mxu0 %v6574_v27  ;;  %2291 = vmatpush1.bf16.msra.mxu1 %v6577_v28  ;;  %v1911_v27 = vrot.slane %v7874_v58, %v7339_v63  ;;  %v6654_v28 = vld [vmem:[%s9191_s1 + $0x8c4] ss:$16 sps:$4 sm:$0xff]   ;;  %v6655_v58 = vld [vmem:[%s9191_s1 + $0x8c8] ss:$16 sps:$4 sm:$0xff]  }
  0xde   : > { %2251 = vmatprep.subr.bf16.mxu0 %v6582_v29  ;;  %2292 = vmatprep.subr.bf16.mxu1 %v6585_v30  ;;  %v6657_v29 = vld [vmem:[%s9191_s1 + $0x8cc] ss:$16 sps:$4 sm:$0xff]   ;;  %v6652_v30 = vld [vmem:[%s9191_s1 + $0x8c0] ss:$16 sps:$4 sm:$0xff]  }
  0xe1   : > { %2252 = vmatpush1.bf16.msra.mxu0 %v6580_v31  ;;  %2293 = vmatpush1.bf16.msra.mxu1 %v6583_v32  ;;  %v2431_v31 = vrot.slane %v2417_v26, %v7339_v63  ;;  %v6717_v26 = vld [vmem:[%s9191_s1 + $0x98c] ss:$16 sps:$4 sm:$0xff]  }
  0xe2   : > { %2253 = vmatprep.subr.bf16.mxu0 %v6588_v33  ;;  %2294 = vmatprep.subr.bf16.mxu1 %v6591_v34 }
  0xe5   : > { %2254 = vmatpush1.bf16.msra.mxu0 %v6586_v36  ;;  %2295 = vmatpush1.bf16.msra.mxu1 %v6589_v37  ;;  %v6660_v37 = vld [vmem:[%s9191_s1 + $0x8a4] ss:$16 sps:$4 sm:$0xff]  }
  0xe6   : > { %2255 = vmatprep.subr.bf16.mxu0 %v6594_v38  ;;  %2296 = vmatprep.subr.bf16.mxu1 %v6597_v39  ;;  %v6663_v38 = vld [vmem:[%s9191_s1 + $0x8ac] ss:$16 sps:$4 sm:$0xff]   ;;  %v6658_v39 = vld [vmem:[%s9191_s1 + $0x8a0] ss:$16 sps:$4 sm:$0xff]  }
  0xe9   : > { %2256 = vmatpush1.bf16.msra.mxu0 %v6592_v40  ;;  %2297 = vmatpush1.bf16.msra.mxu1 %v6595_v41  ;;  %v6661_v40 = vld [vmem:[%s9191_s1 + $0x8a8] ss:$16 sps:$4 sm:$0xff]  }
  0xea   : > { %2257 = vmatprep.subr.bf16.mxu0 %v6600_v42  ;;  %2298 = vmatprep.subr.bf16.mxu1 %v6603_v44 }
  0xed   : > { %2258 = vmatpush2.bf16.msra.mxu0 %v6598_v45  ;;  %2299 = vmatpush2.bf16.msra.mxu1 %v6601_v14  ;;  %v6666_v14 = vld [vmem:[%s9191_s1 + $0x884] ss:$16 sps:$4 sm:$0xff]  }
  0xee   : > { %2259 = vmatprep.subr.bf16.mxu0 %v6606_v47  ;;  %2300 = vmatprep.subr.bf16.mxu1 %v6609_v49  ;;  %v6669_v47 = vld [vmem:[%s9191_s1 + $0x88c] ss:$16 sps:$4 sm:$0xff]   ;;  %v6664_v49 = vld [vmem:[%s9191_s1 + $0x880] ss:$16 sps:$4 sm:$0xff]  }
  0xf1   : > { %2260 = vmatpush2.bf16.msra.mxu0 %v6604_v50  ;;  %2301 = vmatpush2.bf16.msra.mxu1 %v6607_v52  ;;  %v6667_v50 = vld [vmem:[%s9191_s1 + $0x888] ss:$16 sps:$4 sm:$0xff]   ;;  %v6672_v52 = vld [vmem:[%s9191_s1 + $0x864] ss:$16 sps:$4 sm:$0xff]  }
  0xf2   : > { %2261 = vmatprep.subr.bf16.mxu0 %v6612_v53  ;;  %2302 = vmatprep.subr.bf16.mxu1 %v6615_v54  ;;  %v6675_v53 = vld [vmem:[%s9191_s1 + $0x86c] ss:$16 sps:$4 sm:$0xff]   ;;  %v6670_v54 = vld [vmem:[%s9191_s1 + $0x860] ss:$16 sps:$4 sm:$0xff]  }
  0xf5   : > { %2262 = vmatpush2.bf16.msra.mxu0 %v6610_v55  ;;  %2303 = vmatpush2.bf16.msra.mxu1 %v6613_v56  ;;  %v6673_v55 = vld [vmem:[%s9191_s1 + $0x868] ss:$16 sps:$4 sm:$0xff]   ;;  %v6678_v56 = vld [vmem:[%s9191_s1 + $0x844] ss:$16 sps:$4 sm:$0xff]  }
  0xf6   : > { %2263 = vmatprep.subr.bf16.mxu0 %v6618_v57  ;;  %2304 = vmatprep.subr.bf16.mxu1 %v6621_v59  ;;  %v6681_v57 = vld [vmem:[%s9191_s1 + $0x84c] ss:$16 sps:$4 sm:$0xff]   ;;  %v6676_v59 = vld [vmem:[%s9191_s1 + $0x840] ss:$16 sps:$4 sm:$0xff]  }
  0xf9   : > { %2264 = vmatpush2.bf16.msra.mxu0 %v6616_v60  ;;  %2305 = vmatpush2.bf16.msra.mxu1 %v6619_v61  ;;  %v6679_v60 = vld [vmem:[%s9191_s1 + $0x848] ss:$16 sps:$4 sm:$0xff]   ;;  %v6684_v61 = vld [vmem:[%s9191_s1 + $0x824] ss:$16 sps:$4 sm:$0xff]  }
  0xfa   : > { %2265 = vmatprep.subr.bf16.mxu0 %v6624_v62  ;;  %2306 = vmatprep.subr.bf16.mxu1 %v6627_v1  ;;  %v6687_v62 = vld [vmem:[%s9191_s1 + $0x82c] ss:$16 sps:$4 sm:$0xff]   ;;  %v6682_v1 = vld [vmem:[%s9191_s1 + $0x820] ss:$16 sps:$4 sm:$0xff]  }
  0xfd   : > { %2266 = vmatpush2.bf16.msra.mxu0 %v6622_v2  ;;  %2307 = vmatpush2.bf16.msra.mxu1 %v6625_v4  ;;  %v6685_v2 = vld [vmem:[%s9191_s1 + $0x828] ss:$16 sps:$4 sm:$0xff]   ;;  %v6690_v4 = vld [vmem:[%s9191_s1 + $0x804] ss:$16 sps:$4 sm:$0xff]  }
  0xfe   : > { %2267 = vmatprep.subr.bf16.mxu0 %v6630_v6  ;;  %2308 = vmatprep.subr.bf16.mxu1 %v6633_v7  ;;  %v6693_v6 = vld [vmem:[%s9191_s1 + $0x80c] ss:$16 sps:$4 sm:$0xff]   ;;  %v6688_v7 = vld [vmem:[%s9191_s1 + $0x800] ss:$16 sps:$4 sm:$0xff]  }
 0x101   : > { %2268 = vmatpush2.bf16.msra.mxu0 %v6628_v35  ;;  %2309 = vmatpush2.bf16.msra.mxu1 %v6631_v9  ;;  %v6691_v35 = vld [vmem:[%s9191_s1 + $0x808] ss:$16 sps:$4 sm:$0xff]   ;;  %v6696_v9 = vld [vmem:[%s9191_s1 + $0x9e4] ss:$16 sps:$4 sm:$0xff]  }
 0x102   : > { %2269 = vmatprep.subr.bf16.mxu0 %v6636_v10  ;;  %2310 = vmatprep.subr.bf16.mxu1 %v6639_v12  ;;  %v6699_v10 = vld [vmem:[%s9191_s1 + $0x9ec] ss:$16 sps:$4 sm:$0xff]   ;;  %v6694_v12 = vld [vmem:[%s9191_s1 + $0x9e0] ss:$16 sps:$4 sm:$0xff]  }
 0x105   : > { %2270 = vmatpush2.bf16.msra.mxu0 %v6634_v17  ;;  %2311 = vmatpush2.bf16.msra.mxu1 %v6637_v18  ;;  %v6697_v17 = vld [vmem:[%s9191_s1 + $0x9e8] ss:$16 sps:$4 sm:$0xff]   ;;  %v6702_v18 = vld [vmem:[%s9191_s1 + $0x9c4] ss:$16 sps:$4 sm:$0xff]  }
 0x106   : > { %2271 = vmatprep.subr.bf16.mxu0 %v6642_v19  ;;  %2312 = vmatprep.subr.bf16.mxu1 %v6645_v20  ;;  %v6705_v19 = vld [vmem:[%s9191_s1 + $0x9cc] ss:$16 sps:$4 sm:$0xff]   ;;  %v6700_v20 = vld [vmem:[%s9191_s1 + $0x9c0] ss:$16 sps:$4 sm:$0xff]  }
 0x109   : > { %2272 = vmatpush2.bf16.msra.mxu0 %v6640_v22  ;;  %2313 = vmatpush2.bf16.msra.mxu1 %v6643_v23  ;;  %v6703_v22 = vld [vmem:[%s9191_s1 + $0x9c8] ss:$16 sps:$4 sm:$0xff]   ;;  %v6708_v23 = vld [vmem:[%s9191_s1 + $0x9a4] ss:$16 sps:$4 sm:$0xff]  }
 0x10a   : > { %2754 = vmatprep.subr.bf16.mxu0 %v6648_v24  ;;  %2795 = vmatprep.subr.bf16.mxu1 %v6651_v11  ;;  %v6711_v24 = vld [vmem:[%s9191_s1 + $0x9ac] ss:$16 sps:$4 sm:$0xff]   ;;  %v6706_v11 = vld [vmem:[%s9191_s1 + $0x9a0] ss:$16 sps:$4 sm:$0xff]  }
 0x10c   : > { %v8114_v32 = vpop.f32.mrf.mxu0  ;;  %v8116_v33 = vpop.f32.mrf.mxu1  ;;  %2274 = vmatmul.mubr.bf16.vlgmr.msra.gmra.mxu0 %v1911_v27  ;;  %2315 = vmatmul.mubr.bf16.vlgmr.msra.gmra.mxu1 %v1911_v27  ;;  %v6712_v27 = vld [vmem:[%s9191_s1 + $0x980] ss:$16 sps:$4 sm:$0xff]  }
 0x10d   : > { %2755 = vmatpush1.bf16.msra.mxu0 %v6646_v15  ;;  %2796 = vmatpush1.bf16.msra.mxu1 %v6649_v25  ;;  %v6709_v15 = vld [vmem:[%s9191_s1 + $0x9a8] ss:$16 sps:$4 sm:$0xff]   ;;  %v6714_v25 = vld [vmem:[%s9191_s1 + $0x984] ss:$16 sps:$4 sm:$0xff]  }
 0x10e   : > { %v8118_v34 = vpop.f32.mrf.mxu0  ;;  %v8120_v36 = vpop.f32.mrf.mxu1  ;;  %2756 = vmatprep.subr.bf16.mxu0 %v6654_v28  ;;  %2797 = vmatprep.subr.bf16.mxu1 %v6657_v29  ;;  %v6715_v28 = vld [vmem:[%s9191_s1 + $0x988] ss:$16 sps:$4 sm:$0xff]   ;;  %v6720_v29 = vld [vmem:[%s9191_s1 + $0x964] ss:$16 sps:$4 sm:$0xff]  }
 0x10f   : > { %2786 = vmatprep.mubr.bf16.mxu0 %v2431_v31  ;;  %2827 = vmatprep.mubr.bf16.mxu1 %v2431_v31  ;;  %v6721_v31 = vld [vmem:[%s9191_s1 + $0x968] ss:$16 sps:$4 sm:$0xff]  }
 0x110   : > { %v847_v41 = vpop.f32.mrf.mxu0  ;;  %v888_v42 = vpop.f32.mrf.mxu1 }
 0x111   : > { %2757 = vmatpush1.bf16.msra.mxu0 %v6652_v30  ;;  %2798 = vmatpush1.bf16.msra.mxu1 %v6655_v58  ;;  %v6723_v30 = vld [vmem:[%s9191_s1 + $0x96c] ss:$16 sps:$4 sm:$0xff]   ;;  %v6718_v58 = vld [vmem:[%s9191_s1 + $0x960] ss:$16 sps:$4 sm:$0xff]   ;;  %v6732_v41 = vld [vmem:[%s9191_s1 + $0x924] ss:$16 sps:$4 sm:$0xff]  }
 0x112   : > { %v848_v44 = vpop.f32.mrf.mxu0  ;;  %v889_v45 = vpop.f32.mrf.mxu1  ;;  %2758 = vmatprep.subr.bf16.mxu0 %v6660_v37  ;;  %2799 = vmatprep.subr.bf16.mxu1 %v6663_v38  ;;  %v6726_v37 = vld [vmem:[%s9191_s1 + $0x944] ss:$16 sps:$4 sm:$0xff]   ;;  %v6729_v38 = vld [vmem:[%s9191_s1 + $0x94c] ss:$16 sps:$4 sm:$0xff]  }
 0x113   : > { %v6735_v42 = vld [vmem:[%s9191_s1 + $0x92c] ss:$16 sps:$4 sm:$0xff]   ;;  %v2905_v44 = vcombine.low %v7451_v3, %v7455_v5  ;;  %v6730_v45 = vld [vmem:[%s9191_s1 + $0x920] ss:$16 sps:$4 sm:$0xff]  }
 0x114   : > { %v6741_v3 = vld [vmem:[%s9191_s1 + $0x90c] ss:$16 sps:$4 sm:$0xff]  }
 0x115   : > { %2759 = vmatpush1.bf16.msra.mxu0 %v6658_v39  ;;  %2800 = vmatpush1.bf16.msra.mxu1 %v6661_v40  ;;  %v6724_v39 = vld [vmem:[%s9191_s1 + $0x940] ss:$16 sps:$4 sm:$0xff]   ;;  %v6727_v40 = vld [vmem:[%s9191_s1 + $0x948] ss:$16 sps:$4 sm:$0xff]  }
 0x116   : > { %2760 = vmatprep.subr.bf16.mxu0 %v6666_v14  ;;  %2801 = vmatprep.subr.bf16.mxu1 %v6669_v47  ;;  %v6733_v14 = vld [vmem:[%s9191_s1 + $0x928] ss:$16 sps:$4 sm:$0xff]   ;;  %v6738_v47 = vld [vmem:[%s9191_s1 + $0x904] ss:$16 sps:$4 sm:$0xff]  }
 0x119   : > { %2761 = vmatpush1.bf16.msra.mxu0 %v6664_v49  ;;  %2802 = vmatpush1.bf16.msra.mxu1 %v6667_v50  ;;  %v8287_v49 = vrot.slane %v2905_v44, %v7339_v63  ;;  %v6736_v50 = vld [vmem:[%s9191_s1 + $0x900] ss:$16 sps:$4 sm:$0xff]   ;;  %v6787_v44 = vld [vmem:[%s9191_s1 + $0xa08] ss:$16 sps:$4 sm:$0xff]  }
 0x11a   : > { %2762 = vmatprep.subr.bf16.mxu0 %v6672_v52  ;;  %2803 = vmatprep.subr.bf16.mxu1 %v6675_v53  ;;  %v6739_v52 = vld [vmem:[%s9191_s1 + $0x908] ss:$16 sps:$4 sm:$0xff]   ;;  %v6744_v53 = vld [vmem:[%s9191_s1 + $0xae4] ss:$16 sps:$4 sm:$0xff]  }
 0x11d   : > { %2763 = vmatpush1.bf16.msra.mxu0 %v6670_v54  ;;  %2804 = vmatpush1.bf16.msra.mxu1 %v6673_v55  ;;  %v6747_v54 = vld [vmem:[%s9191_s1 + $0xaec] ss:$16 sps:$4 sm:$0xff]   ;;  %v6742_v55 = vld [vmem:[%s9191_s1 + $0xae0] ss:$16 sps:$4 sm:$0xff]  }
 0x11e   : > { %2764 = vmatprep.subr.bf16.mxu0 %v6678_v56  ;;  %2805 = vmatprep.subr.bf16.mxu1 %v6681_v57  ;;  %v6745_v56 = vld [vmem:[%s9191_s1 + $0xae8] ss:$16 sps:$4 sm:$0xff]   ;;  %v2913_v57 = vcombine.high %v8287_v49, %v8287_v49 }
 0x121   : > { %2765 = vmatpush1.bf16.msra.mxu0 %v6676_v59  ;;  %2806 = vmatpush1.bf16.msra.mxu1 %v6679_v60  ;;  %v2424_v59 = vrot.slane %v8077_v21, %v7339_v63  ;;  %v6750_v60 = vld [vmem:[%s9191_s1 + $0xac4] ss:$16 sps:$4 sm:$0xff]   ;;  %v6751_v21 = vld [vmem:[%s9191_s1 + $0xac8] ss:$16 sps:$4 sm:$0xff]  }
 0x122   : > { %2766 = vmatprep.subr.bf16.mxu0 %v6684_v61  ;;  %2807 = vmatprep.subr.bf16.mxu1 %v6687_v62  ;;  %v6753_v61 = vld [vmem:[%s9191_s1 + $0xacc] ss:$16 sps:$4 sm:$0xff]   ;;  %v6748_v62 = vld [vmem:[%s9191_s1 + $0xac0] ss:$16 sps:$4 sm:$0xff]  }
 0x125   : > { %2767 = vmatpush1.bf16.msra.mxu0 %v6682_v1  ;;  %2808 = vmatpush1.bf16.msra.mxu1 %v6685_v2  ;;  %v2927_v1 = vrot.slane %v2913_v57, %v7339_v63  ;;  %v6802_v57 = vld [vmem:[%s9191_s1 + $0xba0] ss:$16 sps:$4 sm:$0xff]  }
 0x126   : > { %2768 = vmatprep.subr.bf16.mxu0 %v6690_v4  ;;  %2809 = vmatprep.subr.bf16.mxu1 %v6693_v6 }
 0x129   : > { %2769 = vmatpush1.bf16.msra.mxu0 %v6688_v7  ;;  %2810 = vmatpush1.bf16.msra.mxu1 %v6691_v35 }
 0x12a   : > { %2770 = vmatprep.subr.bf16.mxu0 %v6696_v9  ;;  %2811 = vmatprep.subr.bf16.mxu1 %v6699_v10  ;;  %v6756_v10 = vld [vmem:[%s9191_s1 + $0xaa4] ss:$16 sps:$4 sm:$0xff]  }
 0x12d   : > { %2771 = vmatpush2.bf16.msra.mxu0 %v6694_v12  ;;  %2812 = vmatpush2.bf16.msra.mxu1 %v6697_v17  ;;  %v6759_v12 = vld [vmem:[%s9191_s1 + $0xaac] ss:$16 sps:$4 sm:$0xff]   ;;  %v6754_v17 = vld [vmem:[%s9191_s1 + $0xaa0] ss:$16 sps:$4 sm:$0xff]  }
 0x12e   : > { %2772 = vmatprep.subr.bf16.mxu0 %v6702_v18  ;;  %2813 = vmatprep.subr.bf16.mxu1 %v6705_v19  ;;  %v6757_v18 = vld [vmem:[%s9191_s1 + $0xaa8] ss:$16 sps:$4 sm:$0xff]  }
 0x131   : > { %2773 = vmatpush2.bf16.msra.mxu0 %v6700_v20  ;;  %2814 = vmatpush2.bf16.msra.mxu1 %v6703_v22 }
 0x132   : > { %2774 = vmatprep.subr.bf16.mxu0 %v6708_v23  ;;  %2815 = vmatprep.subr.bf16.mxu1 %v6711_v24  ;;  %v6765_v23 = vld [vmem:[%s9191_s1 + $0xa8c] ss:$16 sps:$4 sm:$0xff]   ;;  %v6760_v24 = vld [vmem:[%s9191_s1 + $0xa80] ss:$16 sps:$4 sm:$0xff]  }
 0x135   : > { %2775 = vmatpush2.bf16.msra.mxu0 %v6706_v11  ;;  %2816 = vmatpush2.bf16.msra.mxu1 %v6709_v15  ;;  %v6763_v11 = vld [vmem:[%s9191_s1 + $0xa88] ss:$16 sps:$4 sm:$0xff]   ;;  %v6768_v15 = vld [vmem:[%s9191_s1 + $0xa64] ss:$16 sps:$4 sm:$0xff]  }
 0x136   : > { %2776 = vmatprep.subr.bf16.mxu0 %v6714_v25  ;;  %2817 = vmatprep.subr.bf16.mxu1 %v6717_v26  ;;  %v6771_v25 = vld [vmem:[%s9191_s1 + $0xa6c] ss:$16 sps:$4 sm:$0xff]   ;;  %v6766_v26 = vld [vmem:[%s9191_s1 + $0xa60] ss:$16 sps:$4 sm:$0xff]  }
 0x139   : > { %2777 = vmatpush2.bf16.msra.mxu0 %v6712_v27  ;;  %2818 = vmatpush2.bf16.msra.mxu1 %v6715_v28  ;;  %v6769_v27 = vld [vmem:[%s9191_s1 + $0xa68] ss:$16 sps:$4 sm:$0xff]   ;;  %v6774_v28 = vld [vmem:[%s9191_s1 + $0xa44] ss:$16 sps:$4 sm:$0xff]  }
 0x13a   : > { %2778 = vmatprep.subr.bf16.mxu0 %v6720_v29  ;;  %2819 = vmatprep.subr.bf16.mxu1 %v6723_v30  ;;  %v6777_v29 = vld [vmem:[%s9191_s1 + $0xa4c] ss:$16 sps:$4 sm:$0xff]   ;;  %v6772_v30 = vld [vmem:[%s9191_s1 + $0xa40] ss:$16 sps:$4 sm:$0xff]  }
 0x13d   : > { %2779 = vmatpush2.bf16.msra.mxu0 %v6718_v58  ;;  %2820 = vmatpush2.bf16.msra.mxu1 %v6721_v31  ;;  %v6775_v58 = vld [vmem:[%s9191_s1 + $0xa48] ss:$16 sps:$4 sm:$0xff]   ;;  %v6780_v31 = vld [vmem:[%s9191_s1 + $0xa24] ss:$16 sps:$4 sm:$0xff]  }
 0x13e   : > { %2780 = vmatprep.subr.bf16.mxu0 %v6726_v37  ;;  %2821 = vmatprep.subr.bf16.mxu1 %v6729_v38  ;;  %v6783_v37 = vld [vmem:[%s9191_s1 + $0xa2c] ss:$16 sps:$4 sm:$0xff]   ;;  %v6778_v38 = vld [vmem:[%s9191_s1 + $0xa20] ss:$16 sps:$4 sm:$0xff]  }
 0x141   : > { %2781 = vmatpush2.bf16.msra.mxu0 %v6724_v39  ;;  %2822 = vmatpush2.bf16.msra.mxu1 %v6727_v40  ;;  %v6781_v39 = vld [vmem:[%s9191_s1 + $0xa28] ss:$16 sps:$4 sm:$0xff]   ;;  %v6786_v40 = vld [vmem:[%s9191_s1 + $0xa04] ss:$16 sps:$4 sm:$0xff]  }
 0x142   : > { %2782 = vmatprep.subr.bf16.mxu0 %v6732_v41  ;;  %2823 = vmatprep.subr.bf16.mxu1 %v6735_v42  ;;  %v6789_v41 = vld [vmem:[%s9191_s1 + $0xa0c] ss:$16 sps:$4 sm:$0xff]   ;;  %v6784_v42 = vld [vmem:[%s9191_s1 + $0xa00] ss:$16 sps:$4 sm:$0xff]  }
 0x145   : > { %2783 = vmatpush2.bf16.msra.mxu0 %v6730_v45  ;;  %2824 = vmatpush2.bf16.msra.mxu1 %v6733_v14  ;;  %v6792_v45 = vld [vmem:[%s9191_s1 + $0xbe4] ss:$16 sps:$4 sm:$0xff]   ;;  %v6795_v14 = vld [vmem:[%s9191_s1 + $0xbec] ss:$16 sps:$4 sm:$0xff]  }
 0x146   : > { %2784 = vmatprep.subr.bf16.mxu0 %v6738_v47  ;;  %2825 = vmatprep.subr.bf16.mxu1 %v6741_v3  ;;  %v6790_v47 = vld [vmem:[%s9191_s1 + $0xbe0] ss:$16 sps:$4 sm:$0xff]   ;;  %v6793_v3 = vld [vmem:[%s9191_s1 + $0xbe8] ss:$16 sps:$4 sm:$0xff]  }
 0x149   : > { %2785 = vmatpush2.bf16.msra.mxu0 %v6736_v50  ;;  %2826 = vmatpush2.bf16.msra.mxu1 %v6739_v52  ;;  %v6798_v50 = vld [vmem:[%s9191_s1 + $0xbc4] ss:$16 sps:$4 sm:$0xff]   ;;  %v6801_v52 = vld [vmem:[%s9191_s1 + $0xbcc] ss:$16 sps:$4 sm:$0xff]  }
 0x14a   : > { %3250 = vmatprep.subr.bf16.mxu0 %v6744_v53  ;;  %3291 = vmatprep.subr.bf16.mxu1 %v6747_v54  ;;  %v6796_v53 = vld [vmem:[%s9191_s1 + $0xbc0] ss:$16 sps:$4 sm:$0xff]   ;;  %v6799_v54 = vld [vmem:[%s9191_s1 + $0xbc8] ss:$16 sps:$4 sm:$0xff]  }
 0x14c   : > { %v1270_v2 = vpop.f32.mrf.mxu0  ;;  %v1311_v4 = vpop.f32.mrf.mxu1  ;;  %2787 = vmatmul.mubr.bf16.vlgmr.msra.gmra.mxu0 %v2424_v59  ;;  %2828 = vmatmul.mubr.bf16.vlgmr.msra.gmra.mxu1 %v2424_v59  ;;  %v6805_v59 = vld [vmem:[%s9191_s1 + $0xba8] ss:$16 sps:$4 sm:$0xff]  }
 0x14d   : > { %v8325_v6 = vadd.f32 %v1270_v2, %v8114_v32  ;;  %v8328_v7 = vadd.f32 %v1311_v4, %v8116_v33  ;;  %3251 = vmatpush1.bf16.msra.mxu0 %v6742_v55  ;;  %3292 = vmatpush1.bf16.msra.mxu1 %v6745_v56  ;;  %v6804_v55 = vld [vmem:[%s9191_s1 + $0xba4] ss:$16 sps:$4 sm:$0xff]   ;;  %v6807_v56 = vld [vmem:[%s9191_s1 + $0xbac] ss:$16 sps:$4 sm:$0xff]   ;;  %v6814_v4 = vld [vmem:[%s9191_s1 + $0xb60] ss:$16 sps:$4 sm:$0xff]  }
 0x14e   : > { %v1272_v35 = vpop.f32.mrf.mxu0  ;;  %v1313_v9 = vpop.f32.mrf.mxu1  ;;  %3252 = vmatprep.subr.bf16.mxu0 %v6750_v60  ;;  %3293 = vmatprep.subr.bf16.mxu1 %v6753_v61  ;;  %v6810_v60 = vld [vmem:[%s9191_s1 + $0xb84] ss:$16 sps:$4 sm:$0xff]   ;;  %v6813_v61 = vld [vmem:[%s9191_s1 + $0xb8c] ss:$16 sps:$4 sm:$0xff]  }
 0x14f   : > { %v8337_v32 = vadd.f32 %v1272_v35, %v8118_v34  ;;  %v8340_v33 = vadd.f32 %v1313_v9, %v8120_v36  ;;  %3282 = vmatprep.mubr.bf16.mxu0 %v2927_v1  ;;  %3323 = vmatprep.mubr.bf16.mxu1 %v2927_v1  ;;  %v6762_v36 = vld [vmem:[%s9191_s1 + $0xa84] ss:$16 sps:$4 sm:$0xff]   ;;  %v6819_v2 = vld [vmem:[%s9191_s1 + $0xb6c] ss:$16 sps:$4 sm:$0xff]   ;;  %v6817_v35 = vld [vmem:[%s9191_s1 + $0xb68] ss:$16 sps:$4 sm:$0xff]  }
 0x150   : > { %v1274_v19 = vpop.f32.mrf.mxu0  ;;  %v1315_v20 = vpop.f32.mrf.mxu1  ;;  %v6816_v1 = vld [vmem:[%s9191_s1 + $0xb64] ss:$16 sps:$4 sm:$0xff]  }
 0x151   : > { %3253 = vmatpush1.bf16.msra.mxu0 %v6748_v62  ;;  %3294 = vmatpush1.bf16.msra.mxu1 %v6751_v21  ;;  %v6808_v62 = vld [vmem:[%s9191_s1 + $0xb80] ss:$16 sps:$4 sm:$0xff]   ;;  %v6811_v21 = vld [vmem:[%s9191_s1 + $0xb88] ss:$16 sps:$4 sm:$0xff]   ;;  %v6822_v9 = vld [vmem:[%s9191_s1 + $0xb44] ss:$16 sps:$4 sm:$0xff]   ;;  %v3401_v20 = vcombine.low %v7445_v0, %v7410_v46 }
 0x152   : > { %v1275_v22 = vpop.f32.mrf.mxu0  ;;  %v1316_v34 = vpop.f32.mrf.mxu1  ;;  %3254 = vmatprep.subr.bf16.mxu0 %v6756_v10  ;;  %3295 = vmatprep.subr.bf16.mxu1 %v6759_v12  ;;  %v6825_v10 = vld [vmem:[%s9191_s1 + $0xb4c] ss:$16 sps:$4 sm:$0xff]   ;;  %v6820_v12 = vld [vmem:[%s9191_s1 + $0xb40] ss:$16 sps:$4 sm:$0xff]  }
 0x153   : > { %v6831_v19 = vld [vmem:[%s9191_s1 + $0xb2c] ss:$16 sps:$4 sm:$0xff]   ;;  %v6826_v22 = vld [vmem:[%s9191_s1 + $0xb20] ss:$16 sps:$4 sm:$0xff]   ;;  %v6829_v34 = vld [vmem:[%s9191_s1 + $0xb28] ss:$16 sps:$4 sm:$0xff]   ;;  %v8501_v0 = vrot.slane %v3401_v20, %v7339_v63 }
 0x154   : > { %v6837_v46 = vld [vmem:[%s9191_s1 + $0xb0c] ss:$16 sps:$4 sm:$0xff]  }
 0x155   : > { %3255 = vmatpush1.bf16.msra.mxu0 %v6754_v17  ;;  %3296 = vmatpush1.bf16.msra.mxu1 %v6757_v18  ;;  %v6823_v17 = vld [vmem:[%s9191_s1 + $0xb48] ss:$16 sps:$4 sm:$0xff]   ;;  %v6828_v18 = vld [vmem:[%s9191_s1 + $0xb24] ss:$16 sps:$4 sm:$0xff]   ;;  %v6891_v20 = vld [vmem:[%s9191_s1 + $0xdec] ss:$16 sps:$4 sm:$0xff]  }
 0x156   : > { %3256 = vmatprep.subr.bf16.mxu0 %v6762_v36  ;;  %3297 = vmatprep.subr.bf16.mxu1 %v6765_v23  ;;  %v6834_v36 = vld [vmem:[%s9191_s1 + $0xb04] ss:$16 sps:$4 sm:$0xff]   ;;  %v6832_v23 = vld [vmem:[%s9191_s1 + $0xb00] ss:$16 sps:$4 sm:$0xff]  }
 0x159   : > { %3257 = vmatpush1.bf16.msra.mxu0 %v6760_v24  ;;  %3298 = vmatpush1.bf16.msra.mxu1 %v6763_v11  ;;  %v6835_v24 = vld [vmem:[%s9191_s1 + $0xb08] ss:$16 sps:$4 sm:$0xff]   ;;  %v6840_v11 = vld [vmem:[%s9191_s1 + $0xce4] ss:$16 sps:$4 sm:$0xff]  }
 0x15a   : > { %3258 = vmatprep.subr.bf16.mxu0 %v6768_v15  ;;  %3299 = vmatprep.subr.bf16.mxu1 %v6771_v25  ;;  %v6843_v15 = vld [vmem:[%s9191_s1 + $0xcec] ss:$16 sps:$4 sm:$0xff]   ;;  %v3409_v25 = vcombine.high %v8501_v0, %v8501_v0 }
 0x15d   : > { %3259 = vmatpush1.bf16.msra.mxu0 %v6766_v26  ;;  %3300 = vmatpush1.bf16.msra.mxu1 %v6769_v27  ;;  %v2920_v26 = vrot.slane %v8287_v49, %v7339_v63  ;;  %v6838_v27 = vld [vmem:[%s9191_s1 + $0xce0] ss:$16 sps:$4 sm:$0xff]   ;;  %v6849_v49 = vld [vmem:[%s9191_s1 + $0xccc] ss:$16 sps:$4 sm:$0xff]  }
 0x15e   : > { %3260 = vmatprep.subr.bf16.mxu0 %v6774_v28  ;;  %3301 = vmatprep.subr.bf16.mxu1 %v6777_v29  ;;  %v6841_v28 = vld [vmem:[%s9191_s1 + $0xce8] ss:$16 sps:$4 sm:$0xff]   ;;  %v6846_v29 = vld [vmem:[%s9191_s1 + $0xcc4] ss:$16 sps:$4 sm:$0xff]  }
 0x161   : > { %3261 = vmatpush1.bf16.msra.mxu0 %v6772_v30  ;;  %3302 = vmatpush1.bf16.msra.mxu1 %v6775_v58  ;;  %v3423_v30 = vrot.slane %v3409_v25, %v7339_v63  ;;  %v6898_v25 = vld [vmem:[%s9191_s1 + $0xda0] ss:$16 sps:$4 sm:$0xff]  }
 0x162   : > { %3262 = vmatprep.subr.bf16.mxu0 %v6780_v31  ;;  %3303 = vmatprep.subr.bf16.mxu1 %v6783_v37 }
 0x165   : > { %3263 = vmatpush1.bf16.msra.mxu0 %v6778_v38  ;;  %3304 = vmatpush1.bf16.msra.mxu1 %v6781_v39  ;;  %v6844_v39 = vld [vmem:[%s9191_s1 + $0xcc0] ss:$16 sps:$4 sm:$0xff]  }
 0x166   : > { %3264 = vmatprep.subr.bf16.mxu0 %v6786_v40  ;;  %3305 = vmatprep.subr.bf16.mxu1 %v6789_v41  ;;  %v6847_v40 = vld [vmem:[%s9191_s1 + $0xcc8] ss:$16 sps:$4 sm:$0xff]  }
 0x169   : > { %3265 = vmatpush1.bf16.msra.mxu0 %v6784_v42  ;;  %3306 = vmatpush1.bf16.msra.mxu1 %v6787_v44 }
 0x16a   : > { %3266 = vmatprep.subr.bf16.mxu0 %v6792_v45  ;;  %3307 = vmatprep.subr.bf16.mxu1 %v6795_v14 }
 0x16d   : > { %3267 = vmatpush2.bf16.msra.mxu0 %v6790_v47  ;;  %3308 = vmatpush2.bf16.msra.mxu1 %v6793_v3  ;;  %v6850_v3 = vld [vmem:[%s9191_s1 + $0xca0] ss:$16 sps:$4 sm:$0xff]  }
 0x16e   : > { %3268 = vmatprep.subr.bf16.mxu0 %v6798_v50  ;;  %3309 = vmatprep.subr.bf16.mxu1 %v6801_v52  ;;  %v6853_v50 = vld [vmem:[%s9191_s1 + $0xca8] ss:$16 sps:$4 sm:$0xff]  }
 0x171   : > { %3269 = vmatpush2.bf16.msra.mxu0 %v6796_v53  ;;  %3310 = vmatpush2.bf16.msra.mxu1 %v6799_v54  ;;  %v6861_v53 = vld [vmem:[%s9191_s1 + $0xc8c] ss:$16 sps:$4 sm:$0xff]   ;;  %v6856_v54 = vld [vmem:[%s9191_s1 + $0xc80] ss:$16 sps:$4 sm:$0xff]  }
 0x172   : > { %3270 = vmatprep.subr.bf16.mxu0 %v6804_v55  ;;  %3311 = vmatprep.subr.bf16.mxu1 %v6807_v56  ;;  %v6859_v55 = vld [vmem:[%s9191_s1 + $0xc88] ss:$16 sps:$4 sm:$0xff]   ;;  %v6864_v56 = vld [vmem:[%s9191_s1 + $0xc64] ss:$16 sps:$4 sm:$0xff]  }
 0x175   : > { %3271 = vmatpush2.bf16.msra.mxu0 %v6802_v57  ;;  %3312 = vmatpush2.bf16.msra.mxu1 %v6805_v59  ;;  %v6867_v57 = vld [vmem:[%s9191_s1 + $0xc6c] ss:$16 sps:$4 sm:$0xff]   ;;  %v6862_v59 = vld [vmem:[%s9191_s1 + $0xc60] ss:$16 sps:$4 sm:$0xff]  }
 0x176   : > { %3272 = vmatprep.subr.bf16.mxu0 %v6810_v60  ;;  %3313 = vmatprep.subr.bf16.mxu1 %v6813_v61  ;;  %v6865_v60 = vld [vmem:[%s9191_s1 + $0xc68] ss:$16 sps:$4 sm:$0xff]   ;;  %v6870_v61 = vld [vmem:[%s9191_s1 + $0xc44] ss:$16 sps:$4 sm:$0xff]  }
 0x179   : > { %3273 = vmatpush2.bf16.msra.mxu0 %v6808_v62  ;;  %3314 = vmatpush2.bf16.msra.mxu1 %v6811_v21  ;;  %v6873_v62 = vld [vmem:[%s9191_s1 + $0xc4c] ss:$16 sps:$4 sm:$0xff]   ;;  %v6868_v21 = vld [vmem:[%s9191_s1 + $0xc40] ss:$16 sps:$4 sm:$0xff]  }
 0x17a   : > { %3274 = vmatprep.subr.bf16.mxu0 %v6816_v1  ;;  %3315 = vmatprep.subr.bf16.mxu1 %v6819_v2  ;;  %v6871_v1 = vld [vmem:[%s9191_s1 + $0xc48] ss:$16 sps:$4 sm:$0xff]   ;;  %v6876_v2 = vld [vmem:[%s9191_s1 + $0xc24] ss:$16 sps:$4 sm:$0xff]  }
 0x17d   : > { %3275 = vmatpush2.bf16.msra.mxu0 %v6814_v4  ;;  %3316 = vmatpush2.bf16.msra.mxu1 %v6817_v35  ;;  %v6879_v4 = vld [vmem:[%s9191_s1 + $0xc2c] ss:$16 sps:$4 sm:$0xff]   ;;  %v6874_v35 = vld [vmem:[%s9191_s1 + $0xc20] ss:$16 sps:$4 sm:$0xff]  }
 0x17e   : > { %3276 = vmatprep.subr.bf16.mxu0 %v6822_v9  ;;  %3317 = vmatprep.subr.bf16.mxu1 %v6825_v10  ;;  %v6877_v9 = vld [vmem:[%s9191_s1 + $0xc28] ss:$16 sps:$4 sm:$0xff]   ;;  %v6882_v10 = vld [vmem:[%s9191_s1 + $0xc04] ss:$16 sps:$4 sm:$0xff]  }
 0x181   : > { %3277 = vmatpush2.bf16.msra.mxu0 %v6820_v12  ;;  %3318 = vmatpush2.bf16.msra.mxu1 %v6823_v17  ;;  %v6885_v12 = vld [vmem:[%s9191_s1 + $0xc0c] ss:$16 sps:$4 sm:$0xff]   ;;  %v6880_v17 = vld [vmem:[%s9191_s1 + $0xc00] ss:$16 sps:$4 sm:$0xff]  }
 0x182   : > { %3278 = vmatprep.subr.bf16.mxu0 %v6828_v18  ;;  %3319 = vmatprep.subr.bf16.mxu1 %v6831_v19  ;;  %v6883_v18 = vld [vmem:[%s9191_s1 + $0xc08] ss:$16 sps:$4 sm:$0xff]   ;;  %v6888_v19 = vld [vmem:[%s9191_s1 + $0xde4] ss:$16 sps:$4 sm:$0xff]  }
 0x185   : > { %3279 = vmatpush2.bf16.msra.mxu0 %v6826_v22  ;;  %3320 = vmatpush2.bf16.msra.mxu1 %v6829_v34  ;;  %v6886_v22 = vld [vmem:[%s9191_s1 + $0xde0] ss:$16 sps:$4 sm:$0xff]   ;;  %v6889_v34 = vld [vmem:[%s9191_s1 + $0xde8] ss:$16 sps:$4 sm:$0xff]  }
 0x186   : > { %3280 = vmatprep.subr.bf16.mxu0 %v6834_v36  ;;  %3321 = vmatprep.subr.bf16.mxu1 %v6837_v46  ;;  %v6894_v36 = vld [vmem:[%s9191_s1 + $0xdc4] ss:$16 sps:$4 sm:$0xff]   ;;  %v6897_v46 = vld [vmem:[%s9191_s1 + $0xdcc] ss:$16 sps:$4 sm:$0xff]  }
 0x189   : > { %3281 = vmatpush2.bf16.msra.mxu0 %v6832_v23  ;;  %3322 = vmatpush2.bf16.msra.mxu1 %v6835_v24  ;;  %v6892_v23 = vld [vmem:[%s9191_s1 + $0xdc0] ss:$16 sps:$4 sm:$0xff]   ;;  %v6895_v24 = vld [vmem:[%s9191_s1 + $0xdc8] ss:$16 sps:$4 sm:$0xff]  }
 0x18a   : > { %3746 = vmatprep.subr.bf16.mxu0 %v6840_v11  ;;  %3787 = vmatprep.subr.bf16.mxu1 %v6843_v15  ;;  %v6900_v11 = vld [vmem:[%s9191_s1 + $0xda4] ss:$16 sps:$4 sm:$0xff]   ;;  %v6903_v15 = vld [vmem:[%s9191_s1 + $0xdac] ss:$16 sps:$4 sm:$0xff]  }
 0x18c   : > { %v1762_v58 = vpop.f32.mrf.mxu0  ;;  %v1803_v31 = vpop.f32.mrf.mxu1  ;;  %3283 = vmatmul.mubr.bf16.vlgmr.msra.gmra.mxu0 %v2920_v26  ;;  %3324 = vmatmul.mubr.bf16.vlgmr.msra.gmra.mxu1 %v2920_v26  ;;  %v6901_v26 = vld [vmem:[%s9191_s1 + $0xda8] ss:$16 sps:$4 sm:$0xff]  }
 0x18d   : > { %v8533_v37 = vadd.f32 %v1762_v58, %v8325_v6  ;;  %v8536_v38 = vadd.f32 %v1803_v31, %v8328_v7  ;;  %3747 = vmatpush1.bf16.msra.mxu0 %v6838_v27  ;;  %3788 = vmatpush1.bf16.msra.mxu1 %v6841_v28  ;;  %v6852_v6 = vld [vmem:[%s9191_s1 + $0xca4] ss:$16 sps:$4 sm:$0xff]   ;;  %v6855_v7 = vld [vmem:[%s9191_s1 + $0xcac] ss:$16 sps:$4 sm:$0xff]   ;;  %v6910_v31 = vld [vmem:[%s9191_s1 + $0xd60] ss:$16 sps:$4 sm:$0xff]  }
 0x18e   : > { %v1764_v41 = vpop.f32.mrf.mxu0  ;;  %v1805_v42 = vpop.f32.mrf.mxu1  ;;  %3748 = vmatprep.subr.bf16.mxu0 %v6846_v29  ;;  %3789 = vmatprep.subr.bf16.mxu1 %v6849_v49  ;;  %v6906_v27 = vld [vmem:[%s9191_s1 + $0xd84] ss:$16 sps:$4 sm:$0xff]   ;;  %v6909_v28 = vld [vmem:[%s9191_s1 + $0xd8c] ss:$16 sps:$4 sm:$0xff]   ;;  %v6904_v29 = vld [vmem:[%s9191_s1 + $0xd80] ss:$16 sps:$4 sm:$0xff]  }
 0x18f   : > { %v8551_v44 = vadd.f32 %v1764_v41, %v8337_v32  ;;  %v8554_v45 = vadd.f32 %v1805_v42, %v8340_v33  ;;  %3778 = vmatprep.mubr.bf16.mxu0 %v3423_v30  ;;  %3819 = vmatprep.mubr.bf16.mxu1 %v3423_v30  ;;  %v6858_v33 = vld [vmem:[%s9191_s1 + $0xc84] ss:$16 sps:$4 sm:$0xff]   ;;  %v6907_v49 = vld [vmem:[%s9191_s1 + $0xd88] ss:$16 sps:$4 sm:$0xff]   ;;  %v6915_v58 = vld [vmem:[%s9191_s1 + $0xd6c] ss:$16 sps:$4 sm:$0xff]  }
 0x190   : > { %v1766_v14 = vpop.f32.mrf.mxu0  ;;  %v1807_v47 = vpop.f32.mrf.mxu1  ;;  %v6912_v30 = vld [vmem:[%s9191_s1 + $0xd64] ss:$16 sps:$4 sm:$0xff]   ;;  %v6921_v41 = vld [vmem:[%s9191_s1 + $0xd4c] ss:$16 sps:$4 sm:$0xff]   ;;  %v6916_v42 = vld [vmem:[%s9191_s1 + $0xd40] ss:$16 sps:$4 sm:$0xff]  }
 0x191   : > { %3749 = vmatpush1.bf16.msra.mxu0 %v6844_v39  ;;  %3790 = vmatpush1.bf16.msra.mxu1 %v6847_v40  ;;  %v6913_v39 = vld [vmem:[%s9191_s1 + $0xd68] ss:$16 sps:$4 sm:$0xff]   ;;  %v6918_v40 = vld [vmem:[%s9191_s1 + $0xd44] ss:$16 sps:$4 sm:$0xff]   ;;  %v6927_v14 = vld [vmem:[%s9191_s1 + $0xd2c] ss:$16 sps:$4 sm:$0xff]  }
 0x192   : > { %v1767_v52 = vpop.f32.mrf.mxu0  ;;  %v1808_v32 = vpop.f32.mrf.mxu1  ;;  %3750 = vmatprep.subr.bf16.mxu0 %v6852_v6  ;;  %3791 = vmatprep.subr.bf16.mxu1 %v6855_v7  ;;  %v6919_v6 = vld [vmem:[%s9191_s1 + $0xd48] ss:$16 sps:$4 sm:$0xff]   ;;  %v6924_v7 = vld [vmem:[%s9191_s1 + $0xd24] ss:$16 sps:$4 sm:$0xff]   ;;  %v6922_v47 = vld [vmem:[%s9191_s1 + $0xd20] ss:$16 sps:$4 sm:$0xff]  }
 0x193   : > { %v6933_v52 = vld [vmem:[%s9191_s1 + $0xd0c] ss:$16 sps:$4 sm:$0xff]   ;;  %v8716_v32 = vrot.slane %v3897_v16, %v7339_v63  ;;  %v3416_v16 = vrot.slane %v8501_v0, %v7339_v63 }
 0x194   : > { %v6945_v0 = vld [vmem:[%s9191_s1 + $0xecc] ss:$16 sps:$4 sm:$0xff]  }
 0x195   : > { %3751 = vmatpush1.bf16.msra.mxu0 %v6850_v3  ;;  %3792 = vmatpush1.bf16.msra.mxu1 %v6853_v50  ;;  %v6925_v3 = vld [vmem:[%s9191_s1 + $0xd28] ss:$16 sps:$4 sm:$0xff]   ;;  %v6930_v50 = vld [vmem:[%s9191_s1 + $0xd04] ss:$16 sps:$4 sm:$0xff]   ;;  %v3905_v13 = vcombine.high %v8716_v32, %v8716_v32 }
 0x196   : > { %3752 = vmatprep.subr.bf16.mxu0 %v6858_v33  ;;  %3793 = vmatprep.subr.bf16.mxu1 %v6861_v53  ;;  %v6928_v33 = vld [vmem:[%s9191_s1 + $0xd00] ss:$16 sps:$4 sm:$0xff]   ;;  %v6931_v53 = vld [vmem:[%s9191_s1 + $0xd08] ss:$16 sps:$4 sm:$0xff]  }
 0x199   : > { %3753 = vmatpush1.bf16.msra.mxu0 %v6856_v54  ;;  %3794 = vmatpush1.bf16.msra.mxu1 %v6859_v55  ;;  %v6936_v54 = vld [vmem:[%s9191_s1 + $0xee4] ss:$16 sps:$4 sm:$0xff]   ;;  %v6934_v55 = vld [vmem:[%s9191_s1 + $0xee0] ss:$16 sps:$4 sm:$0xff]  }
 0x19a   : > { %3754 = vmatprep.subr.bf16.mxu0 %v6864_v56  ;;  %3795 = vmatprep.subr.bf16.mxu1 %v6867_v57  ;;  %v6937_v56 = vld [vmem:[%s9191_s1 + $0xee8] ss:$16 sps:$4 sm:$0xff]   ;;  %v6942_v57 = vld [vmem:[%s9191_s1 + $0xec4] ss:$16 sps:$4 sm:$0xff]  }
 0x19d   : > { %3755 = vmatpush1.bf16.msra.mxu0 %v6862_v59  ;;  %3796 = vmatpush1.bf16.msra.mxu1 %v6865_v60  ;;  %v3919_v59 = vrot.slane %v3905_v13, %v7339_v63  ;;  %v7005_v13 = vld [vmem:[%s9191_s1 + $0xf8c] ss:$16 sps:$4 sm:$0xff]  }
 0x19e   : > { %3756 = vmatprep.subr.bf16.mxu0 %v6870_v61  ;;  %3797 = vmatprep.subr.bf16.mxu1 %v6873_v62 }
 0x1a1   : > { %3757 = vmatpush1.bf16.msra.mxu0 %v6868_v21  ;;  %3798 = vmatpush1.bf16.msra.mxu1 %v6871_v1  ;;  %v6940_v1 = vld [vmem:[%s9191_s1 + $0xec0] ss:$16 sps:$4 sm:$0xff]  }
 0x1a2   : > { %3758 = vmatprep.subr.bf16.mxu0 %v6876_v2  ;;  %3799 = vmatprep.subr.bf16.mxu1 %v6879_v4  ;;  %v6943_v2 = vld [vmem:[%s9191_s1 + $0xec8] ss:$16 sps:$4 sm:$0xff]  }
 0x1a5   : > { %3759 = vmatpush1.bf16.msra.mxu0 %v6874_v35  ;;  %3800 = vmatpush1.bf16.msra.mxu1 %v6877_v9 }
 0x1a6   : > { %3760 = vmatprep.subr.bf16.mxu0 %v6882_v10  ;;  %3801 = vmatprep.subr.bf16.mxu1 %v6885_v12 }
 0x1a9   : > { %3761 = vmatpush1.bf16.msra.mxu0 %v6880_v17  ;;  %3802 = vmatpush1.bf16.msra.mxu1 %v6883_v18  ;;  %v6946_v18 = vld [vmem:[%s9191_s1 + $0xea0] ss:$16 sps:$4 sm:$0xff]  }
 0x1aa   : > { %3762 = vmatprep.subr.bf16.mxu0 %v6888_v19  ;;  %3803 = vmatprep.subr.bf16.mxu1 %v6891_v20  ;;  %v6949_v19 = vld [vmem:[%s9191_s1 + $0xea8] ss:$16 sps:$4 sm:$0xff]  }
 0x1ad   : > { %3763 = vmatpush2.bf16.msra.mxu0 %v6886_v22  ;;  %3804 = vmatpush2.bf16.msra.mxu1 %v6889_v34  ;;  %v6957_v22 = vld [vmem:[%s9191_s1 + $0xe8c] ss:$16 sps:$4 sm:$0xff]   ;;  %v6952_v34 = vld [vmem:[%s9191_s1 + $0xe80] ss:$16 sps:$4 sm:$0xff]  }
 0x1ae   : > { %3764 = vmatprep.subr.bf16.mxu0 %v6894_v36  ;;  %3805 = vmatprep.subr.bf16.mxu1 %v6897_v46  ;;  %v6955_v36 = vld [vmem:[%s9191_s1 + $0xe88] ss:$16 sps:$4 sm:$0xff]   ;;  %v6960_v46 = vld [vmem:[%s9191_s1 + $0xe64] ss:$16 sps:$4 sm:$0xff]  }
 0x1b1   : > { %3765 = vmatpush2.bf16.msra.mxu0 %v6892_v23  ;;  %3806 = vmatpush2.bf16.msra.mxu1 %v6895_v24  ;;  %v6963_v23 = vld [vmem:[%s9191_s1 + $0xe6c] ss:$16 sps:$4 sm:$0xff]   ;;  %v6958_v24 = vld [vmem:[%s9191_s1 + $0xe60] ss:$16 sps:$4 sm:$0xff]  }
 0x1b2   : > { %3766 = vmatprep.subr.bf16.mxu0 %v6900_v11  ;;  %3807 = vmatprep.subr.bf16.mxu1 %v6903_v15  ;;  %v6961_v11 = vld [vmem:[%s9191_s1 + $0xe68] ss:$16 sps:$4 sm:$0xff]   ;;  %v6966_v15 = vld [vmem:[%s9191_s1 + $0xe44] ss:$16 sps:$4 sm:$0xff]  }
 0x1b5   : > { %3767 = vmatpush2.bf16.msra.mxu0 %v6898_v25  ;;  %3808 = vmatpush2.bf16.msra.mxu1 %v6901_v26  ;;  %v6969_v25 = vld [vmem:[%s9191_s1 + $0xe4c] ss:$16 sps:$4 sm:$0xff]   ;;  %v6964_v26 = vld [vmem:[%s9191_s1 + $0xe40] ss:$16 sps:$4 sm:$0xff]  }
 0x1b6   : > { %3768 = vmatprep.subr.bf16.mxu0 %v6906_v27  ;;  %3809 = vmatprep.subr.bf16.mxu1 %v6909_v28  ;;  %v6967_v27 = vld [vmem:[%s9191_s1 + $0xe48] ss:$16 sps:$4 sm:$0xff]   ;;  %v6972_v28 = vld [vmem:[%s9191_s1 + $0xe24] ss:$16 sps:$4 sm:$0xff]  }
 0x1b9   : > { %3769 = vmatpush2.bf16.msra.mxu0 %v6904_v29  ;;  %3810 = vmatpush2.bf16.msra.mxu1 %v6907_v49  ;;  %v6975_v29 = vld [vmem:[%s9191_s1 + $0xe2c] ss:$16 sps:$4 sm:$0xff]   ;;  %v6970_v49 = vld [vmem:[%s9191_s1 + $0xe20] ss:$16 sps:$4 sm:$0xff]  }
 0x1ba   : > { %3770 = vmatprep.subr.bf16.mxu0 %v6912_v30  ;;  %3811 = vmatprep.subr.bf16.mxu1 %v6915_v58  ;;  %v6973_v30 = vld [vmem:[%s9191_s1 + $0xe28] ss:$16 sps:$4 sm:$0xff]   ;;  %v6978_v58 = vld [vmem:[%s9191_s1 + $0xe04] ss:$16 sps:$4 sm:$0xff]  }
 0x1bd   : > { %3771 = vmatpush2.bf16.msra.mxu0 %v6910_v31  ;;  %3812 = vmatpush2.bf16.msra.mxu1 %v6913_v39  ;;  %v6981_v31 = vld [vmem:[%s9191_s1 + $0xe0c] ss:$16 sps:$4 sm:$0xff]   ;;  %v6976_v39 = vld [vmem:[%s9191_s1 + $0xe00] ss:$16 sps:$4 sm:$0xff]  }
 0x1be   : > { %3772 = vmatprep.subr.bf16.mxu0 %v6918_v40  ;;  %3813 = vmatprep.subr.bf16.mxu1 %v6921_v41  ;;  %v6979_v40 = vld [vmem:[%s9191_s1 + $0xe08] ss:$16 sps:$4 sm:$0xff]   ;;  %v6984_v41 = vld [vmem:[%s9191_s1 + $0xfe4] ss:$16 sps:$4 sm:$0xff]  }
 0x1c1   : > { %3773 = vmatpush2.bf16.msra.mxu0 %v6916_v42  ;;  %3814 = vmatpush2.bf16.msra.mxu1 %v6919_v6  ;;  %v6987_v42 = vld [vmem:[%s9191_s1 + $0xfec] ss:$16 sps:$4 sm:$0xff]   ;;  %v6982_v6 = vld [vmem:[%s9191_s1 + $0xfe0] ss:$16 sps:$4 sm:$0xff]  }
 0x1c2   : > { %3774 = vmatprep.subr.bf16.mxu0 %v6924_v7  ;;  %3815 = vmatprep.subr.bf16.mxu1 %v6927_v14  ;;  %v6985_v7 = vld [vmem:[%s9191_s1 + $0xfe8] ss:$16 sps:$4 sm:$0xff]   ;;  %v6990_v14 = vld [vmem:[%s9191_s1 + $0xfc4] ss:$16 sps:$4 sm:$0xff]  }
 0x1c5   : > { %3775 = vmatpush2.bf16.msra.mxu0 %v6922_v47  ;;  %3816 = vmatpush2.bf16.msra.mxu1 %v6925_v3  ;;  %v6993_v47 = vld [vmem:[%s9191_s1 + $0xfcc] ss:$16 sps:$4 sm:$0xff]   ;;  %v6988_v3 = vld [vmem:[%s9191_s1 + $0xfc0] ss:$16 sps:$4 sm:$0xff]  }
 0x1c6   : > { %3776 = vmatprep.subr.bf16.mxu0 %v6930_v50  ;;  %3817 = vmatprep.subr.bf16.mxu1 %v6933_v52  ;;  %v6991_v50 = vld [vmem:[%s9191_s1 + $0xfc8] ss:$16 sps:$4 sm:$0xff]   ;;  %v6996_v52 = vld [vmem:[%s9191_s1 + $0xfa4] ss:$16 sps:$4 sm:$0xff]  }
 0x1c9   : > { %3777 = vmatpush2.bf16.msra.mxu0 %v6928_v33  ;;  %3818 = vmatpush2.bf16.msra.mxu1 %v6931_v53  ;;  %v6999_v33 = vld [vmem:[%s9191_s1 + $0xfac] ss:$16 sps:$4 sm:$0xff]   ;;  %v6994_v53 = vld [vmem:[%s9191_s1 + $0xfa0] ss:$16 sps:$4 sm:$0xff]  }
 0x1ca   : > { %4242 = vmatprep.subr.bf16.mxu0 %v6936_v54  ;;  %4283 = vmatprep.subr.bf16.mxu1 %v6939_v8  ;;  %v6997_v54 = vld [vmem:[%s9191_s1 + $0xfa8] ss:$16 sps:$4 sm:$0xff]   ;;  %v7002_v8 = vld [vmem:[%s9191_s1 + $0xf84] ss:$16 sps:$4 sm:$0xff]  }
 0x1cc   : > { %v2275_v60 = vpop.f32.mrf.mxu0  ;;  %v2316_v61 = vpop.f32.mrf.mxu1  ;;  %3779 = vmatmul.mubr.bf16.vlgmr.msra.gmra.mxu0 %v3416_v16  ;;  %3820 = vmatmul.mubr.bf16.vlgmr.msra.gmra.mxu1 %v3416_v16  ;;  %v7000_v16 = vld [vmem:[%s9191_s1 + $0xf80] ss:$16 sps:$4 sm:$0xff]  }
 0x1cd   : > { %v8748_v62 = vadd.f32 %v2275_v60, %v8533_v37  ;;  %v8751_v21 = vadd.f32 %v2316_v61, %v8536_v38  ;;  %4243 = vmatpush1.bf16.msra.mxu0 %v6934_v55  ;;  %4284 = vmatpush1.bf16.msra.mxu1 %v6937_v56  ;;  %v6948_v37 = vld [vmem:[%s9191_s1 + $0xea4] ss:$16 sps:$4 sm:$0xff]   ;;  %v6951_v38 = vld [vmem:[%s9191_s1 + $0xeac] ss:$16 sps:$4 sm:$0xff]   ;;  %v7003_v55 = vld [vmem:[%s9191_s1 + $0xf88] ss:$16 sps:$4 sm:$0xff]  }
 0x1ce   : > { %v2277_v4 = vpop.f32.mrf.mxu0  ;;  %v2318_v35 = vpop.f32.mrf.mxu1  ;;  %4244 = vmatprep.subr.bf16.mxu0 %v6942_v57  ;;  %4285 = vmatprep.subr.bf16.mxu1 %v6945_v0  ;;  %v7008_v56 = vld [vmem:[%s9191_s1 + $0xf64] ss:$16 sps:$4 sm:$0xff]   ;;  %v7011_v57 = vld [vmem:[%s9191_s1 + $0xf6c] ss:$16 sps:$4 sm:$0xff]   ;;  %v7006_v0 = vld [vmem:[%s9191_s1 + $0xf60] ss:$16 sps:$4 sm:$0xff]  }
 0x1cf   : > { %v8766_v9 = vadd.f32 %v2277_v4, %v8551_v44  ;;  %v8769_v10 = vadd.f32 %v2318_v35, %v8554_v45  ;;  %4274 = vmatprep.mubr.bf16.mxu0 %v3919_v59  ;;  %4315 = vmatprep.mubr.bf16.mxu1 %v3919_v59  ;;  %v6954_v45 = vld [vmem:[%s9191_s1 + $0xe84] ss:$16 sps:$4 sm:$0xff]   ;;  %v7009_v59 = vld [vmem:[%s9191_s1 + $0xf68] ss:$16 sps:$4 sm:$0xff]   ;;  %v7017_v61 = vld [vmem:[%s9191_s1 + $0xf4c] ss:$16 sps:$4 sm:$0xff]  }
 0x1d0   : > { %v2279_v12 = vpop.f32.mrf.mxu0  ;;  %v2320_v17 = vpop.f32.mrf.mxu1  ;;  %v7014_v60 = vld [vmem:[%s9191_s1 + $0xf44] ss:$16 sps:$4 sm:$0xff]   ;;  %v7023_v35 = vld [vmem:[%s9191_s1 + $0xf2c] ss:$16 sps:$4 sm:$0xff]  }
 0x1d1   : > { %4245 = vmatpush1.bf16.msra.mxu0 %v6940_v1  ;;  %4286 = vmatpush1.bf16.msra.mxu1 %v6943_v2  ;;  %v7012_v1 = vld [vmem:[%s9191_s1 + $0xf40] ss:$16 sps:$4 sm:$0xff]   ;;  %v7015_v2 = vld [vmem:[%s9191_s1 + $0xf48] ss:$16 sps:$4 sm:$0xff]   ;;  %v7020_v4 = vld [vmem:[%s9191_s1 + $0xf24] ss:$16 sps:$4 sm:$0xff]  }
 0x1d2   : > { %v2280_v20 = vpop.f32.mrf.mxu0  ;;  %v2321_v44 = vpop.f32.mrf.mxu1  ;;  %4246 = vmatprep.subr.bf16.mxu0 %v6948_v37  ;;  %4287 = vmatprep.subr.bf16.mxu1 %v6951_v38  ;;  %v4393_v37 = vcombine.low %v7455_v5, %v7413_v48  ;;  %v7018_v38 = vld [vmem:[%s9191_s1 + $0xf20] ss:$16 sps:$4 sm:$0xff]   ;;  %v7021_v12 = vld [vmem:[%s9191_s1 + $0xf28] ss:$16 sps:$4 sm:$0xff]   ;;  %v7026_v17 = vld [vmem:[%s9191_s1 + $0xf04] ss:$16 sps:$4 sm:$0xff]  }
 0x1d3   : > { %v7029_v48 = vld [vmem:[%s9191_s1 + $0xf0c] ss:$16 sps:$4 sm:$0xff]   ;;  %v7032_v20 = vld [vmem:[%s9191_s1 + $0x10e4] ss:$16 sps:$4 sm:$0xff]  }
 0x1d4   : > { %v8930_v5 = vrot.slane %v4393_v37, %v7339_v63  ;;  %v7035_v44 = vld [vmem:[%s9191_s1 + $0x10ec] ss:$16 sps:$4 sm:$0xff]   ;;  %v7084_v37 = vld [vmem:[%s9191_s1 + $0x11c0] ss:$16 sps:$4 sm:$0xff]  }
 0x1d5   : > { %4247 = vmatpush1.bf16.msra.mxu0 %v6946_v18  ;;  %4288 = vmatpush1.bf16.msra.mxu1 %v6949_v19  ;;  %v7024_v18 = vld [vmem:[%s9191_s1 + $0xf00] ss:$16 sps:$4 sm:$0xff]   ;;  %v7027_v19 = vld [vmem:[%s9191_s1 + $0xf08] ss:$16 sps:$4 sm:$0xff]  }
 0x1d6   : > { %4248 = vmatprep.subr.bf16.mxu0 %v6954_v45  ;;  %4289 = vmatprep.subr.bf16.mxu1 %v6957_v22  ;;  %v4401_v45 = vcombine.high %v8930_v5, %v8930_v5  ;;  %v3912_v22 = vrot.slane %v8716_v32, %v7339_v63  ;;  %v7041_v32 = vld [vmem:[%s9191_s1 + $0x10cc] ss:$16 sps:$4 sm:$0xff]  }
 0x1d9   : > { %4249 = vmatpush1.bf16.msra.mxu0 %v6952_v34  ;;  %4290 = vmatpush1.bf16.msra.mxu1 %v6955_v36  ;;  %v7030_v34 = vld [vmem:[%s9191_s1 + $0x10e0] ss:$16 sps:$4 sm:$0xff]   ;;  %v7033_v36 = vld [vmem:[%s9191_s1 + $0x10e8] ss:$16 sps:$4 sm:$0xff]  }
 0x1da   : > { %4250 = vmatprep.subr.bf16.mxu0 %v6960_v46  ;;  %4291 = vmatprep.subr.bf16.mxu1 %v6963_v23  ;;  %v7038_v46 = vld [vmem:[%s9191_s1 + $0x10c4] ss:$16 sps:$4 sm:$0xff]   ;;  %v4415_v23 = vrot.slane %v4401_v45, %v7339_v63  ;;  %v7099_v45 = vld [vmem:[%s9191_s1 + $0x1188] ss:$16 sps:$4 sm:$0xff]  }
 0x1dd   : > { %4251 = vmatpush1.bf16.msra.mxu0 %v6958_v24  ;;  %4292 = vmatpush1.bf16.msra.mxu1 %v6961_v11 }
 0x1de   : > { %4252 = vmatprep.subr.bf16.mxu0 %v6966_v15  ;;  %4293 = vmatprep.subr.bf16.mxu1 %v6969_v25 }
 0x1e1   : > { %4253 = vmatpush1.bf16.msra.mxu0 %v6964_v26  ;;  %4294 = vmatpush1.bf16.msra.mxu1 %v6967_v27  ;;  %v7036_v26 = vld [vmem:[%s9191_s1 + $0x10c0] ss:$16 sps:$4 sm:$0xff]   ;;  %v7039_v27 = vld [vmem:[%s9191_s1 + $0x10c8] ss:$16 sps:$4 sm:$0xff]  }
 0x1e2   : > { %4254 = vmatprep.subr.bf16.mxu0 %v6972_v28  ;;  %4295 = vmatprep.subr.bf16.mxu1 %v6975_v29 }
 0x1e5   : > { %4255 = vmatpush1.bf16.msra.mxu0 %v6970_v49  ;;  %4296 = vmatpush1.bf16.msra.mxu1 %v6973_v30 }
 0x1e6   : > { %4256 = vmatprep.subr.bf16.mxu0 %v6978_v58  ;;  %4297 = vmatprep.subr.bf16.mxu1 %v6981_v31 }
 0x1e9   : > { %4257 = vmatpush1.bf16.msra.mxu0 %v6976_v39  ;;  %4298 = vmatpush1.bf16.msra.mxu1 %v6979_v40  ;;  %v7042_v39 = vld [vmem:[%s9191_s1 + $0x10a0] ss:$16 sps:$4 sm:$0xff]   ;;  %v7045_v40 = vld [vmem:[%s9191_s1 + $0x10a8] ss:$16 sps:$4 sm:$0xff]  }
 0x1ea   : > { %4258 = vmatprep.subr.bf16.mxu0 %v6984_v41  ;;  %4299 = vmatprep.subr.bf16.mxu1 %v6987_v42  ;;  %v7053_v42 = vld [vmem:[%s9191_s1 + $0x108c] ss:$16 sps:$4 sm:$0xff]  }
 0x1ed   : > { %4259 = vmatpush2.bf16.msra.mxu0 %v6982_v6  ;;  %4300 = vmatpush2.bf16.msra.mxu1 %v6985_v7  ;;  %v7048_v6 = vld [vmem:[%s9191_s1 + $0x1080] ss:$16 sps:$4 sm:$0xff]   ;;  %v7051_v7 = vld [vmem:[%s9191_s1 + $0x1088] ss:$16 sps:$4 sm:$0xff]  }
 0x1ee   : > { %4260 = vmatprep.subr.bf16.mxu0 %v6990_v14  ;;  %4301 = vmatprep.subr.bf16.mxu1 %v6993_v47  ;;  %v7056_v14 = vld [vmem:[%s9191_s1 + $0x1064] ss:$16 sps:$4 sm:$0xff]   ;;  %v7059_v47 = vld [vmem:[%s9191_s1 + $0x106c] ss:$16 sps:$4 sm:$0xff]  }
 0x1f1   : > { %4261 = vmatpush2.bf16.msra.mxu0 %v6988_v3  ;;  %4302 = vmatpush2.bf16.msra.mxu1 %v6991_v50  ;;  %v7054_v3 = vld [vmem:[%s9191_s1 + $0x1060] ss:$16 sps:$4 sm:$0xff]   ;;  %v7057_v50 = vld [vmem:[%s9191_s1 + $0x1068] ss:$16 sps:$4 sm:$0xff]  }
 0x1f2   : > { %4262 = vmatprep.subr.bf16.mxu0 %v6996_v52  ;;  %4303 = vmatprep.subr.bf16.mxu1 %v6999_v33  ;;  %v7062_v52 = vld [vmem:[%s9191_s1 + $0x1044] ss:$16 sps:$4 sm:$0xff]   ;;  %v7065_v33 = vld [vmem:[%s9191_s1 + $0x104c] ss:$16 sps:$4 sm:$0xff]  }
 0x1f5   : > { %4263 = vmatpush2.bf16.msra.mxu0 %v6994_v53  ;;  %4304 = vmatpush2.bf16.msra.mxu1 %v6997_v54  ;;  %v7060_v53 = vld [vmem:[%s9191_s1 + $0x1040] ss:$16 sps:$4 sm:$0xff]   ;;  %v7063_v54 = vld [vmem:[%s9191_s1 + $0x1048] ss:$16 sps:$4 sm:$0xff]  }
 0x1f6   : > { %4264 = vmatprep.subr.bf16.mxu0 %v7002_v8  ;;  %4305 = vmatprep.subr.bf16.mxu1 %v7005_v13  ;;  %v7068_v8 = vld [vmem:[%s9191_s1 + $0x1024] ss:$16 sps:$4 sm:$0xff]   ;;  %v7071_v13 = vld [vmem:[%s9191_s1 + $0x102c] ss:$16 sps:$4 sm:$0xff]  }
 0x1f9   : > { %4265 = vmatpush2.bf16.msra.mxu0 %v7000_v16  ;;  %4306 = vmatpush2.bf16.msra.mxu1 %v7003_v55  ;;  %v7066_v16 = vld [vmem:[%s9191_s1 + $0x1020] ss:$16 sps:$4 sm:$0xff]   ;;  %v7069_v55 = vld [vmem:[%s9191_s1 + $0x1028] ss:$16 sps:$4 sm:$0xff]  }
 0x1fa   : > { %4266 = vmatprep.subr.bf16.mxu0 %v7008_v56  ;;  %4307 = vmatprep.subr.bf16.mxu1 %v7011_v57  ;;  %v7074_v56 = vld [vmem:[%s9191_s1 + $0x1004] ss:$16 sps:$4 sm:$0xff]   ;;  %v7077_v57 = vld [vmem:[%s9191_s1 + $0x100c] ss:$16 sps:$4 sm:$0xff]  }
 0x1fd   : > { %4267 = vmatpush2.bf16.msra.mxu0 %v7006_v0  ;;  %4308 = vmatpush2.bf16.msra.mxu1 %v7009_v59  ;;  %v7072_v0 = vld [vmem:[%s9191_s1 + $0x1000] ss:$16 sps:$4 sm:$0xff]   ;;  %v7075_v59 = vld [vmem:[%s9191_s1 + $0x1008] ss:$16 sps:$4 sm:$0xff]  }
 0x1fe   : > { %4268 = vmatprep.subr.bf16.mxu0 %v7014_v60  ;;  %4309 = vmatprep.subr.bf16.mxu1 %v7017_v61  ;;  %v7080_v60 = vld [vmem:[%s9191_s1 + $0x11e4] ss:$16 sps:$4 sm:$0xff]   ;;  %v7083_v61 = vld [vmem:[%s9191_s1 + $0x11ec] ss:$16 sps:$4 sm:$0xff]  }
 0x201   : > { %4269 = vmatpush2.bf16.msra.mxu0 %v7012_v1  ;;  %4310 = vmatpush2.bf16.msra.mxu1 %v7015_v2  ;;  %v7078_v1 = vld [vmem:[%s9191_s1 + $0x11e0] ss:$16 sps:$4 sm:$0xff]   ;;  %v7081_v2 = vld [vmem:[%s9191_s1 + $0x11e8] ss:$16 sps:$4 sm:$0xff]  }
 0x202   : > { %4270 = vmatprep.subr.bf16.mxu0 %v7020_v4  ;;  %4311 = vmatprep.subr.bf16.mxu1 %v7023_v35  ;;  %v7086_v4 = vld [vmem:[%s9191_s1 + $0x11c4] ss:$16 sps:$4 sm:$0xff]   ;;  %v7089_v35 = vld [vmem:[%s9191_s1 + $0x11cc] ss:$16 sps:$4 sm:$0xff]  }
 0x205   : > { %4271 = vmatpush2.bf16.msra.mxu0 %v7018_v38  ;;  %4312 = vmatpush2.bf16.msra.mxu1 %v7021_v12  ;;  %v7087_v38 = vld [vmem:[%s9191_s1 + $0x11c8] ss:$16 sps:$4 sm:$0xff]   ;;  %v7092_v12 = vld [vmem:[%s9191_s1 + $0x11a4] ss:$16 sps:$4 sm:$0xff]  }
 0x206   : > { %4272 = vmatprep.subr.bf16.mxu0 %v7026_v17  ;;  %4313 = vmatprep.subr.bf16.mxu1 %v7029_v48  ;;  %v7095_v17 = vld [vmem:[%s9191_s1 + $0x11ac] ss:$16 sps:$4 sm:$0xff]   ;;  %v7090_v48 = vld [vmem:[%s9191_s1 + $0x11a0] ss:$16 sps:$4 sm:$0xff]  }
 0x209   : > { %4273 = vmatpush2.bf16.msra.mxu0 %v7024_v18  ;;  %4314 = vmatpush2.bf16.msra.mxu1 %v7027_v19  ;;  %v7093_v18 = vld [vmem:[%s9191_s1 + $0x11a8] ss:$16 sps:$4 sm:$0xff]   ;;  %v7098_v19 = vld [vmem:[%s9191_s1 + $0x1184] ss:$16 sps:$4 sm:$0xff]  }
 0x20a   : > { %4738 = vmatprep.subr.bf16.mxu0 %v7032_v20  ;;  %4779 = vmatprep.subr.bf16.mxu1 %v7035_v44  ;;  %v7101_v20 = vld [vmem:[%s9191_s1 + $0x118c] ss:$16 sps:$4 sm:$0xff]   ;;  %v7096_v44 = vld [vmem:[%s9191_s1 + $0x1180] ss:$16 sps:$4 sm:$0xff]  }
 0x20c   : > { %v2788_v24 = vpop.f32.mrf.mxu0  ;;  %v2829_v11 = vpop.f32.mrf.mxu1  ;;  %4275 = vmatmul.mubr.bf16.vlgmr.msra.gmra.mxu0 %v3912_v22  ;;  %4316 = vmatmul.mubr.bf16.vlgmr.msra.gmra.mxu1 %v3912_v22  ;;  %v7104_v22 = vld [vmem:[%s9191_s1 + $0x1164] ss:$16 sps:$4 sm:$0xff]  }
 0x20d   : > { %v8962_v15 = vadd.f32 %v2788_v24, %v8748_v62  ;;  %v8965_v25 = vadd.f32 %v2829_v11, %v8751_v21  ;;  %4739 = vmatpush1.bf16.msra.mxu0 %v7030_v34  ;;  %4780 = vmatpush1.bf16.msra.mxu1 %v7033_v36  ;;  %v7044_v62 = vld [vmem:[%s9191_s1 + $0x10a4] ss:$16 sps:$4 sm:$0xff]   ;;  %v7047_v21 = vld [vmem:[%s9191_s1 + $0x10ac] ss:$16 sps:$4 sm:$0xff]   ;;  %v7102_v36 = vld [vmem:[%s9191_s1 + $0x1160] ss:$16 sps:$4 sm:$0xff]  }
 0x20e   : > { %v2790_v28 = vpop.f32.mrf.mxu0  ;;  %v2831_v29 = vpop.f32.mrf.mxu1  ;;  %4740 = vmatprep.subr.bf16.mxu0 %v7038_v46  ;;  %4781 = vmatprep.subr.bf16.mxu1 %v7041_v32  ;;  %v7107_v34 = vld [vmem:[%s9191_s1 + $0x116c] ss:$16 sps:$4 sm:$0xff]   ;;  %v7105_v46 = vld [vmem:[%s9191_s1 + $0x1168] ss:$16 sps:$4 sm:$0xff]   ;;  %v7110_v32 = vld [vmem:[%s9191_s1 + $0x1144] ss:$16 sps:$4 sm:$0xff]  }
 0x20f   : > { %v8980_v49 = vadd.f32 %v2790_v28, %v8766_v9  ;;  %v8983_v30 = vadd.f32 %v2831_v29, %v8769_v10  ;;  %4770 = vmatprep.mubr.bf16.mxu0 %v4415_v23  ;;  %4811 = vmatprep.mubr.bf16.mxu1 %v4415_v23  ;;  %v7050_v10 = vld [vmem:[%s9191_s1 + $0x1084] ss:$16 sps:$4 sm:$0xff]   ;;  %v7113_v23 = vld [vmem:[%s9191_s1 + $0x114c] ss:$16 sps:$4 sm:$0xff]   ;;  %v7108_v24 = vld [vmem:[%s9191_s1 + $0x1140] ss:$16 sps:$4 sm:$0xff]  }
 0x210   : > { %v2792_v58 = vpop.f32.mrf.mxu0  ;;  %v2833_v31 = vpop.f32.mrf.mxu1  ;;  %v7111_v11 = vld [vmem:[%s9191_s1 + $0x1148] ss:$16 sps:$4 sm:$0xff]   ;;  %v7114_v28 = vld [vmem:[%s9191_s1 + $0x1120] ss:$16 sps:$4 sm:$0xff]  }
 0x211   : > { %4741 = vmatpush1.bf16.msra.mxu0 %v7036_v26  ;;  %4782 = vmatpush1.bf16.msra.mxu1 %v7039_v27  ;;  %v7116_v26 = vld [vmem:[%s9191_s1 + $0x1124] ss:$16 sps:$4 sm:$0xff]   ;;  %v7119_v27 = vld [vmem:[%s9191_s1 + $0x112c] ss:$16 sps:$4 sm:$0xff]   ;;  %v7117_v29 = vld [vmem:[%s9191_s1 + $0x1128] ss:$16 sps:$4 sm:$0xff]  }
 0x212   : > { %v2793_v41 = vpop.f32.mrf.mxu0  ;;  %v2834_v9 = vpop.f32.mrf.mxu1  ;;  %4742 = vmatprep.subr.bf16.mxu0 %v7044_v62  ;;  %4783 = vmatprep.subr.bf16.mxu1 %v7047_v21  ;;  %v7122_v62 = vld [vmem:[%s9191_s1 + $0x1104] ss:$16 sps:$4 sm:$0xff]   ;;  %v7125_v21 = vld [vmem:[%s9191_s1 + $0x110c] ss:$16 sps:$4 sm:$0xff]   ;;  %v7120_v58 = vld [vmem:[%s9191_s1 + $0x1100] ss:$16 sps:$4 sm:$0xff]  }
 0x213   : > { %v7123_v31 = vld [vmem:[%s9191_s1 + $0x1108] ss:$16 sps:$4 sm:$0xff]  }
 0x215   : > { %4743 = vmatpush1.bf16.msra.mxu0 %v7042_v39  ;;  %4784 = vmatpush1.bf16.msra.mxu1 %v7045_v40  ;;  %v4408_v39 = vrot.slane %v8930_v5, %v7339_v63 }
 0x216   : > { %4744 = vmatprep.subr.bf16.mxu0 %v7050_v10  ;;  %4785 = vmatprep.subr.bf16.mxu1 %v7053_v42 }
 0x219   : > { %4745 = vmatpush1.bf16.msra.mxu0 %v7048_v6  ;;  %4786 = vmatpush1.bf16.msra.mxu1 %v7051_v7 }
 0x21a   : > { %4746 = vmatprep.subr.bf16.mxu0 %v7056_v14  ;;  %4787 = vmatprep.subr.bf16.mxu1 %v7059_v47 }
 0x21d   : > { %4747 = vmatpush1.bf16.msra.mxu0 %v7054_v3  ;;  %4788 = vmatpush1.bf16.msra.mxu1 %v7057_v50 }
 0x21e   : > { %4748 = vmatprep.subr.bf16.mxu0 %v7062_v52  ;;  %4789 = vmatprep.subr.bf16.mxu1 %v7065_v33 }
 0x221   : > { %4749 = vmatpush1.bf16.msra.mxu0 %v7060_v53  ;;  %4790 = vmatpush1.bf16.msra.mxu1 %v7063_v54 }
 0x222   : > { %4750 = vmatprep.subr.bf16.mxu0 %v7068_v8  ;;  %4791 = vmatprep.subr.bf16.mxu1 %v7071_v13 }
 0x225   : > { %4751 = vmatpush1.bf16.msra.mxu0 %v7066_v16  ;;  %4792 = vmatpush1.bf16.msra.mxu1 %v7069_v55 }
 0x226   : > { %4752 = vmatprep.subr.bf16.mxu0 %v7074_v56  ;;  %4793 = vmatprep.subr.bf16.mxu1 %v7077_v57 }
 0x229   : > { %4753 = vmatpush1.bf16.msra.mxu0 %v7072_v0  ;;  %4794 = vmatpush1.bf16.msra.mxu1 %v7075_v59 }
 0x22a   : > { %4754 = vmatprep.subr.bf16.mxu0 %v7080_v60  ;;  %4795 = vmatprep.subr.bf16.mxu1 %v7083_v61 }
 0x22d   : > { %4755 = vmatpush2.bf16.msra.mxu0 %v7078_v1  ;;  %4796 = vmatpush2.bf16.msra.mxu1 %v7081_v2 }
 0x22e   : > { %4756 = vmatprep.subr.bf16.mxu0 %v7086_v4  ;;  %4797 = vmatprep.subr.bf16.mxu1 %v7089_v35 }
 0x231   : > { %4757 = vmatpush2.bf16.msra.mxu0 %v7084_v37  ;;  %4798 = vmatpush2.bf16.msra.mxu1 %v7087_v38 }
 0x232   : > { %4758 = vmatprep.subr.bf16.mxu0 %v7092_v12  ;;  %4799 = vmatprep.subr.bf16.mxu1 %v7095_v17  ;;  %v4828_v12 = vsub.s32 0, %v7312_v51  ;;  %v4836_v17 = vsub.s32 2, %v7312_v51 }
 0x235   : > { %4759 = vmatpush2.bf16.msra.mxu0 %v7090_v48  ;;  %4800 = vmatpush2.bf16.msra.mxu1 %v7093_v18  ;;  %v4824_v48 = vld [vmem:[%s9192_s2] sm:$0xf]  ;;  %v4832_v18 = vsub.s32 1, %v7312_v51 }
 0x236   : > { %4760 = vmatprep.subr.bf16.mxu0 %v7098_v19  ;;  %4801 = vmatprep.subr.bf16.mxu1 %v7101_v20  ;;  %v4840_v19 = vsub.s32 3, %v7312_v51  ;;  %v7136_v20 = vmov 1983009808  }
 0x239   : > { %4761 = vmatpush2.bf16.msra.mxu0 %v7096_v44  ;;  %4802 = vmatpush2.bf16.msra.mxu1 %v7099_v45  ;;  %v4861_v44 = vunpack.c.l.s4 %v7136_v20  ;;  %v4829_v45 = vrot.slane %v4824_v48, %v4828_v12 }
 0x23a   : > { %4762 = vmatprep.subr.bf16.mxu0 %v7104_v22  ;;  %4803 = vmatprep.subr.bf16.mxu1 %v7107_v34  ;;  %v4837_v22 = vrot.slane %v4824_v48, %v4836_v17 }
 0x23d   : > { %4763 = vmatpush2.bf16.msra.mxu0 %v7102_v36  ;;  %4804 = vmatpush2.bf16.msra.mxu1 %v7105_v46 }
 0x23e   : > { %4764 = vmatprep.subr.bf16.mxu0 %v7110_v32  ;;  %4805 = vmatprep.subr.bf16.mxu1 %v7113_v23  ;;  %v4833_v23 = vrot.slane %v4824_v48, %v4832_v18 }
 0x241   : > { %4765 = vmatpush2.bf16.msra.mxu0 %v7108_v24  ;;  %4806 = vmatpush2.bf16.msra.mxu1 %v7111_v11  ;;  %v4841_v24 = vrot.slane %v4824_v48, %v4840_v19 }
 0x242   : > { %4766 = vmatprep.subr.bf16.mxu0 %v7116_v26  ;;  %4807 = vmatprep.subr.bf16.mxu1 %v7119_v27  ;;  %v4862_v26 = vunpack.c.0.s8 %v4861_v44 }
 0x245   : > { %4767 = vmatpush2.bf16.msra.mxu0 %v7114_v28  ;;  %4808 = vmatpush2.bf16.msra.mxu1 %v7117_v29 }
 0x246   : > { %4768 = vmatprep.subr.bf16.mxu0 %v7122_v62  ;;  %4809 = vmatprep.subr.bf16.mxu1 %v7125_v21 }
 0x249   : > { %4769 = vmatpush2.bf16.msra.mxu0 %v7120_v58  ;;  %4810 = vmatpush2.bf16.msra.mxu1 %v7123_v31 }
 0x24c   : > { %v3284_v40 = vpop.f32.mrf.mxu0  ;;  %v3325_v41 = vpop.f32.mrf.mxu1  ;;  %4771 = vmatmul.mubr.bf16.vlgmr.msra.gmra.mxu0 %v4408_v39  ;;  %4812 = vmatmul.mubr.bf16.vlgmr.msra.gmra.mxu1 %v4408_v39 }
 0x24d   : > { %v3332_v9 = vadd.f32 %v3284_v40, %v8962_v15  ;;  %v3334_v10 = vadd.f32 %v3325_v41, %v8965_v25  ;;  %v7137_v41 = vmov 0.0  }
 0x24e   : > { %v3286_v42 = vpop.f32.mrf.mxu0  ;;  %v3327_v6 = vpop.f32.mrf.mxu1 }
 0x24f   : > { %v3333_v7 = vadd.f32 %v3286_v42, %v8980_v49  ;;  %v3335_v14 = vadd.f32 %v3327_v6, %v8983_v30 }
 0x250   : > { %v3288_v47 = vpop.f32.mrf.mxu0  ;;  %v3329_v3 = vpop.f32.mrf.mxu1 }
 0x252   : > { %v3289_v50 = vpop.f32.mrf.mxu0  ;;  %v3330_v5 = vpop.f32.mrf.mxu1 }
 0x28c   : > { %v3780_v52 = vpop.f32.mrf.mxu0  ;;  %v3821_v33 = vpop.f32.mrf.mxu1 }
 0x28d   : > { %v3828_v53 = vadd.f32 %v3780_v52, %v3332_v9  ;;  %v3830_v54 = vadd.f32 %v3821_v33, %v3334_v10  ;;  %v4911_v9 = vrot.slane %v7137_v41, 7  ;;  %v4865_v10 = vsub.s32 %v4862_v26, %v7312_v51 }
 0x28e   : > { %v3782_v8 = vpop.f32.mrf.mxu0  ;;  %v3823_v13 = vpop.f32.mrf.mxu1 }
 0x28f   : > { %v3829_v16 = vadd.f32 %v3782_v8, %v3333_v7  ;;  %v3831_v15 = vadd.f32 %v3823_v13, %v3335_v14  ;;  %v4930_v52 = vsel %vm238_vm0, 0.0, %v4911_v9 }
 0x290   : > { %v3784_v55 = vpop.f32.mrf.mxu0  ;;  %v3825_v25 = vpop.f32.mrf.mxu1 }
 0x292   : > { %v3785_v56 = vpop.f32.mrf.mxu0  ;;  %v3826_v57 = vpop.f32.mrf.mxu1 }
 0x2cc   : > { %v4276_v0 = vpop.f32.mrf.mxu0  ;;  %v4317_v49 = vpop.f32.mrf.mxu1 }
 0x2cd   : > { %v4324_v59 = vadd.f32 %v4276_v0, %v3828_v53  ;;  %v4326_v30 = vadd.f32 %v4317_v49, %v3830_v54  ;;  %v4940_v54 = vsel %vm4939_vm5, %v4930_v52, 0.0 }
 0x2ce   : > { %v4278_v60 = vpop.f32.mrf.mxu0  ;;  %v4319_v61 = vpop.f32.mrf.mxu1  ;;  %v4950_v57 = vrot.slane %v4940_v54, 1 }
 0x2cf   : > { %v4325_v1 = vadd.f32 %v4278_v60, %v3829_v16  ;;  %v4327_v2 = vadd.f32 %v4319_v61, %v3831_v15 }
 0x2d0   : > { %v4280_v4 = vpop.f32.mrf.mxu0  ;;  %v4321_v35 = vpop.f32.mrf.mxu1 }
 0x2d2   : > { %v4281_v37 = vpop.f32.mrf.mxu0  ;;  %v4322_v38 = vpop.f32.mrf.mxu1 }
 0x30c   : > { %v4772_v34 = vpop.f32.mrf.mxu0  ;;  %v4813_v36 = vpop.f32.mrf.mxu1 }
 0x30d   : > { %v4820_v46 = vadd.f32 %v4772_v34, %v4324_v59  ;;  %v4822_v32 = vadd.f32 %v4813_v36, %v4326_v30 }
 0x30e   : > { %v4774_v11 = vpop.f32.mrf.mxu0  ;;  %v4815_v27 = vpop.f32.mrf.mxu1 }
 0x30f   : > { %v4846_v28 = vadd.f32 %v4829_v45, %v4820_v46  ;;  %v4848_v29 = vadd.f32 %v4837_v22, %v4822_v32  ;;  %v4821_v62 = vadd.f32 %v4774_v11, %v4325_v1  ;;  %v4823_v21 = vadd.f32 %v4815_v27, %v4327_v2 }
 0x310   : > { %v4776_v58 = vpop.f32.mrf.mxu0  ;;  %v4817_v31 = vpop.f32.mrf.mxu1 }
 0x311   : > { %v4847_v39 = vadd.f32 %v4833_v23, %v4821_v62  ;;  %v4849_v40 = vadd.f32 %v4841_v24, %v4823_v21  ;;  %v4850_v7 = vmax.f32 %v4846_v28, 0.0  ;;  %v4852_v14 = vmax.f32 %v4848_v29, 0.0 }
 0x312   : > { %v4777_v42 = vpop.f32.mrf.mxu0  ;;  %v4818_v6 = vpop.f32.mrf.mxu1 }
 0x313   : > { %v4851_v47 = vmax.f32 %v4847_v39, 0.0  ;;  %v4853_v3 = vmax.f32 %v4849_v40, 0.0  ;;  %v4952_v39 = vmax.f32 %v4940_v54, %v4950_v57 }
 0x315   : > { %v4858_v50 = vcombine.low %v4850_v7, %v4851_v47  ;;  %v4859_v5 = vcombine.low %v4852_v14, %v4853_v3 }
 0x317   : > { %v4866_v33 = vrot.slane %v4858_v50, %v4865_v10  ;;  %v4873_v53 = vrot.slane %v4859_v5, %v4865_v10 }
 0x319   : > { %v4874_v8 = vcombine.low %v4866_v33, %v4873_v53  ;;  %v4875_v13 = vcombine.high %v4866_v33, %v4873_v53  ;;  %v6245_v16 = vcombine.low %v4873_v53, %v4873_v53  ;;  %v6246_v15 = vcombine.high %v4873_v53, %v4873_v53 }
 0x31b   : > { %v4883_v51 = vrot.slane %v4874_v8, %v4865_v10  ;;  %v4890_v55 = vrot.slane %v6245_v16, %v4865_v10  ;;  %v4900_v25 = vrot.slane %v4875_v13, %v4865_v10  ;;  %v4907_v56 = vrot.slane %v6246_v15, %v4865_v10 }
 0x31d   : > { %v4891_v0 = vcombine.high %v4883_v51, %v4883_v51  ;;  %v4892_v49 = vcombine.high %v4890_v55, %v4890_v55  ;;  %v4908_v59 = vcombine.high %v4900_v25, %v4900_v25  ;;  %v4909_v30 = vcombine.high %v4907_v56, %v4907_v56 }
 0x31e   : > { %v4912_v60 = vrot.slane %v4883_v51, 7  ;;  %v4914_v61 = vrot.slane %v4890_v55, 7  ;;  %v4916_v1 = vrot.slane %v4900_v25, 7  ;;  %v4918_v2 = vrot.slane %v4907_v56, 7 }
 0x31f   : > { %v4913_v4 = vrot.slane %v4891_v0, 7  ;;  %v4915_v35 = vrot.slane %v4892_v49, 7  ;;  %v4917_v37 = vrot.slane %v4908_v59, 7  ;;  %v4919_v38 = vrot.slane %v4909_v30, 7 }
 0x320   : > { %v4931_v12 = vsel %vm238_vm0, 0.0, %v4912_v60  ;;  %v4933_v17 = vsel %vm238_vm0, 0.0, %v4914_v61  ;;  %v4935_v48 = vsel %vm238_vm0, 0.0, %v4916_v1  ;;  %v4937_v18 = vsel %vm238_vm0, 0.0, %v4918_v2 }
 0x321   : > { %v4932_v19 = vsel %vm238_vm0, 0.0, %v4913_v4  ;;  %v4934_v20 = vsel %vm238_vm0, 0.0, %v4915_v35  ;;  %v4936_v44 = vsel %vm238_vm0, 0.0, %v4917_v37  ;;  %v4938_v45 = vsel %vm238_vm0, 0.0, %v4919_v38 }
 0x322   : > { %v4941_v22 = vsel %vm4939_vm5, %v4931_v12, 0.0  ;;  %v4942_v34 = vsel %vm4939_vm5, %v4932_v19, 0.0  ;;  %v4943_v36 = vsel %vm4939_vm5, %v4933_v17, 0.0  ;;  %v4944_v46 = vsel %vm4939_vm5, %v4934_v20, 0.0 }
 0x323   : > { %v4945_v32 = vsel %vm4939_vm5, %v4935_v48, 0.0  ;;  %v4946_v23 = vsel %vm4939_vm5, %v4936_v44, 0.0  ;;  %v4947_v24 = vsel %vm4939_vm5, %v4937_v18, 0.0  ;;  %v4948_v11 = vsel %vm4939_vm5, %v4938_v45, 0.0 }
 0x324   : > { %v4957_v26 = vrot.slane %v4941_v22, 6  ;;  %v4958_v27 = vrot.slane %v4942_v34, 6  ;;  %v4959_v28 = vrot.slane %v4943_v36, 6  ;;  %v4960_v29 = vrot.slane %v4944_v46, 6 }
 0x325   : > { %v4969_v62 = vrot.slane %v4941_v22, 1  ;;  %v4970_v21 = vrot.slane %v4942_v34, 1  ;;  %v4971_v58 = vrot.slane %v4943_v36, 1  ;;  %v4972_v31 = vrot.slane %v4944_v46, 1 }
 0x326   : > { %v4965_v40 = vmax.f32 %v4940_v54, %v4957_v26  ;;  %v4966_v41 = vmax.f32 %v4940_v54, %v4958_v27  ;;  %v4967_v9 = vmax.f32 %v4940_v54, %v4959_v28  ;;  %v4968_v10 = vmax.f32 %v4940_v54, %v4960_v29 }
 0x327   : > { %v4985_v42 = vrot.slane %v4945_v32, 1  ;;  %v4986_v6 = vrot.slane %v4946_v23, 1  ;;  %v4987_v7 = vrot.slane %v4947_v24, 1  ;;  %v4988_v14 = vrot.slane %v4948_v11, 1 }
 0x328   : > { %v4977_v47 = vmax.f32 %v4941_v22, %v4969_v62  ;;  %v4978_v3 = vmax.f32 %v4942_v34, %v4970_v21  ;;  %v4979_v50 = vmax.f32 %v4943_v36, %v4971_v58  ;;  %v4980_v5 = vmax.f32 %v4944_v46, %v4972_v31 }
 0x329   : > { %v4993_v52 = vmax.f32 %v4945_v32, %v4985_v42  ;;  %v4994_v33 = vmax.f32 %v4946_v23, %v4986_v6  ;;  %v4995_v53 = vmax.f32 %v4947_v24, %v4987_v7  ;;  %v4996_v8 = vmax.f32 %v4948_v11, %v4988_v14 }
 0x32a   : > { %v5001_v13 = vrot.slane %v4965_v40, 2  ;;  %v5002_v16 = vrot.slane %v4966_v41, 2  ;;  %v5003_v15 = vrot.slane %v4967_v9, 2  ;;  %v5004_v51 = vrot.slane %v4968_v10, 2 }
 0x32b   : > { %v5017_v55 = vrot.slane %v4993_v52, 7  ;;  %v5018_v25 = vrot.slane %v4994_v33, 7  ;;  %v5019_v56 = vrot.slane %v4995_v53, 7  ;;  %v5020_v54 = vrot.slane %v4996_v8, 7 }
 0x32c   : > { %v5009_v30 = vmax.f32 %v4952_v39, %v5001_v13  ;;  %v5010_v60 = vmax.f32 %v4952_v39, %v5002_v16  ;;  %v5011_v61 = vmax.f32 %v4952_v39, %v5003_v15  ;;  %v5012_v1 = vmax.f32 %v4952_v39, %v5004_v51 }
 0x32d   : > { %v5025_v57 = vmax.f32 %v4977_v47, %v5017_v55  ;;  %v5026_v0 = vmax.f32 %v4978_v3, %v5018_v25  ;;  %v5027_v49 = vmax.f32 %v4979_v50, %v5019_v56  ;;  %v5028_v59 = vmax.f32 %v4980_v5, %v5020_v54 }
 0x32e   : > { %v5045_v38 = vrot.slane %v4945_v32, 2  ;;  %v5046_v12 = vrot.slane %v4946_v23, 2  ;;  %v5047_v17 = vrot.slane %v4947_v24, 2  ;;  %v5048_v48 = vrot.slane %v4948_v11, 2 }
 0x32f   : > { %v5033_v2 = vrot.slane %v5025_v57, 1  ;;  %v5034_v4 = vrot.slane %v5026_v0, 1  ;;  %v5035_v35 = vrot.slane %v5027_v49, 1  ;;  %v5036_v37 = vrot.slane %v5028_v59, 1 }
 0x330   : > { %vm5088_vm0 = vcmp.lt.s32.totalorder %v261_v43, 512 }
 0x331   : > { %v5041_v18 = vmax.f32 %v5009_v30, %v5033_v2  ;;  %v5042_v19 = vmax.f32 %v5010_v60, %v5034_v4  ;;  %v5043_v20 = vmax.f32 %v5011_v61, %v5035_v35  ;;  %v5044_v44 = vmax.f32 %v5012_v1, %v5036_v37 }
 0x333   : > { %v5053_v45 = vmax.f32 %v5041_v18, %v5045_v38  ;;  %v5054_v22 = vmax.f32 %v5042_v19, %v5046_v12  ;;  %v5055_v34 = vmax.f32 %v5043_v20, %v5047_v17  ;;  %v5056_v36 = vmax.f32 %v5044_v44, %v5048_v48 }
 0x335   : > { %v5061_v46 = vcombine.low %v5053_v45, %v5054_v22  ;;  %v5062_v26 = vcombine.low %v5055_v34, %v5056_v36 }
 0x337   : > { %v5069_v27 = vrot.slane %v5061_v46, %v7339_v63  ;;  %v5076_v28 = vrot.slane %v5062_v26, %v7339_v63 }
 0x339   : > { %v5077_v29 = vcombine.low %v5069_v27, %v5076_v28 }
 0x33b   : > { %v5084_v32 = vrot.slane %v5077_v29, %v7339_v63 }
 0x33d   : > { %5090 = vst.msk [vmem:[%s168_s25] sm:$0xf] %vm5088_vm0, %v5084_v32 }
 0x33e PF: > { %s13_s12 = sadd.s32 1, %s7132_s12  }
 0x33f   : > { %p10_p4 = scmp.ge.s32.totalorder %s13_s12, 4  }
 0x341   :  { %12 = sbr.rel (!%p10_p4) target bundleno = 1 (0x1), region = 70 }

</bundles_post_ra>
